<compile_context>
chip_gen: v7x
topology: tpu7x:2x2x1
jax: 0.10.0
libtpu: 0.0.40
codegen_flags: <defaults>
</compile_context>

<pallas_src>
import functools
import random

import jax
import jax.numpy as jnp
from jax.experimental import pallas as pl
from jax.experimental.pallas import tpu as pltpu

EPS = 1e-5

# ---- small, deterministic model dims (consistent with SSQL_BYOL structure) --
B, C_IN, H, W = 2, 4, 8, 8
N_VIEWS = 2                 # x1 / x2
HWP = H * W
CK = C_IN * 9               # im2col patch width (3x3 conv, pad=1, stride=1)
PREV_DIM = 24               # backbone feature dim (encoder.fc input dim)
HIDDEN_DIM = 16             # config.SSL.SETTING.HIDDEN_DIM
DIM = 32                    # config.SSL.SETTING.DIM
OUT_PAD = 128               # lane-dense output width (zero-padded final layer)
MOMENTUM = 0.99             # config.SSL.SETTING.MOMENTUM
W_BIT_RANGE = (2, 9)        # config.QUANT.W.BIT_RANGE
A_BIT_RANGE = (2, 9)        # config.QUANT.A.BIT_RANGE

ENC_KEYS = ("conv_w", "conv_g", "conv_b",
            "fc_w1", "fc_g1", "fc_b1",
            "fc_w2", "fc_g2", "fc_b2",
            "fc_w3", "fc_bias3")


# ------------------------------ fused kernel ---------------------------------

def make_fused_kernel(w_bit, a_bit, m):
    """Single kernel: EMA update + float/quant/key encoder passes + predictor."""
    n_w = float(2 ** w_bit - 1)
    n_a = float(2 ** a_bit - 1)

    def mm(a, w):
        # bf16 MXU inputs, f32 accumulation (elementwise math stays f32).
        return jnp.dot(a.astype(jnp.bfloat16), w.astype(jnp.bfloat16),
                       preferred_element_type=jnp.float32)

    def linear(h3, w):
        v, r, k = h3.shape
        return mm(h3.reshape(v * r, k), w).reshape(v, r, w.shape[-1])

    def bn(y, gamma=None, beta=None):
        # Training-mode batch norm, stats over axis 1 (per leading group),
        # matching the separate per-view / per-branch PyTorch forward calls.
        mean = jnp.mean(y, axis=1, keepdims=True)
        var = jnp.mean(jnp.square(y - mean), axis=1, keepdims=True)
        out = (y - mean) * jax.lax.rsqrt(var + EPS)
        if gamma is not None:
            out = out * gamma.reshape(1, 1, -1) + beta.reshape(1, 1, -1)
        return out

    def _minmax_trailing(x, n_axes):
        # chained single-axis reductions over the trailing `n_axes` axes
        lo, hi = x, x
        for ax in range(x.ndim - 1, x.ndim - 1 - n_axes, -1):
            lo = jnp.min(lo, axis=ax, keepdims=True)
            hi = jnp.max(hi, axis=ax, keepdims=True)
        return lo, hi

    def _fq(x, lo, hi, n):
        scale = (hi - lo) / n
        scale = jnp.where(scale <= 0.0, jnp.float32(1.0), scale)
        inv = pl.reciprocal(scale, approx=True)      # EUP slot, off the VALU
        q = jnp.clip(jnp.round((x - lo) * inv), 0.0, n)
        return q * scale + lo

    def fq_weight(w):                                # per-tensor min/max
        lo, hi = _minmax_trailing(w, w.ndim)
        return _fq(w, lo, hi, n_w)

    def fq_act(x):                                   # per-view min/max
        lo, hi = _minmax_trailing(x, x.ndim - 1)
        return _fq(x, lo, hi, n_a)

    def kernel(*refs):
        patches_ref = refs[0]
        q_refs = refs[1:12]
        k_refs = refs[12:23]
        pr_refs = refs[23:28]
        p_out_ref = refs[28]
        zk_out_ref = refs[29]
        k_out_refs = refs[30:41]

        # --- momentum update of the key encoder (EMA), fused in-kernel -------
        q_p = [r[...] for r in q_refs]
        k_new = [kr[...] * m + qv * (1.0 - m) for kr, qv in zip(k_refs, q_p)]
        for o_ref, val in zip(k_out_refs, k_new):
            o_ref[...] = val

        (qcw, qcg, qcb, qw1, qg1, qb1, qw2, qg2, qb2, qw3, qb3) = q_p
        (kcw, kcg, kcb, kw1, kg1, kb1, kw2, kg2, kb2, kw3, kb3) = k_new
        pw1, pg1, pb1, pw2, pbias2 = [r[...] for r in pr_refs]

        patches = patches_ref[...]                   # [V, B*HW, CK]

        def encoder(pat, cw, cg, cb, w1, g1, b1, w2, g2, b2, w3, b3, quant):
            aq = fq_act if quant else (lambda t: t)
            wq = fq_weight if quant else (lambda t: t)
            # conv3x3 stem (im2col matmul) + BN2d + ReLU + global-avg-pool
            v, rows, ck = pat.shape
            y = mm(aq(pat).reshape(v * rows, ck), wq(cw))
            y = y.reshape(v, rows, PREV_DIM)
            y = jnp.maximum(bn(y, cg, cb), 0.0)
            feat = jnp.mean(y.reshape(v * B, HWP, PREV_DIM), axis=1)
            feat = feat.reshape(v, B, PREV_DIM)
            # projection head (encoder.fc)
            h = jnp.maximum(bn(linear(aq(feat), wq(w1)), g1, b1), 0.0)
            h = jnp.maximum(bn(linear(aq(h), wq(w2)), g2, b2), 0.0)
            z = linear(aq(h), wq(w3)) + b3.reshape(1, 1, -1)
            return bn(z)                             # BN1d(dim, affine=False)

        # 1) float pass of encoder_q  2) quantized pass  3) key-encoder pass
        z_f = encoder(patches, qcw, qcg, qcb, qw1, qg1, qb1,
                      qw2, qg2, qb2, qw3, qb3, quant=False)
        z_q = encoder(patches, qcw, qcg, qcb, qw1, qg1, qb1,
                      qw2, qg2, qb2, qw3, qb3, quant=True)
        z_k = encoder(patches, kcw, kcg, kcb, kw1, kg1, kb1,
                      kw2, kg2, kb2, kw3, kb3, quant=False)

        # --- predictor shared across the float & quant branches --------------
        # One [2V, B, .] matmul chain; BN stats over axis 1 reproduce the four
        # separate predictor(z) calls of the PyTorch reference.
        zc = jnp.concatenate([z_f, z_q], axis=0)     # [2V, B, DIM]
        ph = jnp.maximum(bn(linear(zc, pw1), pg1, pb1), 0.0)
        p = linear(ph, pw2) + pbias2.reshape(1, 1, -1)   # [2V, B, OUT_PAD]

        p_out_ref[...] = p.reshape(2 * N_VIEWS * B, OUT_PAD)  # one f32 vreg
        zk_out_ref[...] = z_k.reshape(N_VIEWS * B, DIM)

    return kernel


# --------------------------------- glue --------------------------------------

def _pad_lanes(w, width=OUT_PAD):
    """Zero-pad the last (lane) dim so the kernel output store is lane-dense."""
    return jnp.pad(w, ((0, 0), (0, width - w.shape[-1])))


def im2col_3x3(x_nchw):
    """[N, C, H, W] (pad=1, stride=1) -> patches [N, H*W, C*9]."""
    n, c, h, w = x_nchw.shape
    xp = jnp.pad(x_nchw, ((0, 0), (0, 0), (1, 1), (1, 1)))
    cols = [xp[:, :, di:di + h, dj:dj + w] for di in range(3) for dj in range(3)]
    patches = jnp.stack(cols, axis=2)                           # [N, C, 9, H, W]
    patches = patches.transpose(0, 3, 4, 1, 2).reshape(n, h * w, c * 9)
    return patches.astype(jnp.float32)


def init_encoder_params(key):
    ks = jax.random.split(key, 4)
    sc = 0.05
    return {
        "conv_w": sc * jax.random.normal(ks[0], (CK, PREV_DIM), jnp.float32),
        "conv_g": jnp.ones((1, PREV_DIM), jnp.float32),
        "conv_b": jnp.zeros((1, PREV_DIM), jnp.float32),
        "fc_w1": sc * jax.random.normal(ks[1], (PREV_DIM, HIDDEN_DIM), jnp.float32),
        "fc_g1": jnp.ones((1, HIDDEN_DIM), jnp.float32),
        "fc_b1": jnp.zeros((1, HIDDEN_DIM), jnp.float32),
        "fc_w2": sc * jax.random.normal(ks[2], (HIDDEN_DIM, HIDDEN_DIM), jnp.float32),
        "fc_g2": jnp.ones((1, HIDDEN_DIM), jnp.float32),
        "fc_b2": jnp.zeros((1, HIDDEN_DIM), jnp.float32),
        "fc_w3": sc * jax.random.normal(ks[3], (HIDDEN_DIM, DIM), jnp.float32),
        "fc_bias3": jnp.zeros((1, DIM), jnp.float32),
    }


def init_predictor_params(key):
    ks = jax.random.split(key, 2)
    sc = 0.05
    return {
        "pr_w1": sc * jax.random.normal(ks[0], (DIM, HIDDEN_DIM), jnp.float32),
        "pr_g1": jnp.ones((1, HIDDEN_DIM), jnp.float32),
        "pr_b1": jnp.zeros((1, HIDDEN_DIM), jnp.float32),
        "pr_w2": sc * jax.random.normal(ks[1], (HIDDEN_DIM, DIM), jnp.float32),
        "pr_bias2": jnp.zeros((1, DIM), jnp.float32),
    }


@functools.partial(jax.jit, static_argnames=("w_bit", "a_bit", "m"))
def ssql_byol_forward(x1, x2, enc_q, enc_k, pred, *, w_bit, a_bit, m):
    # im2col once (one small XLA fusion); the single fused kernel reuses the
    # resulting patches for all three branches with one HBM->VMEM DMA.
    patches = im2col_3x3(jnp.concatenate([x1, x2], axis=0))      # [2B, HW, CK]
    patches = patches.reshape(N_VIEWS, B * HWP, CK)              # [V, B*HW, CK]

    pred_args = (pred["pr_w1"], pred["pr_g1"], pred["pr_b1"],
                 _pad_lanes(pred["pr_w2"]), _pad_lanes(pred["pr_bias2"]))
    args = ((patches,)
            + tuple(enc_q[k] for k in ENC_KEYS)
            + tuple(enc_k[k] for k in ENC_KEYS)
            + pred_args)

    out_shape = (
        jax.ShapeDtypeStruct((2 * N_VIEWS * B, OUT_PAD), jnp.float32),  # p slab
        jax.ShapeDtypeStruct((N_VIEWS * B, DIM), jnp.float32),          # z_k
    ) + tuple(jax.ShapeDtypeStruct(enc_k[k].shape, enc_k[k].dtype)
              for k in ENC_KEYS)                                        # EMA'd k

    outs = pl.pallas_call(
        make_fused_kernel(w_bit, a_bit, m),
        out_shape=out_shape,
        in_specs=[pl.BlockSpec(memory_space=pltpu.MemorySpace.VMEM)] * len(args),
        out_specs=tuple(pl.BlockSpec(memory_space=pltpu.MemorySpace.VMEM)
                        for _ in out_shape),
    )(*args)

    p_slab, zk = outs[0], outs[1]
    enc_k_new = dict(zip(ENC_KEYS, outs[2:]))

    p = p_slab[:, :DIM]
    p1, p2 = p[:B], p[B:2 * B]
    p1_q, p2_q = p[2 * B:3 * B], p[3 * B:]
    z1_k, z2_k = zk[:B], zk[B:]
    return ([p1, p2, p1_q, p2_q], [z1_k, z2_k]), enc_k_new


if __name__ == "__main__":
    key = jax.random.PRNGKey(0)
    k_enc, k_pred, k_x1, k_x2 = jax.random.split(key, 4)

    enc_q_params = init_encoder_params(k_enc)
    enc_k_params = jax.tree_util.tree_map(jnp.copy, enc_q_params)   # deepcopy
    pred_params = init_predictor_params(k_pred)

    x1 = jax.random.normal(k_x1, (B, C_IN, H, W), jnp.float32)
    x2 = jax.random.normal(k_x2, (B, C_IN, H, W), jnp.float32)

    # random.choice(np.arange(lo, hi)) for W/A bits, deterministic seed
    random.seed(0)
    w_bit = int(random.choice(list(range(W_BIT_RANGE[0], W_BIT_RANGE[1]))))
    a_bit = int(random.choice(list(range(A_BIT_RANGE[0], A_BIT_RANGE[1]))))

    (preds, targets), enc_k_params = ssql_byol_forward(
        x1, x2, enc_q_params, enc_k_params, pred_params,
        w_bit=w_bit, a_bit=a_bit, m=MOMENTUM)

    jax.block_until_ready((preds, targets, enc_k_params))

    p1, p2, p1_q, p2_q = preds
    z1_k, z2_k = targets
    assert p1.shape == p2.shape == p1_q.shape == p2_q.shape == (B, DIM)
    assert z1_k.shape == z2_k.shape == (B, DIM)
    assert all(bool(jnp.all(jnp.isfinite(t))) for t in preds + targets)
    assert all(bool(jnp.all(jnp.isfinite(v))) for v in enc_k_params.values())
    print("KERNEL_OK")
</pallas_src>

<mosaic_0001>
module attributes {stable_mosaic.version = 11 : i64} {
  func.func @kernel(%arg0: memref<2x128x36xf32, #tpu.memory_space<vmem>>, %arg1: memref<36x24xf32, #tpu.memory_space<vmem>>, %arg2: memref<1x24xf32, #tpu.memory_space<vmem>>, %arg3: memref<1x24xf32, #tpu.memory_space<vmem>>, %arg4: memref<24x16xf32, #tpu.memory_space<vmem>>, %arg5: memref<1x16xf32, #tpu.memory_space<vmem>>, %arg6: memref<1x16xf32, #tpu.memory_space<vmem>>, %arg7: memref<16x16xf32, #tpu.memory_space<vmem>>, %arg8: memref<1x16xf32, #tpu.memory_space<vmem>>, %arg9: memref<1x16xf32, #tpu.memory_space<vmem>>, %arg10: memref<16x32xf32, #tpu.memory_space<vmem>>, %arg11: memref<1x32xf32, #tpu.memory_space<vmem>>, %arg12: memref<36x24xf32, #tpu.memory_space<vmem>>, %arg13: memref<1x24xf32, #tpu.memory_space<vmem>>, %arg14: memref<1x24xf32, #tpu.memory_space<vmem>>, %arg15: memref<24x16xf32, #tpu.memory_space<vmem>>, %arg16: memref<1x16xf32, #tpu.memory_space<vmem>>, %arg17: memref<1x16xf32, #tpu.memory_space<vmem>>, %arg18: memref<16x16xf32, #tpu.memory_space<vmem>>, %arg19: memref<1x16xf32, #tpu.memory_space<vmem>>, %arg20: memref<1x16xf32, #tpu.memory_space<vmem>>, %arg21: memref<16x32xf32, #tpu.memory_space<vmem>>, %arg22: memref<1x32xf32, #tpu.memory_space<vmem>>, %arg23: memref<32x16xf32, #tpu.memory_space<vmem>>, %arg24: memref<1x16xf32, #tpu.memory_space<vmem>>, %arg25: memref<1x16xf32, #tpu.memory_space<vmem>>, %arg26: memref<16x128xf32, #tpu.memory_space<vmem>>, %arg27: memref<1x128xf32, #tpu.memory_space<vmem>>, %arg28: memref<8x128xf32, #tpu.memory_space<vmem>>, %arg29: memref<4x32xf32, #tpu.memory_space<vmem>>, %arg30: memref<36x24xf32, #tpu.memory_space<vmem>>, %arg31: memref<1x24xf32, #tpu.memory_space<vmem>>, %arg32: memref<1x24xf32, #tpu.memory_space<vmem>>, %arg33: memref<24x16xf32, #tpu.memory_space<vmem>>, %arg34: memref<1x16xf32, #tpu.memory_space<vmem>>, %arg35: memref<1x16xf32, #tpu.memory_space<vmem>>, %arg36: memref<16x16xf32, #tpu.memory_space<vmem>>, %arg37: memref<1x16xf32, #tpu.memory_space<vmem>>, %arg38: memref<1x16xf32, #tpu.memory_space<vmem>>, %arg39: memref<16x32xf32, #tpu.memory_space<vmem>>, %arg40: memref<1x32xf32, #tpu.memory_space<vmem>>) attributes {dimension_semantics = [], scalar_prefetch = 0 : i64, scratch_operands = 0 : i64, tpu.core_type = #tpu.core_type<tc>} {
    %c0 = arith.constant 0 : index
    %c0_0 = arith.constant 0 : index
    %0 = vector.load %arg1[%c0, %c0_0] : memref<36x24xf32, #tpu.memory_space<vmem>>, vector<36x24xf32>
    %c0_1 = arith.constant 0 : index
    %c0_2 = arith.constant 0 : index
    %1 = vector.load %arg2[%c0_1, %c0_2] : memref<1x24xf32, #tpu.memory_space<vmem>>, vector<1x24xf32>
    %c0_3 = arith.constant 0 : index
    %c0_4 = arith.constant 0 : index
    %2 = vector.load %arg3[%c0_3, %c0_4] : memref<1x24xf32, #tpu.memory_space<vmem>>, vector<1x24xf32>
    %c0_5 = arith.constant 0 : index
    %c0_6 = arith.constant 0 : index
    %3 = vector.load %arg4[%c0_5, %c0_6] : memref<24x16xf32, #tpu.memory_space<vmem>>, vector<24x16xf32>
    %c0_7 = arith.constant 0 : index
    %c0_8 = arith.constant 0 : index
    %4 = vector.load %arg5[%c0_7, %c0_8] : memref<1x16xf32, #tpu.memory_space<vmem>>, vector<1x16xf32>
    %c0_9 = arith.constant 0 : index
    %c0_10 = arith.constant 0 : index
    %5 = vector.load %arg6[%c0_9, %c0_10] : memref<1x16xf32, #tpu.memory_space<vmem>>, vector<1x16xf32>
    %c0_11 = arith.constant 0 : index
    %c0_12 = arith.constant 0 : index
    %6 = vector.load %arg7[%c0_11, %c0_12] : memref<16x16xf32, #tpu.memory_space<vmem>>, vector<16x16xf32>
    %c0_13 = arith.constant 0 : index
    %c0_14 = arith.constant 0 : index
    %7 = vector.load %arg8[%c0_13, %c0_14] : memref<1x16xf32, #tpu.memory_space<vmem>>, vector<1x16xf32>
    %c0_15 = arith.constant 0 : index
    %c0_16 = arith.constant 0 : index
    %8 = vector.load %arg9[%c0_15, %c0_16] : memref<1x16xf32, #tpu.memory_space<vmem>>, vector<1x16xf32>
    %c0_17 = arith.constant 0 : index
    %c0_18 = arith.constant 0 : index
    %9 = vector.load %arg10[%c0_17, %c0_18] : memref<16x32xf32, #tpu.memory_space<vmem>>, vector<16x32xf32>
    %c0_19 = arith.constant 0 : index
    %c0_20 = arith.constant 0 : index
    %10 = vector.load %arg11[%c0_19, %c0_20] : memref<1x32xf32, #tpu.memory_space<vmem>>, vector<1x32xf32>
    %c0_21 = arith.constant 0 : index
    %c0_22 = arith.constant 0 : index
    %11 = vector.load %arg12[%c0_21, %c0_22] : memref<36x24xf32, #tpu.memory_space<vmem>>, vector<36x24xf32>
    %cst = arith.constant 9.900000e-01 : f32
    %12 = vector.broadcast %cst : f32 to vector<36x24xf32>
    %13 = arith.mulf %11, %12 : vector<36x24xf32>
    %cst_23 = arith.constant 0.00999999977 : f32
    %14 = vector.broadcast %cst_23 : f32 to vector<36x24xf32>
    %15 = arith.mulf %0, %14 : vector<36x24xf32>
    %16 = arith.addf %13, %15 : vector<36x24xf32>
    %c0_24 = arith.constant 0 : index
    %c0_25 = arith.constant 0 : index
    %17 = vector.load %arg13[%c0_24, %c0_25] : memref<1x24xf32, #tpu.memory_space<vmem>>, vector<1x24xf32>
    %cst_26 = arith.constant 9.900000e-01 : f32
    %18 = vector.broadcast %cst_26 : f32 to vector<1x24xf32>
    %19 = arith.mulf %17, %18 : vector<1x24xf32>
    %cst_27 = arith.constant 0.00999999977 : f32
    %20 = vector.broadcast %cst_27 : f32 to vector<1x24xf32>
    %21 = arith.mulf %1, %20 : vector<1x24xf32>
    %22 = arith.addf %19, %21 : vector<1x24xf32>
    %c0_28 = arith.constant 0 : index
    %c0_29 = arith.constant 0 : index
    %23 = vector.load %arg14[%c0_28, %c0_29] : memref<1x24xf32, #tpu.memory_space<vmem>>, vector<1x24xf32>
    %cst_30 = arith.constant 9.900000e-01 : f32
    %24 = vector.broadcast %cst_30 : f32 to vector<1x24xf32>
    %25 = arith.mulf %23, %24 : vector<1x24xf32>
    %cst_31 = arith.constant 0.00999999977 : f32
    %26 = vector.broadcast %cst_31 : f32 to vector<1x24xf32>
    %27 = arith.mulf %2, %26 : vector<1x24xf32>
    %28 = arith.addf %25, %27 : vector<1x24xf32>
    %c0_32 = arith.constant 0 : index
    %c0_33 = arith.constant 0 : index
    %29 = vector.load %arg15[%c0_32, %c0_33] : memref<24x16xf32, #tpu.memory_space<vmem>>, vector<24x16xf32>
    %cst_34 = arith.constant 9.900000e-01 : f32
    %30 = vector.broadcast %cst_34 : f32 to vector<24x16xf32>
    %31 = arith.mulf %29, %30 : vector<24x16xf32>
    %cst_35 = arith.constant 0.00999999977 : f32
    %32 = vector.broadcast %cst_35 : f32 to vector<24x16xf32>
    %33 = arith.mulf %3, %32 : vector<24x16xf32>
    %34 = arith.addf %31, %33 : vector<24x16xf32>
    %c0_36 = arith.constant 0 : index
    %c0_37 = arith.constant 0 : index
    %35 = vector.load %arg16[%c0_36, %c0_37] : memref<1x16xf32, #tpu.memory_space<vmem>>, vector<1x16xf32>
    %cst_38 = arith.constant 9.900000e-01 : f32
    %36 = vector.broadcast %cst_38 : f32 to vector<1x16xf32>
    %37 = arith.mulf %35, %36 : vector<1x16xf32>
    %cst_39 = arith.constant 0.00999999977 : f32
    %38 = vector.broadcast %cst_39 : f32 to vector<1x16xf32>
    %39 = arith.mulf %4, %38 : vector<1x16xf32>
    %40 = arith.addf %37, %39 : vector<1x16xf32>
    %c0_40 = arith.constant 0 : index
    %c0_41 = arith.constant 0 : index
    %41 = vector.load %arg17[%c0_40, %c0_41] : memref<1x16xf32, #tpu.memory_space<vmem>>, vector<1x16xf32>
    %cst_42 = arith.constant 9.900000e-01 : f32
    %42 = vector.broadcast %cst_42 : f32 to vector<1x16xf32>
    %43 = arith.mulf %41, %42 : vector<1x16xf32>
    %cst_43 = arith.constant 0.00999999977 : f32
    %44 = vector.broadcast %cst_43 : f32 to vector<1x16xf32>
    %45 = arith.mulf %5, %44 : vector<1x16xf32>
    %46 = arith.addf %43, %45 : vector<1x16xf32>
    %c0_44 = arith.constant 0 : index
    %c0_45 = arith.constant 0 : index
    %47 = vector.load %arg18[%c0_44, %c0_45] : memref<16x16xf32, #tpu.memory_space<vmem>>, vector<16x16xf32>
    %cst_46 = arith.constant 9.900000e-01 : f32
    %48 = vector.broadcast %cst_46 : f32 to vector<16x16xf32>
    %49 = arith.mulf %47, %48 : vector<16x16xf32>
    %cst_47 = arith.constant 0.00999999977 : f32
    %50 = vector.broadcast %cst_47 : f32 to vector<16x16xf32>
    %51 = arith.mulf %6, %50 : vector<16x16xf32>
    %52 = arith.addf %49, %51 : vector<16x16xf32>
    %c0_48 = arith.constant 0 : index
    %c0_49 = arith.constant 0 : index
    %53 = vector.load %arg19[%c0_48, %c0_49] : memref<1x16xf32, #tpu.memory_space<vmem>>, vector<1x16xf32>
    %cst_50 = arith.constant 9.900000e-01 : f32
    %54 = vector.broadcast %cst_50 : f32 to vector<1x16xf32>
    %55 = arith.mulf %53, %54 : vector<1x16xf32>
    %cst_51 = arith.constant 0.00999999977 : f32
    %56 = vector.broadcast %cst_51 : f32 to vector<1x16xf32>
    %57 = arith.mulf %7, %56 : vector<1x16xf32>
    %58 = arith.addf %55, %57 : vector<1x16xf32>
    %c0_52 = arith.constant 0 : index
    %c0_53 = arith.constant 0 : index
    %59 = vector.load %arg20[%c0_52, %c0_53] : memref<1x16xf32, #tpu.memory_space<vmem>>, vector<1x16xf32>
    %cst_54 = arith.constant 9.900000e-01 : f32
    %60 = vector.broadcast %cst_54 : f32 to vector<1x16xf32>
    %61 = arith.mulf %59, %60 : vector<1x16xf32>
    %cst_55 = arith.constant 0.00999999977 : f32
    %62 = vector.broadcast %cst_55 : f32 to vector<1x16xf32>
    %63 = arith.mulf %8, %62 : vector<1x16xf32>
    %64 = arith.addf %61, %63 : vector<1x16xf32>
    %c0_56 = arith.constant 0 : index
    %c0_57 = arith.constant 0 : index
    %65 = vector.load %arg21[%c0_56, %c0_57] : memref<16x32xf32, #tpu.memory_space<vmem>>, vector<16x32xf32>
    %cst_58 = arith.constant 9.900000e-01 : f32
    %66 = vector.broadcast %cst_58 : f32 to vector<16x32xf32>
    %67 = arith.mulf %65, %66 : vector<16x32xf32>
    %cst_59 = arith.constant 0.00999999977 : f32
    %68 = vector.broadcast %cst_59 : f32 to vector<16x32xf32>
    %69 = arith.mulf %9, %68 : vector<16x32xf32>
    %70 = arith.addf %67, %69 : vector<16x32xf32>
    %c0_60 = arith.constant 0 : index
    %c0_61 = arith.constant 0 : index
    %71 = vector.load %arg22[%c0_60, %c0_61] : memref<1x32xf32, #tpu.memory_space<vmem>>, vector<1x32xf32>
    %cst_62 = arith.constant 9.900000e-01 : f32
    %72 = vector.broadcast %cst_62 : f32 to vector<1x32xf32>
    %73 = arith.mulf %71, %72 : vector<1x32xf32>
    %cst_63 = arith.constant 0.00999999977 : f32
    %74 = vector.broadcast %cst_63 : f32 to vector<1x32xf32>
    %75 = arith.mulf %10, %74 : vector<1x32xf32>
    %76 = arith.addf %73, %75 : vector<1x32xf32>
    %c0_64 = arith.constant 0 : index
    %c0_65 = arith.constant 0 : index
    %77 = vector.load %arg30[%c0_64, %c0_65] : memref<36x24xf32, #tpu.memory_space<vmem>>, vector<36x24xf32>
    tpu.vector_store %arg30[%c0_64, %c0_65], %16 {strides = array<i32>} : memref<36x24xf32, #tpu.memory_space<vmem>>, vector<36x24xf32>,
    %c0_66 = arith.constant 0 : index
    %c0_67 = arith.constant 0 : index
    %78 = vector.load %arg31[%c0_66, %c0_67] : memref<1x24xf32, #tpu.memory_space<vmem>>, vector<1x24xf32>
    tpu.vector_store %arg31[%c0_66, %c0_67], %22 {strides = array<i32>} : memref<1x24xf32, #tpu.memory_space<vmem>>, vector<1x24xf32>,
    %c0_68 = arith.constant 0 : index
    %c0_69 = arith.constant 0 : index
    %79 = vector.load %arg32[%c0_68, %c0_69] : memref<1x24xf32, #tpu.memory_space<vmem>>, vector<1x24xf32>
    tpu.vector_store %arg32[%c0_68, %c0_69], %28 {strides = array<i32>} : memref<1x24xf32, #tpu.memory_space<vmem>>, vector<1x24xf32>,
    %c0_70 = arith.constant 0 : index
    %c0_71 = arith.constant 0 : index
    %80 = vector.load %arg33[%c0_70, %c0_71] : memref<24x16xf32, #tpu.memory_space<vmem>>, vector<24x16xf32>
    tpu.vector_store %arg33[%c0_70, %c0_71], %34 {strides = array<i32>} : memref<24x16xf32, #tpu.memory_space<vmem>>, vector<24x16xf32>,
    %c0_72 = arith.constant 0 : index
    %c0_73 = arith.constant 0 : index
    %81 = vector.load %arg34[%c0_72, %c0_73] : memref<1x16xf32, #tpu.memory_space<vmem>>, vector<1x16xf32>
    tpu.vector_store %arg34[%c0_72, %c0_73], %40 {strides = array<i32>} : memref<1x16xf32, #tpu.memory_space<vmem>>, vector<1x16xf32>,
    %c0_74 = arith.constant 0 : index
    %c0_75 = arith.constant 0 : index
    %82 = vector.load %arg35[%c0_74, %c0_75] : memref<1x16xf32, #tpu.memory_space<vmem>>, vector<1x16xf32>
    tpu.vector_store %arg35[%c0_74, %c0_75], %46 {strides = array<i32>} : memref<1x16xf32, #tpu.memory_space<vmem>>, vector<1x16xf32>,
    %c0_76 = arith.constant 0 : index
    %c0_77 = arith.constant 0 : index
    %83 = vector.load %arg36[%c0_76, %c0_77] : memref<16x16xf32, #tpu.memory_space<vmem>>, vector<16x16xf32>
    tpu.vector_store %arg36[%c0_76, %c0_77], %52 {strides = array<i32>} : memref<16x16xf32, #tpu.memory_space<vmem>>, vector<16x16xf32>,
    %c0_78 = arith.constant 0 : index
    %c0_79 = arith.constant 0 : index
    %84 = vector.load %arg37[%c0_78, %c0_79] : memref<1x16xf32, #tpu.memory_space<vmem>>, vector<1x16xf32>
    tpu.vector_store %arg37[%c0_78, %c0_79], %58 {strides = array<i32>} : memref<1x16xf32, #tpu.memory_space<vmem>>, vector<1x16xf32>,
    %c0_80 = arith.constant 0 : index
    %c0_81 = arith.constant 0 : index
    %85 = vector.load %arg38[%c0_80, %c0_81] : memref<1x16xf32, #tpu.memory_space<vmem>>, vector<1x16xf32>
    tpu.vector_store %arg38[%c0_80, %c0_81], %64 {strides = array<i32>} : memref<1x16xf32, #tpu.memory_space<vmem>>, vector<1x16xf32>,
    %c0_82 = arith.constant 0 : index
    %c0_83 = arith.constant 0 : index
    %86 = vector.load %arg39[%c0_82, %c0_83] : memref<16x32xf32, #tpu.memory_space<vmem>>, vector<16x32xf32>
    tpu.vector_store %arg39[%c0_82, %c0_83], %70 {strides = array<i32>} : memref<16x32xf32, #tpu.memory_space<vmem>>, vector<16x32xf32>,
    %c0_84 = arith.constant 0 : index
    %c0_85 = arith.constant 0 : index
    %87 = vector.load %arg40[%c0_84, %c0_85] : memref<1x32xf32, #tpu.memory_space<vmem>>, vector<1x32xf32>
    tpu.vector_store %arg40[%c0_84, %c0_85], %76 {strides = array<i32>} : memref<1x32xf32, #tpu.memory_space<vmem>>, vector<1x32xf32>,
    %c0_86 = arith.constant 0 : index
    %c0_87 = arith.constant 0 : index
    %88 = vector.load %arg23[%c0_86, %c0_87] : memref<32x16xf32, #tpu.memory_space<vmem>>, vector<32x16xf32>
    %c0_88 = arith.constant 0 : index
    %c0_89 = arith.constant 0 : index
    %89 = vector.load %arg24[%c0_88, %c0_89] : memref<1x16xf32, #tpu.memory_space<vmem>>, vector<1x16xf32>
    %c0_90 = arith.constant 0 : index
    %c0_91 = arith.constant 0 : index
    %90 = vector.load %arg25[%c0_90, %c0_91] : memref<1x16xf32, #tpu.memory_space<vmem>>, vector<1x16xf32>
    %c0_92 = arith.constant 0 : index
    %c0_93 = arith.constant 0 : index
    %91 = vector.load %arg26[%c0_92, %c0_93] : memref<16x128xf32, #tpu.memory_space<vmem>>, vector<16x128xf32>
    %c0_94 = arith.constant 0 : index
    %c0_95 = arith.constant 0 : index
    %92 = vector.load %arg27[%c0_94, %c0_95] : memref<1x128xf32, #tpu.memory_space<vmem>>, vector<1x128xf32>
    %c0_96 = arith.constant 0 : index
    %c0_97 = arith.constant 0 : index
    %c0_98 = arith.constant 0 : index
    %93 = vector.load %arg0[%c0_96, %c0_97, %c0_98] : memref<2x128x36xf32, #tpu.memory_space<vmem>>, vector<2x128x36xf32>
    %94 = vector.shape_cast %93 : vector<2x128x36xf32> to vector<256x36xf32>
    %95 = arith.truncf %94 : vector<256x36xf32> to vector<256x36xbf16>
    %96 = arith.truncf %0 : vector<36x24xf32> to vector<36x24xbf16>
    %cst_99 = arith.constant dense<0.000000e+00> : vector<256x24xf32>
    %97 = tpu.matmul %95, %96, %cst_99 {dimension_numbers = #tpu.dot_dimension_numbers<[1], [0], [0], [1], [0, 0, 1, 1], [], []>} : vector<256x36xbf16>, vector<36x24xbf16>, vector<256x24xf32> -> vector<256x24xf32>
    %98 = vector.shape_cast %97 : vector<256x24xf32> to vector<2x128x24xf32>
    %cst_100 = arith.constant dense<0.000000e+00> : vector<2x24xf32>
    %99 = vector.multi_reduction <add>, %98, %cst_100 [1] : vector<2x128x24xf32> to vector<2x24xf32>
    %100 = vector.shape_cast %99 : vector<2x24xf32> to vector<2x1x24xf32>
    %cst_101 = arith.constant 1.280000e+02 : f32
    %101 = vector.broadcast %cst_101 : f32 to vector<2x1x24xf32>
    %102 = arith.divf %100, %101 : vector<2x1x24xf32>
    %103 = vector.broadcast %102 : vector<2x1x24xf32> to vector<2x128x24xf32>
    %104 = arith.subf %98, %103 : vector<2x128x24xf32>
    %105 = arith.mulf %104, %104 : vector<2x128x24xf32>
    %cst_102 = arith.constant dense<0.000000e+00> : vector<2x24xf32>
    %106 = vector.multi_reduction <add>, %105, %cst_102 [1] : vector<2x128x24xf32> to vector<2x24xf32>
    %107 = vector.shape_cast %106 : vector<2x24xf32> to vector<2x1x24xf32>
    %cst_103 = arith.constant 1.280000e+02 : f32
    %108 = vector.broadcast %cst_103 : f32 to vector<2x1x24xf32>
    %109 = arith.divf %107, %108 : vector<2x1x24xf32>
    %110 = vector.broadcast %102 : vector<2x1x24xf32> to vector<2x128x24xf32>
    %111 = arith.subf %98, %110 : vector<2x128x24xf32>
    %cst_104 = arith.constant 9.99999974E-6 : f32
    %112 = vector.broadcast %cst_104 : f32 to vector<2x1x24xf32>
    %113 = arith.addf %109, %112 : vector<2x1x24xf32>
    %114 = math.rsqrt %113 : vector<2x1x24xf32>
    %115 = vector.broadcast %114 : vector<2x1x24xf32> to vector<2x128x24xf32>
    %116 = arith.mulf %111, %115 : vector<2x128x24xf32>
    %117 = vector.shape_cast %1 : vector<1x24xf32> to vector<1x1x24xf32>
    %118 = vector.broadcast %117 : vector<1x1x24xf32> to vector<2x128x24xf32>
    %119 = arith.mulf %116, %118 : vector<2x128x24xf32>
    %120 = vector.shape_cast %2 : vector<1x24xf32> to vector<1x1x24xf32>
    %121 = vector.broadcast %120 : vector<1x1x24xf32> to vector<2x128x24xf32>
    %122 = arith.addf %119, %121 : vector<2x128x24xf32>
    %cst_105 = arith.constant 0.000000e+00 : f32
    %123 = vector.broadcast %cst_105 : f32 to vector<2x128x24xf32>
    %124 = arith.maximumf %122, %123 : vector<2x128x24xf32>
    %125 = vector.shape_cast %124 : vector<2x128x24xf32> to vector<4x64x24xf32>
    %cst_106 = arith.constant dense<0.000000e+00> : vector<4x24xf32>
    %126 = vector.multi_reduction <add>, %125, %cst_106 [1] : vector<4x64x24xf32> to vector<4x24xf32>
    %cst_107 = arith.constant 6.400000e+01 : f32
    %127 = vector.broadcast %cst_107 : f32 to vector<4x24xf32>
    %128 = arith.divf %126, %127 : vector<4x24xf32>
    %129 = vector.shape_cast %128 : vector<4x24xf32> to vector<2x2x24xf32>
    %130 = vector.shape_cast %129 : vector<2x2x24xf32> to vector<4x24xf32>
    %131 = arith.truncf %130 : vector<4x24xf32> to vector<4x24xbf16>
    %132 = arith.truncf %3 : vector<24x16xf32> to vector<24x16xbf16>
    %cst_108 = arith.constant dense<0.000000e+00> : vector<4x16xf32>
    %133 = tpu.matmul %131, %132, %cst_108 {dimension_numbers = #tpu.dot_dimension_numbers<[1], [0], [0], [1], [0, 0, 1, 1], [], []>} : vector<4x24xbf16>, vector<24x16xbf16>, vector<4x16xf32> -> vector<4x16xf32>
    %134 = vector.shape_cast %133 : vector<4x16xf32> to vector<2x2x16xf32>
    %cst_109 = arith.constant dense<0.000000e+00> : vector<2x16xf32>
    %135 = vector.multi_reduction <add>, %134, %cst_109 [1] : vector<2x2x16xf32> to vector<2x16xf32>
    %136 = vector.shape_cast %135 : vector<2x16xf32> to vector<2x1x16xf32>
    %cst_110 = arith.constant 2.000000e+00 : f32
    %137 = vector.broadcast %cst_110 : f32 to vector<2x1x16xf32>
    %138 = arith.divf %136, %137 : vector<2x1x16xf32>
    %139 = vector.broadcast %138 : vector<2x1x16xf32> to vector<2x2x16xf32>
    %140 = arith.subf %134, %139 : vector<2x2x16xf32>
    %141 = arith.mulf %140, %140 : vector<2x2x16xf32>
    %cst_111 = arith.constant dense<0.000000e+00> : vector<2x16xf32>
    %142 = vector.multi_reduction <add>, %141, %cst_111 [1] : vector<2x2x16xf32> to vector<2x16xf32>
    %143 = vector.shape_cast %142 : vector<2x16xf32> to vector<2x1x16xf32>
    %cst_112 = arith.constant 2.000000e+00 : f32
    %144 = vector.broadcast %cst_112 : f32 to vector<2x1x16xf32>
    %145 = arith.divf %143, %144 : vector<2x1x16xf32>
    %146 = vector.broadcast %138 : vector<2x1x16xf32> to vector<2x2x16xf32>
    %147 = arith.subf %134, %146 : vector<2x2x16xf32>
    %cst_113 = arith.constant 9.99999974E-6 : f32
    %148 = vector.broadcast %cst_113 : f32 to vector<2x1x16xf32>
    %149 = arith.addf %145, %148 : vector<2x1x16xf32>
    %150 = math.rsqrt %149 : vector<2x1x16xf32>
    %151 = vector.broadcast %150 : vector<2x1x16xf32> to vector<2x2x16xf32>
    %152 = arith.mulf %147, %151 : vector<2x2x16xf32>
    %153 = vector.shape_cast %4 : vector<1x16xf32> to vector<1x1x16xf32>
    %154 = vector.broadcast %153 : vector<1x1x16xf32> to vector<2x2x16xf32>
    %155 = arith.mulf %152, %154 : vector<2x2x16xf32>
    %156 = vector.shape_cast %5 : vector<1x16xf32> to vector<1x1x16xf32>
    %157 = vector.broadcast %156 : vector<1x1x16xf32> to vector<2x2x16xf32>
    %158 = arith.addf %155, %157 : vector<2x2x16xf32>
    %cst_114 = arith.constant 0.000000e+00 : f32
    %159 = vector.broadcast %cst_114 : f32 to vector<2x2x16xf32>
    %160 = arith.maximumf %158, %159 : vector<2x2x16xf32>
    %161 = vector.shape_cast %160 : vector<2x2x16xf32> to vector<4x16xf32>
    %162 = arith.truncf %161 : vector<4x16xf32> to vector<4x16xbf16>
    %163 = arith.truncf %6 : vector<16x16xf32> to vector<16x16xbf16>
    %cst_115 = arith.constant dense<0.000000e+00> : vector<4x16xf32>
    %164 = tpu.matmul %162, %163, %cst_115 {dimension_numbers = #tpu.dot_dimension_numbers<[1], [0], [0], [1], [0, 0, 1, 1], [], []>} : vector<4x16xbf16>, vector<16x16xbf16>, vector<4x16xf32> -> vector<4x16xf32>
    %165 = vector.shape_cast %164 : vector<4x16xf32> to vector<2x2x16xf32>
    %cst_116 = arith.constant dense<0.000000e+00> : vector<2x16xf32>
    %166 = vector.multi_reduction <add>, %165, %cst_116 [1] : vector<2x2x16xf32> to vector<2x16xf32>
    %167 = vector.shape_cast %166 : vector<2x16xf32> to vector<2x1x16xf32>
    %cst_117 = arith.constant 2.000000e+00 : f32
    %168 = vector.broadcast %cst_117 : f32 to vector<2x1x16xf32>
    %169 = arith.divf %167, %168 : vector<2x1x16xf32>
    %170 = vector.broadcast %169 : vector<2x1x16xf32> to vector<2x2x16xf32>
    %171 = arith.subf %165, %170 : vector<2x2x16xf32>
    %172 = arith.mulf %171, %171 : vector<2x2x16xf32>
    %cst_118 = arith.constant dense<0.000000e+00> : vector<2x16xf32>
    %173 = vector.multi_reduction <add>, %172, %cst_118 [1] : vector<2x2x16xf32> to vector<2x16xf32>
    %174 = vector.shape_cast %173 : vector<2x16xf32> to vector<2x1x16xf32>
    %cst_119 = arith.constant 2.000000e+00 : f32
    %175 = vector.broadcast %cst_119 : f32 to vector<2x1x16xf32>
    %176 = arith.divf %174, %175 : vector<2x1x16xf32>
    %177 = vector.broadcast %169 : vector<2x1x16xf32> to vector<2x2x16xf32>
    %178 = arith.subf %165, %177 : vector<2x2x16xf32>
    %cst_120 = arith.constant 9.99999974E-6 : f32
    %179 = vector.broadcast %cst_120 : f32 to vector<2x1x16xf32>
    %180 = arith.addf %176, %179 : vector<2x1x16xf32>
    %181 = math.rsqrt %180 : vector<2x1x16xf32>
    %182 = vector.broadcast %181 : vector<2x1x16xf32> to vector<2x2x16xf32>
    %183 = arith.mulf %178, %182 : vector<2x2x16xf32>
    %184 = vector.shape_cast %7 : vector<1x16xf32> to vector<1x1x16xf32>
    %185 = vector.broadcast %184 : vector<1x1x16xf32> to vector<2x2x16xf32>
    %186 = arith.mulf %183, %185 : vector<2x2x16xf32>
    %187 = vector.shape_cast %8 : vector<1x16xf32> to vector<1x1x16xf32>
    %188 = vector.broadcast %187 : vector<1x1x16xf32> to vector<2x2x16xf32>
    %189 = arith.addf %186, %188 : vector<2x2x16xf32>
    %cst_121 = arith.constant 0.000000e+00 : f32
    %190 = vector.broadcast %cst_121 : f32 to vector<2x2x16xf32>
    %191 = arith.maximumf %189, %190 : vector<2x2x16xf32>
    %192 = vector.shape_cast %191 : vector<2x2x16xf32> to vector<4x16xf32>
    %193 = arith.truncf %192 : vector<4x16xf32> to vector<4x16xbf16>
    %194 = arith.truncf %9 : vector<16x32xf32> to vector<16x32xbf16>
    %cst_122 = arith.constant dense<0.000000e+00> : vector<4x32xf32>
    %195 = tpu.matmul %193, %194, %cst_122 {dimension_numbers = #tpu.dot_dimension_numbers<[1], [0], [0], [1], [0, 0, 1, 1], [], []>} : vector<4x16xbf16>, vector<16x32xbf16>, vector<4x32xf32> -> vector<4x32xf32>
    %196 = vector.shape_cast %195 : vector<4x32xf32> to vector<2x2x32xf32>
    %197 = vector.shape_cast %10 : vector<1x32xf32> to vector<1x1x32xf32>
    %198 = vector.broadcast %197 : vector<1x1x32xf32> to vector<2x2x32xf32>
    %199 = arith.addf %196, %198 : vector<2x2x32xf32>
    %cst_123 = arith.constant dense<0.000000e+00> : vector<2x32xf32>
    %200 = vector.multi_reduction <add>, %199, %cst_123 [1] : vector<2x2x32xf32> to vector<2x32xf32>
    %201 = vector.shape_cast %200 : vector<2x32xf32> to vector<2x1x32xf32>
    %cst_124 = arith.constant 2.000000e+00 : f32
    %202 = vector.broadcast %cst_124 : f32 to vector<2x1x32xf32>
    %203 = arith.divf %201, %202 : vector<2x1x32xf32>
    %204 = vector.broadcast %203 : vector<2x1x32xf32> to vector<2x2x32xf32>
    %205 = arith.subf %199, %204 : vector<2x2x32xf32>
    %206 = arith.mulf %205, %205 : vector<2x2x32xf32>
    %cst_125 = arith.constant dense<0.000000e+00> : vector<2x32xf32>
    %207 = vector.multi_reduction <add>, %206, %cst_125 [1] : vector<2x2x32xf32> to vector<2x32xf32>
    %208 = vector.shape_cast %207 : vector<2x32xf32> to vector<2x1x32xf32>
    %cst_126 = arith.constant 2.000000e+00 : f32
    %209 = vector.broadcast %cst_126 : f32 to vector<2x1x32xf32>
    %210 = arith.divf %208, %209 : vector<2x1x32xf32>
    %211 = vector.broadcast %203 : vector<2x1x32xf32> to vector<2x2x32xf32>
    %212 = arith.subf %199, %211 : vector<2x2x32xf32>
    %cst_127 = arith.constant 9.99999974E-6 : f32
    %213 = vector.broadcast %cst_127 : f32 to vector<2x1x32xf32>
    %214 = arith.addf %210, %213 : vector<2x1x32xf32>
    %215 = math.rsqrt %214 : vector<2x1x32xf32>
    %216 = vector.broadcast %215 : vector<2x1x32xf32> to vector<2x2x32xf32>
    %217 = arith.mulf %212, %216 : vector<2x2x32xf32>
    %cst_128 = arith.constant dense<0x7F800000> : vector<2x128xf32>
    %218 = vector.multi_reduction <minimumf>, %93, %cst_128 [2] : vector<2x128x36xf32> to vector<2x128xf32>
    %219 = vector.shape_cast %218 : vector<2x128xf32> to vector<2x128x1xf32>
    %cst_129 = arith.constant dense<0xFF800000> : vector<2x128xf32>
    %220 = vector.multi_reduction <maximumf>, %93, %cst_129 [2] : vector<2x128x36xf32> to vector<2x128xf32>
    %221 = vector.shape_cast %220 : vector<2x128xf32> to vector<2x128x1xf32>
    %cst_130 = arith.constant dense<0x7F800000> : vector<2x1xf32>
    %222 = vector.multi_reduction <minimumf>, %219, %cst_130 [1] : vector<2x128x1xf32> to vector<2x1xf32>
    %223 = vector.shape_cast %222 : vector<2x1xf32> to vector<2x1x1xf32>
    %cst_131 = arith.constant dense<0xFF800000> : vector<2x1xf32>
    %224 = vector.multi_reduction <maximumf>, %221, %cst_131 [1] : vector<2x128x1xf32> to vector<2x1xf32>
    %225 = vector.shape_cast %224 : vector<2x1xf32> to vector<2x1x1xf32>
    %226 = arith.subf %225, %223 : vector<2x1x1xf32>
    %cst_132 = arith.constant 3.100000e+01 : f32
    %227 = vector.broadcast %cst_132 : f32 to vector<2x1x1xf32>
    %228 = arith.divf %226, %227 : vector<2x1x1xf32>
    %cst_133 = arith.constant 0.000000e+00 : f32
    %229 = vector.broadcast %cst_133 : f32 to vector<2x1x1xf32>
    %230 = arith.cmpf ole, %228, %229 : vector<2x1x1xf32>
    %cst_134 = arith.constant 1.000000e+00 : f32
    %231 = vector.broadcast %cst_134 : f32 to vector<2x1x1xf32>
    %232 = arith.select %230, %231, %228 : vector<2x1x1xi1>, vector<2x1x1xf32>
    %233 = tpu.reciprocal %232 {approx = true} : vector<2x1x1xf32> -> vector<2x1x1xf32>
    %234 = vector.broadcast %223 : vector<2x1x1xf32> to vector<2x128x36xf32>
    %235 = arith.subf %93, %234 : vector<2x128x36xf32>
    %236 = vector.broadcast %233 : vector<2x1x1xf32> to vector<2x128x36xf32>
    %237 = arith.mulf %235, %236 : vector<2x128x36xf32>
    %238 = math.roundeven %237 : vector<2x128x36xf32>
    %cst_135 = arith.constant 0.000000e+00 : f32
    %cst_136 = arith.constant 3.100000e+01 : f32
    %239 = vector.broadcast %cst_135 : f32 to vector<2x128x36xf32>
    %240 = arith.maximumf %239, %238 : vector<2x128x36xf32>
    %241 = vector.broadcast %cst_136 : f32 to vector<2x128x36xf32>
    %242 = arith.minimumf %241, %240 : vector<2x128x36xf32>
    %243 = vector.broadcast %232 : vector<2x1x1xf32> to vector<2x128x36xf32>
    %244 = arith.mulf %242, %243 : vector<2x128x36xf32>
    %245 = vector.broadcast %223 : vector<2x1x1xf32> to vector<2x128x36xf32>
    %246 = arith.addf %244, %245 : vector<2x128x36xf32>
    %247 = vector.shape_cast %246 : vector<2x128x36xf32> to vector<256x36xf32>
    %cst_137 = arith.constant dense<0x7F800000> : vector<36xf32>
    %248 = vector.multi_reduction <minimumf>, %0, %cst_137 [1] : vector<36x24xf32> to vector<36xf32>
    %249 = vector.shape_cast %248 : vector<36xf32> to vector<36x1xf32>
    %cst_138 = arith.constant dense<0xFF800000> : vector<36xf32>
    %250 = vector.multi_reduction <maximumf>, %0, %cst_138 [1] : vector<36x24xf32> to vector<36xf32>
    %251 = vector.shape_cast %250 : vector<36xf32> to vector<36x1xf32>
    %cst_139 = arith.constant dense<0x7F800000> : vector<1xf32>
    %252 = vector.multi_reduction <minimumf>, %249, %cst_139 [0] : vector<36x1xf32> to vector<1xf32>
    %253 = vector.shape_cast %252 : vector<1xf32> to vector<1x1xf32>
    %cst_140 = arith.constant dense<0xFF800000> : vector<1xf32>
    %254 = vector.multi_reduction <maximumf>, %251, %cst_140 [0] : vector<36x1xf32> to vector<1xf32>
    %255 = vector.shape_cast %254 : vector<1xf32> to vector<1x1xf32>
    %256 = arith.subf %255, %253 : vector<1x1xf32>
    %cst_141 = arith.constant 2.550000e+02 : f32
    %257 = vector.broadcast %cst_141 : f32 to vector<1x1xf32>
    %258 = arith.divf %256, %257 : vector<1x1xf32>
    %cst_142 = arith.constant 0.000000e+00 : f32
    %259 = vector.broadcast %cst_142 : f32 to vector<1x1xf32>
    %260 = arith.cmpf ole, %258, %259 : vector<1x1xf32>
    %cst_143 = arith.constant 1.000000e+00 : f32
    %261 = vector.broadcast %cst_143 : f32 to vector<1x1xf32>
    %262 = arith.select %260, %261, %258 : vector<1x1xi1>, vector<1x1xf32>
    %263 = tpu.reciprocal %262 {approx = true} : vector<1x1xf32> -> vector<1x1xf32>
    %264 = vector.broadcast %253 : vector<1x1xf32> to vector<36x24xf32>
    %265 = arith.subf %0, %264 : vector<36x24xf32>
    %266 = vector.broadcast %263 : vector<1x1xf32> to vector<36x24xf32>
    %267 = arith.mulf %265, %266 : vector<36x24xf32>
    %268 = math.roundeven %267 : vector<36x24xf32>
    %cst_144 = arith.constant 0.000000e+00 : f32
    %cst_145 = arith.constant 2.550000e+02 : f32
    %269 = vector.broadcast %cst_144 : f32 to vector<36x24xf32>
    %270 = arith.maximumf %269, %268 : vector<36x24xf32>
    %271 = vector.broadcast %cst_145 : f32 to vector<36x24xf32>
    %272 = arith.minimumf %271, %270 : vector<36x24xf32>
    %273 = vector.broadcast %262 : vector<1x1xf32> to vector<36x24xf32>
    %274 = arith.mulf %272, %273 : vector<36x24xf32>
    %275 = vector.broadcast %253 : vector<1x1xf32> to vector<36x24xf32>
    %276 = arith.addf %274, %275 : vector<36x24xf32>
    %277 = arith.truncf %247 : vector<256x36xf32> to vector<256x36xbf16>
    %278 = arith.truncf %276 : vector<36x24xf32> to vector<36x24xbf16>
    %cst_146 = arith.constant dense<0.000000e+00> : vector<256x24xf32>
    %279 = tpu.matmul %277, %278, %cst_146 {dimension_numbers = #tpu.dot_dimension_numbers<[1], [0], [0], [1], [0, 0, 1, 1], [], []>} : vector<256x36xbf16>, vector<36x24xbf16>, vector<256x24xf32> -> vector<256x24xf32>
    %280 = vector.shape_cast %279 : vector<256x24xf32> to vector<2x128x24xf32>
    %cst_147 = arith.constant dense<0.000000e+00> : vector<2x24xf32>
    %281 = vector.multi_reduction <add>, %280, %cst_147 [1] : vector<2x128x24xf32> to vector<2x24xf32>
    %282 = vector.shape_cast %281 : vector<2x24xf32> to vector<2x1x24xf32>
    %cst_148 = arith.constant 1.280000e+02 : f32
    %283 = vector.broadcast %cst_148 : f32 to vector<2x1x24xf32>
    %284 = arith.divf %282, %283 : vector<2x1x24xf32>
    %285 = vector.broadcast %284 : vector<2x1x24xf32> to vector<2x128x24xf32>
    %286 = arith.subf %280, %285 : vector<2x128x24xf32>
    %287 = arith.mulf %286, %286 : vector<2x128x24xf32>
    %cst_149 = arith.constant dense<0.000000e+00> : vector<2x24xf32>
    %288 = vector.multi_reduction <add>, %287, %cst_149 [1] : vector<2x128x24xf32> to vector<2x24xf32>
    %289 = vector.shape_cast %288 : vector<2x24xf32> to vector<2x1x24xf32>
    %cst_150 = arith.constant 1.280000e+02 : f32
    %290 = vector.broadcast %cst_150 : f32 to vector<2x1x24xf32>
    %291 = arith.divf %289, %290 : vector<2x1x24xf32>
    %292 = vector.broadcast %284 : vector<2x1x24xf32> to vector<2x128x24xf32>
    %293 = arith.subf %280, %292 : vector<2x128x24xf32>
    %cst_151 = arith.constant 9.99999974E-6 : f32
    %294 = vector.broadcast %cst_151 : f32 to vector<2x1x24xf32>
    %295 = arith.addf %291, %294 : vector<2x1x24xf32>
    %296 = math.rsqrt %295 : vector<2x1x24xf32>
    %297 = vector.broadcast %296 : vector<2x1x24xf32> to vector<2x128x24xf32>
    %298 = arith.mulf %293, %297 : vector<2x128x24xf32>
    %299 = vector.shape_cast %1 : vector<1x24xf32> to vector<1x1x24xf32>
    %300 = vector.broadcast %299 : vector<1x1x24xf32> to vector<2x128x24xf32>
    %301 = arith.mulf %298, %300 : vector<2x128x24xf32>
    %302 = vector.shape_cast %2 : vector<1x24xf32> to vector<1x1x24xf32>
    %303 = vector.broadcast %302 : vector<1x1x24xf32> to vector<2x128x24xf32>
    %304 = arith.addf %301, %303 : vector<2x128x24xf32>
    %cst_152 = arith.constant 0.000000e+00 : f32
    %305 = vector.broadcast %cst_152 : f32 to vector<2x128x24xf32>
    %306 = arith.maximumf %304, %305 : vector<2x128x24xf32>
    %307 = vector.shape_cast %306 : vector<2x128x24xf32> to vector<4x64x24xf32>
    %cst_153 = arith.constant dense<0.000000e+00> : vector<4x24xf32>
    %308 = vector.multi_reduction <add>, %307, %cst_153 [1] : vector<4x64x24xf32> to vector<4x24xf32>
    %cst_154 = arith.constant 6.400000e+01 : f32
    %309 = vector.broadcast %cst_154 : f32 to vector<4x24xf32>
    %310 = arith.divf %308, %309 : vector<4x24xf32>
    %311 = vector.shape_cast %310 : vector<4x24xf32> to vector<2x2x24xf32>
    %cst_155 = arith.constant dense<0x7F800000> : vector<2x2xf32>
    %312 = vector.multi_reduction <minimumf>, %311, %cst_155 [2] : vector<2x2x24xf32> to vector<2x2xf32>
    %313 = vector.shape_cast %312 : vector<2x2xf32> to vector<2x2x1xf32>
    %cst_156 = arith.constant dense<0xFF800000> : vector<2x2xf32>
    %314 = vector.multi_reduction <maximumf>, %311, %cst_156 [2] : vector<2x2x24xf32> to vector<2x2xf32>
    %315 = vector.shape_cast %314 : vector<2x2xf32> to vector<2x2x1xf32>
    %cst_157 = arith.constant dense<0x7F800000> : vector<2x1xf32>
    %316 = vector.multi_reduction <minimumf>, %313, %cst_157 [1] : vector<2x2x1xf32> to vector<2x1xf32>
    %317 = vector.shape_cast %316 : vector<2x1xf32> to vector<2x1x1xf32>
    %cst_158 = arith.constant dense<0xFF800000> : vector<2x1xf32>
    %318 = vector.multi_reduction <maximumf>, %315, %cst_158 [1] : vector<2x2x1xf32> to vector<2x1xf32>
    %319 = vector.shape_cast %318 : vector<2x1xf32> to vector<2x1x1xf32>
    %320 = arith.subf %319, %317 : vector<2x1x1xf32>
    %cst_159 = arith.constant 3.100000e+01 : f32
    %321 = vector.broadcast %cst_159 : f32 to vector<2x1x1xf32>
    %322 = arith.divf %320, %321 : vector<2x1x1xf32>
    %cst_160 = arith.constant 0.000000e+00 : f32
    %323 = vector.broadcast %cst_160 : f32 to vector<2x1x1xf32>
    %324 = arith.cmpf ole, %322, %323 : vector<2x1x1xf32>
    %cst_161 = arith.constant 1.000000e+00 : f32
    %325 = vector.broadcast %cst_161 : f32 to vector<2x1x1xf32>
    %326 = arith.select %324, %325, %322 : vector<2x1x1xi1>, vector<2x1x1xf32>
    %327 = tpu.reciprocal %326 {approx = true} : vector<2x1x1xf32> -> vector<2x1x1xf32>
    %328 = vector.broadcast %317 : vector<2x1x1xf32> to vector<2x2x24xf32>
    %329 = arith.subf %311, %328 : vector<2x2x24xf32>
    %330 = vector.broadcast %327 : vector<2x1x1xf32> to vector<2x2x24xf32>
    %331 = arith.mulf %329, %330 : vector<2x2x24xf32>
    %332 = math.roundeven %331 : vector<2x2x24xf32>
    %cst_162 = arith.constant 0.000000e+00 : f32
    %cst_163 = arith.constant 3.100000e+01 : f32
    %333 = vector.broadcast %cst_162 : f32 to vector<2x2x24xf32>
    %334 = arith.maximumf %333, %332 : vector<2x2x24xf32>
    %335 = vector.broadcast %cst_163 : f32 to vector<2x2x24xf32>
    %336 = arith.minimumf %335, %334 : vector<2x2x24xf32>
    %337 = vector.broadcast %326 : vector<2x1x1xf32> to vector<2x2x24xf32>
    %338 = arith.mulf %336, %337 : vector<2x2x24xf32>
    %339 = vector.broadcast %317 : vector<2x1x1xf32> to vector<2x2x24xf32>
    %340 = arith.addf %338, %339 : vector<2x2x24xf32>
    %cst_164 = arith.constant dense<0x7F800000> : vector<24xf32>
    %341 = vector.multi_reduction <minimumf>, %3, %cst_164 [1] : vector<24x16xf32> to vector<24xf32>
    %342 = vector.shape_cast %341 : vector<24xf32> to vector<24x1xf32>
    %cst_165 = arith.constant dense<0xFF800000> : vector<24xf32>
    %343 = vector.multi_reduction <maximumf>, %3, %cst_165 [1] : vector<24x16xf32> to vector<24xf32>
    %344 = vector.shape_cast %343 : vector<24xf32> to vector<24x1xf32>
    %cst_166 = arith.constant dense<0x7F800000> : vector<1xf32>
    %345 = vector.multi_reduction <minimumf>, %342, %cst_166 [0] : vector<24x1xf32> to vector<1xf32>
    %346 = vector.shape_cast %345 : vector<1xf32> to vector<1x1xf32>
    %cst_167 = arith.constant dense<0xFF800000> : vector<1xf32>
    %347 = vector.multi_reduction <maximumf>, %344, %cst_167 [0] : vector<24x1xf32> to vector<1xf32>
    %348 = vector.shape_cast %347 : vector<1xf32> to vector<1x1xf32>
    %349 = arith.subf %348, %346 : vector<1x1xf32>
    %cst_168 = arith.constant 2.550000e+02 : f32
    %350 = vector.broadcast %cst_168 : f32 to vector<1x1xf32>
    %351 = arith.divf %349, %350 : vector<1x1xf32>
    %cst_169 = arith.constant 0.000000e+00 : f32
    %352 = vector.broadcast %cst_169 : f32 to vector<1x1xf32>
    %353 = arith.cmpf ole, %351, %352 : vector<1x1xf32>
    %cst_170 = arith.constant 1.000000e+00 : f32
    %354 = vector.broadcast %cst_170 : f32 to vector<1x1xf32>
    %355 = arith.select %353, %354, %351 : vector<1x1xi1>, vector<1x1xf32>
    %356 = tpu.reciprocal %355 {approx = true} : vector<1x1xf32> -> vector<1x1xf32>
    %357 = vector.broadcast %346 : vector<1x1xf32> to vector<24x16xf32>
    %358 = arith.subf %3, %357 : vector<24x16xf32>
    %359 = vector.broadcast %356 : vector<1x1xf32> to vector<24x16xf32>
    %360 = arith.mulf %358, %359 : vector<24x16xf32>
    %361 = math.roundeven %360 : vector<24x16xf32>
    %cst_171 = arith.constant 0.000000e+00 : f32
    %cst_172 = arith.constant 2.550000e+02 : f32
    %362 = vector.broadcast %cst_171 : f32 to vector<24x16xf32>
    %363 = arith.maximumf %362, %361 : vector<24x16xf32>
    %364 = vector.broadcast %cst_172 : f32 to vector<24x16xf32>
    %365 = arith.minimumf %364, %363 : vector<24x16xf32>
    %366 = vector.broadcast %355 : vector<1x1xf32> to vector<24x16xf32>
    %367 = arith.mulf %365, %366 : vector<24x16xf32>
    %368 = vector.broadcast %346 : vector<1x1xf32> to vector<24x16xf32>
    %369 = arith.addf %367, %368 : vector<24x16xf32>
    %370 = vector.shape_cast %340 : vector<2x2x24xf32> to vector<4x24xf32>
    %371 = arith.truncf %370 : vector<4x24xf32> to vector<4x24xbf16>
    %372 = arith.truncf %369 : vector<24x16xf32> to vector<24x16xbf16>
    %cst_173 = arith.constant dense<0.000000e+00> : vector<4x16xf32>
    %373 = tpu.matmul %371, %372, %cst_173 {dimension_numbers = #tpu.dot_dimension_numbers<[1], [0], [0], [1], [0, 0, 1, 1], [], []>} : vector<4x24xbf16>, vector<24x16xbf16>, vector<4x16xf32> -> vector<4x16xf32>
    %374 = vector.shape_cast %373 : vector<4x16xf32> to vector<2x2x16xf32>
    %cst_174 = arith.constant dense<0.000000e+00> : vector<2x16xf32>
    %375 = vector.multi_reduction <add>, %374, %cst_174 [1] : vector<2x2x16xf32> to vector<2x16xf32>
    %376 = vector.shape_cast %375 : vector<2x16xf32> to vector<2x1x16xf32>
    %cst_175 = arith.constant 2.000000e+00 : f32
    %377 = vector.broadcast %cst_175 : f32 to vector<2x1x16xf32>
    %378 = arith.divf %376, %377 : vector<2x1x16xf32>
    %379 = vector.broadcast %378 : vector<2x1x16xf32> to vector<2x2x16xf32>
    %380 = arith.subf %374, %379 : vector<2x2x16xf32>
    %381 = arith.mulf %380, %380 : vector<2x2x16xf32>
    %cst_176 = arith.constant dense<0.000000e+00> : vector<2x16xf32>
    %382 = vector.multi_reduction <add>, %381, %cst_176 [1] : vector<2x2x16xf32> to vector<2x16xf32>
    %383 = vector.shape_cast %382 : vector<2x16xf32> to vector<2x1x16xf32>
    %cst_177 = arith.constant 2.000000e+00 : f32
    %384 = vector.broadcast %cst_177 : f32 to vector<2x1x16xf32>
    %385 = arith.divf %383, %384 : vector<2x1x16xf32>
    %386 = vector.broadcast %378 : vector<2x1x16xf32> to vector<2x2x16xf32>
    %387 = arith.subf %374, %386 : vector<2x2x16xf32>
    %cst_178 = arith.constant 9.99999974E-6 : f32
    %388 = vector.broadcast %cst_178 : f32 to vector<2x1x16xf32>
    %389 = arith.addf %385, %388 : vector<2x1x16xf32>
    %390 = math.rsqrt %389 : vector<2x1x16xf32>
    %391 = vector.broadcast %390 : vector<2x1x16xf32> to vector<2x2x16xf32>
    %392 = arith.mulf %387, %391 : vector<2x2x16xf32>
    %393 = vector.shape_cast %4 : vector<1x16xf32> to vector<1x1x16xf32>
    %394 = vector.broadcast %393 : vector<1x1x16xf32> to vector<2x2x16xf32>
    %395 = arith.mulf %392, %394 : vector<2x2x16xf32>
    %396 = vector.shape_cast %5 : vector<1x16xf32> to vector<1x1x16xf32>
    %397 = vector.broadcast %396 : vector<1x1x16xf32> to vector<2x2x16xf32>
    %398 = arith.addf %395, %397 : vector<2x2x16xf32>
    %cst_179 = arith.constant 0.000000e+00 : f32
    %399 = vector.broadcast %cst_179 : f32 to vector<2x2x16xf32>
    %400 = arith.maximumf %398, %399 : vector<2x2x16xf32>
    %cst_180 = arith.constant dense<0x7F800000> : vector<2x2xf32>
    %401 = vector.multi_reduction <minimumf>, %400, %cst_180 [2] : vector<2x2x16xf32> to vector<2x2xf32>
    %402 = vector.shape_cast %401 : vector<2x2xf32> to vector<2x2x1xf32>
    %cst_181 = arith.constant dense<0xFF800000> : vector<2x2xf32>
    %403 = vector.multi_reduction <maximumf>, %400, %cst_181 [2] : vector<2x2x16xf32> to vector<2x2xf32>
    %404 = vector.shape_cast %403 : vector<2x2xf32> to vector<2x2x1xf32>
    %cst_182 = arith.constant dense<0x7F800000> : vector<2x1xf32>
    %405 = vector.multi_reduction <minimumf>, %402, %cst_182 [1] : vector<2x2x1xf32> to vector<2x1xf32>
    %406 = vector.shape_cast %405 : vector<2x1xf32> to vector<2x1x1xf32>
    %cst_183 = arith.constant dense<0xFF800000> : vector<2x1xf32>
    %407 = vector.multi_reduction <maximumf>, %404, %cst_183 [1] : vector<2x2x1xf32> to vector<2x1xf32>
    %408 = vector.shape_cast %407 : vector<2x1xf32> to vector<2x1x1xf32>
    %409 = arith.subf %408, %406 : vector<2x1x1xf32>
    %cst_184 = arith.constant 3.100000e+01 : f32
    %410 = vector.broadcast %cst_184 : f32 to vector<2x1x1xf32>
    %411 = arith.divf %409, %410 : vector<2x1x1xf32>
    %cst_185 = arith.constant 0.000000e+00 : f32
    %412 = vector.broadcast %cst_185 : f32 to vector<2x1x1xf32>
    %413 = arith.cmpf ole, %411, %412 : vector<2x1x1xf32>
    %cst_186 = arith.constant 1.000000e+00 : f32
    %414 = vector.broadcast %cst_186 : f32 to vector<2x1x1xf32>
    %415 = arith.select %413, %414, %411 : vector<2x1x1xi1>, vector<2x1x1xf32>
    %416 = tpu.reciprocal %415 {approx = true} : vector<2x1x1xf32> -> vector<2x1x1xf32>
    %417 = vector.broadcast %406 : vector<2x1x1xf32> to vector<2x2x16xf32>
    %418 = arith.subf %400, %417 : vector<2x2x16xf32>
    %419 = vector.broadcast %416 : vector<2x1x1xf32> to vector<2x2x16xf32>
    %420 = arith.mulf %418, %419 : vector<2x2x16xf32>
    %421 = math.roundeven %420 : vector<2x2x16xf32>
    %cst_187 = arith.constant 0.000000e+00 : f32
    %cst_188 = arith.constant 3.100000e+01 : f32
    %422 = vector.broadcast %cst_187 : f32 to vector<2x2x16xf32>
    %423 = arith.maximumf %422, %421 : vector<2x2x16xf32>
    %424 = vector.broadcast %cst_188 : f32 to vector<2x2x16xf32>
    %425 = arith.minimumf %424, %423 : vector<2x2x16xf32>
    %426 = vector.broadcast %415 : vector<2x1x1xf32> to vector<2x2x16xf32>
    %427 = arith.mulf %425, %426 : vector<2x2x16xf32>
    %428 = vector.broadcast %406 : vector<2x1x1xf32> to vector<2x2x16xf32>
    %429 = arith.addf %427, %428 : vector<2x2x16xf32>
    %cst_189 = arith.constant dense<0x7F800000> : vector<16xf32>
    %430 = vector.multi_reduction <minimumf>, %6, %cst_189 [1] : vector<16x16xf32> to vector<16xf32>
    %431 = vector.shape_cast %430 : vector<16xf32> to vector<16x1xf32>
    %cst_190 = arith.constant dense<0xFF800000> : vector<16xf32>
    %432 = vector.multi_reduction <maximumf>, %6, %cst_190 [1] : vector<16x16xf32> to vector<16xf32>
    %433 = vector.shape_cast %432 : vector<16xf32> to vector<16x1xf32>
    %cst_191 = arith.constant dense<0x7F800000> : vector<1xf32>
    %434 = vector.multi_reduction <minimumf>, %431, %cst_191 [0] : vector<16x1xf32> to vector<1xf32>
    %435 = vector.shape_cast %434 : vector<1xf32> to vector<1x1xf32>
    %cst_192 = arith.constant dense<0xFF800000> : vector<1xf32>
    %436 = vector.multi_reduction <maximumf>, %433, %cst_192 [0] : vector<16x1xf32> to vector<1xf32>
    %437 = vector.shape_cast %436 : vector<1xf32> to vector<1x1xf32>
    %438 = arith.subf %437, %435 : vector<1x1xf32>
    %cst_193 = arith.constant 2.550000e+02 : f32
    %439 = vector.broadcast %cst_193 : f32 to vector<1x1xf32>
    %440 = arith.divf %438, %439 : vector<1x1xf32>
    %cst_194 = arith.constant 0.000000e+00 : f32
    %441 = vector.broadcast %cst_194 : f32 to vector<1x1xf32>
    %442 = arith.cmpf ole, %440, %441 : vector<1x1xf32>
    %cst_195 = arith.constant 1.000000e+00 : f32
    %443 = vector.broadcast %cst_195 : f32 to vector<1x1xf32>
    %444 = arith.select %442, %443, %440 : vector<1x1xi1>, vector<1x1xf32>
    %445 = tpu.reciprocal %444 {approx = true} : vector<1x1xf32> -> vector<1x1xf32>
    %446 = vector.broadcast %435 : vector<1x1xf32> to vector<16x16xf32>
    %447 = arith.subf %6, %446 : vector<16x16xf32>
    %448 = vector.broadcast %445 : vector<1x1xf32> to vector<16x16xf32>
    %449 = arith.mulf %447, %448 : vector<16x16xf32>
    %450 = math.roundeven %449 : vector<16x16xf32>
    %cst_196 = arith.constant 0.000000e+00 : f32
    %cst_197 = arith.constant 2.550000e+02 : f32
    %451 = vector.broadcast %cst_196 : f32 to vector<16x16xf32>
    %452 = arith.maximumf %451, %450 : vector<16x16xf32>
    %453 = vector.broadcast %cst_197 : f32 to vector<16x16xf32>
    %454 = arith.minimumf %453, %452 : vector<16x16xf32>
    %455 = vector.broadcast %444 : vector<1x1xf32> to vector<16x16xf32>
    %456 = arith.mulf %454, %455 : vector<16x16xf32>
    %457 = vector.broadcast %435 : vector<1x1xf32> to vector<16x16xf32>
    %458 = arith.addf %456, %457 : vector<16x16xf32>
    %459 = vector.shape_cast %429 : vector<2x2x16xf32> to vector<4x16xf32>
    %460 = arith.truncf %459 : vector<4x16xf32> to vector<4x16xbf16>
    %461 = arith.truncf %458 : vector<16x16xf32> to vector<16x16xbf16>
    %cst_198 = arith.constant dense<0.000000e+00> : vector<4x16xf32>
    %462 = tpu.matmul %460, %461, %cst_198 {dimension_numbers = #tpu.dot_dimension_numbers<[1], [0], [0], [1], [0, 0, 1, 1], [], []>} : vector<4x16xbf16>, vector<16x16xbf16>, vector<4x16xf32> -> vector<4x16xf32>
    %463 = vector.shape_cast %462 : vector<4x16xf32> to vector<2x2x16xf32>
    %cst_199 = arith.constant dense<0.000000e+00> : vector<2x16xf32>
    %464 = vector.multi_reduction <add>, %463, %cst_199 [1] : vector<2x2x16xf32> to vector<2x16xf32>
    %465 = vector.shape_cast %464 : vector<2x16xf32> to vector<2x1x16xf32>
    %cst_200 = arith.constant 2.000000e+00 : f32
    %466 = vector.broadcast %cst_200 : f32 to vector<2x1x16xf32>
    %467 = arith.divf %465, %466 : vector<2x1x16xf32>
    %468 = vector.broadcast %467 : vector<2x1x16xf32> to vector<2x2x16xf32>
    %469 = arith.subf %463, %468 : vector<2x2x16xf32>
    %470 = arith.mulf %469, %469 : vector<2x2x16xf32>
    %cst_201 = arith.constant dense<0.000000e+00> : vector<2x16xf32>
    %471 = vector.multi_reduction <add>, %470, %cst_201 [1] : vector<2x2x16xf32> to vector<2x16xf32>
    %472 = vector.shape_cast %471 : vector<2x16xf32> to vector<2x1x16xf32>
    %cst_202 = arith.constant 2.000000e+00 : f32
    %473 = vector.broadcast %cst_202 : f32 to vector<2x1x16xf32>
    %474 = arith.divf %472, %473 : vector<2x1x16xf32>
    %475 = vector.broadcast %467 : vector<2x1x16xf32> to vector<2x2x16xf32>
    %476 = arith.subf %463, %475 : vector<2x2x16xf32>
    %cst_203 = arith.constant 9.99999974E-6 : f32
    %477 = vector.broadcast %cst_203 : f32 to vector<2x1x16xf32>
    %478 = arith.addf %474, %477 : vector<2x1x16xf32>
    %479 = math.rsqrt %478 : vector<2x1x16xf32>
    %480 = vector.broadcast %479 : vector<2x1x16xf32> to vector<2x2x16xf32>
    %481 = arith.mulf %476, %480 : vector<2x2x16xf32>
    %482 = vector.shape_cast %7 : vector<1x16xf32> to vector<1x1x16xf32>
    %483 = vector.broadcast %482 : vector<1x1x16xf32> to vector<2x2x16xf32>
    %484 = arith.mulf %481, %483 : vector<2x2x16xf32>
    %485 = vector.shape_cast %8 : vector<1x16xf32> to vector<1x1x16xf32>
    %486 = vector.broadcast %485 : vector<1x1x16xf32> to vector<2x2x16xf32>
    %487 = arith.addf %484, %486 : vector<2x2x16xf32>
    %cst_204 = arith.constant 0.000000e+00 : f32
    %488 = vector.broadcast %cst_204 : f32 to vector<2x2x16xf32>
    %489 = arith.maximumf %487, %488 : vector<2x2x16xf32>
    %cst_205 = arith.constant dense<0x7F800000> : vector<2x2xf32>
    %490 = vector.multi_reduction <minimumf>, %489, %cst_205 [2] : vector<2x2x16xf32> to vector<2x2xf32>
    %491 = vector.shape_cast %490 : vector<2x2xf32> to vector<2x2x1xf32>
    %cst_206 = arith.constant dense<0xFF800000> : vector<2x2xf32>
    %492 = vector.multi_reduction <maximumf>, %489, %cst_206 [2] : vector<2x2x16xf32> to vector<2x2xf32>
    %493 = vector.shape_cast %492 : vector<2x2xf32> to vector<2x2x1xf32>
    %cst_207 = arith.constant dense<0x7F800000> : vector<2x1xf32>
    %494 = vector.multi_reduction <minimumf>, %491, %cst_207 [1] : vector<2x2x1xf32> to vector<2x1xf32>
    %495 = vector.shape_cast %494 : vector<2x1xf32> to vector<2x1x1xf32>
    %cst_208 = arith.constant dense<0xFF800000> : vector<2x1xf32>
    %496 = vector.multi_reduction <maximumf>, %493, %cst_208 [1] : vector<2x2x1xf32> to vector<2x1xf32>
    %497 = vector.shape_cast %496 : vector<2x1xf32> to vector<2x1x1xf32>
    %498 = arith.subf %497, %495 : vector<2x1x1xf32>
    %cst_209 = arith.constant 3.100000e+01 : f32
    %499 = vector.broadcast %cst_209 : f32 to vector<2x1x1xf32>
    %500 = arith.divf %498, %499 : vector<2x1x1xf32>
    %cst_210 = arith.constant 0.000000e+00 : f32
    %501 = vector.broadcast %cst_210 : f32 to vector<2x1x1xf32>
    %502 = arith.cmpf ole, %500, %501 : vector<2x1x1xf32>
    %cst_211 = arith.constant 1.000000e+00 : f32
    %503 = vector.broadcast %cst_211 : f32 to vector<2x1x1xf32>
    %504 = arith.select %502, %503, %500 : vector<2x1x1xi1>, vector<2x1x1xf32>
    %505 = tpu.reciprocal %504 {approx = true} : vector<2x1x1xf32> -> vector<2x1x1xf32>
    %506 = vector.broadcast %495 : vector<2x1x1xf32> to vector<2x2x16xf32>
    %507 = arith.subf %489, %506 : vector<2x2x16xf32>
    %508 = vector.broadcast %505 : vector<2x1x1xf32> to vector<2x2x16xf32>
    %509 = arith.mulf %507, %508 : vector<2x2x16xf32>
    %510 = math.roundeven %509 : vector<2x2x16xf32>
    %cst_212 = arith.constant 0.000000e+00 : f32
    %cst_213 = arith.constant 3.100000e+01 : f32
    %511 = vector.broadcast %cst_212 : f32 to vector<2x2x16xf32>
    %512 = arith.maximumf %511, %510 : vector<2x2x16xf32>
    %513 = vector.broadcast %cst_213 : f32 to vector<2x2x16xf32>
    %514 = arith.minimumf %513, %512 : vector<2x2x16xf32>
    %515 = vector.broadcast %504 : vector<2x1x1xf32> to vector<2x2x16xf32>
    %516 = arith.mulf %514, %515 : vector<2x2x16xf32>
    %517 = vector.broadcast %495 : vector<2x1x1xf32> to vector<2x2x16xf32>
    %518 = arith.addf %516, %517 : vector<2x2x16xf32>
    %cst_214 = arith.constant dense<0x7F800000> : vector<16xf32>
    %519 = vector.multi_reduction <minimumf>, %9, %cst_214 [1] : vector<16x32xf32> to vector<16xf32>
    %520 = vector.shape_cast %519 : vector<16xf32> to vector<16x1xf32>
    %cst_215 = arith.constant dense<0xFF800000> : vector<16xf32>
    %521 = vector.multi_reduction <maximumf>, %9, %cst_215 [1] : vector<16x32xf32> to vector<16xf32>
    %522 = vector.shape_cast %521 : vector<16xf32> to vector<16x1xf32>
    %cst_216 = arith.constant dense<0x7F800000> : vector<1xf32>
    %523 = vector.multi_reduction <minimumf>, %520, %cst_216 [0] : vector<16x1xf32> to vector<1xf32>
    %524 = vector.shape_cast %523 : vector<1xf32> to vector<1x1xf32>
    %cst_217 = arith.constant dense<0xFF800000> : vector<1xf32>
    %525 = vector.multi_reduction <maximumf>, %522, %cst_217 [0] : vector<16x1xf32> to vector<1xf32>
    %526 = vector.shape_cast %525 : vector<1xf32> to vector<1x1xf32>
    %527 = arith.subf %526, %524 : vector<1x1xf32>
    %cst_218 = arith.constant 2.550000e+02 : f32
    %528 = vector.broadcast %cst_218 : f32 to vector<1x1xf32>
    %529 = arith.divf %527, %528 : vector<1x1xf32>
    %cst_219 = arith.constant 0.000000e+00 : f32
    %530 = vector.broadcast %cst_219 : f32 to vector<1x1xf32>
    %531 = arith.cmpf ole, %529, %530 : vector<1x1xf32>
    %cst_220 = arith.constant 1.000000e+00 : f32
    %532 = vector.broadcast %cst_220 : f32 to vector<1x1xf32>
    %533 = arith.select %531, %532, %529 : vector<1x1xi1>, vector<1x1xf32>
    %534 = tpu.reciprocal %533 {approx = true} : vector<1x1xf32> -> vector<1x1xf32>
    %535 = vector.broadcast %524 : vector<1x1xf32> to vector<16x32xf32>
    %536 = arith.subf %9, %535 : vector<16x32xf32>
    %537 = vector.broadcast %534 : vector<1x1xf32> to vector<16x32xf32>
    %538 = arith.mulf %536, %537 : vector<16x32xf32>
    %539 = math.roundeven %538 : vector<16x32xf32>
    %cst_221 = arith.constant 0.000000e+00 : f32
    %cst_222 = arith.constant 2.550000e+02 : f32
    %540 = vector.broadcast %cst_221 : f32 to vector<16x32xf32>
    %541 = arith.maximumf %540, %539 : vector<16x32xf32>
    %542 = vector.broadcast %cst_222 : f32 to vector<16x32xf32>
    %543 = arith.minimumf %542, %541 : vector<16x32xf32>
    %544 = vector.broadcast %533 : vector<1x1xf32> to vector<16x32xf32>
    %545 = arith.mulf %543, %544 : vector<16x32xf32>
    %546 = vector.broadcast %524 : vector<1x1xf32> to vector<16x32xf32>
    %547 = arith.addf %545, %546 : vector<16x32xf32>
    %548 = vector.shape_cast %518 : vector<2x2x16xf32> to vector<4x16xf32>
    %549 = arith.truncf %548 : vector<4x16xf32> to vector<4x16xbf16>
    %550 = arith.truncf %547 : vector<16x32xf32> to vector<16x32xbf16>
    %cst_223 = arith.constant dense<0.000000e+00> : vector<4x32xf32>
    %551 = tpu.matmul %549, %550, %cst_223 {dimension_numbers = #tpu.dot_dimension_numbers<[1], [0], [0], [1], [0, 0, 1, 1], [], []>} : vector<4x16xbf16>, vector<16x32xbf16>, vector<4x32xf32> -> vector<4x32xf32>
    %552 = vector.shape_cast %551 : vector<4x32xf32> to vector<2x2x32xf32>
    %553 = vector.shape_cast %10 : vector<1x32xf32> to vector<1x1x32xf32>
    %554 = vector.broadcast %553 : vector<1x1x32xf32> to vector<2x2x32xf32>
    %555 = arith.addf %552, %554 : vector<2x2x32xf32>
    %cst_224 = arith.constant dense<0.000000e+00> : vector<2x32xf32>
    %556 = vector.multi_reduction <add>, %555, %cst_224 [1] : vector<2x2x32xf32> to vector<2x32xf32>
    %557 = vector.shape_cast %556 : vector<2x32xf32> to vector<2x1x32xf32>
    %cst_225 = arith.constant 2.000000e+00 : f32
    %558 = vector.broadcast %cst_225 : f32 to vector<2x1x32xf32>
    %559 = arith.divf %557, %558 : vector<2x1x32xf32>
    %560 = vector.broadcast %559 : vector<2x1x32xf32> to vector<2x2x32xf32>
    %561 = arith.subf %555, %560 : vector<2x2x32xf32>
    %562 = arith.mulf %561, %561 : vector<2x2x32xf32>
    %cst_226 = arith.constant dense<0.000000e+00> : vector<2x32xf32>
    %563 = vector.multi_reduction <add>, %562, %cst_226 [1] : vector<2x2x32xf32> to vector<2x32xf32>
    %564 = vector.shape_cast %563 : vector<2x32xf32> to vector<2x1x32xf32>
    %cst_227 = arith.constant 2.000000e+00 : f32
    %565 = vector.broadcast %cst_227 : f32 to vector<2x1x32xf32>
    %566 = arith.divf %564, %565 : vector<2x1x32xf32>
    %567 = vector.broadcast %559 : vector<2x1x32xf32> to vector<2x2x32xf32>
    %568 = arith.subf %555, %567 : vector<2x2x32xf32>
    %cst_228 = arith.constant 9.99999974E-6 : f32
    %569 = vector.broadcast %cst_228 : f32 to vector<2x1x32xf32>
    %570 = arith.addf %566, %569 : vector<2x1x32xf32>
    %571 = math.rsqrt %570 : vector<2x1x32xf32>
    %572 = vector.broadcast %571 : vector<2x1x32xf32> to vector<2x2x32xf32>
    %573 = arith.mulf %568, %572 : vector<2x2x32xf32>
    %574 = vector.shape_cast %93 : vector<2x128x36xf32> to vector<256x36xf32>
    %575 = arith.truncf %574 : vector<256x36xf32> to vector<256x36xbf16>
    %576 = arith.truncf %16 : vector<36x24xf32> to vector<36x24xbf16>
    %cst_229 = arith.constant dense<0.000000e+00> : vector<256x24xf32>
    %577 = tpu.matmul %575, %576, %cst_229 {dimension_numbers = #tpu.dot_dimension_numbers<[1], [0], [0], [1], [0, 0, 1, 1], [], []>} : vector<256x36xbf16>, vector<36x24xbf16>, vector<256x24xf32> -> vector<256x24xf32>
    %578 = vector.shape_cast %577 : vector<256x24xf32> to vector<2x128x24xf32>
    %cst_230 = arith.constant dense<0.000000e+00> : vector<2x24xf32>
    %579 = vector.multi_reduction <add>, %578, %cst_230 [1] : vector<2x128x24xf32> to vector<2x24xf32>
    %580 = vector.shape_cast %579 : vector<2x24xf32> to vector<2x1x24xf32>
    %cst_231 = arith.constant 1.280000e+02 : f32
    %581 = vector.broadcast %cst_231 : f32 to vector<2x1x24xf32>
    %582 = arith.divf %580, %581 : vector<2x1x24xf32>
    %583 = vector.broadcast %582 : vector<2x1x24xf32> to vector<2x128x24xf32>
    %584 = arith.subf %578, %583 : vector<2x128x24xf32>
    %585 = arith.mulf %584, %584 : vector<2x128x24xf32>
    %cst_232 = arith.constant dense<0.000000e+00> : vector<2x24xf32>
    %586 = vector.multi_reduction <add>, %585, %cst_232 [1] : vector<2x128x24xf32> to vector<2x24xf32>
    %587 = vector.shape_cast %586 : vector<2x24xf32> to vector<2x1x24xf32>
    %cst_233 = arith.constant 1.280000e+02 : f32
    %588 = vector.broadcast %cst_233 : f32 to vector<2x1x24xf32>
    %589 = arith.divf %587, %588 : vector<2x1x24xf32>
    %590 = vector.broadcast %582 : vector<2x1x24xf32> to vector<2x128x24xf32>
    %591 = arith.subf %578, %590 : vector<2x128x24xf32>
    %cst_234 = arith.constant 9.99999974E-6 : f32
    %592 = vector.broadcast %cst_234 : f32 to vector<2x1x24xf32>
    %593 = arith.addf %589, %592 : vector<2x1x24xf32>
    %594 = math.rsqrt %593 : vector<2x1x24xf32>
    %595 = vector.broadcast %594 : vector<2x1x24xf32> to vector<2x128x24xf32>
    %596 = arith.mulf %591, %595 : vector<2x128x24xf32>
    %597 = vector.shape_cast %22 : vector<1x24xf32> to vector<1x1x24xf32>
    %598 = vector.broadcast %597 : vector<1x1x24xf32> to vector<2x128x24xf32>
    %599 = arith.mulf %596, %598 : vector<2x128x24xf32>
    %600 = vector.shape_cast %28 : vector<1x24xf32> to vector<1x1x24xf32>
    %601 = vector.broadcast %600 : vector<1x1x24xf32> to vector<2x128x24xf32>
    %602 = arith.addf %599, %601 : vector<2x128x24xf32>
    %cst_235 = arith.constant 0.000000e+00 : f32
    %603 = vector.broadcast %cst_235 : f32 to vector<2x128x24xf32>
    %604 = arith.maximumf %602, %603 : vector<2x128x24xf32>
    %605 = vector.shape_cast %604 : vector<2x128x24xf32> to vector<4x64x24xf32>
    %cst_236 = arith.constant dense<0.000000e+00> : vector<4x24xf32>
    %606 = vector.multi_reduction <add>, %605, %cst_236 [1] : vector<4x64x24xf32> to vector<4x24xf32>
    %cst_237 = arith.constant 6.400000e+01 : f32
    %607 = vector.broadcast %cst_237 : f32 to vector<4x24xf32>
    %608 = arith.divf %606, %607 : vector<4x24xf32>
    %609 = vector.shape_cast %608 : vector<4x24xf32> to vector<2x2x24xf32>
    %610 = vector.shape_cast %609 : vector<2x2x24xf32> to vector<4x24xf32>
    %611 = arith.truncf %610 : vector<4x24xf32> to vector<4x24xbf16>
    %612 = arith.truncf %34 : vector<24x16xf32> to vector<24x16xbf16>
    %cst_238 = arith.constant dense<0.000000e+00> : vector<4x16xf32>
    %613 = tpu.matmul %611, %612, %cst_238 {dimension_numbers = #tpu.dot_dimension_numbers<[1], [0], [0], [1], [0, 0, 1, 1], [], []>} : vector<4x24xbf16>, vector<24x16xbf16>, vector<4x16xf32> -> vector<4x16xf32>
    %614 = vector.shape_cast %613 : vector<4x16xf32> to vector<2x2x16xf32>
    %cst_239 = arith.constant dense<0.000000e+00> : vector<2x16xf32>
    %615 = vector.multi_reduction <add>, %614, %cst_239 [1] : vector<2x2x16xf32> to vector<2x16xf32>
    %616 = vector.shape_cast %615 : vector<2x16xf32> to vector<2x1x16xf32>
    %cst_240 = arith.constant 2.000000e+00 : f32
    %617 = vector.broadcast %cst_240 : f32 to vector<2x1x16xf32>
    %618 = arith.divf %616, %617 : vector<2x1x16xf32>
    %619 = vector.broadcast %618 : vector<2x1x16xf32> to vector<2x2x16xf32>
    %620 = arith.subf %614, %619 : vector<2x2x16xf32>
    %621 = arith.mulf %620, %620 : vector<2x2x16xf32>
    %cst_241 = arith.constant dense<0.000000e+00> : vector<2x16xf32>
    %622 = vector.multi_reduction <add>, %621, %cst_241 [1] : vector<2x2x16xf32> to vector<2x16xf32>
    %623 = vector.shape_cast %622 : vector<2x16xf32> to vector<2x1x16xf32>
    %cst_242 = arith.constant 2.000000e+00 : f32
    %624 = vector.broadcast %cst_242 : f32 to vector<2x1x16xf32>
    %625 = arith.divf %623, %624 : vector<2x1x16xf32>
    %626 = vector.broadcast %618 : vector<2x1x16xf32> to vector<2x2x16xf32>
    %627 = arith.subf %614, %626 : vector<2x2x16xf32>
    %cst_243 = arith.constant 9.99999974E-6 : f32
    %628 = vector.broadcast %cst_243 : f32 to vector<2x1x16xf32>
    %629 = arith.addf %625, %628 : vector<2x1x16xf32>
    %630 = math.rsqrt %629 : vector<2x1x16xf32>
    %631 = vector.broadcast %630 : vector<2x1x16xf32> to vector<2x2x16xf32>
    %632 = arith.mulf %627, %631 : vector<2x2x16xf32>
    %633 = vector.shape_cast %40 : vector<1x16xf32> to vector<1x1x16xf32>
    %634 = vector.broadcast %633 : vector<1x1x16xf32> to vector<2x2x16xf32>
    %635 = arith.mulf %632, %634 : vector<2x2x16xf32>
    %636 = vector.shape_cast %46 : vector<1x16xf32> to vector<1x1x16xf32>
    %637 = vector.broadcast %636 : vector<1x1x16xf32> to vector<2x2x16xf32>
    %638 = arith.addf %635, %637 : vector<2x2x16xf32>
    %cst_244 = arith.constant 0.000000e+00 : f32
    %639 = vector.broadcast %cst_244 : f32 to vector<2x2x16xf32>
    %640 = arith.maximumf %638, %639 : vector<2x2x16xf32>
    %641 = vector.shape_cast %640 : vector<2x2x16xf32> to vector<4x16xf32>
    %642 = arith.truncf %641 : vector<4x16xf32> to vector<4x16xbf16>
    %643 = arith.truncf %52 : vector<16x16xf32> to vector<16x16xbf16>
    %cst_245 = arith.constant dense<0.000000e+00> : vector<4x16xf32>
    %644 = tpu.matmul %642, %643, %cst_245 {dimension_numbers = #tpu.dot_dimension_numbers<[1], [0], [0], [1], [0, 0, 1, 1], [], []>} : vector<4x16xbf16>, vector<16x16xbf16>, vector<4x16xf32> -> vector<4x16xf32>
    %645 = vector.shape_cast %644 : vector<4x16xf32> to vector<2x2x16xf32>
    %cst_246 = arith.constant dense<0.000000e+00> : vector<2x16xf32>
    %646 = vector.multi_reduction <add>, %645, %cst_246 [1] : vector<2x2x16xf32> to vector<2x16xf32>
    %647 = vector.shape_cast %646 : vector<2x16xf32> to vector<2x1x16xf32>
    %cst_247 = arith.constant 2.000000e+00 : f32
    %648 = vector.broadcast %cst_247 : f32 to vector<2x1x16xf32>
    %649 = arith.divf %647, %648 : vector<2x1x16xf32>
    %650 = vector.broadcast %649 : vector<2x1x16xf32> to vector<2x2x16xf32>
    %651 = arith.subf %645, %650 : vector<2x2x16xf32>
    %652 = arith.mulf %651, %651 : vector<2x2x16xf32>
    %cst_248 = arith.constant dense<0.000000e+00> : vector<2x16xf32>
    %653 = vector.multi_reduction <add>, %652, %cst_248 [1] : vector<2x2x16xf32> to vector<2x16xf32>
    %654 = vector.shape_cast %653 : vector<2x16xf32> to vector<2x1x16xf32>
    %cst_249 = arith.constant 2.000000e+00 : f32
    %655 = vector.broadcast %cst_249 : f32 to vector<2x1x16xf32>
    %656 = arith.divf %654, %655 : vector<2x1x16xf32>
    %657 = vector.broadcast %649 : vector<2x1x16xf32> to vector<2x2x16xf32>
    %658 = arith.subf %645, %657 : vector<2x2x16xf32>
    %cst_250 = arith.constant 9.99999974E-6 : f32
    %659 = vector.broadcast %cst_250 : f32 to vector<2x1x16xf32>
    %660 = arith.addf %656, %659 : vector<2x1x16xf32>
    %661 = math.rsqrt %660 : vector<2x1x16xf32>
    %662 = vector.broadcast %661 : vector<2x1x16xf32> to vector<2x2x16xf32>
    %663 = arith.mulf %658, %662 : vector<2x2x16xf32>
    %664 = vector.shape_cast %58 : vector<1x16xf32> to vector<1x1x16xf32>
    %665 = vector.broadcast %664 : vector<1x1x16xf32> to vector<2x2x16xf32>
    %666 = arith.mulf %663, %665 : vector<2x2x16xf32>
    %667 = vector.shape_cast %64 : vector<1x16xf32> to vector<1x1x16xf32>
    %668 = vector.broadcast %667 : vector<1x1x16xf32> to vector<2x2x16xf32>
    %669 = arith.addf %666, %668 : vector<2x2x16xf32>
    %cst_251 = arith.constant 0.000000e+00 : f32
    %670 = vector.broadcast %cst_251 : f32 to vector<2x2x16xf32>
    %671 = arith.maximumf %669, %670 : vector<2x2x16xf32>
    %672 = vector.shape_cast %671 : vector<2x2x16xf32> to vector<4x16xf32>
    %673 = arith.truncf %672 : vector<4x16xf32> to vector<4x16xbf16>
    %674 = arith.truncf %70 : vector<16x32xf32> to vector<16x32xbf16>
    %cst_252 = arith.constant dense<0.000000e+00> : vector<4x32xf32>
    %675 = tpu.matmul %673, %674, %cst_252 {dimension_numbers = #tpu.dot_dimension_numbers<[1], [0], [0], [1], [0, 0, 1, 1], [], []>} : vector<4x16xbf16>, vector<16x32xbf16>, vector<4x32xf32> -> vector<4x32xf32>
    %676 = vector.shape_cast %675 : vector<4x32xf32> to vector<2x2x32xf32>
    %677 = vector.shape_cast %76 : vector<1x32xf32> to vector<1x1x32xf32>
    %678 = vector.broadcast %677 : vector<1x1x32xf32> to vector<2x2x32xf32>
    %679 = arith.addf %676, %678 : vector<2x2x32xf32>
    %cst_253 = arith.constant dense<0.000000e+00> : vector<2x32xf32>
    %680 = vector.multi_reduction <add>, %679, %cst_253 [1] : vector<2x2x32xf32> to vector<2x32xf32>
    %681 = vector.shape_cast %680 : vector<2x32xf32> to vector<2x1x32xf32>
    %cst_254 = arith.constant 2.000000e+00 : f32
    %682 = vector.broadcast %cst_254 : f32 to vector<2x1x32xf32>
    %683 = arith.divf %681, %682 : vector<2x1x32xf32>
    %684 = vector.broadcast %683 : vector<2x1x32xf32> to vector<2x2x32xf32>
    %685 = arith.subf %679, %684 : vector<2x2x32xf32>
    %686 = arith.mulf %685, %685 : vector<2x2x32xf32>
    %cst_255 = arith.constant dense<0.000000e+00> : vector<2x32xf32>
    %687 = vector.multi_reduction <add>, %686, %cst_255 [1] : vector<2x2x32xf32> to vector<2x32xf32>
    %688 = vector.shape_cast %687 : vector<2x32xf32> to vector<2x1x32xf32>
    %cst_256 = arith.constant 2.000000e+00 : f32
    %689 = vector.broadcast %cst_256 : f32 to vector<2x1x32xf32>
    %690 = arith.divf %688, %689 : vector<2x1x32xf32>
    %691 = vector.broadcast %683 : vector<2x1x32xf32> to vector<2x2x32xf32>
    %692 = arith.subf %679, %691 : vector<2x2x32xf32>
    %cst_257 = arith.constant 9.99999974E-6 : f32
    %693 = vector.broadcast %cst_257 : f32 to vector<2x1x32xf32>
    %694 = arith.addf %690, %693 : vector<2x1x32xf32>
    %695 = math.rsqrt %694 : vector<2x1x32xf32>
    %696 = vector.broadcast %695 : vector<2x1x32xf32> to vector<2x2x32xf32>
    %697 = arith.mulf %692, %696 : vector<2x2x32xf32>
    %698 = tpu.concatenate %217, %573 in 0 : vector<2x2x32xf32>, vector<2x2x32xf32> -> vector<4x2x32xf32>
    %699 = vector.shape_cast %698 : vector<4x2x32xf32> to vector<8x32xf32>
    %700 = arith.truncf %699 : vector<8x32xf32> to vector<8x32xbf16>
    %701 = arith.truncf %88 : vector<32x16xf32> to vector<32x16xbf16>
    %cst_258 = arith.constant dense<0.000000e+00> : vector<8x16xf32>
    %702 = tpu.matmul %700, %701, %cst_258 {dimension_numbers = #tpu.dot_dimension_numbers<[1], [0], [0], [1], [0, 0, 1, 1], [], []>} : vector<8x32xbf16>, vector<32x16xbf16>, vector<8x16xf32> -> vector<8x16xf32>
    %703 = vector.shape_cast %702 : vector<8x16xf32> to vector<4x2x16xf32>
    %cst_259 = arith.constant dense<0.000000e+00> : vector<4x16xf32>
    %704 = vector.multi_reduction <add>, %703, %cst_259 [1] : vector<4x2x16xf32> to vector<4x16xf32>
    %705 = vector.shape_cast %704 : vector<4x16xf32> to vector<4x1x16xf32>
    %cst_260 = arith.constant 2.000000e+00 : f32
    %706 = vector.broadcast %cst_260 : f32 to vector<4x1x16xf32>
    %707 = arith.divf %705, %706 : vector<4x1x16xf32>
    %708 = vector.broadcast %707 : vector<4x1x16xf32> to vector<4x2x16xf32>
    %709 = arith.subf %703, %708 : vector<4x2x16xf32>
    %710 = arith.mulf %709, %709 : vector<4x2x16xf32>
    %cst_261 = arith.constant dense<0.000000e+00> : vector<4x16xf32>
    %711 = vector.multi_reduction <add>, %710, %cst_261 [1] : vector<4x2x16xf32> to vector<4x16xf32>
    %712 = vector.shape_cast %711 : vector<4x16xf32> to vector<4x1x16xf32>
    %cst_262 = arith.constant 2.000000e+00 : f32
    %713 = vector.broadcast %cst_262 : f32 to vector<4x1x16xf32>
    %714 = arith.divf %712, %713 : vector<4x1x16xf32>
    %715 = vector.broadcast %707 : vector<4x1x16xf32> to vector<4x2x16xf32>
    %716 = arith.subf %703, %715 : vector<4x2x16xf32>
    %cst_263 = arith.constant 9.99999974E-6 : f32
    %717 = vector.broadcast %cst_263 : f32 to vector<4x1x16xf32>
    %718 = arith.addf %714, %717 : vector<4x1x16xf32>
    %719 = math.rsqrt %718 : vector<4x1x16xf32>
    %720 = vector.broadcast %719 : vector<4x1x16xf32> to vector<4x2x16xf32>
    %721 = arith.mulf %716, %720 : vector<4x2x16xf32>
    %722 = vector.shape_cast %89 : vector<1x16xf32> to vector<1x1x16xf32>
    %723 = vector.broadcast %722 : vector<1x1x16xf32> to vector<4x2x16xf32>
    %724 = arith.mulf %721, %723 : vector<4x2x16xf32>
    %725 = vector.shape_cast %90 : vector<1x16xf32> to vector<1x1x16xf32>
    %726 = vector.broadcast %725 : vector<1x1x16xf32> to vector<4x2x16xf32>
    %727 = arith.addf %724, %726 : vector<4x2x16xf32>
    %cst_264 = arith.constant 0.000000e+00 : f32
    %728 = vector.broadcast %cst_264 : f32 to vector<4x2x16xf32>
    %729 = arith.maximumf %727, %728 : vector<4x2x16xf32>
    %730 = vector.shape_cast %729 : vector<4x2x16xf32> to vector<8x16xf32>
    %731 = arith.truncf %730 : vector<8x16xf32> to vector<8x16xbf16>
    %732 = arith.truncf %91 : vector<16x128xf32> to vector<16x128xbf16>
    %cst_265 = arith.constant dense<0.000000e+00> : vector<8x128xf32>
    %733 = tpu.matmul %731, %732, %cst_265 {dimension_numbers = #tpu.dot_dimension_numbers<[1], [0], [0], [1], [0, 0, 1, 1], [], []>} : vector<8x16xbf16>, vector<16x128xbf16>, vector<8x128xf32> -> vector<8x128xf32>
    %734 = vector.shape_cast %733 : vector<8x128xf32> to vector<4x2x128xf32>
    %735 = vector.shape_cast %92 : vector<1x128xf32> to vector<1x1x128xf32>
    %736 = vector.broadcast %735 : vector<1x1x128xf32> to vector<4x2x128xf32>
    %737 = arith.addf %734, %736 : vector<4x2x128xf32>
    %738 = vector.shape_cast %737 : vector<4x2x128xf32> to vector<8x128xf32>
    %c0_266 = arith.constant 0 : index
    %c0_267 = arith.constant 0 : index
    %739 = vector.load %arg28[%c0_266, %c0_267] : memref<8x128xf32, #tpu.memory_space<vmem>>, vector<8x128xf32>
    tpu.vector_store %arg28[%c0_266, %c0_267], %738 {strides = array<i32>} : memref<8x128xf32, #tpu.memory_space<vmem>>, vector<8x128xf32>,
    %740 = vector.shape_cast %697 : vector<2x2x32xf32> to vector<4x32xf32>
    %c0_268 = arith.constant 0 : index
    %c0_269 = arith.constant 0 : index
    %741 = vector.load %arg29[%c0_268, %c0_269] : memref<4x32xf32, #tpu.memory_space<vmem>>, vector<4x32xf32>
    tpu.vector_store %arg29[%c0_268, %c0_269], %740 {strides = array<i32>} : memref<4x32xf32, #tpu.memory_space<vmem>>, vector<4x32xf32>,
    return
  }
}

</mosaic_0001>

<bundles_post_ra>
// kernel: ssql_byol_forward.1
= control target key start
LH: loop header
LB: loop body
LE: loop exit
PB: predicated region body
PF: predicated region fallthrough
CT: control target
= control target key end

     0   :  { %s5687_s6 = smov 1   ;;  %s5688_s10 = smov 2   ;;  %s8633_s0 = inlined_call_operand.smem [shape: u32[41], index: -1, kind: input, shape index: {}] }
   0x1   :  { %s5749_s5 = sld [smem:[%s8633_s0]]   ;;  %s5689_s14 = smov 3  }
   0x2   :  { %s5754_s9 = sld [smem:[%s8633_s0 + %s5687_s6]]   ;;  %s5690_s18 = smov 4  }
   0x3   :  { %s5759_s13 = sld [smem:[%s8633_s0 + %s5688_s10]]   ;;  %s5691_s22 = smov 5  }
   0x4   :  { %s5764_s17 = sld [smem:[%s8633_s0 + %s5689_s14]]   ;;  %s5692_s26 = smov 6  }
   0x5   :  { %s5769_s21 = sld [smem:[%s8633_s0 + %s5690_s18]]   ;;  %s5693_s30 = smov 7  }
   0x6   :  { %s5774_s25 = sld [smem:[%s8633_s0 + %s5691_s22]]   ;;  %s5694_s4 = smov 8  }
   0x7   :  { %s5779_s29 = sld [smem:[%s8633_s0 + %s5692_s26]]   ;;  %s5695_s10 = smov 9  }
   0x8   :  { %s5784_s3 = sld [smem:[%s8633_s0 + %s5693_s30]]   ;;  %s5696_s15 = smov 10  }
   0x9   :  { %s5789_s8 = sld [smem:[%s8633_s0 + %s5694_s4]]   ;;  %s5697_s20 = smov 11  }
   0xa   :  { %s5794_s14 = sld [smem:[%s8633_s0 + %s5695_s10]]   ;;  %s5698_s26 = smov 12  }
   0xb   :  { %s5799_s19 = sld [smem:[%s8633_s0 + %s5696_s15]]   ;;  %s5699_s1 = smov 13  }
   0xc   :  { %s5804_s24 = sld [smem:[%s8633_s0 + %s5697_s20]]   ;;  %s5700_s7 = smov 14  }
   0xd   :  { %s5809_s30 = sld [smem:[%s8633_s0 + %s5698_s26]]   ;;  %s5701_s15 = smov 15  }
   0xe   :  { %s5814_s6 = sld [smem:[%s8633_s0 + %s5699_s1]]   ;;  %s5702_s22 = smov 16  }
   0xf   :  { %s5819_s12 = sld [smem:[%s8633_s0 + %s5700_s7]]   ;;  %s5703_s28 = smov 17  }
  0x10   :  { %s5824_s20 = sld [smem:[%s8633_s0 + %s5701_s15]]   ;;  %s5704_s7 = smov 18  }
  0x11   :  { %s5829_s27 = sld [smem:[%s8633_s0 + %s5702_s22]]   ;;  %s5705_s15 = smov 19  }
  0x12   :  { %8686 = sst [smem:[#allocation21_spill]] %s5804_s24  ;;  %s5706_s22 = smov 20  }
  0x13   :  { %s5834_s4 = sld [smem:[%s8633_s0 + %s5703_s28]]   ;;  %s5707_s28 = smov 21  }
  0x14   :  { %s5839_s24 = sld [smem:[%s8633_s0 + %s5704_s7]]   ;;  %s5708_s7 = smov 22  }
  0x15   :  { %8687 = sst [smem:[#allocation22_spill]] %s5819_s12 }
  0x16   :  { %8688 = sst [smem:[#allocation23_spill]] %s5824_s20 }
  0x17   :  { %8689 = sst [smem:[#allocation24_spill]] %s5829_s27 }
  0x18   :  { %s5844_s20 = sld [smem:[%s8633_s0 + %s5705_s15]]   ;;  %s5709_s15 = smov 23  }
  0x19   :  { %8690 = sst [smem:[#allocation25_spill]] %s5834_s4 }
  0x1a   :  { %8691 = sst [smem:[#allocation26_spill]] %s5839_s24 }
  0x1b   :  { %s5849_s27 = sld [smem:[%s8633_s0 + %s5706_s22]]   ;;  %s5710_s22 = smov 24  }
  0x1c   :  { %s5854_s4 = sld [smem:[%s8633_s0 + %s5707_s28]]   ;;  %s5711_s28 = smov 25  }
  0x1d   :  { %s5859_s24 = sld [smem:[%s8633_s0 + %s5708_s7]]   ;;  %s5712_s7 = smov 26  }
  0x1e   :  { %8692 = sst [smem:[#allocation27_spill]] %s5844_s20 }
  0x1f   :  { %s5864_s20 = sld [smem:[%s8633_s0 + %s5709_s15]]   ;;  %s5713_s15 = smov 27  }
  0x21   :  { %8693 = sst [smem:[#allocation28_spill]] %s5849_s27 }
  0x22   :  { %8694 = sst [smem:[#allocation29_spill]] %s5854_s4 }
  0x23   :  { %8695 = sst [smem:[#allocation30_spill]] %s5859_s24 }
  0x24   :  { %s5869_s27 = sld [smem:[%s8633_s0 + %s5710_s22]]   ;;  %s5714_s22 = smov 28  }
  0x25   :  { %8696 = sst [smem:[#allocation31_spill]] %s5864_s20 }
  0x26   :  { %s5874_s4 = sld [smem:[%s8633_s0 + %s5711_s28]]   ;;  %s5715_s28 = smov 29  }
  0x27   :  { %s5879_s24 = sld [smem:[%s8633_s0 + %s5712_s7]]   ;;  %s5716_s7 = smov 30  }
  0x28   :  { %s5884_s20 = sld [smem:[%s8633_s0 + %s5713_s15]]   ;;  %s5717_s15 = smov 31  }
  0x2a   :  { %8697 = sst [smem:[#allocation32_spill]] %s5869_s27 }
  0x2b   :  { %s5889_s27 = sld [smem:[%s8633_s0 + %s5714_s22]]   ;;  %s5718_s22 = smov 32  }
  0x2c   :  { %8698 = sst [smem:[#allocation33_spill]] %s5874_s4 }
  0x2d   :  { %8699 = sst [smem:[#allocation34_spill]] %s5879_s24 }
  0x2e   :  { %8700 = sst [smem:[#allocation35_spill]] %s5884_s20 }
  0x2f   :  { %s5894_s4 = sld [smem:[%s8633_s0 + %s5715_s28]]   ;;  %s5719_s28 = smov 33  }
  0x30   :  { %s5899_s24 = sld [smem:[%s8633_s0 + %s5716_s7]]   ;;  %s5720_s7 = smov 34  }
  0x31   :  { %8701 = sst [smem:[#allocation36_spill]] %s5889_s27 }
  0x32   :  { %s5904_s20 = sld [smem:[%s8633_s0 + %s5717_s15]]   ;;  %s5721_s15 = smov 35  }
  0x33   :  { %s5909_s27 = sld [smem:[%s8633_s0 + %s5718_s22]]   ;;  %s5722_s22 = smov 36  }
  0x34   :  { %s5919_s12 = sld [smem:[%s8633_s0 + %s5720_s7]]   ;;  %s5724_s7 = smov 38  }
  0x35   :  { %8702 = sst [smem:[#allocation37_spill]] %s5894_s4 }
  0x36   :  { %s5914_s4 = sld [smem:[%s8633_s0 + %s5719_s28]]   ;;  %s5723_s28 = smov 37  }
  0x38   :  { %8703 = sst [smem:[#allocation38_spill]] %s5904_s20 }
  0x39   :  { %8704 = sst [smem:[#allocation39_spill]] %s5909_s27 }
  0x3a   :  { %8706 = sst [smem:[#allocation41_spill]] %s5919_s12 }
  0x3b   :  { %s5924_s20 = sld [smem:[%s8633_s0 + %s5721_s15]]   ;;  %s5725_s15 = smov 39  }
  0x3c   :  { %8705 = sst [smem:[#allocation40_spill]] %s5914_s4 }
  0x3d   :  { %s5929_s27 = sld [smem:[%s8633_s0 + %s5722_s22]]   ;;  %s5726_s22 = smov 40  }
  0x3e   :  { %s5934_s4 = sld [smem:[%s8633_s0 + %s5723_s28]]  }
  0x3f   :  { %s5939_s12 = sld [smem:[%s8633_s0 + %s5724_s7]]  }
  0x41   :  { %8707 = sst [smem:[#allocation42_spill]] %s5924_s20 }
  0x42   :  { %s5944_s20 = sld [smem:[%s8633_s0 + %s5725_s15]]  }
  0x43   :  { %8708 = sst [smem:[#allocation43_spill]] %s5929_s27 }
  0x44   :  { %s5949_s27 = sld [smem:[%s8633_s0 + %s5726_s22]]  }
  0x45   :  { %87 = vsyncpa [#allocation3], 0 }
  0x46   :  { %88 = vsyncpa [#allocation5], 0 }
  0x47   :  { %89 = vsyncpa [#allocation8], 0 }
  0x48   :  { %90 = vsyncpa [#allocation11], 0  ;;  %v5952_v0 = vld [vmem:[%s5754_s9] sm:$0xff]  ;;  %v5955_v1 = vld [vmem:[%s5754_s9 + $0x8] sm:$0xff]  ;;  %vm330_vm0 = vcmask 293888   ;;  %vm379_vm1 = vcmask 1041408  }
  0x49   :  { %v5958_v2 = vld [vmem:[%s5754_s9 + $0x10] sm:$0xff]  ;;  %v327_v3 = vpack.c.bf16 %v5955_v1, %v5952_v0  ;;  %v5963_v4 = vld [vmem:[%s5754_s9 + $0x18] sm:$0xff]  ;;  %v5966_v5 = vld [vmem:[%s5749_s5] sm:$0xff] }
  0x4a   :  { %v328_v6 = vpack.c.bf16 %v5963_v4, %v5958_v2  ;;  %v5971_v7 = vld [vmem:[%s5754_s9 + $0x20] sm:$0xf]  ;;  %v5974_v8 = vld [vmem:[%s5749_s5 + $0x8] sm:$0xff]  ;;  %v5985_v11 = vld [vmem:[%s5749_s5 + $0x10] sm:$0xff] }
  0x4b   :  { %5019 = vmatprep.subr.bf16.mxu0 %v327_v3  ;;  %v5978_v9 = vpack.c.bf16 %v5974_v8, %v5966_v5  ;;  %v329_v10 = vpack.c.bf16 %v5971_v7, %v5971_v7  ;;  %v5988_v12 = vld [vmem:[%s5749_s5 + $0x18] sm:$0xff]  ;;  %v5993_v14 = vld [vmem:[%s5749_s5 + $0x20] sm:$0xff]  ;;  %v5996_v15 = vld [vmem:[%s5749_s5 + $0x28] sm:$0xff] }
  0x4c   :  { %5020 = vmatpush3.bf16.msra.mxu0 %v327_v3  ;;  %8710 = vst [vmem:[#allocation45_spill] sm:$0xff] %v5996_v15  ;;  %v6000_v16 = vpack.c.bf16 %v5988_v12, %v5985_v11  ;;  %v6004_v17 = vpack.c.bf16 %v5996_v15, %v5993_v14 }
  0x4d   :  { %8709 = vst [vmem:[#allocation44_spill] sm:$0xff] %v5978_v9  ;;  %5021 = vmatprep.subr.bf16.mxu0 %v328_v6  ;;  %5025 = vmatprep.mubr.msk.bf16.mxu0 %vm330_vm0, %v5978_v9  ;;  %v381_v13 = vsel %vm379_vm1, %v329_v10, 0 }
  0x4e   :  { %8711 = vst [vmem:[#allocation46_spill] sm:$0xff] %v6000_v16  ;;  %8712 = vst [vmem:[#allocation47_spill] sm:$0xff] %v6004_v17 }
  0x50   :  { %5022 = vmatpush3.bf16.msra.mxu0 %v328_v6 }
  0x51   :  { %5207 = vmatprep.subr.msk.bf16.mxu0 %vm379_vm1, %v329_v10 }
  0x54   :  { %5024 = vmatpush3.bf16.msra.mxu0 %v381_v13 }
  0x55   :  { %91 = vsyncpa [#allocation14], 0  ;;  %v285_v18 = vld [vmem:[%s5749_s5 + $0x30] sm:$0xff]  ;;  %v286_v19 = vld [vmem:[%s5749_s5 + $0x38] sm:$0xff]  ;;  %vm244_vm2 = vcmask 195584   ;;  %vm1018_vm3 = vcmask 1043456  }
  0x56   :  { %v287_v20 = vld [vmem:[%s5749_s5 + $0x40] sm:$0xff]  ;;  %v288_v21 = vld [vmem:[%s5749_s5 + $0x48] sm:$0xff]  ;;  %v6014_v22 = vpack.c.bf16 %v286_v19, %v285_v18  ;;  %v289_v24 = vld [vmem:[%s5749_s5 + $0x50] sm:$0xff]  ;;  %vm5728_vm4 = vmmov 0   ;;  %vm249_vm5 = vcmask 191488   ;;  %vm1008_vm6 = vcmask 1041409  }
  0x57   :  { %5026 = vmatmul.mubr.msk.bf16.vlgmr.msra.gmra.mrb[0].mxu0 %vm330_vm0, %v6000_v16  ;;  %v6016_v23 = vpack.c.bf16 %v288_v21, %v287_v20  ;;  %v290_v25 = vld [vmem:[%s5749_s5 + $0x58] sm:$0xff]  ;;  %v291_v26 = vld [vmem:[%s5749_s5 + $0x60] sm:$0xff]  ;;  %v292_v27 = vld [vmem:[%s5749_s5 + $0x68] sm:$0xff]  ;;  %vm1010_vm7 = vcmask 1042434   ;;  %vm1012_vm8 = vcmask 1043459   ;;  %vm1073_vm9 = vcmask 123904  }
  0x58   :  { %5029 = vmatprep.mubr.msk.bf16.mxu0 %vm330_vm0, %v6004_v17  ;;  %8713 = vst [vmem:[#allocation48_spill] sm:$0xff] %v6014_v22  ;;  %v6026_v28 = vpack.c.bf16 %v290_v25, %v289_v24  ;;  %v6028_v29 = vpack.c.bf16 %v292_v27, %v291_v26  ;;  %v293_v30 = vld [vmem:[%s5749_s5 + $0x70] sm:$0xff]  ;;  %v294_v31 = vld [vmem:[%s5749_s5 + $0x78] sm:$0xff]  ;;  %v295_v32 = vld [vmem:[%s5749_s5 + $0x80] sm:$0xff]  ;;  %vm254_vm11 = vcmask 130048   ;;  %vm2659_vm14 = vcmask 189440  }
  0x59   :  { %8714 = vst [vmem:[#allocation49_spill] sm:$0xff] %v6016_v23  ;;  %v296_v33 = vld [vmem:[%s5749_s5 + $0x88] sm:$0xff]  ;;  %v6038_v34 = vpack.c.bf16 %v294_v31, %v293_v30  ;;  %v297_v36 = vld [vmem:[%s5749_s5 + $0x90] sm:$0xff]  ;;  %v298_v37 = vld [vmem:[%s5749_s5 + $0x98] sm:$0xff]  ;;  %s8774_s0 = sld [smem:[#allocation22_spill]]  ;;  %s8798_s28 = sld [smem:[#allocation33_spill]] }
  0x5a   :  { %8715 = vst [vmem:[#allocation50_spill] sm:$0xff] %v6026_v28  ;;  %8716 = vst [vmem:[#allocation51_spill] sm:$0xff] %v6028_v29  ;;  %v6040_v35 = vpack.c.bf16 %v296_v33, %v295_v32  ;;  %v299_v38 = vld [vmem:[%s5749_s5 + $0xa0] sm:$0xff]  ;;  %v300_v39 = vld [vmem:[%s5749_s5 + $0xa8] sm:$0xff]  ;;  %v6050_v40 = vpack.c.bf16 %v298_v37, %v297_v36  ;;  %s5730_s1 = smov [#allocation4]   ;;  %s5731_s7 = smov [#allocation7]  }
  0x5b   :  { %8717 = vst [vmem:[#allocation52_spill] sm:$0xff] %v6038_v34  ;;  %v6052_v41 = vpack.c.bf16 %v300_v39, %v299_v38  ;;  %v301_v42 = vld [vmem:[%s5749_s5 + $0xb0] sm:$0xff]  ;;  %v302_v43 = vld [vmem:[%s5749_s5 + $0xb8] sm:$0xff]  ;;  %v303_v44 = vld [vmem:[%s5749_s5 + $0xc0] sm:$0xff]  ;;  %s4714_s2 = sshll.u32 %s5730_s1, 4  ;;  %s4736_s10 = sshll.u32 %s5731_s7, 4  ;;  %s4715_s2 = int_to_ptr.vmem [resolvable:$true] %s4714_s2  ;;  %s8573_s10 = int_to_ptr.vmem [resolvable:$true] %s4736_s10 }
  0x5c   :  { %8718 = vst [vmem:[#allocation53_spill] sm:$0xff] %v6040_v35  ;;  %8719 = vst [vmem:[#allocation54_spill] sm:$0xff] %v6050_v40  ;;  %v304_v45 = vld [vmem:[%s5749_s5 + $0xc8] sm:$0xff]  ;;  %v6062_v46 = vpack.c.bf16 %v302_v43, %v301_v42  ;;  %v305_v48 = vld [vmem:[%s5749_s5 + $0xd0] sm:$0xff]  ;;  %s5479_s11 = scalar_lea.vmem %s4715_s2, 16  ;;  %s5483_s15 = scalar_lea.vmem %s4715_s2, 32 }
  0x5d   :  { %8720 = vst [vmem:[#allocation55_spill] sm:$0xff] %v6052_v41  ;;  %v6064_v47 = vpack.c.bf16 %v304_v45, %v303_v44  ;;  %v306_v49 = vld [vmem:[%s5749_s5 + $0xd8] sm:$0xff]  ;;  %v307_v50 = vld [vmem:[%s5749_s5 + $0xe0] sm:$0xff]  ;;  %v308_v51 = vld [vmem:[%s5749_s5 + $0xe8] sm:$0xff]  ;;  %p5480_p0 = scmp.ne.s32.totalorder %s4715_s2, %s5479_s11  ;;  %p5484_p1 = scmp.lt.s32.totalorder %s4715_s2, %s4715_s2 }
  0x5e   :  { %8721 = vst [vmem:[#allocation56_spill] sm:$0xff] %v6062_v46  ;;  %v6074_v52 = vpack.c.bf16 %v306_v49, %v305_v48  ;;  %v6076_v53 = vpack.c.bf16 %v308_v51, %v307_v50  ;;  %v309_v54 = vld [vmem:[%s5749_s5 + $0xf0] sm:$0xff]  ;;  %v310_v55 = vld [vmem:[%s5749_s5 + $0xf8] sm:$0xff]  ;;  %p5485_p2 = scmp.lt.s32.totalorder %s5483_s15, %s5479_s11 }
  0x5f   :  { %5030 = vmatmul.mubr.msk.bf16.gmra.mrb[4].mxu0 %vm330_vm0, %v6014_v22  ;;  %8722 = vst [vmem:[#allocation57_spill] sm:$0xff] %v6064_v47  ;;  %v6084_v56 = vpack.c.bf16 %v310_v55, %v309_v54 }
  0x60   :  { %5033 = vmatprep.mubr.msk.bf16.mxu0 %vm330_vm0, %v6016_v23  ;;  %8723 = vst [vmem:[#allocation58_spill] sm:$0xff] %v6074_v52  ;;  %8724 = vst [vmem:[#allocation59_spill] sm:$0xff] %v6076_v53  ;;  %p5486_p3 = por %p5485_p2, %p5484_p1 }
  0x61   :  { %8725 = vst [vmem:[#allocation60_spill] sm:$0xff] %v6084_v56 }
  0x62   :  { %p5487_p4 = pnand %p5486_p3, %p5480_p0 }
  0x67   :  { %5034 = vmatmul.mubr.msk.bf16.gmra.mrb[8].mxu0 %vm330_vm0, %v6026_v28 }
  0x68   :  { %5037 = vmatprep.mubr.msk.bf16.mxu0 %vm330_vm0, %v6028_v29 }
  0x6f   :  { %5038 = vmatmul.mubr.msk.bf16.gmra.mrb[12].mxu0 %vm330_vm0, %v6038_v34 }
  0x70   :  { %5041 = vmatprep.mubr.msk.bf16.mxu0 %vm330_vm0, %v6040_v35 }
  0x77   :  { %5042 = vmatmul.mubr.msk.bf16.gmra.mrb[16].mxu0 %vm330_vm0, %v6050_v40 }
  0x78   :  { %5045 = vmatprep.mubr.msk.bf16.mxu0 %vm330_vm0, %v6052_v41 }
  0x7f   :  { %5046 = vmatmul.mubr.msk.bf16.gmra.mrb[20].mxu0 %vm330_vm0, %v6062_v46 }
  0x80   :  { %5049 = vmatprep.mubr.msk.bf16.mxu0 %vm330_vm0, %v6064_v47 }
  0x87   :  { %5050 = vmatmul.mubr.msk.bf16.gmra.mrb[24].mxu0 %vm330_vm0, %v6074_v52 }
  0x88   :  { %5053 = vmatprep.mubr.msk.bf16.mxu0 %vm330_vm0, %v6076_v53 }
  0x8f   :  { %5054 = vmatmul.mubr.msk.bf16.gmra.mrb[28].mxu0 %vm330_vm0, %v6084_v56 }
 0x12a   :  { %v6088_v57 = vpop.f32.mrb[0].mxu0 }
 0x12b   :  { %v6090_v58 = vpop.f32.mrb[1].mxu0  ;;  %v547_v3 = vsel %vm244_vm2, %v6088_v57, 0.0 }
 0x12c   :  { %v6092_v59 = vpop.f32.mrb[2].mxu0  ;;  %v544_v61 = vsel %vm244_vm2, %v6090_v58, 0.0 }
 0x12d   :  { %v6094_v60 = vpop.f32.mrb[3].mxu0  ;;  %v549_v10 = vsel %vm244_vm2, %v6092_v59, 0.0 }
 0x12e   :  { %v545_v62 = vsel %vm244_vm2, %v6094_v60, 0.0 }
 0x12f   :  { %v546_v63 = vadd.f32 %v545_v62, %v544_v61 }
 0x131   :  { %v548_v6 = vadd.f32 %v547_v3, %v546_v63 }
 0x132   :  { %v6104_v13 = vpop.f32.mrb[4].mxu0 }
 0x133   :  { %v6106_v18 = vpop.f32.mrb[5].mxu0  ;;  %v550_v19 = vadd.f32 %v549_v10, %v548_v6  ;;  %v555_v30 = vsel %vm244_vm2, %v6104_v13, 0.0 }
 0x134   :  { %v551_v20 = vsel %vm244_vm2, %v6106_v18, 0.0  ;;  %v6110_v21 = vpop.f32.mrb[6].mxu0 }
 0x135   :  { %v552_v24 = vadd.f32 %v551_v20, %v550_v19  ;;  %v6112_v25 = vpop.f32.mrb[7].mxu0  ;;  %v557_v32 = vsel %vm244_vm2, %v6110_v21, 0.0 }
 0x136   :  { %v553_v26 = vsel %vm244_vm2, %v6112_v25, 0.0 }
 0x137   :  { %v554_v27 = vadd.f32 %v553_v26, %v552_v24 }
 0x139   :  { %v556_v31 = vadd.f32 %v555_v30, %v554_v27 }
 0x13a   :  { %v6120_v33 = vpop.f32.mrb[8].mxu0 }
 0x13b   :  { %v6122_v36 = vpop.f32.mrb[9].mxu0  ;;  %v558_v37 = vadd.f32 %v557_v32, %v556_v31  ;;  %v563_v48 = vsel %vm244_vm2, %v6120_v33, 0.0 }
 0x13c   :  { %v559_v38 = vsel %vm244_vm2, %v6122_v36, 0.0  ;;  %v6126_v39 = vpop.f32.mrb[10].mxu0 }
 0x13d   :  { %v560_v42 = vadd.f32 %v559_v38, %v558_v37  ;;  %v452_v43 = vpop.f32.mrb[11].mxu0  ;;  %v565_v50 = vsel %vm244_vm2, %v6126_v39, 0.0 }
 0x13e   :  { %v561_v44 = vsel %vm244_vm2, %v452_v43, 0.0 }
 0x13f   :  { %v562_v45 = vadd.f32 %v561_v44, %v560_v42 }
 0x141   :  { %v564_v49 = vadd.f32 %v563_v48, %v562_v45 }
 0x142   :  { %v5039_v51 = vpop.f32.mrb[12].mxu0 }
 0x143   :  { %v465_v54 = vpop.f32.mrb[13].mxu0  ;;  %v566_v55 = vadd.f32 %v565_v50, %v564_v49  ;;  %v571_v19 = vsel %vm244_vm2, %v5039_v51, 0.0 }
 0x144   :  { %v567_v61 = vsel %vm244_vm2, %v465_v54, 0.0  ;;  %v5040_v62 = vpop.f32.mrb[14].mxu0 }
 0x145   :  { %v568_v63 = vadd.f32 %v567_v61, %v566_v55  ;;  %v468_v3 = vpop.f32.mrb[15].mxu0  ;;  %v573_v24 = vsel %vm244_vm2, %v5040_v62, 0.0 }
 0x146   :  { %v569_v6 = vsel %vm244_vm2, %v468_v3, 0.0 }
 0x147   :  { %v570_v10 = vadd.f32 %v569_v6, %v568_v63 }
 0x149   :  { %v572_v20 = vadd.f32 %v571_v19, %v570_v10 }
 0x14a   :  { %v6137_v26 = vpop.f32.mrb[16].mxu0 }
 0x14b   :  { %v574_v27 = vadd.f32 %v573_v24, %v572_v20  ;;  %v6139_v30 = vpop.f32.mrb[17].mxu0  ;;  %v584_v48 = vsel %vm244_vm2, %v6137_v26, 0.0 }
 0x14c   :  { %v6141_v31 = vpop.f32.mrb[18].mxu0  ;;  %v581_v38 = vsel %vm244_vm2, %v6139_v30, 0.0 }
 0x14d   :  { %v575_v32 = vrot.slane %v574_v27, 4  ;;  %v6143_v37 = vpop.f32.mrb[19].mxu0  ;;  %v586_v55 = vsel %vm244_vm2, %v6141_v31, 0.0 }
 0x14e   :  { %v582_v42 = vsel %vm244_vm2, %v6143_v37, 0.0 }
 0x14f   :  { %v576_v44 = vadd.f32 %v575_v32, %v574_v27  ;;  %v583_v45 = vadd.f32 %v582_v42, %v581_v38 }
 0x151   :  { %v577_v49 = vrot.slane %v576_v44, 2  ;;  %v585_v50 = vadd.f32 %v584_v48, %v583_v45 }
 0x152   :  { %v6153_v61 = vpop.f32.mrb[20].mxu0 }
 0x153   :  { %v578_v63 = vadd.f32 %v577_v49, %v576_v44  ;;  %v6155_v6 = vpop.f32.mrb[21].mxu0  ;;  %v587_v10 = vadd.f32 %v586_v55, %v585_v50  ;;  %v592_v44 = vsel %vm244_vm2, %v6153_v61, 0.0 }
 0x154   :  { %v588_v19 = vsel %vm244_vm2, %v6155_v6, 0.0  ;;  %v6159_v20 = vpop.f32.mrb[22].mxu0 }
 0x155   :  { %v579_v24 = vrot.slane %v578_v63, 1  ;;  %v589_v27 = vadd.f32 %v588_v19, %v587_v10  ;;  %v6161_v32 = vpop.f32.mrb[23].mxu0  ;;  %v594_v40 = vsel %vm244_vm2, %v6159_v20, 0.0 }
 0x156   :  { %v590_v38 = vsel %vm244_vm2, %v6161_v32, 0.0 }
 0x157   :  { %v580_v42 = vadd.f32 %v579_v24, %v578_v63  ;;  %v591_v45 = vadd.f32 %v590_v38, %v589_v27 }
 0x159   :  { %v619_v48 = vmul.f32 0.0078125, %v580_v42  ;;  %v593_v49 = vadd.f32 %v592_v44, %v591_v45 }
 0x15a   :  { %v6167_v50 = vpop.f32.mrb[24].mxu0 }
 0x15b   :  { %v6170_v55 = vsub.f32 %v6090_v58, %v619_v48  ;;  %v6173_v56 = vsub.f32 %v6094_v60, %v619_v48  ;;  %v6176_v10 = vsub.f32 %v6088_v57, %v619_v48  ;;  %v6179_v19 = vsub.f32 %v6092_v59, %v619_v48  ;;  %v6181_v63 = vpop.f32.mrb[25].mxu0 }
 0x15c   :  { %v6184_v24 = vsub.f32 %v6106_v18, %v619_v48  ;;  %v6187_v27 = vsub.f32 %v6112_v25, %v619_v48  ;;  %v6190_v58 = vsub.f32 %v6104_v13, %v619_v48  ;;  %v6193_v60 = vsub.f32 %v6110_v21, %v619_v48  ;;  %v6195_v38 = vpop.f32.mrb[26].mxu0 }
 0x15d   :  { %v6198_v57 = vsub.f32 %v6122_v36, %v619_v48  ;;  %v6200_v59 = vsub.f32 %v452_v43, %v619_v48  ;;  %v6203_v42 = vsub.f32 %v6120_v33, %v619_v48  ;;  %v6206_v18 = vsub.f32 %v6126_v39, %v619_v48  ;;  %v6208_v25 = vpop.f32.mrb[27].mxu0 }
 0x15e   :  { %v6210_v13 = vsub.f32 %v465_v54, %v619_v48  ;;  %v6212_v45 = vsub.f32 %v468_v3, %v619_v48  ;;  %v6214_v21 = vsub.f32 %v5039_v51, %v619_v48  ;;  %v6216_v44 = vsub.f32 %v5040_v62, %v619_v48 }
 0x15f   :  { %v653_v36 = vmul.f32 %v6170_v55, %v6170_v55  ;;  %v654_v33 = vmul.f32 %v6173_v56, %v6173_v56  ;;  %v655_v39 = vmul.f32 %v6176_v10, %v6176_v10  ;;  %v656_v54 = vmul.f32 %v6179_v19, %v6179_v19 }
 0x160   :  { %v657_v52 = vmul.f32 %v6184_v24, %v6184_v24  ;;  %v595_v35 = vadd.f32 %v594_v40, %v593_v49  ;;  %v598_v34 = vsel %vm244_vm2, %v6208_v25, 0.0  ;;  %v660_v28 = vmul.f32 %v6193_v60, %v6193_v60 }
 0x161   :  { %v685_v3 = vsel %vm244_vm2, %v653_v36, 0.0  ;;  %v686_v51 = vsel %vm244_vm2, %v654_v33, 0.0  ;;  %v688_v47 = vsel %vm244_vm2, %v655_v39, 0.0  ;;  %v658_v36 = vmul.f32 %v6187_v27, %v6187_v27 }
 0x162   :  { %v6224_v43 = vpop.f32.mrb[28].mxu0  ;;  %v687_v48 = vadd.f32 %v686_v51, %v685_v3  ;;  %v690_v33 = vsel %vm244_vm2, %v656_v54, 0.0  ;;  %v596_v51 = vsel %vm244_vm2, %v6181_v63, 0.0  ;;  %v659_v39 = vmul.f32 %v6190_v58, %v6190_v58 }
 0x163   :  { %v6230_v62 = vpop.f32.mrb[29].mxu0  ;;  %v694_v54 = vsel %vm244_vm2, %v658_v36, 0.0  ;;  %v600_v49 = vsel %vm244_vm2, %v6167_v50, 0.0 }
 0x164   :  { %v6232_v53 = vpop.f32.mrb[30].mxu0  ;;  %v689_v41 = vadd.f32 %v688_v47, %v687_v48  ;;  %v692_v47 = vsel %vm244_vm2, %v657_v52, 0.0  ;;  %v597_v48 = vadd.f32 %v596_v51, %v595_v35  ;;  %v696_v23 = vsel %vm244_vm2, %v659_v39, 0.0 }
 0x165   :  { %v6237_v46 = vpop.f32.mrb[31].mxu0  ;;  %v602_v35 = vsel %vm244_vm2, %v6195_v38, 0.0  ;;  %v604_v52 = vsel %vm244_vm2, %v6230_v62, 0.0  ;;  %v663_v39 = vmul.f32 %v6203_v42, %v6203_v42 }
 0x166   :  { %v691_v3 = vadd.f32 %v690_v33, %v689_v41  ;;  %v599_v40 = vadd.f32 %v598_v34, %v597_v48  ;;  %v661_v33 = vmul.f32 %v6198_v57, %v6198_v57  ;;  %v662_v34 = vmul.f32 %v6200_v59, %v6200_v59 }
 0x167   :  { %v606_v51 = vsel %vm244_vm2, %v6237_v46, 0.0 }
 0x168   :  { %v693_v29 = vadd.f32 %v692_v47, %v691_v3  ;;  %v601_v22 = vadd.f32 %v600_v49, %v599_v40  ;;  %v702_v40 = vsel %vm244_vm2, %v662_v34, 0.0 }
 0x16a   :  { %v695_v41 = vadd.f32 %v694_v54, %v693_v29  ;;  %v698_v29 = vsel %vm244_vm2, %v660_v28, 0.0  ;;  %v603_v36 = vadd.f32 %v602_v35, %v601_v22  ;;  %v664_v54 = vmul.f32 %v6206_v18, %v6206_v18 }
 0x16b   :  { %v665_v22 = vmul.f32 %v6210_v13, %v6210_v13  ;;  %v704_v28 = vsel %vm244_vm2, %v663_v39, 0.0  ;;  %v668_v39 = vmul.f32 %v6216_v44, %v6216_v44 }
 0x16c   :  { %v697_v17 = vadd.f32 %v696_v23, %v695_v41  ;;  %v700_v23 = vsel %vm244_vm2, %v661_v33, 0.0  ;;  %v605_v47 = vadd.f32 %v604_v52, %v603_v36  ;;  %v610_v33 = vsel %vm244_vm2, %v6232_v53, 0.0 }
 0x16d   :  { %v666_v52 = vmul.f32 %v6212_v45, %v6212_v45  ;;  %v706_v34 = vsel %vm244_vm2, %v664_v54, 0.0 }
 0x16e   :  { %v699_v3 = vadd.f32 %v698_v29, %v697_v17  ;;  %v607_v41 = vadd.f32 %v606_v51, %v605_v47  ;;  %v608_v17 = vsel %vm244_vm2, %v6224_v43, 0.0  ;;  %v667_v51 = vmul.f32 %v6214_v21, %v6214_v21 }
 0x170   :  { %v701_v48 = vadd.f32 %v700_v23, %v699_v3  ;;  %v609_v35 = vadd.f32 %v608_v17, %v607_v41  ;;  %v708_v23 = vsel %vm244_vm2, %v665_v22, 0.0  ;;  %v712_v17 = vsel %vm244_vm2, %v667_v51, 0.0 }
 0x172   :  { %v703_v49 = vadd.f32 %v702_v40, %v701_v48  ;;  %v611_v36 = vadd.f32 %v610_v33, %v609_v35  ;;  %v710_v40 = vsel %vm244_vm2, %v666_v52, 0.0  ;;  %v714_v35 = vsel %vm244_vm2, %v668_v39, 0.0 }
 0x174   :  { %v705_v29 = vadd.f32 %v704_v28, %v703_v49  ;;  %v612_v47 = vrot.slane %v611_v36, 4 }
 0x176   :  { %v707_v3 = vadd.f32 %v706_v34, %v705_v29  ;;  %v613_v41 = vadd.f32 %v612_v47, %v611_v36 }
 0x178   :  { %v709_v48 = vadd.f32 %v708_v23, %v707_v3  ;;  %v614_v28 = vrot.slane %v613_v41, 2 }
 0x17a   :  { %v711_v49 = vadd.f32 %v710_v40, %v709_v48  ;;  %v615_v29 = vadd.f32 %v614_v28, %v613_v41 }
 0x17c   :  { %v713_v54 = vadd.f32 %v712_v17, %v711_v49  ;;  %v616_v34 = vrot.slane %v615_v29, 1 }
 0x17e   :  { %v715_v33 = vadd.f32 %v714_v35, %v713_v54  ;;  %v617_v22 = vadd.f32 %v616_v34, %v615_v29  ;;  %v156_v29 = vld [vmem:[%s5769_s21] sm:$0xff]  ;;  %v158_v34 = vld [vmem:[%s5769_s21 + $0x10] sm:$0xff] }
 0x180   :  { %v716_v16 = vrot.slane %v715_v33, 4  ;;  %v620_v3 = vmul.f32 0.0078125, %v617_v22 }
 0x182   :  { %v717_v9 = vadd.f32 %v716_v16, %v715_v33  ;;  %v6293_v15 = vsub.f32 %v6139_v30, %v620_v3  ;;  %v6296_v52 = vsub.f32 %v6143_v37, %v620_v3  ;;  %v6299_v36 = vsub.f32 %v6137_v26, %v620_v3  ;;  %v157_v33 = vld [vmem:[%s5769_s21 + $0x8] sm:$0xff] }
 0x183   :  { %v6302_v51 = vsub.f32 %v6141_v31, %v620_v3  ;;  %v6305_v48 = vsub.f32 %v6155_v6, %v620_v3  ;;  %v6308_v16 = vsub.f32 %v6161_v32, %v620_v3  ;;  %v6311_v39 = vsub.f32 %v6153_v61, %v620_v3 }
 0x184   :  { %v718_v23 = vrot.slane %v717_v9, 2  ;;  %v6314_v30 = vsub.f32 %v6159_v20, %v620_v3  ;;  %v6317_v37 = vsub.f32 %v6181_v63, %v620_v3  ;;  %v6320_v26 = vsub.f32 %v6208_v25, %v620_v3 }
 0x185   :  { %v6326_v6 = vsub.f32 %v6195_v38, %v620_v3  ;;  %v6329_v32 = vsub.f32 %v6230_v62, %v620_v3  ;;  %v6332_v61 = vsub.f32 %v6237_v46, %v620_v3  ;;  %v798_v20 = vlaneseq }
 0x186   :  { %v719_v47 = vadd.f32 %v718_v23, %v717_v9  ;;  %v6323_v9 = vsub.f32 %v6167_v50, %v620_v3  ;;  %v6335_v63 = vsub.f32 %v6224_v43, %v620_v3  ;;  %v6338_v25 = vsub.f32 %v6232_v53, %v620_v3 }
 0x187   :  { %v669_v38 = vmul.f32 %v6293_v15, %v6293_v15  ;;  %v670_v62 = vmul.f32 %v6296_v52, %v6296_v52  ;;  %v671_v46 = vmul.f32 %v6299_v36, %v6299_v36  ;;  %v6346_v41 = vshrl.u32 %v798_v20, 7 }
 0x188   :  { %v720_v31 = vrot.slane %v719_v47, 1  ;;  %v672_v53 = vmul.f32 %v6302_v51, %v6302_v51  ;;  %v673_v54 = vmul.f32 %v6305_v48, %v6305_v48  ;;  %v674_v22 = vmul.f32 %v6308_v16, %v6308_v16 }
 0x189   :  { %8726 = vst [vmem:[#allocation61_spill] sm:$0xff] %v6346_v41  ;;  %v722_v49 = vsel %vm244_vm2, %v669_v38, 0.0  ;;  %v723_v17 = vsel %vm244_vm2, %v670_v62, 0.0  ;;  %v725_v35 = vsel %vm244_vm2, %v671_v46, 0.0  ;;  %v6361_v23 = vsub.s32 0, %v6346_v41 }
 0x18a   :  { %v721_v50 = vadd.f32 %v720_v31, %v719_v47  ;;  %v724_v28 = vadd.f32 %v723_v17, %v722_v49  ;;  %v727_v47 = vsel %vm244_vm2, %v672_v53, 0.0  ;;  %v6365_v31 = vld [vmem:[%s5759_s13] ss:$0 sm:$0xff]  ;;  %v999_v38 = vpack.c.bf16 %v158_v34, %v158_v34 }
 0x18b   :  { %8727 = vst [vmem:[#allocation62_spill] sm:$0xff] %v6361_v23  ;;  %8728 = vst [vmem:[#allocation63_spill] sm:$0xff] %v6365_v31  ;;  %v675_v62 = vmul.f32 %v6311_v39, %v6311_v39  ;;  %v8663_v46 = vmov 0.0   ;;  %v6374_v49 = vld [vmem:[%s5764_s17] ss:$0 sm:$0xff]  ;;  %v731_v17 = vsel %vm244_vm2, %v674_v22, 0.0 }
 0x18c   :  { %v759_v40 = vmul.f32 0.0078125, %v721_v50  ;;  %v726_v3 = vadd.f32 %v725_v35, %v724_v28  ;;  %v998_v50 = vpack.c.bf16 %v157_v33, %v156_v29  ;;  %5057 = vmatprep.subr.bf16.mxu0 %v8663_v46  ;;  %5065 = vmatprep.subr.bf16.mxu1 %v8663_v46  ;;  %8729 = vst [vmem:[#allocation64_spill] sm:$0xff] %v6374_v49  ;;  %v1903_v35 = vsel %vm249_vm5, %v5971_v7, inf }
 0x18d   :  { %5061 = vmatprep.mubr.msk.bf16.mxu0 %vm5728_vm4, %v8663_v46  ;;  %v182_v29 = vmul.f32 0.01, %v5971_v7  ;;  %v1891_v33 = vsel %vm244_vm2, %v5952_v0, inf  ;;  %5067 = vmatprep.mubr.msk.bf16.mxu1 %vm5728_vm4, %v8663_v46  ;;  %v733_v22 = vsel %vm244_vm2, %v675_v62, 0.0  ;;  %v678_v62 = vmul.f32 %v6320_v26, %v6320_v26 }
 0x18e   :  { %v761_v43 = vadd.f32 1e-05, %v759_v40  ;;  %v728_v20 = vadd.f32 %v727_v47, %v726_v3  ;;  %v729_v40 = vsel %vm244_vm2, %v673_v54, 0.0  ;;  %5058 = vmatpush3.bf16.msra.mxu0 %v998_v50  ;;  %v1020_v54 = vsel %vm1018_vm3, %v999_v38, 0  ;;  %1904 = vmin.xlane.f32.xlu0 %v1903_v35 }
 0x18f   :  { %5059 = vmatprep.subr.bf16.mxu0 %v8663_v46  ;;  %1892 = vmin.xlane.f32.xlu1 %v1891_v33  ;;  %v1918_v47 = vsel %vm249_vm5, %v5971_v7, -inf  ;;  %v677_v50 = vmul.f32 %v6317_v37, %v6317_v37  ;;  %v1380_v7 = vsel %vm330_vm0, %v5966_v5, inf }
 0x190   :  { %5316 = vrsqrt.f32 %v761_v43  ;;  %v172_v43 = vld [vmem:[%s5809_s30 + $0x20] sm:$0xf]  ;;  %v730_v53 = vadd.f32 %v729_v40, %v728_v20  ;;  %v676_v20 = vmul.f32 %v6314_v30, %v6314_v30  ;;  %v1906_v40 = vsel %vm244_vm2, %v5952_v0, -inf }
 0x191   :  { %v177_v28 = vmul.f32 0.99, %v172_v43 }
 0x192   :  { %v732_v34 = vadd.f32 %v731_v17, %v730_v53  ;;  %5060 = vmatpush3.bf16.msra.mxu0 %v1020_v54  ;;  %v6405_v53 = vmul.f32 %v6323_v9, %v6323_v9  ;;  %v1383_v17 = vsel %vm330_vm0, %v5974_v8, inf  ;;  %1919 = vmax.xlane.f32.xlu0 %v1918_v47 }
 0x193   :  { %v6389_v3 = vadd.f32 %v182_v29, %v177_v28  ;;  %5115 = vmatprep.subr.bf16.mxu0 %v8663_v46  ;;  %1907 = vmax.xlane.f32.xlu1 %v1906_v40 }
 0x194   :  { %v6397_v38 = vadd.f32 %v733_v22, %v732_v34 }
 0x195   :  { %8730 = vst [vmem:[#allocation65_spill] sm:$0xff] %v6389_v3  ;;  %250 = vst.msk [vmem:[%s5899_s24 + $0x20] sm:$0xf] %vm249_vm5, %v6389_v3 }
 0x196   :  { %1381 = vmin.xlane.f32.xlu0 %v1380_v7  ;;  %v1485_v7 = vsel %vm330_vm0, %v5988_v12, -inf }
 0x197   :  { %1384 = vmin.xlane.f32.xlu1 %v1383_v17 }
 0x19a   :  { %v5317_v43 = vpop.eup %5316 }
 0x19b   :  { %v765_v0 = vmul.f32 %v5317_v43, %v6170_v55  ;;  %v766_v28 = vmul.f32 %v5317_v43, %v6173_v56  ;;  %v767_v54 = vmul.f32 %v5317_v43, %v6176_v10  ;;  %v768_v35 = vmul.f32 %v5317_v43, %v6179_v19 }
 0x19c   :  { %v769_v29 = vmul.f32 %v5317_v43, %v6184_v24  ;;  %v770_v33 = vmul.f32 %v5317_v43, %v6187_v27  ;;  %v771_v34 = vmul.f32 %v5317_v43, %v6190_v58  ;;  %v772_v22 = vmul.f32 %v5317_v43, %v6193_v60 }
 0x19d   :  { %v773_v46 = vmul.f32 %v5317_v43, %v6198_v57  ;;  %v774_v55 = vmul.f32 %v5317_v43, %v6200_v59  ;;  %v775_v56 = vmul.f32 %v5317_v43, %v6203_v42  ;;  %v776_v10 = vmul.f32 %v5317_v43, %v6206_v18 }
 0x19e   :  { %v777_v19 = vmul.f32 %v5317_v43, %v6210_v13  ;;  %v778_v47 = vmul.f32 %v5317_v43, %v6212_v45  ;;  %v779_v24 = vmul.f32 %v5317_v43, %v6214_v21  ;;  %v780_v27 = vmul.f32 %v5317_v43, %v6216_v44 }
 0x19f   :  { %v803_v58 = vmul.f32 %v6365_v31, %v765_v0  ;;  %v804_v60 = vmul.f32 %v6365_v31, %v766_v28  ;;  %v6435_v57 = vmul.f32 %v6326_v6, %v6326_v6  ;;  %v6439_v59 = vmul.f32 %v6329_v32, %v6329_v32 }
 0x1a0   :  { %v6442_v42 = vsel %vm244_vm2, %v676_v20, 0.0  ;;  %v6445_v18 = vsel %vm244_vm2, %v677_v50, 0.0  ;;  %v6448_v13 = vsel %vm244_vm2, %v678_v62, 0.0  ;;  %v1386_v45 = vsel %vm330_vm0, %v5985_v11, inf }
 0x1a1   :  { %v805_v21 = vmul.f32 %v6365_v31, %v767_v54  ;;  %v811_v44 = vmul.f32 %v6365_v31, %v773_v46  ;;  %v812_v40 = vmul.f32 %v6365_v31, %v774_v55  ;;  %v1389_v20 = vsel %vm330_vm0, %v5988_v12, inf  ;;  %1387 = vmin.xlane.f32.xlu0 %v1386_v45 }
 0x1a2   :  { %v1476_v50 = vsel %vm330_vm0, %v5966_v5, -inf  ;;  %v1479_v43 = vsel %vm330_vm0, %v5974_v8, -inf  ;;  %v1482_v62 = vsel %vm330_vm0, %v5985_v11, -inf  ;;  %v806_v17 = vmul.f32 %v6365_v31, %v768_v35  ;;  %1390 = vmin.xlane.f32.xlu1 %v1389_v20 }
 0x1a3   :  { %v813_v46 = vmul.f32 %v6365_v31, %v775_v56  ;;  %v841_v0 = vadd.f32 %v6374_v49, %v803_v58  ;;  %v842_v28 = vadd.f32 %v6374_v49, %v804_v60  ;;  %v807_v5 = vmul.f32 %v6365_v31, %v769_v29 }
 0x1a4   :  { %v1894_v8 = vsel %vm244_vm2, %v5955_v1, inf  ;;  %v1897_v11 = vsel %vm244_vm2, %v5958_v2, inf  ;;  %v6476_v12 = vsel %vm244_vm2, %v5963_v4, inf  ;;  %v814_v54 = vmul.f32 %v6365_v31, %v776_v10 }
 0x1a5   :  { %v843_v35 = vadd.f32 %v6374_v49, %v805_v21  ;;  %v849_v55 = vadd.f32 %v6374_v49, %v811_v44  ;;  %v850_v56 = vadd.f32 %v6374_v49, %v812_v40  ;;  %v808_v29 = vmul.f32 %v6365_v31, %v770_v33  ;;  %1477 = vmax.xlane.f32.xlu0 %v1476_v50 }
 0x1a6   :  { %v809_v58 = vmul.f32 %v6365_v31, %v771_v34  ;;  %v815_v60 = vmul.f32 %v6365_v31, %v777_v19  ;;  %v6487_v45 = vsel %vm244_vm2, %v5955_v1, -inf  ;;  %v844_v20 = vadd.f32 %v6374_v49, %v806_v17  ;;  %1480 = vmax.xlane.f32.xlu1 %v1479_v43 }
 0x1a7   :  { %v851_v10 = vadd.f32 %v6374_v49, %v813_v46  ;;  %v873_v23 = vmax.f32 %v841_v0, 0.0  ;;  %v874_v21 = vmax.f32 %v842_v28, 0.0  ;;  %v810_v44 = vmul.f32 %v6365_v31, %v772_v22 }
 0x1a8   :  { %v816_v40 = vmul.f32 %v6365_v31, %v778_v47  ;;  %v817_v33 = vmul.f32 %v6365_v31, %v779_v24  ;;  %v845_v34 = vadd.f32 %v6374_v49, %v807_v5  ;;  %v852_v19 = vadd.f32 %v6374_v49, %v814_v54 }
 0x1a9   :  { %v875_v1 = vmax.f32 %v843_v35, 0.0  ;;  %v881_v3 = vmax.f32 %v849_v55, 0.0  ;;  %v882_v41 = vmax.f32 %v850_v56, 0.0  ;;  %v818_v17 = vmul.f32 %v6365_v31, %v780_v27  ;;  %1483 = vmax.xlane.f32.xlu0 %v1482_v62 }
 0x1aa   :  { %v846_v46 = vadd.f32 %v6374_v49, %v808_v29  ;;  %v847_v50 = vadd.f32 %v6374_v49, %v809_v58  ;;  %v853_v22 = vadd.f32 %v6374_v49, %v815_v60  ;;  %v876_v0 = vmax.f32 %v844_v20, 0.0  ;;  %1486 = vmax.xlane.f32.xlu1 %v1485_v7 }
 0x1ab   :  { %v883_v47 = vmax.f32 %v851_v10, 0.0  ;;  %v905_v24 = vsel %vm244_vm2, %v873_v23, 0.0  ;;  %v906_v28 = vsel %vm244_vm2, %v874_v21, 0.0  ;;  %v848_v43 = vadd.f32 %v6374_v49, %v810_v44 }
 0x1ac   :  { %v854_v5 = vadd.f32 %v6374_v49, %v816_v40  ;;  %v877_v54 = vmax.f32 %v845_v34, 0.0  ;;  %v907_v35 = vadd.f32 %v906_v28, %v905_v24  ;;  %v884_v27 = vmax.f32 %v852_v19, 0.0 }
 0x1ad   :  { %v908_v55 = vsel %vm244_vm2, %v875_v1, 0.0  ;;  %v926_v56 = vsel %vm244_vm2, %v881_v3, 0.0  ;;  %v927_v29 = vsel %vm244_vm2, %v882_v41, 0.0  ;;  %v855_v58 = vadd.f32 %v6374_v49, %v817_v33  ;;  %1895 = vmin.xlane.f32.xlu0 %v1894_v8 }
 0x1ae   :  { %v878_v23 = vmax.f32 %v846_v46, 0.0  ;;  %v909_v60 = vadd.f32 %v908_v55, %v907_v35  ;;  %v928_v20 = vadd.f32 %v927_v29, %v926_v56  ;;  %v885_v62 = vmax.f32 %v853_v22, 0.0  ;;  %1898 = vmin.xlane.f32.xlu1 %v1897_v11 }
 0x1af   :  { %v910_v10 = vsel %vm244_vm2, %v876_v0, 0.0  ;;  %v929_v21 = vsel %vm244_vm2, %v883_v47, 0.0  ;;  %v736_v7 = vadd.f32 %v6442_v42, %v6397_v38  ;;  %v856_v44 = vadd.f32 %v6374_v49, %v818_v17 }
 0x1b0   :  { %v879_v40 = vmax.f32 %v847_v50, 0.0  ;;  %v911_v3 = vadd.f32 %v910_v10, %v909_v60  ;;  %v930_v34 = vadd.f32 %v929_v21, %v928_v20  ;;  %v886_v41 = vmax.f32 %v854_v5, 0.0  ;;  %v8731_v60 = vld [vmem:[#allocation45_spill] sm:$0xff] }
 0x1b1   :  { %v912_v33 = vsel %vm244_vm2, %v877_v54, 0.0  ;;  %v931_v19 = vsel %vm244_vm2, %v884_v27, 0.0  ;;  %v738_v1 = vadd.f32 %v6445_v18, %v736_v7  ;;  %v880_v46 = vmax.f32 %v848_v43, 0.0  ;;  %1901 = vmin.xlane.f32.xlu0 %v6476_v12 }
 0x1b2   :  { %v913_v22 = vadd.f32 %v912_v33, %v911_v3  ;;  %v932_v0 = vadd.f32 %v931_v19, %v930_v34  ;;  %v741_v38 = vsel %vm244_vm2, %v6405_v53, 0.0  ;;  %v887_v42 = vmax.f32 %v855_v58, 0.0  ;;  %1910 = vmax.xlane.f32.xlu1 %v6487_v45 }
 0x1b3   :  { %v914_v8 = vsel %vm244_vm2, %v878_v23, 0.0  ;;  %v933_v17 = vsel %vm244_vm2, %v885_v62, 0.0  ;;  %v740_v11 = vadd.f32 %v6448_v13, %v738_v1  ;;  %v888_v50 = vmax.f32 %v856_v44, 0.0 }
 0x1b4   :  { %v915_v47 = vadd.f32 %v914_v8, %v913_v22  ;;  %v934_v24 = vadd.f32 %v933_v17, %v932_v0  ;;  %v1912_v18 = vsel %vm244_vm2, %v5958_v2, -inf  ;;  %v916_v28 = vsel %vm244_vm2, %v879_v40, 0.0 }
 0x1b5   :  { %v935_v53 = vsel %vm244_vm2, %v886_v41, 0.0  ;;  %v742_v43 = vadd.f32 %v741_v38, %v740_v11  ;;  %v1915_v5 = vsel %vm244_vm2, %v5963_v4, -inf  ;;  %v682_v12 = vmul.f32 %v6332_v61, %v6332_v61  ;;  %1913 = vmax.xlane.f32.xlu0 %v1912_v18 }
 0x1b6   :  { %v917_v54 = vadd.f32 %v916_v28, %v915_v47  ;;  %v936_v13 = vadd.f32 %v935_v53, %v934_v24  ;;  %v743_v35 = vsel %vm244_vm2, %v6435_v57, 0.0  ;;  %v918_v45 = vsel %vm244_vm2, %v880_v46, 0.0  ;;  %1916 = vmax.xlane.f32.xlu1 %v1915_v5 }
 0x1b7   :  { %v937_v2 = vsel %vm244_vm2, %v887_v42, 0.0  ;;  %v683_v27 = vmul.f32 %v6335_v63, %v6335_v63  ;;  %v744_v55 = vadd.f32 %v743_v35, %v742_v43  ;;  %v745_v4 = vsel %vm244_vm2, %v6439_v59, 0.0 }
 0x1b8   :  { %v919_v56 = vadd.f32 %v918_v45, %v917_v54  ;;  %v938_v29 = vadd.f32 %v937_v2, %v936_v13  ;;  %v1392_v58 = vsel %vm330_vm0, %v5993_v14, inf  ;;  %v939_v57 = vsel %vm244_vm2, %v888_v50, 0.0 }
 0x1b9   :  { %v746_v23 = vadd.f32 %v745_v4, %v744_v55  ;;  %v1395_v20 = vsel %vm330_vm0, %v8731_v60, inf  ;;  %v684_v10 = vmul.f32 %v6338_v25, %v6338_v25  ;;  %v747_v21 = vsel %vm244_vm2, %v682_v12, 0.0  ;;  %1393 = vmin.xlane.f32.xlu0 %v1392_v58 }
 0x1ba   :  { %v940_v62 = vadd.f32 %v939_v57, %v938_v29  ;;  %v920_v7 = vrot.slane %v919_v56, 4  ;;  %v749_v40 = vsel %vm244_vm2, %v683_v27, 0.0  ;;  %1396 = vmin.xlane.f32.xlu1 %v1395_v20  ;;  %v1488_v34 = vsel %vm330_vm0, %v5993_v14, -inf }
 0x1bb   :  { %v748_v44 = vadd.f32 %v747_v21, %v746_v23  ;;  %v1491_v33 = vsel %vm330_vm0, %v8731_v60, -inf  ;;  %v751_v1 = vsel %vm244_vm2, %v684_v10, 0.0 }
 0x1bc   :  { %v941_v59 = vrot.slane %v940_v62, 4  ;;  %v921_v3 = vadd.f32 %v920_v7, %v919_v56 }
 0x1bd   :  { %v750_v41 = vadd.f32 %v749_v40, %v748_v44  ;;  %1489 = vmax.xlane.f32.xlu0 %v1488_v34 }
 0x1be   :  { %v942_v19 = vadd.f32 %v941_v59, %v940_v62  ;;  %v922_v46 = vrot.slane %v921_v3, 2  ;;  %1492 = vmax.xlane.f32.xlu1 %v1491_v33 }
 0x1bf   :  { %v752_v22 = vadd.f32 %v751_v1, %v750_v41 }
 0x1c0   :  { %v943_v0 = vrot.slane %v942_v19, 2  ;;  %v923_v38 = vadd.f32 %v922_v46, %v921_v3 }
 0x1c1   :  { %v753_v42 = vrot.slane %v752_v22, 4 }
 0x1c2   :  { %v944_v8 = vadd.f32 %v943_v0, %v942_v19  ;;  %v924_v17 = vrot.slane %v923_v38, 1 }
 0x1c3   :  { %v754_v11 = vadd.f32 %v753_v42, %v752_v22 }
 0x1c4   :  { %v945_v50 = vrot.slane %v944_v8, 1  ;;  %v925_v47 = vadd.f32 %v924_v17, %v923_v38 }
 0x1c5   :  { %v755_v14 = vrot.slane %v754_v11, 2 }
 0x1c6   :  { %v946_v24 = vadd.f32 %v945_v50, %v944_v8  ;;  %v990_v18 = vmul.f32 0.015625, %v925_v47 }
 0x1c7   :  { %v756_v28 = vadd.f32 %v755_v14, %v754_v11 }
 0x1c8   :  { %v991_v53 = vmul.f32 0.015625, %v946_v24  ;;  %v994_v43 = vpack.c.bf16 %v990_v18, %v990_v18 }
 0x1c9   :  { %v757_v5 = vrot.slane %v756_v28, 1 }
 0x1ca   :  { %v995_v54 = vpack.c.bf16 %v991_v53, %v991_v53  ;;  %v1004_v13 = vunpack.c.l.b16 %v994_v43 }
 0x1cb   :  { %v758_v12 = vadd.f32 %v757_v5, %v756_v28 }
 0x1cc   :  { %v1005_v35 = vunpack.c.l.b16 %v995_v54 }
 0x1cd   :  { %v760_v45 = vmul.f32 0.0078125, %v758_v12 }
 0x1ce   :  { %v6554_v2 = vsel %vm1008_vm6, %v1005_v35, %v1004_v13 }
 0x1cf   :  { %v762_v27 = vadd.f32 1e-05, %v760_v45 }
 0x1d1   :  { %5318 = vrsqrt.f32 %v762_v27 }
 0x1db   :  { %v5319_v55 = vpop.eup %5318 }
 0x1dc   :  { %v781_v56 = vmul.f32 %v5319_v55, %v6293_v15  ;;  %v782_v29 = vmul.f32 %v5319_v55, %v6296_v52  ;;  %v783_v4 = vmul.f32 %v5319_v55, %v6299_v36  ;;  %v784_v58 = vmul.f32 %v5319_v55, %v6302_v51 }
 0x1dd   :  { %v785_v57 = vmul.f32 %v5319_v55, %v6305_v48  ;;  %v786_v23 = vmul.f32 %v5319_v55, %v6308_v16  ;;  %v787_v60 = vmul.f32 %v5319_v55, %v6311_v39  ;;  %v788_v20 = vmul.f32 %v5319_v55, %v6314_v30 }
 0x1de   :  { %v789_v62 = vmul.f32 %v5319_v55, %v6317_v37  ;;  %v790_v10 = vmul.f32 %v5319_v55, %v6320_v26  ;;  %v791_v15 = vmul.f32 %v5319_v55, %v6323_v9  ;;  %v792_v52 = vmul.f32 %v5319_v55, %v6326_v6 }
 0x1df   :  { %v793_v36 = vmul.f32 %v5319_v55, %v6329_v32  ;;  %v794_v51 = vmul.f32 %v5319_v55, %v6332_v61  ;;  %v795_v48 = vmul.f32 %v5319_v55, %v6335_v63  ;;  %v796_v16 = vmul.f32 %v5319_v55, %v6338_v25 }
 0x1e0   :  { %v819_v39 = vmul.f32 %v6365_v31, %v781_v56  ;;  %v820_v30 = vmul.f32 %v6365_v31, %v782_v29  ;;  %v827_v37 = vmul.f32 %v6365_v31, %v789_v62  ;;  %v828_v26 = vmul.f32 %v6365_v31, %v790_v10 }
 0x1e1   :  { %v829_v9 = vmul.f32 %v6365_v31, %v791_v15  ;;  %v821_v6 = vmul.f32 %v6365_v31, %v783_v4  ;;  %v830_v63 = vmul.f32 %v6365_v31, %v792_v52  ;;  %v822_v7 = vmul.f32 %v6365_v31, %v784_v58 }
 0x1e2   :  { %v857_v32 = vadd.f32 %v6374_v49, %v819_v39  ;;  %v858_v61 = vadd.f32 %v6374_v49, %v820_v30  ;;  %v865_v25 = vadd.f32 %v6374_v49, %v827_v37  ;;  %v866_v21 = vadd.f32 %v6374_v49, %v828_v26 }
 0x1e3   :  { %v831_v44 = vmul.f32 %v6365_v31, %v793_v36  ;;  %v867_v59 = vadd.f32 %v6374_v49, %v829_v9  ;;  %v823_v40 = vmul.f32 %v6365_v31, %v785_v57  ;;  %v859_v3 = vadd.f32 %v6374_v49, %v821_v6 }
 0x1e4   :  { %v889_v34 = vmax.f32 %v857_v32, 0.0  ;;  %v890_v41 = vmax.f32 %v858_v61, 0.0  ;;  %v832_v33 = vmul.f32 %v6365_v31, %v794_v51  ;;  %v868_v19 = vadd.f32 %v6374_v49, %v830_v63 }
 0x1e5   :  { %v897_v1 = vmax.f32 %v865_v25, 0.0  ;;  %v898_v46 = vmax.f32 %v866_v21, 0.0  ;;  %v824_v22 = vmul.f32 %v6365_v31, %v786_v23  ;;  %v825_v0 = vmul.f32 %v6365_v31, %v787_v60 }
 0x1e6   :  { %v860_v38 = vadd.f32 %v6374_v49, %v822_v7  ;;  %v833_v42 = vmul.f32 %v6365_v31, %v795_v48  ;;  %v834_v8 = vmul.f32 %v6365_v31, %v796_v16  ;;  %v869_v17 = vadd.f32 %v6374_v49, %v831_v44 }
 0x1e7   :  { %v899_v11 = vmax.f32 %v867_v59, 0.0  ;;  %v861_v50 = vadd.f32 %v6374_v49, %v823_v40  ;;  %v891_v47 = vmax.f32 %v859_v3, 0.0  ;;  %v947_v14 = vsel %vm244_vm2, %v889_v34, 0.0 }
 0x1e8   :  { %v948_v24 = vsel %vm244_vm2, %v890_v41, 0.0  ;;  %v870_v18 = vadd.f32 %v6374_v49, %v832_v33  ;;  %v900_v28 = vmax.f32 %v868_v19, 0.0  ;;  %v968_v53 = vsel %vm244_vm2, %v897_v1, 0.0 }
 0x1e9   :  { %v969_v43 = vsel %vm244_vm2, %v898_v46, 0.0  ;;  %v826_v5 = vmul.f32 %v6365_v31, %v788_v20  ;;  %v862_v54 = vadd.f32 %v6374_v49, %v824_v22  ;;  %v892_v13 = vmax.f32 %v860_v38, 0.0 }
 0x1ea   :  { %v970_v12 = vadd.f32 %v969_v43, %v968_v53  ;;  %v871_v35 = vadd.f32 %v6374_v49, %v833_v42  ;;  %v901_v45 = vmax.f32 %v869_v17, 0.0  ;;  %v971_v27 = vsel %vm244_vm2, %v899_v11, 0.0 }
 0x1eb   :  { %v949_v55 = vadd.f32 %v948_v24, %v947_v14  ;;  %v863_v56 = vadd.f32 %v6374_v49, %v825_v0  ;;  %v893_v29 = vmax.f32 %v861_v50, 0.0  ;;  %v950_v4 = vsel %vm244_vm2, %v891_v47, 0.0 }
 0x1ec   :  { %v972_v58 = vadd.f32 %v971_v27, %v970_v12  ;;  %v872_v57 = vadd.f32 %v6374_v49, %v834_v8  ;;  %v902_v23 = vmax.f32 %v870_v18, 0.0  ;;  %v973_v60 = vsel %vm244_vm2, %v900_v28, 0.0 }
 0x1ed   :  { %v951_v20 = vadd.f32 %v950_v4, %v949_v55  ;;  %v864_v62 = vadd.f32 %v6374_v49, %v826_v5  ;;  %v894_v10 = vmax.f32 %v862_v54, 0.0  ;;  %v952_v15 = vsel %vm244_vm2, %v892_v13, 0.0  ;;  %v6627_v13 = vld [vmem:[%s5749_s5 + $0x30] sm:$0xff]  ;;  %v6641_v55 = vld [vmem:[%s5749_s5 + $0x40] sm:$0xff] }
 0x1ee   :  { %v974_v52 = vadd.f32 %v973_v60, %v972_v58  ;;  %v903_v36 = vmax.f32 %v871_v35, 0.0  ;;  %v975_v51 = vsel %vm244_vm2, %v901_v45, 0.0  ;;  %v895_v16 = vmax.f32 %v863_v56, 0.0  ;;  %v6632_v35 = vld [vmem:[%s5749_s5 + $0x38] sm:$0xff] }
 0x1ef   :  { %v953_v48 = vadd.f32 %v952_v15, %v951_v20  ;;  %v954_v39 = vsel %vm244_vm2, %v893_v29, 0.0  ;;  %v904_v37 = vmax.f32 %v872_v57, 0.0  ;;  %v977_v26 = vsel %vm244_vm2, %v902_v23, 0.0  ;;  %v6646_v29 = vld [vmem:[%s5749_s5 + $0x48] sm:$0xff]  ;;  %v6655_v23 = vld [vmem:[%s5749_s5 + $0x50] sm:$0xff]  ;;  %v6660_v20 = vld [vmem:[%s5749_s5 + $0x58] sm:$0xff] }
 0x1f0   :  { %v976_v30 = vadd.f32 %v975_v51, %v974_v52  ;;  %v896_v6 = vmax.f32 %v864_v62, 0.0  ;;  %v956_v32 = vsel %vm244_vm2, %v894_v10, 0.0  ;;  %v979_v63 = vsel %vm244_vm2, %v903_v36, 0.0  ;;  %v6669_v52 = vld [vmem:[%s5749_s5 + $0x60] sm:$0xff]  ;;  %v6674_v51 = vld [vmem:[%s5749_s5 + $0x68] sm:$0xff] }
 0x1f1   :  { %v955_v9 = vadd.f32 %v954_v39, %v953_v48  ;;  %v958_v21 = vsel %vm244_vm2, %v895_v16, 0.0  ;;  %v981_v44 = vsel %vm244_vm2, %v904_v37, 0.0  ;;  %v8732_v54 = vmov 0.0  }
 0x1f2   :  { %v978_v61 = vadd.f32 %v977_v26, %v976_v30  ;;  %v960_v40 = vsel %vm244_vm2, %v896_v6, 0.0  ;;  %v1398_v12 = vsel %vm330_vm0, %v6627_v13, inf  ;;  %v1401_v45 = vsel %vm330_vm0, %v6632_v35, inf  ;;  %v6683_v30 = vld [vmem:[%s5749_s5 + $0x70] sm:$0xff]  ;;  %v6688_v26 = vld [vmem:[%s5749_s5 + $0x78] sm:$0xff] }
 0x1f3   :  { %v957_v25 = vadd.f32 %v956_v32, %v955_v9  ;;  %1399 = vmin.xlane.f32.xlu0 %v1398_v12  ;;  %1402 = vmin.xlane.f32.xlu1 %v1401_v45  ;;  %v1497_v27 = vsel %vm330_vm0, %v6632_v35, -inf  ;;  %v1404_v56 = vsel %vm330_vm0, %v6641_v55, inf  ;;  %v1407_v4 = vsel %vm330_vm0, %v6646_v29, inf }
 0x1f4   :  { %v980_v7 = vadd.f32 %v979_v63, %v978_v61  ;;  %v1500_v58 = vsel %vm330_vm0, %v6641_v55, -inf  ;;  %v1503_v57 = vsel %vm330_vm0, %v6646_v29, -inf  ;;  %v1410_v60 = vsel %vm330_vm0, %v6655_v23, inf  ;;  %v5406_v61 = vld [vmem:[%s5749_s5 + $0x80] sm:$0xff] }
 0x1f5   :  { %v959_v59 = vadd.f32 %v958_v21, %v957_v25  ;;  %v1413_v62 = vsel %vm330_vm0, %v6660_v20, inf  ;;  %v1506_v10 = vsel %vm330_vm0, %v6655_v23, -inf  ;;  %v1509_v15 = vsel %vm330_vm0, %v6660_v20, -inf  ;;  %v5407_v25 = vld [vmem:[%s5749_s5 + $0x88] sm:$0xff] }
 0x1f6   :  { %v982_v3 = vadd.f32 %v981_v44, %v980_v7  ;;  %v1416_v36 = vsel %vm330_vm0, %v6669_v52, inf  ;;  %v1419_v48 = vsel %vm330_vm0, %v6674_v51, inf  ;;  %v1512_v16 = vsel %vm330_vm0, %v6669_v52, -inf  ;;  %v161_v7 = vld [vmem:[%s5784_s3] sm:$0xff]  ;;  %v162_v44 = vld [vmem:[%s5784_s3 + $0x8] sm:$0xff] }
 0x1f7   :  { %v961_v34 = vadd.f32 %v960_v40, %v959_v59  ;;  %1498 = vmax.xlane.f32.xlu1 %v1497_v27  ;;  %v1515_v39 = vsel %vm330_vm0, %v6674_v51, -inf  ;;  %v1422_v37 = vsel %vm330_vm0, %v6683_v30, inf  ;;  %v1425_v9 = vsel %vm330_vm0, %v6688_v26, inf  ;;  %v5408_v59 = vld [vmem:[%s5749_s5 + $0x90] sm:$0xff] }
 0x1f8   :  { %v983_v41 = vrot.slane %v982_v3, 4  ;;  %v1518_v6 = vsel %vm330_vm0, %v6683_v30, -inf  ;;  %v1521_v32 = vsel %vm330_vm0, %v6688_v26, -inf  ;;  %v1428_v63 = vsel %vm330_vm0, %v5406_v61, inf }
 0x1f9   :  { %v962_v33 = vrot.slane %v961_v34, 4  ;;  %v1431_v21 = vsel %vm330_vm0, %v5407_v25, inf  ;;  %v1434_v40 = vsel %vm330_vm0, %v5408_v59, inf }
 0x1fa   :  { %v984_v19 = vadd.f32 %v983_v41, %v982_v3  ;;  %v5409_v3 = vld [vmem:[%s5749_s5 + $0x98] sm:$0xff]  ;;  %v1147_v41 = vpack.c.bf16 %v162_v44, %v161_v7 }
 0x1fb   :  { %v963_v1 = vadd.f32 %v962_v33, %v961_v34  ;;  %1408 = vmin.xlane.f32.xlu1 %v1407_v4  ;;  %v1437_v34 = vsel %vm330_vm0, %v5409_v3, inf  ;;  %v1524_v33 = vsel %vm330_vm0, %v5406_v61, -inf  ;;  %v5417_v61 = vld [vmem:[%s5749_s5 + $0xd8] sm:$0xff] }
 0x1fc   :  { %v985_v46 = vrot.slane %v984_v19, 2  ;;  %5066 = vmatpush3.bf16.msra.mxu1 %v1147_v41  ;;  %v1557_v44 = vsel %vm330_vm0, %v5417_v61, -inf }
 0x1fd   :  { %v964_v22 = vrot.slane %v963_v1, 2  ;;  %5071 = vmatprep.subr.bf16.mxu1 %v8732_v54 }
 0x1fe   :  { %v986_v0 = vadd.f32 %v985_v46, %v984_v19  ;;  %v1527_v19 = vsel %vm330_vm0, %v5407_v25, -inf  ;;  %v1533_v46 = vsel %vm330_vm0, %v5409_v3, -inf }
 0x1ff   :  { %v965_v38 = vadd.f32 %v964_v22, %v963_v1  ;;  %1504 = vmax.xlane.f32.xlu1 %v1503_v57  ;;  %v1530_v1 = vsel %vm330_vm0, %v5408_v59, -inf }
 0x200   :  { %v987_v42 = vrot.slane %v986_v0, 1 }
 0x201   :  { %v966_v8 = vrot.slane %v965_v38, 1 }
 0x202   :  { %v988_v17 = vadd.f32 %v987_v42, %v986_v0 }
 0x203   :  { %v967_v11 = vadd.f32 %v966_v8, %v965_v38  ;;  %1414 = vmin.xlane.f32.xlu1 %v1413_v62  ;;  %v5410_v38 = vld [vmem:[%s5749_s5 + $0xa0] sm:$0xff]  ;;  %v5411_v8 = vld [vmem:[%s5749_s5 + $0xa8] sm:$0xff] }
 0x204   :  { %v993_v50 = vmul.f32 0.015625, %v988_v17  ;;  %v1440_v42 = vsel %vm330_vm0, %v5410_v38, inf  ;;  %v1443_v17 = vsel %vm330_vm0, %v5411_v8, inf }
 0x205   :  { %v992_v47 = vmul.f32 0.015625, %v967_v11 }
 0x206   :  { %v997_v14 = vpack.c.bf16 %v993_v50, %v993_v50 }
 0x207   :  { %v996_v24 = vpack.c.bf16 %v992_v47, %v992_v47  ;;  %1510 = vmax.xlane.f32.xlu1 %v1509_v15  ;;  %v1536_v47 = vsel %vm330_vm0, %v5410_v38, -inf }
 0x208   :  { %v1007_v18 = vunpack.c.l.b16 %v997_v14  ;;  %v1539_v14 = vsel %vm330_vm0, %v5411_v8, -inf }
 0x209   :  { %v1006_v28 = vunpack.c.l.b16 %v996_v24 }
 0x20b   :  { %v1011_v53 = vsel %vm1010_vm7, %v1006_v28, %v6554_v2  ;;  %v1494_v2 = vsel %vm330_vm0, %v6627_v13, -inf  ;;  %1420 = vmin.xlane.f32.xlu1 %v1419_v48  ;;  %v5412_v28 = vld [vmem:[%s5749_s5 + $0xb0] sm:$0xff] }
 0x20c   :  { %v1013_v43 = vsel %vm1012_vm8, %v1007_v18, %v1011_v53  ;;  %1495 = vmax.xlane.f32.xlu0 %v1494_v2  ;;  %v1446_v53 = vsel %vm330_vm0, %v5412_v28, inf }
 0x20d   :  { %v1014_v5 = vpack.c.b16 %v1013_v43, %v1013_v43  ;;  %v5413_v43 = vld [vmem:[%s5749_s5 + $0xb8] sm:$0xff] }
 0x20e   :  { %v1545_v4 = vsel %vm330_vm0, %v5413_v43, -inf }
 0x20f   :  { %5062 = vmatmul.mubr.msk.bf16.vlgmr.msra.gmra.mrb[32].mxu0 %vm244_vm2, %v1014_v5  ;;  %1516 = vmax.xlane.f32.xlu1 %v1515_v39  ;;  %v1449_v5 = vsel %vm330_vm0, %v5413_v43, inf  ;;  %v5421_v43 = vld [vmem:[%s5749_s5 + $0xf8] sm:$0xff] }
 0x210   :  { %5119 = vmatprep.mubr.msk.bf16.mxu0 %vm5728_vm4, %v8732_v54  ;;  %1405 = vmin.xlane.f32.xlu0 %v1404_v56  ;;  %v1542_v56 = vsel %vm330_vm0, %v5412_v28, -inf }
 0x213   :  { %1426 = vmin.xlane.f32.xlu1 %v1425_v9 }
 0x214   :  { %1501 = vmax.xlane.f32.xlu0 %v1500_v58 }
 0x217   :  { %1522 = vmax.xlane.f32.xlu1 %v1521_v32 }
 0x218   :  { %1411 = vmin.xlane.f32.xlu0 %v1410_v60  ;;  %v5414_v60 = vld [vmem:[%s5749_s5 + $0xc0] sm:$0xff] }
 0x219   :  { %v1452_v62 = vsel %vm330_vm0, %v5414_v60, inf }
 0x21b   :  { %1432 = vmin.xlane.f32.xlu1 %v1431_v21  ;;  %v1905_v22 = vpop.xlane.xlu0 %1904 }
 0x21c   :  { %1507 = vmax.xlane.f32.xlu0 %v1506_v10  ;;  %v6711_v0 = vpop.xlane.xlu1 %1892  ;;  %v5415_v10 = vld [vmem:[%s5749_s5 + $0xc8] sm:$0xff]  ;;  %v1921_v59 = vsel %vm1018_vm3, %v1905_v22, inf }
 0x21d   :  { %v1455_v15 = vsel %vm330_vm0, %v5415_v10, inf  ;;  %v1551_v9 = vsel %vm330_vm0, %v5415_v10, -inf }
 0x21f   :  { %1438 = vmin.xlane.f32.xlu1 %v1437_v34  ;;  %v1920_v11 = vpop.xlane.xlu0 %1919  ;;  %v5419_v34 = vld [vmem:[%s5749_s5 + $0xe8] sm:$0xff] }
 0x220   :  { %1417 = vmin.xlane.f32.xlu0 %v1416_v36  ;;  %v6717_v50 = vpop.xlane.xlu1 %1907  ;;  %v1467_v41 = vsel %vm330_vm0, %v5419_v34, inf }
 0x223   :  { %1528 = vmax.xlane.f32.xlu1 %v1527_v19  ;;  %v6721_v24 = vpop.xlane.xlu0 %1381 }
 0x224   :  { %1513 = vmax.xlane.f32.xlu0 %v1512_v16  ;;  %v6723_v18 = vpop.xlane.xlu1 %1384 }
 0x227   :  { %1534 = vmax.xlane.f32.xlu1 %v1533_v46  ;;  %v1922_v46 = vmin.f32 %v6711_v0, %v1921_v59 }
 0x228   :  { %1423 = vmin.xlane.f32.xlu0 %v1422_v37  ;;  %v1548_v37 = vsel %vm330_vm0, %v5414_v60, -inf  ;;  %v1569_v60 = vsel %vm330_vm0, %v5421_v43, -inf }
 0x22b   :  { %1444 = vmin.xlane.f32.xlu1 %v1443_v17 }
 0x22c   :  { %1519 = vmax.xlane.f32.xlu0 %v1518_v6  ;;  %v5416_v6 = vld [vmem:[%s5749_s5 + $0xd0] sm:$0xff] }
 0x22d   :  { %v1458_v32 = vsel %vm330_vm0, %v5416_v6, inf  ;;  %v1554_v7 = vsel %vm330_vm0, %v5416_v6, -inf }
 0x22e   :  { %v6729_v12 = vpop.xlane.xlu0 %1387 }
 0x22f   :  { %1540 = vmax.xlane.f32.xlu1 %v1539_v14  ;;  %v6731_v45 = vpop.xlane.xlu1 %1390  ;;  %v1572_v2 = vmin.f32 %v6721_v24, %v6729_v12  ;;  %v5422_v12 = vld [vmem:[%s5754_s9] sm:$0xff] }
 0x230   :  { %1429 = vmin.xlane.f32.xlu0 %v1428_v63  ;;  %v1573_v27 = vmin.f32 %v6723_v18, %v6731_v45  ;;  %v1461_v63 = vsel %vm330_vm0, %v5417_v61, inf }
 0x232   :  { %v6739_v58 = vpop.xlane.xlu0 %1477 }
 0x233   :  { %1450 = vmin.xlane.f32.xlu1 %v1449_v5  ;;  %v6741_v57 = vpop.xlane.xlu1 %1480  ;;  %v1473_v5 = vsel %vm330_vm0, %v5421_v43, inf }
 0x234   :  { %1435 = vmin.xlane.f32.xlu0 %v1434_v40  ;;  %v5418_v40 = vld [vmem:[%s5749_s5 + $0xe0] sm:$0xff] }
 0x235   :  { %v1464_v3 = vsel %vm330_vm0, %v5418_v40, inf  ;;  %v1560_v22 = vsel %vm330_vm0, %v5418_v40, -inf }
 0x236   :  { %v6747_v36 = vpop.xlane.xlu0 %1483 }
 0x237   :  { %1546 = vmax.xlane.f32.xlu1 %v1545_v4  ;;  %v6749_v48 = vpop.xlane.xlu1 %1486  ;;  %v1614_v16 = vmax.f32 %v6739_v58, %v6747_v36 }
 0x238   :  { %1525 = vmax.xlane.f32.xlu0 %v1524_v33  ;;  %v1615_v39 = vmax.f32 %v6741_v57, %v6749_v48  ;;  %v1932_v33 = vsel %vm1018_vm3, %v1920_v11, -inf }
 0x239   :  { %v1933_v38 = vmax.f32 %v6717_v50, %v1932_v33 }
 0x23a   :  { %v1896_v25 = vpop.xlane.xlu0 %1895 }
 0x23b   :  { %1456 = vmin.xlane.f32.xlu1 %v1455_v15  ;;  %v1899_v21 = vpop.xlane.xlu1 %1898  ;;  %v1923_v8 = vmin.f32 %v1922_v46, %v1896_v25  ;;  %v5729_v15 = vmov 1983009808   ;;  %v8733_v25 = vld [vmem:[#allocation61_spill] sm:$0xff] }
 0x23c   :  { %1531 = vmax.xlane.f32.xlu0 %v1530_v1 }
 0x23e   :  { %v1902_v19 = vpop.xlane.xlu0 %1901 }
 0x23f   :  { %1552 = vmax.xlane.f32.xlu1 %v1551_v9  ;;  %v1911_v1 = vpop.xlane.xlu1 %1910  ;;  %v1924_v11 = vmin.f32 %v1899_v21, %v1902_v19 }
 0x240   :  { %1441 = vmin.xlane.f32.xlu0 %v1440_v42  ;;  %v1563_v42 = vsel %vm330_vm0, %v5419_v34, -inf  ;;  %v1934_v14 = vmax.f32 %v1933_v38, %v1911_v1 }
 0x241   :  { %v1925_v50 = vmin.f32 %v1923_v8, %v1924_v11 }
 0x242   :  { %v1914_v17 = vpop.xlane.xlu0 %1913 }
 0x243   :  { %1462 = vmin.xlane.f32.xlu1 %v1461_v63 }
 0x244   :  { %1537 = vmax.xlane.f32.xlu0 %v1536_v47  ;;  %v1917_v47 = vpop.xlane.xlu1 %1916 }
 0x245   :  { %v1935_v28 = vmax.f32 %v1914_v17, %v1917_v47 }
 0x247   :  { %1558 = vmax.xlane.f32.xlu1 %v1557_v44 }
 0x248   :  { %1447 = vmin.xlane.f32.xlu0 %v1446_v53  ;;  %v5420_v53 = vld [vmem:[%s5749_s5 + $0xf0] sm:$0xff]  ;;  %v1397_v8 = vpop.xlane.xlu1 %1396 }
 0x249   :  { %v1470_v0 = vsel %vm330_vm0, %v5420_v53, inf  ;;  %v1566_v4 = vsel %vm330_vm0, %v5420_v53, -inf }
 0x24b   :  { %1468 = vmin.xlane.f32.xlu1 %v1467_v41 }
 0x24c   :  { %1543 = vmax.xlane.f32.xlu0 %v1542_v56  ;;  %v1936_v56 = vmax.f32 %v1934_v14, %v1935_v28 }
 0x24e   :  { %v1937_v10 = vrot.slane %v1936_v56, 4 }
 0x24f   :  { %1564 = vmax.xlane.f32.xlu1 %v1563_v42  ;;  %v1394_v42 = vpop.xlane.xlu0 %1393 }
 0x250   :  { %1453 = vmin.xlane.f32.xlu0 %v1452_v62  ;;  %v1926_v62 = vrot.slane %v1925_v50, 4  ;;  %v1938_v6 = vmax.f32 %v1936_v56, %v1937_v10 }
 0x252   :  { %v1927_v9 = vmin.f32 %v1925_v50, %v1926_v62  ;;  %v1939_v63 = vrot.slane %v1938_v6, 2  ;;  %v1493_v50 = vpop.xlane.xlu1 %1492 }
 0x253   :  { %1474 = vmin.xlane.f32.xlu1 %v1473_v5  ;;  %v1490_v5 = vpop.xlane.xlu0 %1489  ;;  %v1617_v18 = vmax.f32 %v1615_v39, %v1493_v50 }
 0x254   :  { %1549 = vmax.xlane.f32.xlu0 %v1548_v37  ;;  %v1064_v37 = vunpack.c.l.s4 %v5729_v15  ;;  %v1928_v61 = vrot.slane %v1927_v9, 2  ;;  %v1940_v59 = vmax.f32 %v1938_v6, %v1939_v63 }
 0x256   :  { %v1929_v44 = vmin.f32 %v1927_v9, %v1928_v61  ;;  %v1941_v38 = vrot.slane %v1940_v59, 1 }
 0x257   :  { %1570 = vmax.xlane.f32.xlu1 %v1569_v60 }
 0x258   :  { %1459 = vmin.xlane.f32.xlu0 %v1458_v32  ;;  %v1065_v32 = vunpack.c.0.s8 %v1064_v37  ;;  %v1930_v46 = vrot.slane %v1929_v44, 1  ;;  %v1942_v53 = vmax.f32 %v1940_v59, %v1941_v38 }
 0x25a   :  { %v6780_v21 = vsub.s32 %v1065_v32, %v8733_v25  ;;  %v6785_v28 = vmin.f32 %v1929_v44, %v1930_v46 }
 0x25c   :  { %1555 = vmax.xlane.f32.xlu0 %v1554_v7  ;;  %v1943_v60 = vsub.f32 %v1942_v53, %v6785_v28  ;;  %v1949_v45 = vsub.f32 %v5422_v12, %v6785_v28 }
 0x25e   :  { %v1945_v9 = vmul.f32 0.003921569, %v1943_v60 }
 0x260   :  { %1465 = vmin.xlane.f32.xlu0 %v1464_v3  ;;  %vm1946_vm10 = vcmp.le.f32.partialorder %v1945_v9, 0.0 }
 0x264   :  { %1561 = vmax.xlane.f32.xlu0 %v1560_v22 }
 0x268   :  { %1471 = vmin.xlane.f32.xlu0 %v1470_v0 }
 0x26c   :  { %1567 = vmax.xlane.f32.xlu0 %v1566_v4 }
 0x280   :  { %v1400_v6 = vpop.xlane.xlu0 %1399  ;;  %v1403_v32 = vpop.xlane.xlu1 %1402 }
 0x284   :  { %v1499_v59 = vpop.xlane.xlu1 %1498 }
 0x285   :  { %v1619_v57 = vmax.f32 %v1617_v18, %v1499_v59 }
 0x288   :  { %v1409_v38 = vpop.xlane.xlu1 %1408 }
 0x28c   :  { %v1505_v53 = vpop.xlane.xlu1 %1504 }
 0x299   :  { %v1496_v44 = vpop.xlane.xlu0 %1495 }
 0x2e2   :  { %v1056_v7 = vpop.f32.mrb[32].mxu0 }
 0x2e3   :  { %v1069_v40 = vrot.slane %v1056_v7, %v6780_v21  ;;  %v5063_v3 = vpop.f32.mrb[33].mxu0 }
 0x2e4   :  { %v1059_v34 = vpop.f32.mrb[34].mxu0 }
 0x2e5   :  { %v1070_v41 = vcombine.high %v1069_v40, %v1069_v40  ;;  %v1074_v33 = vsel %vm1073_vm9, %v1069_v40, 0.0  ;;  %v5064_v19 = vpop.f32.mrb[35].mxu0 }
 0x2e6   :  { %v1075_v1 = vrot.slane %v1074_v33, 4  ;;  %v6797_v19 = vsel %vm1946_vm10, 1.0, %v1945_v9 }
 0x2e7   :  { %v1081_v22 = vsel %vm1073_vm9, %v1070_v41, 0.0  ;;  %5320 = vrcp.f32 %v6797_v19 }
 0x2e8   :  { %v1076_v17 = vadd.f32 %v1075_v1, %v1074_v33  ;;  %v1082_v47 = vrot.slane %v1081_v22, 4 }
 0x2ea   :  { %v1077_v11 = vrot.slane %v1076_v17, 2  ;;  %v1083_v14 = vadd.f32 %v1082_v47, %v1081_v22 }
 0x2ec   :  { %v1078_v0 = vadd.f32 %v1077_v11, %v1076_v17  ;;  %v1084_v43 = vrot.slane %v1083_v14, 2 }
 0x2ee   :  { %v1079_v56 = vrot.slane %v1078_v0, 1  ;;  %v1085_v4 = vadd.f32 %v1084_v43, %v1083_v14  ;;  %v1575_v43 = vmin.f32 %v1573_v27, %v1397_v8  ;;  %v5423_v27 = vld [vmem:[%s5754_s9 + $0x8] sm:$0xff] }
 0x2f0   :  { %v1080_v62 = vadd.f32 %v1079_v56, %v1078_v0  ;;  %v1086_v10 = vrot.slane %v1085_v4, 1  ;;  %v1574_v0 = vmin.f32 %v1572_v2, %v1394_v42  ;;  %v1950_v42 = vsub.f32 %v5423_v27, %v6785_v28 }
 0x2f1   :  { %v6815_v2 = vpop.eup %5320 }
 0x2f2   :  { %v1087_v15 = vadd.f32 %v1086_v10, %v1085_v4  ;;  %v1089_v37 = vmul.f32 0.5, %v1080_v62  ;;  %v1576_v9 = vmin.f32 %v1574_v0, %v1400_v6  ;;  %v1954_v48 = vmul.f32 %v6815_v2, %v1949_v45 }
 0x2f3   :  { %v1955_v39 = vmul.f32 %v6815_v2, %v1950_v42 }
 0x2f4   :  { %v1090_v61 = vmul.f32 0.5, %v1087_v15  ;;  %v6788_v63 = vsub.f32 %v1069_v40, %v1089_v37  ;;  %v1415_v15 = vpop.xlane.xlu1 %1414  ;;  %v1616_v37 = vmax.f32 %v1614_v16, %v1490_v5 }
 0x2f6   :  { %v6790_v25 = vsub.f32 %v1070_v41, %v1090_v61  ;;  %v1093_v7 = vmul.f32 %v6788_v63, %v6788_v63  ;;  %v1406_v41 = vpop.xlane.xlu0 %1405  ;;  %v1577_v61 = vmin.f32 %v1575_v43, %v1403_v32  ;;  %v1618_v16 = vmax.f32 %v1616_v37, %v1496_v44 }
 0x2f7   :  { %v1578_v5 = vmin.f32 %v1576_v9, %v1406_v41  ;;  %v5243_v44 = vround.rtne.f32 %v1955_v39  ;;  %v6822_v41 = vld [vmem:[%s5774_s25] ss:$0 sm:$0xff] }
 0x2f8   :  { %v1094_v3 = vmul.f32 %v6790_v25, %v6790_v25  ;;  %v1095_v34 = vsel %vm1073_vm9, %v1093_v7, 0.0  ;;  %v1511_v36 = vpop.xlane.xlu1 %1510  ;;  %v1579_v6 = vmin.f32 %v1577_v61, %v1409_v38  ;;  %8734 = vst [vmem:[#allocation45_spill] sm:$0xff] %v6822_v41 }
 0x2f9   :  { %v1096_v33 = vrot.slane %v1095_v34, 4 }
 0x2fa   :  { %v1102_v1 = vsel %vm1073_vm9, %v1094_v3, 0.0  ;;  %v1502_v14 = vpop.xlane.xlu0 %1501 }
 0x2fb   :  { %v1097_v40 = vadd.f32 %v1096_v33, %v1095_v34  ;;  %v1103_v46 = vrot.slane %v1102_v1, 4  ;;  %v1620_v33 = vmax.f32 %v1618_v16, %v1502_v14 }
 0x2fc   :  { %v1421_v34 = vpop.xlane.xlu1 %1420 }
 0x2fd   :  { %v1098_v22 = vrot.slane %v1097_v40, 2  ;;  %v1104_v17 = vadd.f32 %v1103_v46, %v1102_v1  ;;  %v1621_v46 = vmax.f32 %v1619_v57, %v1505_v53 }
 0x2fe   :  { %v1412_v10 = vpop.xlane.xlu0 %1411 }
 0x2ff   :  { %v1099_v47 = vadd.f32 %v1098_v22, %v1097_v40  ;;  %v1105_v11 = vrot.slane %v1104_v17, 2  ;;  %v1580_v1 = vmin.f32 %v1578_v5, %v1412_v10  ;;  %v1581_v40 = vmin.f32 %v1579_v6, %v1415_v15 }
 0x300   :  { %v5242_v22 = vround.rtne.f32 %v1954_v48  ;;  %v1623_v43 = vmax.f32 %v1621_v46, %v1511_v36 }
 0x301   :  { %v1100_v56 = vrot.slane %v1099_v47, 1  ;;  %v1106_v4 = vadd.f32 %v1105_v11, %v1104_v17  ;;  %v1517_v17 = vpop.xlane.xlu1 %1516  ;;  %v1583_v0 = vmin.f32 %v1581_v40, %v1421_v34 }
 0x302   :  { %v1508_v58 = vpop.xlane.xlu0 %1507  ;;  %v1625_v61 = vmax.f32 %v1623_v43, %v1517_v17 }
 0x303   :  { %v1101_v60 = vadd.f32 %v1100_v56, %v1099_v47  ;;  %v1107_v62 = vrot.slane %v1106_v4, 1  ;;  %v6825_v47 = vld [vmem:[%s5779_s29] ss:$0 sm:$0xff]  ;;  %v1622_v59 = vmax.f32 %v1620_v33, %v1508_v58  ;;  %v1964_v56 = vmax.f32 %v5242_v22, 0.0 }
 0x304   :  { %8735 = vst [vmem:[#allocation61_spill] sm:$0xff] %v6825_v47  ;;  %v165_v33 = vld [vmem:[%s5799_s19] sm:$0xff] }
 0x305   :  { %v1108_v7 = vadd.f32 %v1107_v62, %v1106_v4  ;;  %v1109_v24 = vmul.f32 0.5, %v1101_v60  ;;  %v1965_v4 = vmax.f32 %v5243_v44, 0.0  ;;  %v1427_v14 = vpop.xlane.xlu1 %1426 }
 0x306   :  { %v1418_v50 = vpop.xlane.xlu0 %1417  ;;  %v1585_v37 = vmin.f32 %v1583_v0, %v1427_v14 }
 0x307   :  { %v1110_v8 = vmul.f32 0.5, %v1108_v7  ;;  %v1111_v3 = vadd.f32 1e-05, %v1109_v24  ;;  %v1582_v11 = vmin.f32 %v1580_v1, %v1418_v50  ;;  %v1969_v7 = vmin.f32 %v1964_v56, 255.0  ;;  %v166_v1 = vld [vmem:[%s5799_s19 + $0x8] sm:$0xff] }
 0x308   :  { %v1970_v45 = vmin.f32 %v1965_v4, 255.0 }
 0x309   :  { %v1112_v32 = vadd.f32 1e-05, %v1110_v8  ;;  %5322 = vrsqrt.f32 %v1111_v3  ;;  %v1523_v42 = vpop.xlane.xlu1 %1522 }
 0x30a   :  { %v1514_v38 = vpop.xlane.xlu0 %1513  ;;  %v1627_v36 = vmax.f32 %v1625_v61, %v1523_v42  ;;  %v1975_v6 = vmul.f32 %v1970_v45, %v6797_v19  ;;  %v5428_v45 = vld [vmem:[%s5749_s5 + $0x20] sm:$0xff]  ;;  %v5429_v42 = vld [vmem:[%s5749_s5 + $0x28] sm:$0xff] }
 0x30b   :  { %5324 = vrsqrt.f32 %v1112_v32  ;;  %v1624_v53 = vmax.f32 %v1622_v59, %v1514_v38  ;;  %v1274_v59 = vpack.c.bf16 %v166_v1, %v165_v33 }
 0x30c   :  { %v1980_v46 = vadd.f32 %v1975_v6, %v6785_v28 }
 0x30e   :  { %v1424_v62 = vpop.xlane.xlu0 %1423 }
 0x30f   :  { %v1584_v15 = vmin.f32 %v1582_v11, %v1424_v62 }
 0x311   :  { %v1586_v12 = vmin.f32 %v1584_v15, %v1585_v37  ;;  %v5424_v15 = vld [vmem:[%s5749_s5] sm:$0xff] }
 0x312   :  { %v1520_v27 = vpop.xlane.xlu0 %1519 }
 0x313   :  { %v5323_v60 = vpop.eup %5322  ;;  %v1587_v3 = vrot.slane %v1586_v12, 4  ;;  %v1626_v58 = vmax.f32 %v1624_v53, %v1520_v27 }
 0x314   :  { %v1115_v10 = vmul.f32 %v5323_v60, %v6788_v63 }
 0x315   :  { %v5325_v9 = vpop.eup %5324  ;;  %v1588_v5 = vmin.f32 %v1586_v12, %v1587_v3  ;;  %v1628_v32 = vmax.f32 %v1626_v58, %v1627_v36 }
 0x316   :  { %v1116_v24 = vmul.f32 %v5325_v9, %v6790_v25  ;;  %v1123_v18 = vmul.f32 %v6822_v41, %v1115_v10  ;;  %v1974_v25 = vmul.f32 %v1969_v7, %v6797_v19  ;;  %v5425_v9 = vld [vmem:[%s5749_s5 + $0x8] sm:$0xff]  ;;  %v5426_v7 = vld [vmem:[%s5749_s5 + $0x10] sm:$0xff] }
 0x317   :  { %v1589_v39 = vrot.slane %v1588_v5, 2  ;;  %v1629_v50 = vrot.slane %v1628_v32, 4 }
 0x318   :  { %v1124_v8 = vmul.f32 %v6822_v41, %v1116_v24  ;;  %v1131_v63 = vadd.f32 %v6825_v47, %v1123_v18  ;;  %v1979_v40 = vadd.f32 %v1974_v25, %v6785_v28  ;;  %v5427_v18 = vld [vmem:[%s5749_s5 + $0x18] sm:$0xff] }
 0x319   :  { %v1630_v22 = vmax.f32 %v1628_v32, %v1629_v50  ;;  %v1590_v38 = vmin.f32 %v1588_v5, %v1589_v39 }
 0x31a   :  { %v1132_v16 = vadd.f32 %v6825_v47, %v1124_v8  ;;  %v1133_v57 = vmax.f32 %v1131_v63, 0.0  ;;  %v6840_v0 = vpack.c.bf16 %v1980_v46, %v1979_v40 }
 0x31b   :  { %v1631_v17 = vrot.slane %v1630_v22, 2  ;;  %v1591_v43 = vrot.slane %v1590_v38, 1 }
 0x31c   :  { %v1134_v48 = vmax.f32 %v1132_v16, 0.0 }
 0x31d   :  { %v1632_v56 = vmax.f32 %v1630_v22, %v1631_v17  ;;  %v6846_v4 = vmin.f32 %v1590_v38, %v1591_v43 }
 0x31e   :  { %v1137_v34 = vcombine.low %v1133_v57, %v1134_v48 }
 0x31f   :  { %v1633_v60 = vrot.slane %v1632_v56, 1  ;;  %v1667_v37 = vsub.f32 %v5424_v15, %v6846_v4  ;;  %v1668_v61 = vsub.f32 %v5425_v9, %v6846_v4  ;;  %v1669_v24 = vsub.f32 %v5426_v7, %v6846_v4 }
 0x320   :  { %v1144_v44 = vrot.slane %v1137_v34, %v6780_v21  ;;  %v1670_v12 = vsub.f32 %v5427_v18, %v6846_v4  ;;  %v1671_v27 = vsub.f32 %v5428_v45, %v6846_v4  ;;  %v1672_v8 = vsub.f32 %v5429_v42, %v6846_v4 }
 0x321   :  { %v1634_v62 = vmax.f32 %v1632_v56, %v1633_v60  ;;  %v1673_v63 = vsub.f32 %v6627_v13, %v6846_v4  ;;  %v1674_v3 = vsub.f32 %v6632_v35, %v6846_v4  ;;  %v1675_v36 = vsub.f32 %v6641_v55, %v6846_v4 }
 0x322   :  { %v1146_v11 = vpack.c.bf16 %v1144_v44, %v1144_v44  ;;  %v1676_v34 = vsub.f32 %v6646_v29, %v6846_v4  ;;  %v1677_v33 = vsub.f32 %v6655_v23, %v6846_v4  ;;  %v1678_v29 = vsub.f32 %v6660_v20, %v6846_v4 }
 0x323   :  { %v1656_v14 = vsub.f32 %v1634_v62, %v6846_v4  ;;  %v1679_v23 = vsub.f32 %v6669_v52, %v6846_v4 }
 0x324   :  { %5068 = vmatmul.mubr.msk.bf16.vlgmr.msra.gmra.mrb[0].mxu1 %vm254_vm11, %v1146_v11 }
 0x325   :  { %5072 = vmatpush3.bf16.msra.mxu1 %v1274_v59  ;;  %5073 = vmatprep.mubr.msk.bf16.mxu1 %vm5728_vm4, %v8732_v54  ;;  %v1659_v10 = vmul.f32 0.032258064, %v1656_v14 }
 0x326   :  { %5077 = vmatprep.subr.bf16.mxu1 %v6840_v0 }
 0x327   :  { %vm1661_vm12 = vcmp.le.f32.partialorder %v1659_v10, 0.0 }
 0x328   :  { %v6849_v53 = vsel %vm1661_vm12, 1.0, %v1659_v10 }
 0x329   :  { %5326 = vrcp.f32 %v6849_v53 }
 0x333   :  { %v6868_v58 = vpop.eup %5326 }
 0x334   :  { %v1699_v16 = vmul.f32 %v6868_v58, %v1667_v37  ;;  %v1700_v5 = vmul.f32 %v6868_v58, %v1668_v61  ;;  %v1701_v25 = vmul.f32 %v6868_v58, %v1669_v24  ;;  %v1702_v6 = vmul.f32 %v6868_v58, %v1670_v12 }
 0x335   :  { %v1703_v32 = vmul.f32 %v6868_v58, %v1671_v27  ;;  %v1704_v13 = vmul.f32 %v6868_v58, %v1672_v8  ;;  %v1705_v57 = vmul.f32 %v6868_v58, %v1673_v63  ;;  %v1706_v35 = vmul.f32 %v6868_v58, %v1674_v3 }
 0x336   :  { %v5210_v48 = vround.rtne.f32 %v1699_v16  ;;  %v5211_v39 = vround.rtne.f32 %v1700_v5  ;;  %v5212_v50 = vround.rtne.f32 %v1701_v25  ;;  %v5213_v55 = vround.rtne.f32 %v1702_v6 }
 0x337   :  { %v5214_v1 = vround.rtne.f32 %v1703_v32  ;;  %v5215_v40 = vround.rtne.f32 %v1704_v13  ;;  %v5216_v11 = vround.rtne.f32 %v1705_v57  ;;  %v5217_v43 = vround.rtne.f32 %v1706_v35 }
 0x338   :  { %v1763_v46 = vmax.f32 %v5210_v48, 0.0  ;;  %v1764_v22 = vmax.f32 %v5211_v39, 0.0  ;;  %v1765_v44 = vmax.f32 %v5212_v50, 0.0  ;;  %v1766_v38 = vmax.f32 %v5213_v55, 0.0 }
 0x339   :  { %v1767_v17 = vmax.f32 %v5214_v1, 0.0  ;;  %v1768_v59 = vmax.f32 %v5215_v40, 0.0  ;;  %v1769_v12 = vmax.f32 %v5216_v11, 0.0  ;;  %v1770_v45 = vmax.f32 %v5217_v43, 0.0 }
 0x33a   :  { %v1795_v56 = vmin.f32 %v1763_v46, 31.0  ;;  %v1796_v60 = vmin.f32 %v1764_v22, 31.0  ;;  %v1797_v62 = vmin.f32 %v1765_v44, 31.0  ;;  %v1798_v14 = vmin.f32 %v1766_v38, 31.0 }
 0x33b   :  { %v1799_v10 = vmin.f32 %v1767_v17, 31.0  ;;  %v1800_v15 = vmin.f32 %v1768_v59, 31.0  ;;  %v1680_v8 = vsub.f32 %v6674_v51, %v6846_v4  ;;  %v1681_v63 = vsub.f32 %v6683_v30, %v6846_v4 }
 0x33c   :  { %v1827_v37 = vmul.f32 %v1795_v56, %v6849_v53  ;;  %v1828_v9 = vmul.f32 %v1796_v60, %v6849_v53  ;;  %v1829_v61 = vmul.f32 %v1797_v62, %v6849_v53  ;;  %v1830_v7 = vmul.f32 %v1798_v14, %v6849_v53 }
 0x33d   :  { %v1831_v24 = vmul.f32 %v1799_v10, %v6849_v53  ;;  %v1832_v18 = vmul.f32 %v1800_v15, %v6849_v53  ;;  %v1801_v6 = vmin.f32 %v1769_v12, 31.0  ;;  %v1802_v32 = vmin.f32 %v1770_v45, 31.0 }
 0x33e   :  { %v6895_v20 = vadd.f32 %v1827_v37, %v6846_v4  ;;  %v6898_v52 = vadd.f32 %v1828_v9, %v6846_v4  ;;  %v6901_v27 = vadd.f32 %v1829_v61, %v6846_v4  ;;  %v6904_v42 = vadd.f32 %v1830_v7, %v6846_v4 }
 0x33f   :  { %v6911_v3 = vadd.f32 %v1831_v24, %v6846_v4  ;;  %v6914_v16 = vadd.f32 %v1832_v18, %v6846_v4  ;;  %v1707_v13 = vmul.f32 %v6868_v58, %v1675_v36  ;;  %v1708_v30 = vmul.f32 %v6868_v58, %v1676_v34 }
 0x340   :  { %v1709_v57 = vmul.f32 %v6868_v58, %v1677_v33  ;;  %v1833_v35 = vmul.f32 %v1801_v6, %v6849_v53  ;;  %v1834_v48 = vmul.f32 %v1802_v32, %v6849_v53  ;;  %v1710_v39 = vmul.f32 %v6868_v58, %v1678_v29 }
 0x341   :  { %v1711_v50 = vmul.f32 %v6868_v58, %v1679_v23  ;;  %v1682_v55 = vsub.f32 %v6688_v26, %v6846_v4  ;;  %v5218_v1 = vround.rtne.f32 %v1707_v13  ;;  %v5219_v40 = vround.rtne.f32 %v1708_v30 }
 0x342   :  { %v6932_v46 = vadd.f32 %v1833_v35, %v6846_v4  ;;  %v6935_v36 = vadd.f32 %v1834_v48, %v6846_v4  ;;  %v5220_v34 = vround.rtne.f32 %v1709_v57  ;;  %v5221_v33 = vround.rtne.f32 %v1710_v39 }
 0x343   :  { %v1771_v22 = vmax.f32 %v5218_v1, 0.0  ;;  %v1772_v44 = vmax.f32 %v5219_v40, 0.0  ;;  %v1712_v38 = vmul.f32 %v6868_v58, %v1680_v8  ;;  %v5222_v17 = vround.rtne.f32 %v1711_v50 }
 0x344   :  { %v1773_v11 = vmax.f32 %v5220_v34, 0.0  ;;  %v1774_v26 = vmax.f32 %v5221_v33, 0.0  ;;  %v1713_v43 = vmul.f32 %v6868_v58, %v1681_v63  ;;  %v1714_v37 = vmul.f32 %v6868_v58, %v1682_v55 }
 0x345   :  { %v1803_v56 = vmin.f32 %v1771_v22, 31.0  ;;  %v1804_v60 = vmin.f32 %v1772_v44, 31.0  ;;  %v5223_v29 = vround.rtne.f32 %v1712_v38  ;;  %v1775_v23 = vmax.f32 %v5222_v17, 0.0  ;;  %v1430_v17 = vpop.xlane.xlu0 %1429 }
 0x346   :  { %v1805_v62 = vmin.f32 %v1773_v11, 31.0  ;;  %v1806_v14 = vmin.f32 %v1774_v26, 31.0  ;;  %v5224_v9 = vround.rtne.f32 %v1713_v43  ;;  %v5225_v13 = vround.rtne.f32 %v1714_v37  ;;  %v1433_v11 = vpop.xlane.xlu1 %1432 }
 0x347   :  { %v1835_v10 = vmul.f32 %v1803_v56, %v6849_v53  ;;  %v1836_v15 = vmul.f32 %v1804_v60, %v6849_v53  ;;  %v1776_v24 = vmax.f32 %v5223_v29, 0.0  ;;  %v1807_v18 = vmin.f32 %v1775_v23, 31.0 }
 0x348   :  { %v1837_v61 = vmul.f32 %v1805_v62, %v6849_v53  ;;  %v1838_v7 = vmul.f32 %v1806_v14, %v6849_v53  ;;  %v1777_v30 = vmax.f32 %v5224_v9, 0.0  ;;  %v1778_v39 = vmax.f32 %v5225_v13, 0.0 }
 0x349   :  { %v6947_v12 = vadd.f32 %v1835_v10, %v6846_v4  ;;  %v6950_v45 = vadd.f32 %v1836_v15, %v6846_v4  ;;  %v1808_v58 = vmin.f32 %v1776_v24, 31.0  ;;  %v1839_v6 = vmul.f32 %v1807_v18, %v6849_v53  ;;  %v1436_v26 = vpop.xlane.xlu0 %1435 }
 0x34a   :  { %v6953_v8 = vadd.f32 %v1837_v61, %v6846_v4  ;;  %v6956_v63 = vadd.f32 %v1838_v7, %v6846_v4  ;;  %v1809_v50 = vmin.f32 %v1777_v30, 31.0  ;;  %v1810_v1 = vmin.f32 %v1778_v39, 31.0  ;;  %v1439_v43 = vpop.xlane.xlu1 %1438 }
 0x34b   :  { %v1840_v35 = vmul.f32 %v1808_v58, %v6849_v53  ;;  %v6965_v48 = vadd.f32 %v1839_v6, %v6846_v4  ;;  %v1594_v39 = vmin.f32 %v1433_v11, %v1439_v43 }
 0x34c   :  { %v1841_v40 = vmul.f32 %v1809_v50, %v6849_v53  ;;  %v1842_v33 = vmul.f32 %v1810_v1, %v6849_v53 }
 0x34d   :  { %v6968_v55 = vadd.f32 %v1840_v35, %v6846_v4  ;;  %v1526_v56 = vpop.xlane.xlu0 %1525  ;;  %v1593_v35 = vmin.f32 %v1430_v17, %v1436_v26 }
 0x34e   :  { %v6975_v22 = vadd.f32 %v1841_v40, %v6846_v4  ;;  %v6978_v44 = vadd.f32 %v1842_v33, %v6846_v4  ;;  %v1529_v60 = vpop.xlane.xlu1 %1528 }
 0x351   :  { %v1532_v62 = vpop.xlane.xlu0 %1531 }
 0x352   :  { %v1535_v14 = vpop.xlane.xlu1 %1534  ;;  %v1635_v50 = vmax.f32 %v1526_v56, %v1532_v62 }
 0x353   :  { %v1636_v1 = vmax.f32 %v1529_v60, %v1535_v14 }
 0x355   :  { %v1442_v29 = vpop.xlane.xlu0 %1441 }
 0x356   :  { %v1445_v23 = vpop.xlane.xlu1 %1444  ;;  %v1595_v33 = vmin.f32 %v1593_v35, %v1442_v29 }
 0x357   :  { %v1596_v34 = vmin.f32 %v1594_v39, %v1445_v23 }
 0x359   :  { %v1538_v53 = vpop.xlane.xlu0 %1537 }
 0x35a   :  { %v1541_v10 = vpop.xlane.xlu1 %1540  ;;  %v1637_v57 = vmax.f32 %v1635_v50, %v1538_v53 }
 0x35b   :  { %v1638_v32 = vmax.f32 %v1636_v1, %v1541_v10 }
 0x35d   :  { %v1448_v15 = vpop.xlane.xlu0 %1447 }
 0x35e   :  { %v1451_v37 = vpop.xlane.xlu1 %1450  ;;  %v1597_v59 = vmin.f32 %v1595_v33, %v1448_v15 }
 0x35f   :  { %v1598_v25 = vmin.f32 %v1596_v34, %v1451_v37 }
 0x361   :  { %v1544_v9 = vpop.xlane.xlu0 %1543 }
 0x362   :  { %v1547_v4 = vpop.xlane.xlu1 %1546  ;;  %v1639_v5 = vmax.f32 %v1637_v57, %v1544_v9 }
 0x363   :  { %v1640_v47 = vmax.f32 %v1638_v32, %v1547_v4 }
 0x365   :  { %v1454_v61 = vpop.xlane.xlu0 %1453 }
 0x366   :  { %v1457_v7 = vpop.xlane.xlu1 %1456  ;;  %v1599_v56 = vmin.f32 %v1597_v59, %v1454_v61 }
 0x367   :  { %v1600_v62 = vmin.f32 %v1598_v25, %v1457_v7 }
 0x369   :  { %v1550_v24 = vpop.xlane.xlu0 %1549 }
 0x36a   :  { %v1553_v18 = vpop.xlane.xlu1 %1552  ;;  %v1641_v14 = vmax.f32 %v1639_v5, %v1550_v24 }
 0x36b   :  { %v1642_v29 = vmax.f32 %v1640_v47, %v1553_v18 }
 0x36d   :  { %v1460_v58 = vpop.xlane.xlu0 %1459 }
 0x36e   :  { %v1463_v6 = vpop.xlane.xlu1 %1462 }
 0x36f   :  { %v1602_v15 = vmin.f32 %v1600_v62, %v1463_v6 }
 0x371   :  { %v1556_v13 = vpop.xlane.xlu0 %1555 }
 0x372   :  { %v1559_v30 = vpop.xlane.xlu1 %1558  ;;  %v1643_v37 = vmax.f32 %v1641_v14, %v1556_v13 }
 0x373   :  { %v1644_v9 = vmax.f32 %v1642_v29, %v1559_v30 }
 0x375   :  { %v1466_v40 = vpop.xlane.xlu0 %1465 }
 0x376   :  { %v1469_v38 = vpop.xlane.xlu1 %1468 }
 0x377   :  { %v1604_v25 = vmin.f32 %v1602_v15, %v1469_v38 }
 0x379   :  { %v1562_v41 = vpop.xlane.xlu0 %1561 }
 0x37a   :  { %v1565_v31 = vpop.xlane.xlu1 %1564  ;;  %v1645_v5 = vmax.f32 %v1643_v37, %v1562_v41 }
 0x37b   :  { %v1646_v47 = vmax.f32 %v1644_v9, %v1565_v31 }
 0x37d   :  { %v1472_v32 = vpop.xlane.xlu0 %1471 }
 0x37e   :  { %v1475_v53 = vpop.xlane.xlu1 %1474 }
 0x381   :  { %v1568_v7 = vpop.xlane.xlu0 %1567 }
 0x382   :  { %v1571_v24 = vpop.xlane.xlu1 %1570 }
 0x383   :  { %v1648_v6 = vmax.f32 %v1646_v47, %v1571_v24  ;;  %v5430_v47 = vld [vmem:[%s5754_s9 + $0x10] sm:$0xff]  ;;  %v5431_v24 = vld [vmem:[%s5754_s9 + $0x18] sm:$0xff] }
 0x3f7   :  { %v1185_v51 = vpop.f32.mrb[0].mxu1 }
 0x3f8   :  { %v1198_v54 = vrot.slane %v1185_v51, %v6780_v21  ;;  %v5069_v49 = vpop.f32.mrb[1].mxu1 }
 0x3f9   :  { %v1188_v17 = vpop.f32.mrb[2].mxu1  ;;  %v1601_v49 = vmin.f32 %v1599_v56, %v1460_v58  ;;  %v1647_v58 = vmax.f32 %v1645_v5, %v1568_v7  ;;  %v1951_v7 = vsub.f32 %v5430_v47, %v6785_v28 }
 0x3fa   :  { %v1199_v11 = vcombine.high %v1198_v54, %v1198_v54  ;;  %v1202_v26 = vsel %vm1073_vm9, %v1198_v54, 0.0  ;;  %v5070_v43 = vpop.f32.mrb[3].mxu1 }
 0x3fb   :  { %v1203_v60 = vrot.slane %v1202_v26, 4  ;;  %v1603_v61 = vmin.f32 %v1601_v49, %v1466_v40  ;;  %v1649_v62 = vmax.f32 %v1647_v58, %v1648_v6  ;;  %v1956_v58 = vmul.f32 %v6815_v2, %v1951_v7 }
 0x3fc   :  { %v1209_v23 = vsel %vm1073_vm9, %v1199_v11, 0.0 }
 0x3fd   :  { %v1204_v34 = vadd.f32 %v1203_v60, %v1202_v26  ;;  %v1210_v57 = vrot.slane %v1209_v23, 4  ;;  %v1605_v17 = vmin.f32 %v1603_v61, %v1472_v32  ;;  %v1606_v26 = vmin.f32 %v1604_v25, %v1475_v53 }
 0x3fe   :  { %v1650_v29 = vrot.slane %v1649_v62, 4 }
 0x3ff   :  { %v1205_v10 = vrot.slane %v1204_v34, 2  ;;  %v1211_v51 = vadd.f32 %v1210_v57, %v1209_v23  ;;  %v1607_v60 = vmin.f32 %v1605_v17, %v1606_v26  ;;  %v5432_v17 = vld [vmem:[%s5754_s9 + $0x20] sm:$0xf] }
 0x400   :  { %v1953_v26 = vsub.f32 %v5432_v17, %v6785_v28  ;;  %v5434_v17 = vld [vmem:[%s5749_s5 + $0x88] sm:$0xff] }
 0x401   :  { %v1206_v4 = vadd.f32 %v1205_v10, %v1204_v34  ;;  %v1212_v35 = vrot.slane %v1211_v51, 2  ;;  %v1608_v14 = vrot.slane %v1607_v60, 4  ;;  %v1651_v10 = vmax.f32 %v1649_v62, %v1650_v29 }
 0x402   :  { %v1958_v62 = vmul.f32 %v6815_v2, %v1953_v26 }
 0x403   :  { %v1207_v39 = vrot.slane %v1206_v4, 1  ;;  %v1213_v59 = vadd.f32 %v1212_v35, %v1211_v51  ;;  %v1609_v53 = vmin.f32 %v1607_v60, %v1608_v14  ;;  %v1652_v37 = vrot.slane %v1651_v10, 2  ;;  %v6998_v60 = vld [vmem:[%s5789_s8] ss:$0 sm:$0xff] }
 0x404   :  { %8736 = vst [vmem:[#allocation66_spill] sm:$0xff] %v6998_v60  ;;  %v5246_v29 = vround.rtne.f32 %v1958_v62  ;;  %v5436_v62 = vld [vmem:[%s5749_s5 + $0x98] sm:$0xff] }
 0x405   :  { %v1208_v18 = vadd.f32 %v1207_v39, %v1206_v4  ;;  %v1214_v50 = vrot.slane %v1213_v59, 1  ;;  %v1610_v15 = vrot.slane %v1609_v53, 2  ;;  %v1653_v61 = vmax.f32 %v1651_v10, %v1652_v37 }
 0x407   :  { %v1215_v1 = vadd.f32 %v1214_v50, %v1213_v59  ;;  %v1216_v33 = vmul.f32 0.5, %v1208_v18  ;;  %v1611_v59 = vmin.f32 %v1609_v53, %v1610_v15  ;;  %v1952_v18 = vsub.f32 %v5431_v24, %v6785_v28 }
 0x409   :  { %v1217_v13 = vmul.f32 0.5, %v1215_v1  ;;  %v1218_v30 = vsub.f32 %v1198_v54, %v1216_v33  ;;  %v1612_v1 = vrot.slane %v1611_v59, 1  ;;  %v1654_v33 = vrot.slane %v1653_v61, 1 }
 0x40a   :  { %v1957_v6 = vmul.f32 %v6815_v2, %v1952_v18 }
 0x40b   :  { %v1219_v43 = vsub.f32 %v1199_v11, %v1217_v13  ;;  %v1220_v56 = vmul.f32 %v1218_v30, %v1218_v30  ;;  %v6995_v13 = vmin.f32 %v1611_v59, %v1612_v1 }
 0x40d   :  { %v1221_v40 = vmul.f32 %v1219_v43, %v1219_v43  ;;  %v1222_v41 = vsel %vm1073_vm9, %v1220_v56, 0.0  ;;  %v1655_v56 = vmax.f32 %v1653_v61, %v1654_v33 }
 0x40e   :  { %v1223_v31 = vrot.slane %v1222_v41, 4 }
 0x40f   :  { %v1229_v38 = vsel %vm1073_vm9, %v1221_v40, 0.0  ;;  %v5244_v40 = vround.rtne.f32 %v1956_v58  ;;  %v1657_v14 = vsub.f32 %v1655_v56, %v6995_v13  ;;  %v8739_v58 = vpack.c.bf16 %v6904_v42, %v6901_v27 }
 0x410   :  { %v1224_v23 = vadd.f32 %v1223_v31, %v1222_v41  ;;  %v1230_v34 = vrot.slane %v1229_v38, 4  ;;  %v5245_v41 = vround.rtne.f32 %v1957_v6  ;;  %v7002_v31 = vld [vmem:[%s5794_s14] ss:$0 sm:$0xff]  ;;  %v5435_v6 = vld [vmem:[%s5749_s5 + $0x90] sm:$0xff] }
 0x411   :  { %8737 = vst [vmem:[#allocation67_spill] sm:$0xff] %v7002_v31  ;;  %v1685_v56 = vsub.f32 %v5435_v6, %v6995_v13 }
 0x412   :  { %v1225_v57 = vrot.slane %v1224_v23, 2  ;;  %v1231_v32 = vadd.f32 %v1230_v34, %v1229_v38  ;;  %v1966_v34 = vmax.f32 %v5244_v40, 0.0  ;;  %v1686_v40 = vsub.f32 %v5436_v62, %v6995_v13 }
 0x414   :  { %v1226_v54 = vadd.f32 %v1225_v57, %v1224_v23  ;;  %v1232_v11 = vrot.slane %v1231_v32, 2  ;;  %v1967_v57 = vmax.f32 %v5245_v41, 0.0  ;;  %v5437_v41 = vld [vmem:[%s5749_s5 + $0xa0] sm:$0xff] }
 0x416   :  { %v1227_v51 = vrot.slane %v1226_v54, 1  ;;  %v1233_v49 = vadd.f32 %v1232_v11, %v1231_v32  ;;  %v1968_v11 = vmax.f32 %v5246_v29, 0.0  ;;  %v1972_v15 = vmin.f32 %v1967_v57, 255.0 }
 0x418   :  { %v1228_v9 = vadd.f32 %v1227_v51, %v1226_v54  ;;  %v1234_v4 = vrot.slane %v1233_v49, 1  ;;  %v1660_v54 = vmul.f32 0.032258064, %v1657_v14  ;;  %v5438_v14 = vld [vmem:[%s5749_s5 + $0xa8] sm:$0xff] }
 0x419   :  { %v1688_v29 = vsub.f32 %v5438_v14, %v6995_v13 }
 0x41a   :  { %v1235_v35 = vadd.f32 %v1234_v4, %v1233_v49  ;;  %v1236_v39 = vmul.f32 0.5, %v1228_v9  ;;  %v1971_v49 = vmin.f32 %v1966_v34, 255.0  ;;  %vm1662_vm13 = vcmp.le.f32.partialorder %v1660_v54, 0.0 }
 0x41b   :  { %v1973_v9 = vmin.f32 %v1968_v11, 255.0  ;;  %v5439_v11 = vld [vmem:[%s5749_s5 + $0xb0] sm:$0xff] }
 0x41c   :  { %v1237_v25 = vmul.f32 0.5, %v1235_v35  ;;  %v1238_v5 = vadd.f32 1e-05, %v1236_v39  ;;  %v1976_v35 = vmul.f32 %v1971_v49, %v6797_v19  ;;  %v7011_v39 = vsel %vm1662_vm13, 1.0, %v1660_v54 }
 0x41d   :  { %v1978_v47 = vmul.f32 %v1973_v9, %v6797_v19  ;;  %v8742_v49 = vpack.c.bf16 %v6950_v45, %v6947_v12 }
 0x41e   :  { %v1239_v50 = vadd.f32 1e-05, %v1237_v25  ;;  %5328 = vrsqrt.f32 %v1238_v5  ;;  %v1981_v25 = vadd.f32 %v1976_v35, %v6785_v28 }
 0x41f   :  { %v1983_v18 = vadd.f32 %v1978_v47, %v6785_v28 }
 0x420   :  { %5330 = vrsqrt.f32 %v1239_v50  ;;  %v8738_v50 = vpack.c.bf16 %v6898_v52, %v6895_v20 }
 0x421   :  { %5332 = vrcp.f32 %v7011_v39  ;;  %v2002_v1 = vpack.c.bf16 %v1983_v18, %v1983_v18 }
 0x423   :  { %v2052_v20 = vsel %vm379_vm1, %v2002_v1, 0 }
 0x428   :  { %v5329_v38 = vpop.eup %5328 }
 0x429   :  { %v1242_v23 = vmul.f32 %v5329_v38, %v1218_v30  ;;  %v1687_v38 = vsub.f32 %v5437_v41, %v6995_v13 }
 0x42a   :  { %v5331_v32 = vpop.eup %5330 }
 0x42b   :  { %v1243_v53 = vmul.f32 %v5331_v32, %v1219_v43  ;;  %v1250_v10 = vmul.f32 %v6998_v60, %v1242_v23  ;;  %v1977_v43 = vmul.f32 %v1972_v15, %v6797_v19  ;;  %v5433_v19 = vld [vmem:[%s5749_s5 + $0x80] sm:$0xff]  ;;  %v8740_v23 = vpack.c.bf16 %v6914_v16, %v6911_v3  ;;  %v5440_v3 = vld [vmem:[%s5749_s5 + $0xb8] sm:$0xff] }
 0x42c   :  { %v1683_v33 = vsub.f32 %v5433_v19, %v6995_v13  ;;  %v1690_v16 = vsub.f32 %v5440_v3, %v6995_v13 }
 0x42d   :  { %v1251_v51 = vmul.f32 %v6998_v60, %v1243_v53  ;;  %v1258_v2 = vadd.f32 %v7002_v31, %v1250_v10  ;;  %v1982_v5 = vadd.f32 %v1977_v43, %v6785_v28  ;;  %v1684_v28 = vsub.f32 %v5434_v17, %v6995_v13  ;;  %v5441_v43 = vld [vmem:[%s5749_s5 + $0xc0] sm:$0xff] }
 0x42e   :  { %v8744_v17 = vpack.c.bf16 %v6968_v55, %v6965_v48  ;;  %v5446_v48 = vld [vmem:[%s5749_s5 + $0xe8] sm:$0xff] }
 0x42f   :  { %v1259_v37 = vadd.f32 %v7002_v31, %v1251_v51  ;;  %v1260_v4 = vmax.f32 %v1258_v2, 0.0  ;;  %v2001_v24 = vpack.c.bf16 %v1982_v5, %v1981_v25  ;;  %v1689_v51 = vsub.f32 %v5439_v11, %v6995_v13 }
 0x430   :  { %v8741_v2 = vpack.c.bf16 %v6935_v36, %v6932_v46  ;;  %v1696_v55 = vsub.f32 %v5446_v48, %v6995_v13 }
 0x431   :  { %v1261_v30 = vmax.f32 %v1259_v37, 0.0 }
 0x433   :  { %v1264_v59 = vcombine.low %v1260_v4, %v1261_v30 }
 0x435   :  { %v1271_v61 = vrot.slane %v1264_v59, %v6780_v21  ;;  %v1691_v59 = vsub.f32 %v5441_v43, %v6995_v13  ;;  %v5448_v43 = vld [vmem:[%s5749_s5 + $0xf8] sm:$0xff] }
 0x437   :  { %v1273_v7 = vpack.c.bf16 %v1271_v61, %v1271_v61  ;;  %v5442_v61 = vld [vmem:[%s5749_s5 + $0xc8] sm:$0xff] }
 0x438   :  { %v1692_v25 = vsub.f32 %v5442_v61, %v6995_v13 }
 0x439   :  { %5074 = vmatmul.mubr.msk.bf16.vlgmr.msra.gmra.mrb[4].mxu1 %vm254_vm11, %v1273_v7 }
 0x43a   :  { %5078 = vmatpush3.bf16.msra.mxu1 %v6840_v0  ;;  %5083 = vmatprep.mubr.msk.bf16.mxu1 %vm330_vm0, %v8738_v50  ;;  %v7030_v0 = vpop.eup %5332 }
 0x43b   :  { %5079 = vmatprep.subr.bf16.mxu1 %v2001_v24  ;;  %v1715_v52 = vmul.f32 %v7030_v0, %v1683_v33  ;;  %v1716_v26 = vmul.f32 %v7030_v0, %v1684_v28  ;;  %v1717_v34 = vmul.f32 %v7030_v0, %v1685_v56  ;;  %v1718_v57 = vmul.f32 %v7030_v0, %v1686_v40  ;;  %v5444_v56 = vld [vmem:[%s5749_s5 + $0xd8] sm:$0xff]  ;;  %v5445_v40 = vld [vmem:[%s5749_s5 + $0xe0] sm:$0xff] }
 0x43c   :  { %v1719_v32 = vmul.f32 %v7030_v0, %v1687_v38  ;;  %v1720_v53 = vmul.f32 %v7030_v0, %v1688_v29  ;;  %v1721_v46 = vmul.f32 %v7030_v0, %v1689_v51  ;;  %v1722_v36 = vmul.f32 %v7030_v0, %v1690_v16 }
 0x43d   :  { %v5226_v27 = vround.rtne.f32 %v1715_v52  ;;  %v5227_v42 = vround.rtne.f32 %v1716_v26  ;;  %v5228_v15 = vround.rtne.f32 %v1717_v34  ;;  %v5229_v37 = vround.rtne.f32 %v1718_v57 }
 0x43e   :  { %5080 = vmatpush3.bf16.msra.mxu1 %v2001_v24  ;;  %v5230_v9 = vround.rtne.f32 %v1719_v32  ;;  %v5231_v4 = vround.rtne.f32 %v1720_v53  ;;  %v1723_v18 = vmul.f32 %v7030_v0, %v1691_v59  ;;  %v1724_v50 = vmul.f32 %v7030_v0, %v1692_v25 }
 0x43f   :  { %5208 = vmatprep.subr.msk.bf16.mxu1 %vm379_vm1, %v2002_v1  ;;  %v1779_v10 = vmax.f32 %v5226_v27, 0.0  ;;  %v1780_v54 = vmax.f32 %v5227_v42, 0.0  ;;  %v1781_v5 = vmax.f32 %v5228_v15, 0.0  ;;  %v1782_v12 = vmax.f32 %v5229_v37, 0.0 }
 0x440   :  { %v1783_v45 = vmax.f32 %v5230_v9, 0.0  ;;  %v1784_v47 = vmax.f32 %v5231_v4, 0.0  ;;  %v8743_v1 = vpack.c.bf16 %v6956_v63, %v6953_v8  ;;  %v5232_v19 = vround.rtne.f32 %v1721_v46 }
 0x441   :  { %v1811_v30 = vmin.f32 %v1779_v10, 31.0  ;;  %v1812_v35 = vmin.f32 %v1780_v54, 31.0  ;;  %v5233_v33 = vround.rtne.f32 %v1722_v36  ;;  %v1813_v28 = vmin.f32 %v1781_v5, 31.0 }
 0x442   :  { %5082 = vmatpush3.bf16.msra.mxu1 %v2052_v20  ;;  %v1814_v20 = vmin.f32 %v1782_v12, 31.0  ;;  %v1815_v52 = vmin.f32 %v1783_v45, 31.0  ;;  %v1816_v26 = vmin.f32 %v1784_v47, 31.0  ;;  %v1694_v8 = vsub.f32 %v5444_v56, %v6995_v13 }
 0x443   :  { %v1843_v7 = vmul.f32 %v1811_v30, %v7011_v39  ;;  %v1844_v24 = vmul.f32 %v1812_v35, %v7011_v39  ;;  %v1695_v41 = vsub.f32 %v5445_v40, %v6995_v13  ;;  %v5234_v38 = vround.rtne.f32 %v1723_v18  ;;  %v5447_v30 = vld [vmem:[%s5749_s5 + $0xf0] sm:$0xff] }
 0x444   :  { %v5235_v14 = vround.rtne.f32 %v1724_v50  ;;  %v1785_v29 = vmax.f32 %v5232_v19, 0.0  ;;  %v1845_v27 = vmul.f32 %v1813_v28, %v7011_v39  ;;  %v1846_v42 = vmul.f32 %v1814_v20, %v7011_v39 }
 0x445   :  { %5084 = vmatmul.mubr.msk.bf16.vlgmr.msra.gmra.mrb[8].mxu1 %vm330_vm0, %v8739_v58  ;;  %v5443_v58 = vld [vmem:[%s5749_s5 + $0xd0] sm:$0xff]  ;;  %v1875_v63 = vadd.f32 %v1843_v7, %v6995_v13  ;;  %v1876_v62 = vadd.f32 %v1844_v24, %v6995_v13  ;;  %v1847_v34 = vmul.f32 %v1815_v52, %v7011_v39  ;;  %v1848_v57 = vmul.f32 %v1816_v26, %v7011_v39  ;;  %s8783_s5 = sld [smem:[#allocation23_spill]] }
 0x446   :  { %5087 = vmatprep.mubr.msk.bf16.mxu1 %vm330_vm0, %v8740_v23  ;;  %v1693_v6 = vsub.f32 %v5443_v58, %v6995_v13  ;;  %v1786_v23 = vmax.f32 %v5233_v33, 0.0  ;;  %v1726_v10 = vmul.f32 %v7030_v0, %v1694_v8  ;;  %v1787_v54 = vmax.f32 %v5234_v38, 0.0 }
 0x447   :  { %v1992_v32 = vpack.c.bf16 %v1876_v62, %v1875_v63  ;;  %v1788_v11 = vmax.f32 %v5235_v14, 0.0  ;;  %v1727_v51 = vmul.f32 %v7030_v0, %v1695_v41  ;;  %v1728_v3 = vmul.f32 %v7030_v0, %v1696_v55 }
 0x448   :  { %v1725_v53 = vmul.f32 %v7030_v0, %v1693_v6  ;;  %v8745_v16 = vpack.c.bf16 %v6978_v44, %v6975_v22  ;;  %v1877_v15 = vadd.f32 %v1845_v27, %v6995_v13  ;;  %v1878_v37 = vadd.f32 %v1846_v42, %v6995_v13 }
 0x449   :  { %v1879_v9 = vadd.f32 %v1847_v34, %v6995_v13  ;;  %v1880_v4 = vadd.f32 %v1848_v57, %v6995_v13  ;;  %v1697_v35 = vsub.f32 %v5447_v30, %v6995_v13  ;;  %v1698_v22 = vsub.f32 %v5448_v43, %v6995_v13 }
 0x44a   :  { %v5236_v44 = vround.rtne.f32 %v1725_v53  ;;  %v5237_v59 = vround.rtne.f32 %v1726_v10  ;;  %v1819_v61 = vmin.f32 %v1787_v54, 31.0  ;;  %v1820_v25 = vmin.f32 %v1788_v11, 31.0 }
 0x44b   :  { %v5238_v46 = vround.rtne.f32 %v1727_v51  ;;  %v5239_v36 = vround.rtne.f32 %v1728_v3  ;;  %v1993_v5 = vpack.c.bf16 %v1878_v37, %v1877_v15  ;;  %v1994_v12 = vpack.c.bf16 %v1880_v4, %v1879_v9 }
 0x44c   :  { %v1789_v7 = vmax.f32 %v5236_v44, 0.0  ;;  %v1790_v24 = vmax.f32 %v5237_v59, 0.0  ;;  %v1729_v18 = vmul.f32 %v7030_v0, %v1697_v35  ;;  %v1730_v50 = vmul.f32 %v7030_v0, %v1698_v22 }
 0x44d   :  { %5088 = vmatmul.mubr.msk.bf16.gmra.mrb[12].mxu1 %vm330_vm0, %v8741_v2  ;;  %v1817_v2 = vmin.f32 %v1785_v29, 31.0  ;;  %v1852_v19 = vmul.f32 %v1820_v25, %v7011_v39  ;;  %v1791_v33 = vmax.f32 %v5238_v46, 0.0 }
 0x44e   :  { %5091 = vmatprep.mubr.msk.bf16.mxu1 %vm330_vm0, %v8742_v49  ;;  %v1818_v49 = vmin.f32 %v1786_v23, 31.0  ;;  %v1821_v52 = vmin.f32 %v1789_v7, 31.0  ;;  %v1822_v26 = vmin.f32 %v1790_v24, 31.0  ;;  %v5240_v58 = vround.rtne.f32 %v1729_v18 }
 0x44f   :  { %v1849_v45 = vmul.f32 %v1817_v2, %v7011_v39  ;;  %v5241_v6 = vround.rtne.f32 %v1730_v50  ;;  %v1884_v56 = vadd.f32 %v1852_v19, %v6995_v13  ;;  %v1823_v8 = vmin.f32 %v1791_v33, 31.0  ;;  %v8746_v2 = vld [vmem:[#allocation44_spill] sm:$0xff] }
 0x450   :  { %v1850_v47 = vmul.f32 %v1818_v49, %v7011_v39  ;;  %v1853_v40 = vmul.f32 %v1821_v52, %v7011_v39  ;;  %v1854_v41 = vmul.f32 %v1822_v26, %v7011_v39  ;;  %v1793_v48 = vmax.f32 %v5240_v58, 0.0  ;;  %v7190_v52 = vld [vmem:[%s5769_s21] sm:$0xff]  ;;  %v7195_v58 = vld [vmem:[%s5769_s21 + $0x8] sm:$0xff] }
 0x451   :  { %v1881_v28 = vadd.f32 %v1849_v45, %v6995_v13  ;;  %v1794_v55 = vmax.f32 %v5241_v6, 0.0  ;;  %v1855_v14 = vmul.f32 %v1823_v8, %v7011_v39  ;;  %v2738_v26 = vsel %vm254_vm11, %v7190_v52, inf }
 0x452   :  { %v1882_v20 = vadd.f32 %v1850_v47, %v6995_v13  ;;  %v1885_v23 = vadd.f32 %v1853_v40, %v6995_v13  ;;  %v1886_v27 = vadd.f32 %v1854_v41, %v6995_v13  ;;  %v1825_v42 = vmin.f32 %v1793_v48, 31.0  ;;  %2739 = vmin.xlane.f32.xlu0 %v2738_v26 }
 0x453   :  { %v1826_v34 = vmin.f32 %v1794_v55, 31.0  ;;  %v1887_v57 = vadd.f32 %v1855_v14, %v6995_v13  ;;  %v2741_v6 = vsel %vm254_vm11, %v7195_v58, inf  ;;  %v2750_v41 = vsel %vm254_vm11, %v7195_v58, -inf }
 0x454   :  { %v1995_v62 = vpack.c.bf16 %v1882_v20, %v1881_v28  ;;  %v1997_v53 = vpack.c.bf16 %v1886_v27, %v1885_v23  ;;  %v1857_v10 = vmul.f32 %v1825_v42, %v7011_v39  ;;  %2742 = vmin.xlane.f32.xlu1 %v2741_v6  ;;  %v7215_v42 = vld [vmem:[%s5769_s21 + $0x10] sm:$0xff] }
 0x455   :  { %5092 = vmatmul.mubr.msk.bf16.gmra.mrb[16].mxu1 %vm330_vm0, %v8743_v1  ;;  %v1851_v1 = vmul.f32 %v1819_v61, %v7011_v39  ;;  %v1858_v54 = vmul.f32 %v1826_v34, %v7011_v39  ;;  %v2744_v34 = vsel %vm254_vm11, %v7215_v42, inf }
 0x456   :  { %5095 = vmatprep.mubr.msk.bf16.mxu1 %vm330_vm0, %v8744_v17  ;;  %v1792_v17 = vmax.f32 %v5239_v36, 0.0  ;;  %v1889_v51 = vadd.f32 %v1857_v10, %v6995_v13 }
 0x457   :  { %v1883_v0 = vadd.f32 %v1851_v1, %v6995_v13  ;;  %v1890_v3 = vadd.f32 %v1858_v54, %v6995_v13 }
 0x458   :  { %v1824_v63 = vmin.f32 %v1792_v17, 31.0  ;;  %2751 = vmax.xlane.f32.xlu1 %v2750_v41 }
 0x459   :  { %v1996_v38 = vpack.c.bf16 %v1884_v56, %v1883_v0 }
 0x45a   :  { %v1856_v29 = vmul.f32 %v1824_v63, %v7011_v39 }
 0x45d   :  { %5096 = vmatmul.mubr.msk.bf16.gmra.mrb[20].mxu1 %vm330_vm0, %v8745_v16  ;;  %v1999_v16 = vpack.c.bf16 %v1890_v3, %v1889_v51 }
 0x45e   :  { %5099 = vmatprep.mubr.msk.bf16.mxu1 %vm330_vm0, %v1992_v32  ;;  %v1888_v32 = vadd.f32 %v1856_v29, %v6995_v13 }
 0x460   :  { %v1998_v11 = vpack.c.bf16 %v1888_v32, %v1887_v57  ;;  %v2753_v57 = vsel %vm254_vm11, %v7215_v42, -inf }
 0x461   :  { %2754 = vmax.xlane.f32.xlu1 %v2753_v57 }
 0x465   :  { %5100 = vmatmul.mubr.msk.bf16.gmra.mrb[24].mxu1 %vm330_vm0, %v1993_v5 }
 0x466   :  { %5103 = vmatprep.mubr.msk.bf16.mxu1 %vm330_vm0, %v1994_v12 }
 0x46d   :  { %5104 = vmatmul.mubr.msk.bf16.gmra.mrb[28].mxu1 %vm330_vm0, %v1995_v62  ;;  %v2747_v62 = vsel %vm254_vm11, %v7190_v52, -inf }
 0x46e   :  { %5107 = vmatprep.mubr.msk.bf16.mxu1 %vm330_vm0, %v1996_v38  ;;  %2748 = vmax.xlane.f32.xlu0 %v2747_v62 }
 0x472   :  { %2745 = vmin.xlane.f32.xlu0 %v2744_v34 }
 0x475   :  { %5108 = vmatmul.mubr.msk.bf16.gmra.mrb[32].mxu1 %vm330_vm0, %v1997_v53 }
 0x476   :  { %5111 = vmatprep.mubr.msk.bf16.mxu1 %vm330_vm0, %v1998_v11 }
 0x47d   :  { %5112 = vmatmul.mubr.msk.bf16.gmra.mrb[36].mxu1 %vm330_vm0, %v1999_v16 }
 0x47e   :  { %5141 = vmatprep.mubr.msk.bf16.mxu1 %vm330_vm0, %v8746_v2 }
 0x50c   :  { %v7147_v49 = vpop.f32.mrb[4].mxu1 }
 0x50d   :  { %8747 = vst [vmem:[#allocation44_spill] sm:$0xff] %v7147_v49  ;;  %v5075_v15 = vpop.f32.mrb[5].mxu1 }
 0x50e   :  { %v1315_v37 = vpop.f32.mrb[6].mxu1 }
 0x50f   :  { %v5076_v39 = vpop.f32.mrb[7].mxu1 }
 0x518   :  { %v7149_v9 = vpop.f32.mrb[8].mxu1 }
 0x519   :  { %v7151_v4 = vpop.f32.mrb[9].mxu1  ;;  %v2218_v44 = vsel %vm244_vm2, %v7149_v9, 0.0 }
 0x51a   :  { %v7153_v30 = vpop.f32.mrb[10].mxu1  ;;  %v2215_v13 = vsel %vm244_vm2, %v7151_v4, 0.0 }
 0x51b   :  { %v7155_v35 = vpop.f32.mrb[11].mxu1  ;;  %v2220_v61 = vsel %vm244_vm2, %v7153_v30, 0.0 }
 0x51c   :  { %v2216_v43 = vsel %vm244_vm2, %v7155_v35, 0.0 }
 0x51d   :  { %v2217_v22 = vadd.f32 %v2216_v43, %v2215_v13 }
 0x51f   :  { %v2219_v59 = vadd.f32 %v2218_v44, %v2217_v22 }
 0x520   :  { %v7165_v25 = vpop.f32.mrb[12].mxu1 }
 0x521   :  { %v7167_v46 = vpop.f32.mrb[13].mxu1  ;;  %v2221_v36 = vadd.f32 %v2220_v61, %v2219_v59  ;;  %v2226_v18 = vsel %vm244_vm2, %v7165_v25, 0.0 }
 0x522   :  { %v2222_v5 = vsel %vm244_vm2, %v7167_v46, 0.0  ;;  %v7171_v12 = vpop.f32.mrb[14].mxu1 }
 0x523   :  { %v2223_v45 = vadd.f32 %v2222_v5, %v2221_v36  ;;  %v7173_v47 = vpop.f32.mrb[15].mxu1  ;;  %v2228_v1 = vsel %vm244_vm2, %v7171_v12, 0.0 }
 0x524   :  { %v2224_v7 = vsel %vm244_vm2, %v7173_v47, 0.0 }
 0x525   :  { %v2225_v24 = vadd.f32 %v2224_v7, %v2223_v45 }
 0x527   :  { %v2227_v50 = vadd.f32 %v2226_v18, %v2225_v24 }
 0x528   :  { %v7181_v19 = vpop.f32.mrb[16].mxu1 }
 0x529   :  { %v7183_v33 = vpop.f32.mrb[17].mxu1  ;;  %v2229_v17 = vadd.f32 %v2228_v1, %v2227_v50  ;;  %v2234_v40 = vsel %vm244_vm2, %v7181_v19, 0.0 }
 0x52a   :  { %v2230_v28 = vsel %vm244_vm2, %v7183_v33, 0.0  ;;  %v7187_v20 = vpop.f32.mrb[18].mxu1 }
 0x52b   :  { %v2231_v0 = vadd.f32 %v2230_v28, %v2229_v17  ;;  %v7199_v56 = vpop.f32.mrb[19].mxu1  ;;  %v2236_v55 = vsel %vm244_vm2, %v7187_v20, 0.0 }
 0x52c   :  { %v2232_v8 = vsel %vm244_vm2, %v7199_v56, 0.0 }
 0x52d   :  { %v2233_v63 = vadd.f32 %v2232_v8, %v2231_v0 }
 0x52f   :  { %v2235_v48 = vadd.f32 %v2234_v40, %v2233_v63 }
 0x530   :  { %v7211_v38 = vpop.f32.mrb[20].mxu1 }
 0x531   :  { %v2136_v14 = vpop.f32.mrb[21].mxu1  ;;  %v2237_v29 = vadd.f32 %v2236_v55, %v2235_v48  ;;  %v2242_v11 = vsel %vm244_vm2, %v7211_v38, 0.0 }
 0x532   :  { %v2238_v23 = vsel %vm244_vm2, %v2136_v14, 0.0  ;;  %v5098_v27 = vpop.f32.mrb[22].mxu1 }
 0x533   :  { %v2239_v32 = vadd.f32 %v2238_v23, %v2237_v29  ;;  %v2139_v53 = vpop.f32.mrb[23].mxu1  ;;  %v2244_v3 = vsel %vm244_vm2, %v5098_v27, 0.0 }
 0x534   :  { %v2240_v10 = vsel %vm244_vm2, %v2139_v53, 0.0 }
 0x535   :  { %v2241_v54 = vadd.f32 %v2240_v10, %v2239_v32 }
 0x537   :  { %v2243_v51 = vadd.f32 %v2242_v11, %v2241_v54 }
 0x538   :  { %v7225_v16 = vpop.f32.mrb[24].mxu1 }
 0x539   :  { %v2245_v2 = vadd.f32 %v2244_v3, %v2243_v51  ;;  %v7227_v15 = vpop.f32.mrb[25].mxu1  ;;  %v2255_v61 = vsel %vm244_vm2, %v7225_v16, 0.0 }
 0x53a   :  { %v7229_v37 = vpop.f32.mrb[26].mxu1  ;;  %v2252_v43 = vsel %vm244_vm2, %v7227_v15, 0.0 }
 0x53b   :  { %v2246_v39 = vrot.slane %v2245_v2, 4  ;;  %v7231_v13 = vpop.f32.mrb[27].mxu1  ;;  %v2257_v45 = vsel %vm244_vm2, %v7229_v37, 0.0 }
 0x53c   :  { %v2253_v22 = vsel %vm244_vm2, %v7231_v13, 0.0 }
 0x53d   :  { %v2247_v44 = vadd.f32 %v2246_v39, %v2245_v2  ;;  %v2254_v59 = vadd.f32 %v2253_v22, %v2252_v43 }
 0x53f   :  { %v2248_v36 = vrot.slane %v2247_v44, 2  ;;  %v2256_v5 = vadd.f32 %v2255_v61, %v2254_v59 }
 0x540   :  { %v7241_v7 = vpop.f32.mrb[28].mxu1 }
 0x541   :  { %v2249_v24 = vadd.f32 %v2248_v36, %v2247_v44  ;;  %v7243_v18 = vpop.f32.mrb[29].mxu1  ;;  %v2258_v50 = vadd.f32 %v2257_v45, %v2256_v5  ;;  %v2263_v62 = vsel %vm244_vm2, %v7241_v7, 0.0 }
 0x542   :  { %v2259_v1 = vsel %vm244_vm2, %v7243_v18, 0.0  ;;  %v7247_v17 = vpop.f32.mrb[30].mxu1 }
 0x543   :  { %v2250_v28 = vrot.slane %v2249_v24, 1  ;;  %v2260_v26 = vadd.f32 %v2259_v1, %v2258_v50  ;;  %v7249_v6 = vpop.f32.mrb[31].mxu1  ;;  %v2265_v61 = vsel %vm244_vm2, %v7247_v17, 0.0 }
 0x544   :  { %v2261_v0 = vsel %vm244_vm2, %v7249_v6, 0.0 }
 0x545   :  { %v2251_v8 = vadd.f32 %v2250_v28, %v2249_v24  ;;  %v2262_v63 = vadd.f32 %v2261_v0, %v2260_v26 }
 0x547   :  { %v2289_v40 = vmul.f32 0.0078125, %v2251_v8  ;;  %v2264_v41 = vadd.f32 %v2263_v62, %v2262_v63 }
 0x548   :  { %v7255_v48 = vpop.f32.mrb[32].mxu1 }
 0x549   :  { %v7258_v55 = vsub.f32 %v7151_v4, %v2289_v40  ;;  %v7261_v29 = vsub.f32 %v7155_v35, %v2289_v40  ;;  %v7264_v23 = vsub.f32 %v7149_v9, %v2289_v40  ;;  %v7267_v34 = vsub.f32 %v7153_v30, %v2289_v40  ;;  %v7269_v57 = vpop.f32.mrb[33].mxu1 }
 0x54a   :  { %v7272_v32 = vsub.f32 %v7167_v46, %v2289_v40  ;;  %v7275_v10 = vsub.f32 %v7173_v47, %v2289_v40  ;;  %v7278_v4 = vsub.f32 %v7165_v25, %v2289_v40  ;;  %v7281_v35 = vsub.f32 %v7171_v12, %v2289_v40  ;;  %v7283_v54 = vpop.f32.mrb[34].mxu1 }
 0x54b   :  { %v7286_v9 = vsub.f32 %v7183_v33, %v2289_v40  ;;  %v7289_v30 = vsub.f32 %v7199_v56, %v2289_v40  ;;  %v7292_v46 = vsub.f32 %v7181_v19, %v2289_v40  ;;  %v7295_v47 = vsub.f32 %v7187_v20, %v2289_v40  ;;  %v7297_v11 = vpop.f32.mrb[35].mxu1 }
 0x54c   :  { %v7299_v25 = vsub.f32 %v2136_v14, %v2289_v40  ;;  %v7301_v12 = vsub.f32 %v2139_v53, %v2289_v40  ;;  %v7304_v51 = vsub.f32 %v7211_v38, %v2289_v40  ;;  %v7306_v33 = vsub.f32 %v5098_v27, %v2289_v40 }
 0x54d   :  { %v2323_v56 = vmul.f32 %v7258_v55, %v7258_v55  ;;  %v2324_v19 = vmul.f32 %v7261_v29, %v7261_v29  ;;  %v2325_v20 = vmul.f32 %v7264_v23, %v7264_v23  ;;  %v2326_v14 = vmul.f32 %v7267_v34, %v7267_v34 }
 0x54e   :  { %v2327_v43 = vmul.f32 %v7272_v32, %v7272_v32  ;;  %v2328_v36 = vmul.f32 %v7275_v10, %v7275_v10  ;;  %v2266_v45 = vadd.f32 %v2265_v61, %v2264_v41  ;;  %v2267_v50 = vsel %vm244_vm2, %v7269_v57, 0.0 }
 0x54f   :  { %v2355_v53 = vsel %vm244_vm2, %v2323_v56, 0.0  ;;  %v2356_v38 = vsel %vm244_vm2, %v2324_v19, 0.0  ;;  %v2358_v22 = vsel %vm244_vm2, %v2325_v20, 0.0  ;;  %v2360_v5 = vsel %vm244_vm2, %v2326_v14, 0.0 }
 0x550   :  { %v7314_v3 = vpop.f32.mrb[36].mxu1  ;;  %v2357_v2 = vadd.f32 %v2356_v38, %v2355_v53  ;;  %v2269_v1 = vsel %vm244_vm2, %v7297_v11, 0.0  ;;  %v2329_v28 = vmul.f32 %v7278_v4, %v7278_v4  ;;  %v2362_v26 = vsel %vm244_vm2, %v2327_v43, 0.0 }
 0x551   :  { %v7320_v27 = vpop.f32.mrb[37].mxu1  ;;  %v2268_v0 = vadd.f32 %v2267_v50, %v2266_v45  ;;  %v2330_v63 = vmul.f32 %v7281_v35, %v7281_v35  ;;  %v2364_v62 = vsel %vm244_vm2, %v2328_v36, 0.0  ;;  %v2271_v56 = vsel %vm244_vm2, %v7255_v48, 0.0 }
 0x552   :  { %v7322_v39 = vpop.f32.mrb[38].mxu1  ;;  %v2359_v59 = vadd.f32 %v2358_v22, %v2357_v2  ;;  %v2331_v19 = vmul.f32 %v7286_v9, %v7286_v9  ;;  %v2366_v20 = vsel %vm244_vm2, %v2329_v28, 0.0  ;;  %v2273_v38 = vsel %vm244_vm2, %v7283_v54, 0.0 }
 0x553   :  { %v7327_v44 = vpop.f32.mrb[39].mxu1  ;;  %v2270_v40 = vadd.f32 %v2269_v1, %v2268_v0  ;;  %v2275_v2 = vsel %vm244_vm2, %v7320_v27, 0.0  ;;  %v2332_v43 = vmul.f32 %v7289_v30, %v7289_v30  ;;  %v2368_v22 = vsel %vm244_vm2, %v2330_v63, 0.0 }
 0x554   :  { %v2361_v24 = vadd.f32 %v2360_v5, %v2359_v59  ;;  %v2277_v36 = vsel %vm244_vm2, %v7327_v44, 0.0  ;;  %v2333_v5 = vmul.f32 %v7292_v46, %v7292_v46  ;;  %v2370_v45 = vsel %vm244_vm2, %v2331_v19, 0.0 }
 0x555   :  { %v2272_v14 = vadd.f32 %v2271_v56, %v2270_v40  ;;  %v2334_v1 = vmul.f32 %v7295_v47, %v7295_v47  ;;  %v2372_v28 = vsel %vm244_vm2, %v2332_v43, 0.0  ;;  %v2335_v63 = vmul.f32 %v7299_v25, %v7299_v25 }
 0x556   :  { %v2363_v8 = vadd.f32 %v2362_v26, %v2361_v24  ;;  %v2281_v56 = vsel %vm244_vm2, %v7322_v39, 0.0  ;;  %v2336_v19 = vmul.f32 %v7301_v12, %v7301_v12 }
 0x557   :  { %v2274_v59 = vadd.f32 %v2273_v38, %v2272_v14  ;;  %v2337_v38 = vmul.f32 %v7304_v51, %v7304_v51 }
 0x558   :  { %v2365_v41 = vadd.f32 %v2364_v62, %v2363_v8  ;;  %v2279_v8 = vsel %vm244_vm2, %v7314_v3, 0.0  ;;  %v2374_v62 = vsel %vm244_vm2, %v2333_v5, 0.0 }
 0x559   :  { %v2276_v24 = vadd.f32 %v2275_v2, %v2274_v59  ;;  %v2378_v2 = vsel %vm244_vm2, %v2335_v63, 0.0  ;;  %v2338_v59 = vmul.f32 %v7306_v33, %v7306_v33 }
 0x55a   :  { %v2367_v53 = vadd.f32 %v2366_v20, %v2365_v41  ;;  %v2376_v20 = vsel %vm244_vm2, %v2334_v1, 0.0 }
 0x55b   :  { %v2278_v26 = vadd.f32 %v2277_v36, %v2276_v24  ;;  %v2384_v1 = vsel %vm244_vm2, %v2338_v59, 0.0 }
 0x55c   :  { %v2369_v61 = vadd.f32 %v2368_v22, %v2367_v53 }
 0x55d   :  { %v2280_v40 = vadd.f32 %v2279_v8, %v2278_v26 }
 0x55e   :  { %v2371_v50 = vadd.f32 %v2370_v45, %v2369_v61  ;;  %v2380_v61 = vsel %vm244_vm2, %v2336_v19, 0.0  ;;  %v2382_v45 = vsel %vm244_vm2, %v2337_v38, 0.0 }
 0x55f   :  { %v2282_v14 = vadd.f32 %v2281_v56, %v2280_v40 }
 0x560   :  { %v2373_v0 = vadd.f32 %v2372_v28, %v2371_v50 }
 0x561   :  { %v2283_v43 = vrot.slane %v2282_v14, 4 }
 0x562   :  { %v2375_v41 = vadd.f32 %v2374_v62, %v2373_v0 }
 0x563   :  { %v2284_v36 = vadd.f32 %v2283_v43, %v2282_v14 }
 0x564   :  { %v2377_v53 = vadd.f32 %v2376_v20, %v2375_v41 }
 0x565   :  { %v2285_v24 = vrot.slane %v2284_v36, 2 }
 0x566   :  { %v2379_v22 = vadd.f32 %v2378_v2, %v2377_v53 }
 0x567   :  { %v2286_v28 = vadd.f32 %v2285_v24, %v2284_v36 }
 0x568   :  { %v2381_v5 = vadd.f32 %v2380_v61, %v2379_v22 }
 0x569   :  { %v2287_v0 = vrot.slane %v2286_v28, 1 }
 0x56a   :  { %v2383_v50 = vadd.f32 %v2382_v45, %v2381_v5 }
 0x56b   :  { %v2288_v63 = vadd.f32 %v2287_v0, %v2286_v28 }
 0x56c   :  { %v2385_v26 = vadd.f32 %v2384_v1, %v2383_v50 }
 0x56d   :  { %v2290_v40 = vmul.f32 0.0078125, %v2288_v63 }
 0x56e   :  { %v2386_v8 = vrot.slane %v2385_v26, 4 }
 0x56f   :  { %v7383_v56 = vsub.f32 %v7227_v15, %v2290_v40  ;;  %v7386_v19 = vsub.f32 %v7231_v13, %v2290_v40  ;;  %v7389_v20 = vsub.f32 %v7225_v16, %v2290_v40  ;;  %v7392_v14 = vsub.f32 %v7229_v37, %v2290_v40 }
 0x570   :  { %v2387_v62 = vadd.f32 %v2386_v8, %v2385_v26  ;;  %v7395_v38 = vsub.f32 %v7243_v18, %v2290_v40  ;;  %v7398_v2 = vsub.f32 %v7249_v6, %v2290_v40  ;;  %v7401_v43 = vsub.f32 %v7241_v7, %v2290_v40 }
 0x571   :  { %v7404_v15 = vsub.f32 %v7247_v17, %v2290_v40  ;;  %v7407_v13 = vsub.f32 %v7269_v57, %v2290_v40  ;;  %v7410_v16 = vsub.f32 %v7297_v11, %v2290_v40  ;;  %v7413_v37 = vsub.f32 %v7255_v48, %v2290_v40 }
 0x572   :  { %v2388_v41 = vrot.slane %v2387_v62, 2  ;;  %v7416_v22 = vsub.f32 %v7283_v54, %v2290_v40  ;;  %v7419_v6 = vsub.f32 %v7320_v27, %v2290_v40  ;;  %v7422_v7 = vsub.f32 %v7327_v44, %v2290_v40 }
 0x573   :  { %v7425_v17 = vsub.f32 %v7314_v3, %v2290_v40  ;;  %v7428_v57 = vsub.f32 %v7322_v39, %v2290_v40  ;;  %v2339_v48 = vmul.f32 %v7383_v56, %v7383_v56  ;;  %v2340_v54 = vmul.f32 %v7386_v19, %v7386_v19 }
 0x574   :  { %v2389_v53 = vadd.f32 %v2388_v41, %v2387_v62  ;;  %v2341_v27 = vmul.f32 %v7389_v20, %v7389_v20  ;;  %v2342_v44 = vmul.f32 %v7392_v14, %v7392_v14  ;;  %v2343_v5 = vmul.f32 %v7395_v38, %v7395_v38 }
 0x575   :  { %v2392_v3 = vsel %vm244_vm2, %v2339_v48, 0.0  ;;  %v2393_v39 = vsel %vm244_vm2, %v2340_v54, 0.0  ;;  %v2344_v50 = vmul.f32 %v7398_v2, %v7398_v2  ;;  %v2345_v26 = vmul.f32 %v7401_v43, %v7401_v43 }
 0x576   :  { %v2390_v18 = vrot.slane %v2389_v53, 1  ;;  %v2394_v36 = vadd.f32 %v2393_v39, %v2392_v3  ;;  %v2395_v45 = vsel %vm244_vm2, %v2341_v27, 0.0  ;;  %v2397_v1 = vsel %vm244_vm2, %v2342_v44, 0.0 }
 0x577   :  { %v2399_v0 = vsel %vm244_vm2, %v2343_v5, 0.0  ;;  %v2346_v8 = vmul.f32 %v7404_v15, %v7404_v15  ;;  %v2347_v62 = vmul.f32 %v7407_v13, %v7407_v13  ;;  %v2348_v40 = vmul.f32 %v7410_v16, %v7410_v16 }
 0x578   :  { %v2391_v11 = vadd.f32 %v2390_v18, %v2389_v53  ;;  %v2396_v24 = vadd.f32 %v2395_v45, %v2394_v36  ;;  %v2349_v41 = vmul.f32 %v7413_v37, %v7413_v37  ;;  %v2401_v53 = vsel %vm244_vm2, %v2344_v50, 0.0 }
 0x579   :  { %v2351_v48 = vmul.f32 %v7419_v6, %v7419_v6  ;;  %v2403_v54 = vsel %vm244_vm2, %v2345_v26, 0.0  ;;  %v7467_v27 = vmul.f32 %v7425_v17, %v7425_v17  ;;  %v2405_v39 = vsel %vm244_vm2, %v2346_v8, 0.0 }
 0x57a   :  { %v2429_v59 = vmul.f32 0.0078125, %v2391_v11  ;;  %v2398_v28 = vadd.f32 %v2397_v1, %v2396_v24  ;;  %v2350_v11 = vmul.f32 %v7416_v22, %v7416_v22  ;;  %v2407_v36 = vsel %vm244_vm2, %v2347_v62, 0.0  ;;  %v8748_v62 = vld [vmem:[#allocation63_spill] sm:$0xff] }
 0x57b   :  { %v2409_v5 = vsel %vm244_vm2, %v2348_v40, 0.0  ;;  %v2411_v45 = vsel %vm244_vm2, %v2349_v41, 0.0 }
 0x57c   :  { %v2431_v61 = vadd.f32 1e-05, %v2429_v59  ;;  %v2400_v63 = vadd.f32 %v2399_v0, %v2398_v28  ;;  %v2352_v59 = vmul.f32 %v7422_v7, %v7422_v7 }
 0x57e   :  { %5334 = vrsqrt.f32 %v2431_v61  ;;  %v2402_v18 = vadd.f32 %v2401_v53, %v2400_v63  ;;  %v7471_v61 = vmul.f32 %v7428_v57, %v7428_v57 }
 0x580   :  { %v2404_v44 = vadd.f32 %v2403_v54, %v2402_v18 }
 0x582   :  { %v2406_v53 = vadd.f32 %v2405_v39, %v2404_v44  ;;  %v2413_v39 = vsel %vm244_vm2, %v2350_v11, 0.0 }
 0x588   :  { %v5335_v3 = vpop.eup %5334 }
 0x589   :  { %v2443_v24 = vmul.f32 %v5335_v3, %v7286_v9  ;;  %v2444_v50 = vmul.f32 %v5335_v3, %v7289_v30  ;;  %v2445_v1 = vmul.f32 %v5335_v3, %v7292_v46  ;;  %v2446_v28 = vmul.f32 %v5335_v3, %v7295_v47 }
 0x58a   :  { %v2447_v26 = vmul.f32 %v5335_v3, %v7299_v25  ;;  %v2448_v0 = vmul.f32 %v5335_v3, %v7301_v12  ;;  %v2449_v8 = vmul.f32 %v5335_v3, %v7304_v51  ;;  %v2450_v63 = vmul.f32 %v5335_v3, %v7306_v33  ;;  %v8749_v12 = vld [vmem:[#allocation64_spill] sm:$0xff] }
 0x58b   :  { %v2475_v40 = vmul.f32 %v8748_v62, %v2443_v24  ;;  %v2476_v41 = vmul.f32 %v8748_v62, %v2444_v50  ;;  %v2477_v9 = vmul.f32 %v8748_v62, %v2445_v1  ;;  %v2478_v30 = vmul.f32 %v8748_v62, %v2446_v28 }
 0x58c   :  { %v2479_v46 = vmul.f32 %v8748_v62, %v2447_v26  ;;  %v2480_v47 = vmul.f32 %v8748_v62, %v2448_v0  ;;  %v2481_v25 = vmul.f32 %v8748_v62, %v2449_v8  ;;  %v2408_v28 = vadd.f32 %v2407_v36, %v2406_v53 }
 0x58d   :  { %v2507_v18 = vadd.f32 %v8749_v12, %v2475_v40  ;;  %v2508_v51 = vadd.f32 %v8749_v12, %v2476_v41  ;;  %v2509_v33 = vadd.f32 %v8749_v12, %v2477_v9  ;;  %v2510_v54 = vadd.f32 %v8749_v12, %v2478_v30 }
 0x58e   :  { %v2511_v24 = vadd.f32 %v8749_v12, %v2479_v46  ;;  %v2512_v50 = vadd.f32 %v8749_v12, %v2480_v47  ;;  %v2513_v1 = vadd.f32 %v8749_v12, %v2481_v25  ;;  %v2410_v44 = vadd.f32 %v2409_v5, %v2408_v28 }
 0x58f   :  { %v2539_v26 = vmax.f32 %v2507_v18, 0.0  ;;  %v2540_v0 = vmax.f32 %v2508_v51, 0.0  ;;  %v2541_v49 = vmax.f32 %v2509_v33, 0.0  ;;  %v2542_v8 = vmax.f32 %v2510_v54, 0.0 }
 0x590   :  { %v2415_v40 = vsel %vm244_vm2, %v2351_v48, 0.0  ;;  %v2417_v41 = vsel %vm244_vm2, %v2352_v59, 0.0  ;;  %v2543_v9 = vmax.f32 %v2511_v24, 0.0  ;;  %v2544_v30 = vmax.f32 %v2512_v50, 0.0 }
 0x591   :  { %v2584_v46 = vsel %vm244_vm2, %v2539_v26, 0.0  ;;  %v2585_v47 = vsel %vm244_vm2, %v2540_v0, 0.0  ;;  %v2545_v31 = vmax.f32 %v2513_v1, 0.0  ;;  %v2587_v36 = vsel %vm244_vm2, %v2541_v49, 0.0 }
 0x592   :  { %v2586_v25 = vadd.f32 %v2585_v47, %v2584_v46  ;;  %v2589_v53 = vsel %vm244_vm2, %v2542_v8, 0.0  ;;  %v2412_v18 = vadd.f32 %v2411_v45, %v2410_v44  ;;  %v2435_v5 = vmul.f32 %v5335_v3, %v7258_v55 }
 0x593   :  { %v2436_v11 = vmul.f32 %v5335_v3, %v7261_v29  ;;  %v2437_v48 = vmul.f32 %v5335_v3, %v7264_v23  ;;  %v2438_v51 = vmul.f32 %v5335_v3, %v7267_v34  ;;  %v2439_v33 = vmul.f32 %v5335_v3, %v7272_v32 }
 0x594   :  { %v2588_v59 = vadd.f32 %v2587_v36, %v2586_v25  ;;  %v2440_v54 = vmul.f32 %v5335_v3, %v7275_v10  ;;  %v2414_v24 = vadd.f32 %v2413_v39, %v2412_v18  ;;  %v2441_v50 = vmul.f32 %v5335_v3, %v7278_v4 }
 0x595   :  { %v2442_v49 = vmul.f32 %v5335_v3, %v7281_v35  ;;  %v2467_v45 = vmul.f32 %v8748_v62, %v2435_v5  ;;  %v2468_v55 = vmul.f32 %v8748_v62, %v2436_v11  ;;  %v2469_v29 = vmul.f32 %v8748_v62, %v2437_v48 }
 0x596   :  { %v2590_v1 = vadd.f32 %v2589_v53, %v2588_v59  ;;  %v2470_v23 = vmul.f32 %v8748_v62, %v2438_v51  ;;  %v2591_v34 = vsel %vm244_vm2, %v2543_v9, 0.0  ;;  %v2593_v32 = vsel %vm244_vm2, %v2544_v30, 0.0 }
 0x597   :  { %v2416_v28 = vadd.f32 %v2415_v40, %v2414_v24  ;;  %v2419_v10 = vsel %vm244_vm2, %v7467_v27, 0.0  ;;  %v2471_v35 = vmul.f32 %v8748_v62, %v2439_v33  ;;  %v2482_v3 = vmul.f32 %v8748_v62, %v2450_v63 }
 0x598   :  { %v2592_v4 = vadd.f32 %v2591_v34, %v2590_v1  ;;  %v2499_v26 = vadd.f32 %v8749_v12, %v2467_v45  ;;  %v2472_v8 = vmul.f32 %v8748_v62, %v2440_v54  ;;  %v2500_v44 = vadd.f32 %v8749_v12, %v2468_v55 }
 0x599   :  { %v2418_v0 = vadd.f32 %v2417_v41, %v2416_v28  ;;  %v2501_v39 = vadd.f32 %v8749_v12, %v2469_v29  ;;  %v2595_v40 = vsel %vm244_vm2, %v2545_v31, 0.0  ;;  %v2421_v27 = vsel %vm244_vm2, %v7471_v61, 0.0 }
 0x59a   :  { %v2594_v9 = vadd.f32 %v2593_v32, %v2592_v4  ;;  %v2502_v30 = vadd.f32 %v8749_v12, %v2470_v23  ;;  %v2473_v63 = vmul.f32 %v8748_v62, %v2441_v50  ;;  %v2514_v47 = vadd.f32 %v8749_v12, %v2482_v3 }
 0x59b   :  { %v2420_v46 = vadd.f32 %v2419_v10, %v2418_v0  ;;  %v2531_v41 = vmax.f32 %v2499_v26, 0.0  ;;  %v2503_v36 = vadd.f32 %v8749_v12, %v2471_v35  ;;  %v2532_v53 = vmax.f32 %v2500_v44, 0.0 }
 0x59c   :  { %v2596_v25 = vadd.f32 %v2595_v40, %v2594_v9  ;;  %v2533_v18 = vmax.f32 %v2501_v39, 0.0  ;;  %v2474_v11 = vmul.f32 %v8748_v62, %v2442_v49  ;;  %v2504_v31 = vadd.f32 %v8749_v12, %v2472_v8 }
 0x59d   :  { %v2422_v5 = vadd.f32 %v2421_v27, %v2420_v46  ;;  %v2534_v48 = vmax.f32 %v2502_v30, 0.0  ;;  %v2546_v61 = vmax.f32 %v2514_v47, 0.0  ;;  %v2563_v59 = vsel %vm244_vm2, %v2531_v41, 0.0 }
 0x59e   :  { %v2564_v51 = vsel %vm244_vm2, %v2532_v53, 0.0  ;;  %v2505_v24 = vadd.f32 %v8749_v12, %v2473_v63  ;;  %v2535_v50 = vmax.f32 %v2503_v36, 0.0  ;;  %v2566_v45 = vsel %vm244_vm2, %v2533_v18, 0.0 }
 0x59f   :  { %v2423_v33 = vrot.slane %v2422_v5, 4  ;;  %v2565_v54 = vadd.f32 %v2564_v51, %v2563_v59  ;;  %v2597_v29 = vsel %vm244_vm2, %v2546_v61, 0.0  ;;  %v2506_v49 = vadd.f32 %v8749_v12, %v2474_v11 }
 0x5a0   :  { %v2536_v23 = vmax.f32 %v2504_v31, 0.0  ;;  %v2568_v34 = vsel %vm244_vm2, %v2534_v48, 0.0  ;;  %v2598_v32 = vadd.f32 %v2597_v29, %v2596_v25  ;;  %v2537_v4 = vmax.f32 %v2505_v24, 0.0 }
 0x5a1   :  { %v2424_v1 = vadd.f32 %v2423_v33, %v2422_v5  ;;  %v2567_v55 = vadd.f32 %v2566_v45, %v2565_v54  ;;  %v2570_v35 = vsel %vm244_vm2, %v2535_v50, 0.0  ;;  %v2538_v8 = vmax.f32 %v2506_v49, 0.0 }
 0x5a2   :  { %v2599_v3 = vrot.slane %v2598_v32, 4  ;;  %v2572_v44 = vsel %vm244_vm2, %v2536_v23, 0.0  ;;  %v2574_v27 = vsel %vm244_vm2, %v2537_v4, 0.0 }
 0x5a3   :  { %v2425_v28 = vrot.slane %v2424_v1, 2  ;;  %v2569_v10 = vadd.f32 %v2568_v34, %v2567_v55  ;;  %v2576_v47 = vsel %vm244_vm2, %v2538_v8, 0.0 }
 0x5a4   :  { %v2600_v39 = vadd.f32 %v2599_v3, %v2598_v32 }
 0x5a5   :  { %v2426_v26 = vadd.f32 %v2425_v28, %v2424_v1  ;;  %v2571_v0 = vadd.f32 %v2570_v35, %v2569_v10 }
 0x5a6   :  { %v2601_v63 = vrot.slane %v2600_v39, 2 }
 0x5a7   :  { %v2427_v9 = vrot.slane %v2426_v26, 1  ;;  %v2573_v40 = vadd.f32 %v2572_v44, %v2571_v0 }
 0x5a8   :  { %v2602_v18 = vadd.f32 %v2601_v63, %v2600_v39 }
 0x5a9   :  { %v2428_v30 = vadd.f32 %v2427_v9, %v2426_v26  ;;  %v2575_v46 = vadd.f32 %v2574_v27, %v2573_v40  ;;  %v7578_v40 = vpop.xlane.xlu0 %2739 }
 0x5aa   :  { %v2603_v31 = vrot.slane %v2602_v18, 1 }
 0x5ab   :  { %v2430_v41 = vmul.f32 0.0078125, %v2428_v30  ;;  %v2577_v25 = vadd.f32 %v2576_v47, %v2575_v46 }
 0x5ac   :  { %v2604_v59 = vadd.f32 %v2603_v31, %v2602_v18 }
 0x5ad   :  { %v2432_v36 = vadd.f32 1e-05, %v2430_v41  ;;  %v2578_v53 = vrot.slane %v2577_v25, 4 }
 0x5ae   :  { %v7550_v24 = vmul.f32 0.015625, %v2604_v59 }
 0x5af   :  { %5336 = vrsqrt.f32 %v2432_v36  ;;  %v2579_v5 = vadd.f32 %v2578_v53, %v2577_v25  ;;  %v2743_v53 = vpop.xlane.xlu1 %2742 }
 0x5b1   :  { %v2580_v11 = vrot.slane %v2579_v5, 2 }
 0x5b3   :  { %v2581_v48 = vadd.f32 %v2580_v11, %v2579_v5 }
 0x5b5   :  { %v2582_v61 = vrot.slane %v2581_v48, 1 }
 0x5b7   :  { %v2583_v51 = vadd.f32 %v2582_v61, %v2581_v48 }
 0x5b9   :  { %v5337_v33 = vpop.eup %5336  ;;  %v7548_v54 = vmul.f32 0.015625, %v2583_v51 }
 0x5ba   :  { %v2459_v50 = vmul.f32 %v5337_v33, %v7407_v13  ;;  %v2460_v45 = vmul.f32 %v5337_v33, %v7410_v16  ;;  %v2461_v1 = vmul.f32 %v5337_v33, %v7413_v37  ;;  %v2462_v55 = vmul.f32 %v5337_v33, %v7416_v22 }
 0x5bb   :  { %v2463_v29 = vmul.f32 %v5337_v33, %v7419_v6  ;;  %v2464_v49 = vmul.f32 %v5337_v33, %v7422_v7  ;;  %v2465_v23 = vmul.f32 %v5337_v33, %v7425_v17  ;;  %v2466_v34 = vmul.f32 %v5337_v33, %v7428_v57 }
 0x5bc   :  { %v2491_v32 = vmul.f32 %v8748_v62, %v2459_v50  ;;  %v2492_v28 = vmul.f32 %v8748_v62, %v2460_v45  ;;  %v2493_v13 = vmul.f32 %v8748_v62, %v2461_v1  ;;  %v2494_v16 = vmul.f32 %v8748_v62, %v2462_v55  ;;  %v2749_v55 = vpop.xlane.xlu0 %2748 }
 0x5bd   :  { %v2495_v37 = vmul.f32 %v8748_v62, %v2463_v29  ;;  %v2496_v22 = vmul.f32 %v8748_v62, %v2464_v49  ;;  %v2497_v6 = vmul.f32 %v8748_v62, %v2465_v23  ;;  %v2655_v7 = vsel %vm1008_vm6, %v7550_v24, %v7548_v54 }
 0x5be   :  { %v2523_v17 = vadd.f32 %v8749_v12, %v2491_v32  ;;  %v2524_v57 = vadd.f32 %v8749_v12, %v2492_v28  ;;  %v2525_v10 = vadd.f32 %v8749_v12, %v2493_v13  ;;  %v2526_v4 = vadd.f32 %v8749_v12, %v2494_v16  ;;  %v2752_v32 = vpop.xlane.xlu1 %2751 }
 0x5bf   :  { %v2527_v35 = vadd.f32 %v8749_v12, %v2495_v37  ;;  %v2528_v3 = vadd.f32 %v8749_v12, %v2496_v22  ;;  %v2666_v26 = vsel %vm2659_vm14, %v2655_v7, -inf  ;;  %v2660_v9 = vsel %vm2659_vm14, %v2655_v7, inf }
 0x5c0   :  { %v2555_v0 = vmax.f32 %v2523_v17, 0.0  ;;  %v2556_v8 = vmax.f32 %v2524_v57, 0.0  ;;  %v2557_v44 = vmax.f32 %v2525_v10, 0.0  ;;  %v2558_v39 = vmax.f32 %v2526_v4, 0.0  ;;  %2667 = vmax.xlane.f32.xlu1 %v2666_v26  ;;  %2661 = vmin.xlane.f32.xlu0 %v2660_v9  ;;  %v2746_v26 = vpop.xlane.xlu0 %2745 }
 0x5c1   :  { %v2529_v27 = vadd.f32 %v8749_v12, %v2497_v6  ;;  %v2559_v30 = vmax.f32 %v2527_v35, 0.0  ;;  %v2560_v47 = vmax.f32 %v2528_v3, 0.0  ;;  %v2451_v18 = vmul.f32 %v5337_v33, %v7383_v56 }
 0x5c2   :  { %v2626_v46 = vsel %vm244_vm2, %v2555_v0, 0.0  ;;  %v2627_v63 = vsel %vm244_vm2, %v2556_v8, 0.0  ;;  %v2629_v25 = vsel %vm244_vm2, %v2557_v44, 0.0  ;;  %v2631_v36 = vsel %vm244_vm2, %v2558_v39, 0.0 }
 0x5c3   :  { %v2628_v41 = vadd.f32 %v2627_v63, %v2626_v46  ;;  %v2452_v5 = vmul.f32 %v5337_v33, %v7386_v19  ;;  %v2453_v11 = vmul.f32 %v5337_v33, %v7389_v20  ;;  %v2454_v31 = vmul.f32 %v5337_v33, %v7392_v14  ;;  %v2755_v46 = vpop.xlane.xlu1 %2754 }
 0x5c4   :  { %v2455_v61 = vmul.f32 %v5337_v33, %v7395_v38  ;;  %v2456_v59 = vmul.f32 %v5337_v33, %v7398_v2  ;;  %v2457_v51 = vmul.f32 %v5337_v33, %v7401_v43  ;;  %v2458_v50 = vmul.f32 %v5337_v33, %v7404_v15 }
 0x5c5   :  { %v2630_v48 = vadd.f32 %v2629_v25, %v2628_v41  ;;  %v2483_v45 = vmul.f32 %v8748_v62, %v2451_v18  ;;  %v2484_v1 = vmul.f32 %v8748_v62, %v2452_v5  ;;  %v2485_v56 = vmul.f32 %v8748_v62, %v2453_v11 }
 0x5c6   :  { %v2486_v20 = vmul.f32 %v8748_v62, %v2454_v31  ;;  %v2487_v14 = vmul.f32 %v8748_v62, %v2455_v61  ;;  %v2561_v29 = vmax.f32 %v2529_v27, 0.0  ;;  %v2633_v38 = vsel %vm244_vm2, %v2559_v30, 0.0 }
 0x5c7   :  { %v2632_v19 = vadd.f32 %v2631_v36, %v2630_v48  ;;  %v2498_v2 = vmul.f32 %v8748_v62, %v2466_v34  ;;  %v2515_v43 = vadd.f32 %v8749_v12, %v2483_v45  ;;  %v2635_v33 = vsel %vm244_vm2, %v2560_v47, 0.0 }
 0x5c8   :  { %v2516_v49 = vadd.f32 %v8749_v12, %v2484_v1  ;;  %v2517_v23 = vadd.f32 %v8749_v12, %v2485_v56  ;;  %v2488_v28 = vmul.f32 %v8748_v62, %v2456_v59  ;;  %v2489_v13 = vmul.f32 %v8748_v62, %v2457_v51 }
 0x5c9   :  { %v2634_v15 = vadd.f32 %v2633_v38, %v2632_v19  ;;  %v2518_v16 = vadd.f32 %v8749_v12, %v2486_v20  ;;  %v2519_v37 = vadd.f32 %v8749_v12, %v2487_v14  ;;  %v2530_v34 = vadd.f32 %v8749_v12, %v2498_v2 }
 0x5ca   :  { %v2547_v6 = vmax.f32 %v2515_v43, 0.0  ;;  %v2548_v7 = vmax.f32 %v2516_v49, 0.0  ;;  %v2637_v17 = vsel %vm244_vm2, %v2561_v29, 0.0  ;;  %v2549_v57 = vmax.f32 %v2517_v23, 0.0 }
 0x5cb   :  { %v2636_v22 = vadd.f32 %v2635_v33, %v2634_v15  ;;  %v2756_v10 = vmin.f32 %v7578_v40, %v2743_v53  ;;  %v2490_v35 = vmul.f32 %v8748_v62, %v2458_v50  ;;  %v2562_v3 = vmax.f32 %v2530_v34, 0.0 }
 0x5cc   :  { %v2520_v0 = vadd.f32 %v8749_v12, %v2488_v28  ;;  %v2550_v8 = vmax.f32 %v2518_v16, 0.0  ;;  %v2605_v44 = vsel %vm244_vm2, %v2547_v6, 0.0  ;;  %v2606_v39 = vsel %vm244_vm2, %v2548_v7, 0.0 }
 0x5cd   :  { %v2638_v4 = vadd.f32 %v2637_v17, %v2636_v22  ;;  %v2521_v9 = vadd.f32 %v8749_v12, %v2489_v13  ;;  %v2551_v27 = vmax.f32 %v2519_v37, 0.0  ;;  %v2607_v30 = vadd.f32 %v2606_v39, %v2605_v44 }
 0x5ce   :  { %v2608_v63 = vsel %vm244_vm2, %v2549_v57, 0.0  ;;  %v2639_v40 = vsel %vm244_vm2, %v2562_v3, 0.0  ;;  %v2764_v47 = vmax.f32 %v2749_v55, %v2752_v32  ;;  %v2757_v62 = vmin.f32 %v2756_v10, %v2746_v26 }
 0x5cf   :  { %v2522_v41 = vadd.f32 %v8749_v12, %v2490_v35  ;;  %v2609_v25 = vadd.f32 %v2608_v63, %v2607_v30  ;;  %v2640_v36 = vadd.f32 %v2639_v40, %v2638_v4  ;;  %v2552_v53 = vmax.f32 %v2520_v0, 0.0 }
 0x5d0   :  { %v2610_v18 = vsel %vm244_vm2, %v2550_v8, 0.0  ;;  %v2758_v5 = vrot.slane %v2757_v62, 4  ;;  %v2765_v11 = vmax.f32 %v2764_v47, %v2755_v46  ;;  %v2553_v61 = vmax.f32 %v2521_v9, 0.0 }
 0x5d1   :  { %v2611_v31 = vadd.f32 %v2610_v18, %v2609_v25  ;;  %v2641_v48 = vrot.slane %v2640_v36, 4  ;;  %v2612_v59 = vsel %vm244_vm2, %v2551_v27, 0.0  ;;  %v2554_v56 = vmax.f32 %v2522_v41, 0.0 }
 0x5d2   :  { %v2759_v51 = vmin.f32 %v2757_v62, %v2758_v5  ;;  %v2766_v50 = vrot.slane %v2765_v11, 4  ;;  %v2614_v19 = vsel %vm244_vm2, %v2552_v53, 0.0  ;;  %v2616_v29 = vsel %vm244_vm2, %v2553_v61, 0.0 }
 0x5d3   :  { %v2613_v45 = vadd.f32 %v2612_v59, %v2611_v31  ;;  %v2642_v1 = vadd.f32 %v2641_v48, %v2640_v36  ;;  %v2618_v15 = vsel %vm244_vm2, %v2554_v56, 0.0 }
 0x5d4   :  { %v2760_v12 = vrot.slane %v2759_v51, 2  ;;  %v2767_v20 = vmax.f32 %v2765_v11, %v2766_v50 }
 0x5d5   :  { %v2615_v14 = vadd.f32 %v2614_v19, %v2613_v45  ;;  %v2643_v55 = vrot.slane %v2642_v1, 2  ;;  %v8750_v45 = vmov 0.0  }
 0x5d6   :  { %v2761_v38 = vmin.f32 %v2759_v51, %v2760_v12  ;;  %v2768_v2 = vrot.slane %v2767_v20, 2 }
 0x5d7   :  { %v2617_v43 = vadd.f32 %v2616_v29, %v2615_v14  ;;  %v2644_v32 = vadd.f32 %v2643_v55, %v2642_v1 }
 0x5d8   :  { %v2762_v33 = vrot.slane %v2761_v38, 1  ;;  %v2769_v49 = vmax.f32 %v2767_v20, %v2768_v2 }
 0x5d9   :  { %v2619_v23 = vadd.f32 %v2618_v15, %v2617_v43  ;;  %v2645_v34 = vrot.slane %v2644_v32, 1 }
 0x5da   :  { %v2763_v28 = vmin.f32 %v2761_v38, %v2762_v33  ;;  %v2770_v13 = vrot.slane %v2769_v49, 1 }
 0x5db   :  { %v2620_v16 = vrot.slane %v2619_v23, 4  ;;  %v2646_v10 = vadd.f32 %v2645_v34, %v2644_v32 }
 0x5dc   :  { %v2771_v37 = vmax.f32 %v2769_v49, %v2770_v13  ;;  %v2777_v9 = vsub.f32 %v7190_v52, %v2763_v28  ;;  %v2778_v27 = vsub.f32 %v7195_v58, %v2763_v28  ;;  %v2779_v30 = vsub.f32 %v7215_v42, %v2763_v28 }
 0x5dd   :  { %v2621_v22 = vadd.f32 %v2620_v16, %v2619_v23  ;;  %v7624_v26 = vmul.f32 0.015625, %v2646_v10 }
 0x5de   :  { %v2772_v6 = vsub.f32 %v2771_v37, %v2763_v28 }
 0x5df   :  { %v2622_v7 = vrot.slane %v2621_v22, 2 }
 0x5e0   :  { %v2773_v17 = vmul.f32 0.003921569, %v2772_v6 }
 0x5e1   :  { %v2623_v57 = vadd.f32 %v2622_v7, %v2621_v22 }
 0x5e2   :  { %vm2774_vm15 = vcmp.le.f32.partialorder %v2773_v17, 0.0 }
 0x5e3   :  { %v2624_v4 = vrot.slane %v2623_v57, 1  ;;  %v2775_v35 = vsel %vm2774_vm15, 1.0, %v2773_v17 }
 0x5e4   :  { %5338 = vrcp.f32 %v2775_v35 }
 0x5e5   :  { %v2625_v3 = vadd.f32 %v2624_v4, %v2623_v57 }
 0x5e7   :  { %v7626_v0 = vmul.f32 0.015625, %v2625_v3 }
 0x5e9   :  { %v2656_v8 = vsel %vm1008_vm6, %v7624_v26, %v7626_v0 }
 0x5ea   :  { %v2669_v44 = vsel %vm2659_vm14, %v2656_v8, -inf  ;;  %v2663_v39 = vsel %vm2659_vm14, %v2656_v8, inf  ;;  %vm265_vm14 = vcmask 261120  }
 0x5eb   :  { %2670 = vmax.xlane.f32.xlu1 %v2669_v44  ;;  %2664 = vmin.xlane.f32.xlu0 %v2663_v39 }
 0x5ee   :  { %v5339_v46 = vpop.eup %5338 }
 0x5ef   :  { %v2780_v63 = vmul.f32 %v5339_v46, %v2777_v9  ;;  %v2781_v40 = vmul.f32 %v5339_v46, %v2778_v27  ;;  %v2782_v47 = vmul.f32 %v5339_v46, %v2779_v30 }
 0x5f1   :  { %v5251_v62 = vround.rtne.f32 %v2780_v63  ;;  %v5252_v41 = vround.rtne.f32 %v2781_v40  ;;  %v5253_v25 = vround.rtne.f32 %v2782_v47 }
 0x5f3   :  { %v2786_v36 = vmax.f32 %v5251_v62, 0.0  ;;  %v2787_v53 = vmax.f32 %v5252_v41, 0.0  ;;  %v2788_v18 = vmax.f32 %v5253_v25, 0.0 }
 0x5f5   :  { %v2789_v5 = vmin.f32 %v2786_v36, 255.0  ;;  %v2790_v11 = vmin.f32 %v2787_v53, 255.0  ;;  %v2791_v31 = vmin.f32 %v2788_v18, 255.0 }
 0x5f7   :  { %v2792_v48 = vmul.f32 %v2789_v5, %v2775_v35  ;;  %v2793_v61 = vmul.f32 %v2790_v11, %v2775_v35  ;;  %v2794_v52 = vmul.f32 %v2791_v31, %v2775_v35 }
 0x5f9   :  { %v2795_v59 = vadd.f32 %v2792_v48, %v2763_v28  ;;  %v2796_v58 = vadd.f32 %v2793_v61, %v2763_v28  ;;  %v2797_v51 = vadd.f32 %v2794_v52, %v2763_v28 }
 0x5fb   :  { %v2802_v42 = vpack.c.bf16 %v2796_v58, %v2795_v59  ;;  %v2803_v50 = vpack.c.bf16 %v2797_v51, %v2797_v51 }
 0x5fd   :  { %5116 = vmatpush3.bf16.msra.mxu0 %v2802_v42  ;;  %v2820_v1 = vsel %vm1018_vm3, %v2803_v50, 0 }
 0x5fe   :  { %5117 = vmatprep.subr.bf16.mxu0 %v8750_v45 }
 0x601   :  { %5118 = vmatpush3.bf16.msra.mxu0 %v2820_v1 }
 0x602   :  { %5123 = vmatprep.subr.bf16.mxu0 %v8750_v45 }
 0x64d   :  { %v2668_v56 = vpop.xlane.xlu1 %2667  ;;  %v2662_v19 = vpop.xlane.xlu0 %2661 }
 0x64e   :  { %v2686_v12 = vsel %vm379_vm1, %v2668_v56, -inf  ;;  %v2672_v20 = vsel %vm379_vm1, %v2662_v19, inf }
 0x64f   :  { %v2687_v14 = vrot.slane %v2686_v12, 4  ;;  %v2673_v55 = vrot.slane %v2672_v20, 4 }
 0x651   :  { %v2688_v29 = vmax.f32 %v2686_v12, %v2687_v14  ;;  %v2674_v38 = vmin.f32 %v2672_v20, %v2673_v55 }
 0x653   :  { %v2689_v2 = vrot.slane %v2688_v29, 2  ;;  %v2675_v43 = vrot.slane %v2674_v38, 2 }
 0x655   :  { %v2690_v15 = vmax.f32 %v2688_v29, %v2689_v2  ;;  %v2676_v33 = vmin.f32 %v2674_v38, %v2675_v43 }
 0x657   :  { %v2691_v49 = vrot.slane %v2690_v15, 1  ;;  %v2677_v23 = vrot.slane %v2676_v33, 1 }
 0x659   :  { %v2692_v32 = vmax.f32 %v2690_v15, %v2691_v49  ;;  %v2678_v28 = vmin.f32 %v2676_v33, %v2677_v23 }
 0x65b   :  { %v2700_v13 = vsub.f32 %v2692_v32, %v2678_v28  ;;  %v2710_v30 = vsub.f32 %v7548_v54, %v2678_v28  ;;  %v2711_v46 = vsub.f32 %v7550_v24, %v2678_v28 }
 0x65d   :  { %v2702_v16 = vmul.f32 0.032258064, %v2700_v13 }
 0x65f   :  { %vm2704_vm5 = vcmp.le.f32.partialorder %v2702_v16, 0.0 }
 0x660   :  { %v2706_v37 = vsel %vm2704_vm5, 1.0, %v2702_v16 }
 0x661   :  { %5340 = vrcp.f32 %v2706_v37 }
 0x66b   :  { %v5341_v27 = vpop.eup %5340 }
 0x66c   :  { %v2714_v47 = vmul.f32 %v5341_v27, %v2710_v30  ;;  %v2715_v62 = vmul.f32 %v5341_v27, %v2711_v46  ;;  %v5456_v46 = vld [vmem:[%s5754_s9 + $0x10] sm:$0xff] }
 0x66e   :  { %v5247_v36 = vround.rtne.f32 %v2714_v47  ;;  %v5248_v53 = vround.rtne.f32 %v2715_v62  ;;  %v5457_v62 = vld [vmem:[%s5754_s9 + $0x18] sm:$0xff] }
 0x670   :  { %v2722_v5 = vmax.f32 %v5247_v36, 0.0  ;;  %v2723_v11 = vmax.f32 %v5248_v53, 0.0 }
 0x672   :  { %v2726_v31 = vmin.f32 %v2722_v5, 31.0  ;;  %v2727_v48 = vmin.f32 %v2723_v11, 31.0  ;;  %v8751_v5 = vld [vmem:[#allocation65_spill] sm:$0xff] }
 0x673   :  { %v3367_v11 = vpack.c.bf16 %v8751_v5, %v8751_v5 }
 0x674   :  { %v2730_v52 = vmul.f32 %v2726_v31, %v2706_v37  ;;  %v2731_v59 = vmul.f32 %v2727_v48, %v2706_v37  ;;  %v8752_v48 = vld [vmem:[#allocation46_spill] sm:$0xff] }
 0x675   :  { %v3369_v31 = vsel %vm379_vm1, %v3367_v11, 0 }
 0x676   :  { %v2734_v1 = vadd.f32 %v2730_v52, %v2678_v28  ;;  %v2735_v56 = vadd.f32 %v2731_v59, %v2678_v28  ;;  %v8756_v52 = vld [vmem:[#allocation50_spill] sm:$0xff]  ;;  %v8757_v59 = vld [vmem:[#allocation51_spill] sm:$0xff] }
 0x678   :  { %v2671_v22 = vpop.xlane.xlu1 %2670  ;;  %v2665_v34 = vpop.xlane.xlu0 %2664  ;;  %v2798_v55 = vpack.c.bf16 %v2734_v1, %v2734_v1  ;;  %v2799_v29 = vpack.c.bf16 %v2735_v56, %v2735_v56  ;;  %v8762_v56 = vld [vmem:[#allocation56_spill] sm:$0xff] }
 0x679   :  { %v2693_v6 = vsel %vm379_vm1, %v2671_v22, -inf  ;;  %v2679_v7 = vsel %vm379_vm1, %v2665_v34, inf  ;;  %v7654_v22 = vld [vmem:[%s5784_s3 + $0x8] sm:$0xff] }
 0x67a   :  { %v2694_v17 = vrot.slane %v2693_v6, 4  ;;  %v2680_v57 = vrot.slane %v2679_v7, 4  ;;  %v2808_v43 = vunpack.c.l.b16 %v2798_v55  ;;  %v2809_v15 = vunpack.c.l.b16 %v2799_v29 }
 0x67b   :  { %v2988_v34 = vsel %vm254_vm11, %v7654_v22, inf }
 0x67c   :  { %v2695_v10 = vmax.f32 %v2693_v6, %v2694_v17  ;;  %v2681_v4 = vmin.f32 %v2679_v7, %v2680_v57  ;;  %v2812_v28 = vsel %vm1008_vm6, %v2809_v15, %v2808_v43  ;;  %v7659_v6 = vld [vmem:[%s5784_s3] sm:$0xff]  ;;  %2989 = vmin.xlane.f32.xlu1 %v2988_v34  ;;  %v169_v57 = vld [vmem:[%s5809_s30 + $0x8] sm:$0xff] }
 0x67d   :  { %v2985_v7 = vsel %vm254_vm11, %v7659_v6, inf  ;;  %v168_v17 = vld [vmem:[%s5809_s30] sm:$0xff] }
 0x67e   :  { %v2696_v35 = vrot.slane %v2695_v10, 2  ;;  %v2682_v3 = vrot.slane %v2681_v4, 2  ;;  %2986 = vmin.xlane.f32.xlu0 %v2985_v7 }
 0x680   :  { %v2697_v8 = vmax.f32 %v2695_v10, %v2696_v35  ;;  %v2683_v44 = vmin.f32 %v2681_v4, %v2682_v3  ;;  %v5454_v10 = vld [vmem:[%s5754_s9] sm:$0xff]  ;;  %v5455_v35 = vld [vmem:[%s5754_s9 + $0x8] sm:$0xff]  ;;  %s8784_s9 = sld [smem:[#allocation40_spill]] }
 0x681   :  { %v178_v4 = vmul.f32 0.01, %v5454_v10  ;;  %v179_v3 = vmul.f32 0.01, %v5455_v35 }
 0x682   :  { %v2698_v39 = vrot.slane %v2697_v8, 1  ;;  %v2684_v9 = vrot.slane %v2683_v44, 1 }
 0x684   :  { %v2699_v63 = vmax.f32 %v2697_v8, %v2698_v39  ;;  %v2685_v40 = vmin.f32 %v2683_v44, %v2684_v9  ;;  %v173_v8 = vmul.f32 0.99, %v168_v17  ;;  %v174_v44 = vmul.f32 0.99, %v169_v57  ;;  %v170_v39 = vld [vmem:[%s5809_s30 + $0x10] sm:$0xff]  ;;  %v171_v9 = vld [vmem:[%s5809_s30 + $0x18] sm:$0xff] }
 0x685   :  { %v175_v27 = vmul.f32 0.99, %v170_v39  ;;  %v176_v30 = vmul.f32 0.99, %v171_v9  ;;  %v8766_v57 = vld [vmem:[#allocation60_spill] sm:$0xff]  ;;  %s8796_s30 = sld [smem:[#allocation32_spill]] }
 0x686   :  { %v2701_v41 = vsub.f32 %v2699_v63, %v2685_v40  ;;  %v2712_v61 = vsub.f32 %v7626_v0, %v2685_v40  ;;  %v2713_v54 = vsub.f32 %v7624_v26, %v2685_v40  ;;  %v180_v63 = vmul.f32 0.01, %v5456_v46 }
 0x687   :  { %v184_v47 = vadd.f32 %v179_v3, %v174_v44 }
 0x688   :  { %v2703_v25 = vmul.f32 0.032258064, %v2701_v41  ;;  %v181_v41 = vmul.f32 0.01, %v5457_v62 }
 0x689   :  { %246 = vst.msk [vmem:[%s5899_s24 + $0x8] sm:$0xff] %vm244_vm2, %v184_v47 }
 0x68a   :  { %vm2705_vm10 = vcmp.le.f32.partialorder %v2703_v25, 0.0  ;;  %v186_v53 = vadd.f32 %v181_v41, %v176_v30 }
 0x68b   :  { %v2707_v18 = vsel %vm2705_vm10, 1.0, %v2703_v25  ;;  %v185_v25 = vadd.f32 %v180_v63, %v175_v27 }
 0x68c   :  { %5342 = vrcp.f32 %v2707_v18  ;;  %248 = vst.msk [vmem:[%s5899_s24 + $0x18] sm:$0xff] %vm244_vm2, %v186_v53 }
 0x68d   :  { %247 = vst.msk [vmem:[%s5899_s24 + $0x10] sm:$0xff] %vm244_vm2, %v185_v25 }
 0x696   :  { %v5343_v24 = vpop.eup %5342 }
 0x697   :  { %v2716_v58 = vmul.f32 %v5343_v24, %v2712_v61  ;;  %v2717_v51 = vmul.f32 %v5343_v24, %v2713_v54  ;;  %v8753_v61 = vld [vmem:[#allocation47_spill] sm:$0xff]  ;;  %v8754_v54 = vld [vmem:[#allocation48_spill] sm:$0xff]  ;;  %v8755_v24 = vld [vmem:[#allocation49_spill] sm:$0xff] }
 0x699   :  { %v5249_v42 = vround.rtne.f32 %v2716_v58  ;;  %v5250_v50 = vround.rtne.f32 %v2717_v51  ;;  %v8758_v58 = vld [vmem:[#allocation52_spill] sm:$0xff]  ;;  %v8759_v51 = vld [vmem:[#allocation53_spill] sm:$0xff] }
 0x69b   :  { %v2724_v19 = vmax.f32 %v5249_v42, 0.0  ;;  %v2725_v12 = vmax.f32 %v5250_v50, 0.0  ;;  %v8760_v42 = vld [vmem:[#allocation54_spill] sm:$0xff]  ;;  %v8761_v50 = vld [vmem:[#allocation55_spill] sm:$0xff] }
 0x69d   :  { %v2728_v20 = vmin.f32 %v2724_v19, 31.0  ;;  %v2729_v14 = vmin.f32 %v2725_v12, 31.0 }
 0x69f   :  { %v2732_v38 = vmul.f32 %v2728_v20, %v2707_v18  ;;  %v2733_v0 = vmul.f32 %v2729_v14, %v2707_v18  ;;  %v3366_v18 = vpack.c.bf16 %v186_v53, %v185_v25  ;;  %v8763_v20 = vld [vmem:[#allocation57_spill] sm:$0xff] }
 0x6a1   :  { %v2736_v2 = vadd.f32 %v2732_v38, %v2685_v40  ;;  %v2737_v26 = vadd.f32 %v2733_v0, %v2685_v40  ;;  %v183_v40 = vadd.f32 %v178_v4, %v173_v8 }
 0x6a3   :  { %v2800_v33 = vpack.c.bf16 %v2736_v2, %v2736_v2  ;;  %v2801_v49 = vpack.c.bf16 %v2737_v26, %v2737_v26  ;;  %245 = vst.msk [vmem:[%s5899_s24] sm:$0xff] %vm244_vm2, %v183_v40  ;;  %v3365_v36 = vpack.c.bf16 %v184_v47, %v183_v40  ;;  %s8793_s24 = sld [smem:[#allocation31_spill]] }
 0x6a5   :  { %v2810_v23 = vunpack.c.l.b16 %v2800_v33  ;;  %v2811_v32 = vunpack.c.l.b16 %v2801_v49  ;;  %5135 = vmatprep.subr.bf16.mxu1 %v3365_v36  ;;  %v8764_v49 = vld [vmem:[#allocation58_spill] sm:$0xff] }
 0x6a6   :  { %5136 = vmatpush3.bf16.msra.mxu1 %v3365_v36 }
 0x6a7   :  { %v2813_v13 = vsel %vm1010_vm7, %v2810_v23, %v2812_v28  ;;  %5137 = vmatprep.subr.bf16.mxu1 %v3366_v18  ;;  %v8765_v23 = vld [vmem:[#allocation59_spill] sm:$0xff] }
 0x6a8   :  { %v2814_v16 = vsel %vm1012_vm8, %v2811_v32, %v2813_v13 }
 0x6a9   :  { %v2815_v37 = vpack.c.b16 %v2814_v16, %v2814_v16 }
 0x6aa   :  { %5138 = vmatpush3.bf16.msra.mxu1 %v3366_v18 }
 0x6ab   :  { %5120 = vmatmul.mubr.msk.bf16.vlgmr.msra.gmra.mrb[36].mxu0 %vm244_vm2, %v2815_v37  ;;  %5209 = vmatprep.subr.msk.bf16.mxu1 %vm379_vm1, %v3367_v11 }
 0x6ac   :  { %5125 = vmatprep.mubr.msk.bf16.mxu0 %vm5728_vm4, %v8750_v45 }
 0x6ae   :  { %5140 = vmatpush3.bf16.msra.mxu1 %v3369_v31 }
 0x6b1   :  { %5142 = vmatmul.mubr.msk.bf16.vlgmr.msra.gmra.mrb[40].mxu1 %vm330_vm0, %v8752_v48 }
 0x6b2   :  { %5145 = vmatprep.mubr.msk.bf16.mxu1 %vm330_vm0, %v8753_v61 }
 0x6b9   :  { %5146 = vmatmul.mubr.msk.bf16.gmra.mrb[44].mxu1 %vm330_vm0, %v8754_v54 }
 0x6ba   :  { %5149 = vmatprep.mubr.msk.bf16.mxu1 %vm330_vm0, %v8755_v24 }
 0x6c1   :  { %5150 = vmatmul.mubr.msk.bf16.gmra.mrb[48].mxu1 %vm330_vm0, %v8756_v52  ;;  %v8767_v52 = vld [vmem:[#allocation45_spill] sm:$0xff] }
 0x6c2   :  { %5153 = vmatprep.mubr.msk.bf16.mxu1 %vm330_vm0, %v8757_v59 }
 0x6c9   :  { %5154 = vmatmul.mubr.msk.bf16.gmra.mrb[52].mxu1 %vm330_vm0, %v8758_v58  ;;  %v8768_v58 = vld [vmem:[#allocation61_spill] sm:$0xff] }
 0x6ca   :  { %5157 = vmatprep.mubr.msk.bf16.mxu1 %vm330_vm0, %v8759_v51 }
 0x6d1   :  { %5158 = vmatmul.mubr.msk.bf16.gmra.mrb[56].mxu1 %vm330_vm0, %v8760_v42 }
 0x6d2   :  { %5161 = vmatprep.mubr.msk.bf16.mxu1 %vm330_vm0, %v8761_v50 }
 0x6d9   :  { %5162 = vmatmul.mubr.msk.bf16.gmra.mrb[60].mxu1 %vm330_vm0, %v8762_v56 }
 0x6da   :  { %5165 = vmatprep.mubr.msk.bf16.mxu1 %vm330_vm0, %v8763_v20 }
 0x6e1   :  { %5166 = vmatmul.mubr.msk.bf16.gmra.mrb[64].mxu1 %vm330_vm0, %v8764_v49 }
 0x6e2   :  { %5169 = vmatprep.mubr.msk.bf16.mxu1 %vm330_vm0, %v8765_v23 }
 0x6e9   :  { %5170 = vmatmul.mubr.msk.bf16.gmra.mrb[68].mxu1 %vm330_vm0, %v8766_v57 }
 0x77e   :  { %v2856_v1 = vpop.f32.mrb[36].mxu0 }
 0x77f   :  { %v2869_v19 = vrot.slane %v2856_v1, %v6780_v21  ;;  %v5121_v12 = vpop.f32.mrb[37].mxu0 }
 0x780   :  { %v2859_v14 = vpop.f32.mrb[38].mxu0 }
 0x781   :  { %v2870_v55 = vcombine.high %v2869_v19, %v2869_v19  ;;  %v2873_v29 = vsel %vm1073_vm9, %v2869_v19, 0.0  ;;  %v5122_v38 = vpop.f32.mrb[39].mxu0 }
 0x782   :  { %v2874_v0 = vrot.slane %v2873_v29, 4 }
 0x783   :  { %v2880_v2 = vsel %vm1073_vm9, %v2870_v55, 0.0 }
 0x784   :  { %v2875_v26 = vadd.f32 %v2874_v0, %v2873_v29  ;;  %v2881_v43 = vrot.slane %v2880_v2, 4  ;;  %v2994_v29 = vsel %vm254_vm11, %v7654_v22, -inf  ;;  %v7738_v38 = vpop.f32.mrb[40].mxu1 }
 0x785   :  { %v7740_v0 = vpop.f32.mrb[41].mxu1 }
 0x786   :  { %v2876_v15 = vrot.slane %v2875_v26, 2  ;;  %v2882_v33 = vadd.f32 %v2881_v43, %v2880_v2  ;;  %v3532_v2 = vsel %vm244_vm2, %v7740_v0, 0.0 }
 0x788   :  { %v2877_v32 = vadd.f32 %v2876_v15, %v2875_v26  ;;  %v2883_v28 = vrot.slane %v2882_v33, 2  ;;  %v7744_v26 = vpop.f32.mrb[42].mxu1  ;;  %v3535_v15 = vsel %vm244_vm2, %v7738_v38, 0.0 }
 0x789   :  { %v7746_v43 = vpop.f32.mrb[43].mxu1  ;;  %v3537_v23 = vsel %vm244_vm2, %v7744_v26, 0.0 }
 0x78a   :  { %v2878_v13 = vrot.slane %v2877_v32, 1  ;;  %v2884_v16 = vadd.f32 %v2883_v28, %v2882_v33  ;;  %v3533_v33 = vsel %vm244_vm2, %v7746_v43, 0.0 }
 0x78b   :  { %v3534_v49 = vadd.f32 %v3533_v33, %v3532_v2 }
 0x78c   :  { %v2879_v37 = vadd.f32 %v2878_v13, %v2877_v32  ;;  %v2885_v34 = vrot.slane %v2884_v16, 1  ;;  %v7754_v28 = vpop.f32.mrb[44].mxu1 }
 0x78d   :  { %v3536_v32 = vadd.f32 %v3535_v15, %v3534_v49  ;;  %v7756_v13 = vpop.f32.mrb[45].mxu1  ;;  %v3543_v57 = vsel %vm244_vm2, %v7754_v28, 0.0 }
 0x78e   :  { %v2886_v7 = vadd.f32 %v2885_v34, %v2884_v16  ;;  %v2887_v17 = vmul.f32 0.5, %v2879_v37  ;;  %v3539_v37 = vsel %vm244_vm2, %v7756_v13, 0.0  ;;  %v7760_v34 = vpop.f32.mrb[46].mxu1 }
 0x78f   :  { %v3538_v16 = vadd.f32 %v3537_v23, %v3536_v32 }
 0x790   :  { %v2888_v10 = vmul.f32 0.5, %v2886_v7  ;;  %v2889_v4 = vsub.f32 %v2869_v19, %v2887_v17  ;;  %v7762_v17 = vpop.f32.mrb[47].mxu1 }
 0x791   :  { %v3540_v7 = vadd.f32 %v3539_v37, %v3538_v16 }
 0x792   :  { %v2890_v35 = vsub.f32 %v2870_v55, %v2888_v10  ;;  %v2891_v3 = vmul.f32 %v2889_v4, %v2889_v4  ;;  %v2991_v55 = vsel %vm254_vm11, %v7659_v6, -inf  ;;  %v3541_v10 = vsel %vm244_vm2, %v7762_v17, 0.0 }
 0x794   :  { %v2892_v8 = vmul.f32 %v2890_v35, %v2890_v35  ;;  %v2893_v44 = vsel %vm1073_vm9, %v2891_v3, 0.0 }
 0x795   :  { %v2894_v39 = vrot.slane %v2893_v44, 4 }
 0x796   :  { %v2900_v9 = vsel %vm1073_vm9, %v2892_v8, 0.0  ;;  %v7770_v8 = vpop.f32.mrb[48].mxu1 }
 0x797   :  { %v2895_v27 = vadd.f32 %v2894_v39, %v2893_v44  ;;  %v2901_v30 = vrot.slane %v2900_v9, 4  ;;  %v7772_v44 = vpop.f32.mrb[49].mxu1 }
 0x799   :  { %v2896_v46 = vrot.slane %v2895_v27, 2  ;;  %v2902_v63 = vadd.f32 %v2901_v30, %v2900_v9  ;;  %v3547_v9 = vsel %vm244_vm2, %v7772_v44, 0.0 }
 0x79b   :  { %v2897_v40 = vadd.f32 %v2896_v46, %v2895_v27  ;;  %v2903_v47 = vrot.slane %v2902_v63, 2  ;;  %v7776_v27 = vpop.f32.mrb[50].mxu1 }
 0x79c   :  { %v7778_v46 = vpop.f32.mrb[51].mxu1 }
 0x79d   :  { %v2898_v62 = vrot.slane %v2897_v40, 1  ;;  %v2904_v41 = vadd.f32 %v2903_v47, %v2902_v63  ;;  %v3551_v63 = vsel %vm244_vm2, %v7770_v8, 0.0  ;;  %v2990_v47 = vpop.xlane.xlu1 %2989 }
 0x79f   :  { %v2899_v25 = vadd.f32 %v2898_v62, %v2897_v40  ;;  %v2905_v36 = vrot.slane %v2904_v41, 1  ;;  %v3549_v40 = vsel %vm244_vm2, %v7778_v46, 0.0  ;;  %v2987_v62 = vpop.xlane.xlu0 %2986 }
 0x7a1   :  { %v2906_v53 = vadd.f32 %v2905_v36, %v2904_v41  ;;  %v2907_v18 = vmul.f32 0.5, %v2899_v25  ;;  %v3553_v25 = vsel %vm244_vm2, %v7776_v27, 0.0 }
 0x7a3   :  { %v2908_v5 = vmul.f32 0.5, %v2906_v53  ;;  %v2909_v11 = vadd.f32 1e-05, %v2907_v18  ;;  %v2997_v53 = vmin.f32 %v2987_v62, %v2990_v47  ;;  %v7786_v18 = vpop.f32.mrb[52].mxu1 }
 0x7a5   :  { %v2910_v31 = vadd.f32 1e-05, %v2908_v5  ;;  %5344 = vrsqrt.f32 %v2909_v11  ;;  %v7788_v5 = vpop.f32.mrb[53].mxu1 }
 0x7a7   :  { %5346 = vrsqrt.f32 %v2910_v31  ;;  %v3555_v31 = vsel %vm244_vm2, %v7788_v5, 0.0 }
 0x7af   :  { %v5345_v48 = vpop.eup %5344 }
 0x7b0   :  { %v2913_v61 = vmul.f32 %v5345_v48, %v2889_v4  ;;  %v3542_v4 = vadd.f32 %v3541_v10, %v3540_v7  ;;  %v7792_v48 = vpop.f32.mrb[54].mxu1 }
 0x7b1   :  { %v5347_v54 = vpop.eup %5346 }
 0x7b2   :  { %v2914_v24 = vmul.f32 %v5347_v54, %v2890_v35  ;;  %v2915_v59 = vmul.f32 %v8767_v52, %v2913_v61  ;;  %v3545_v35 = vsel %vm244_vm2, %v7760_v34, 0.0  ;;  %v3544_v3 = vadd.f32 %v3543_v57, %v3542_v4  ;;  %v7794_v54 = vpop.f32.mrb[55].mxu1 }
 0x7b3   :  { %v7805_v23 = vpop.f32.mrb[56].mxu1 }
 0x7b4   :  { %v2917_v51 = vadd.f32 %v8768_v58, %v2915_v59  ;;  %v2916_v42 = vmul.f32 %v8767_v52, %v2914_v24  ;;  %v3546_v39 = vadd.f32 %v3545_v35, %v3544_v3  ;;  %v2998_v24 = vrot.slane %v2997_v53, 4  ;;  %v7807_v10 = vpop.f32.mrb[57].mxu1 }
 0x7b5   :  { %v3559_v52 = vsel %vm244_vm2, %v7786_v18, 0.0  ;;  %v3557_v59 = vsel %vm244_vm2, %v7794_v54, 0.0  ;;  %v3569_v3 = vsel %vm244_vm2, %v7807_v10, 0.0 }
 0x7b6   :  { %v7721_v50 = vmax.f32 %v2917_v51, 0.0  ;;  %v2918_v1 = vadd.f32 %v8768_v58, %v2916_v42  ;;  %v3548_v30 = vadd.f32 %v3547_v9, %v3546_v39  ;;  %v7812_v39 = vpop.f32.mrb[58].mxu1 }
 0x7b7   :  { %v7814_v62 = vpop.f32.mrb[59].mxu1 }
 0x7b8   :  { %v2921_v56 = vsel %vm1073_vm9, %v7721_v50, inf  ;;  %v7726_v19 = vmax.f32 %v2918_v1, 0.0  ;;  %v2927_v20 = vsel %vm1073_vm9, %v7721_v50, -inf  ;;  %v3550_v41 = vadd.f32 %v3549_v40, %v3548_v30 }
 0x7b9   :  { %2922 = vmin.xlane.f32.xlu0 %v2921_v56  ;;  %v3561_v1 = vsel %vm244_vm2, %v7792_v48, 0.0 }
 0x7ba   :  { %v2924_v12 = vsel %vm1073_vm9, %v7726_v19, inf  ;;  %v2930_v14 = vsel %vm1073_vm9, %v7726_v19, -inf  ;;  %v3552_v36 = vadd.f32 %v3551_v63, %v3550_v41 }
 0x7bb   :  { %2925 = vmin.xlane.f32.xlu1 %v2924_v12 }
 0x7bc   :  { %v3554_v11 = vadd.f32 %v3553_v25, %v3552_v36  ;;  %v3570_v25 = vsel %vm244_vm2, %v7814_v62, 0.0 }
 0x7bd   :  { %2928 = vmax.xlane.f32.xlu0 %v2927_v20 }
 0x7be   :  { %v3556_v61 = vadd.f32 %v3555_v31, %v3554_v11 }
 0x7bf   :  { %2931 = vmax.xlane.f32.xlu1 %v2930_v14  ;;  %v2999_v14 = vmin.f32 %v2997_v53, %v2998_v24 }
 0x7c0   :  { %v3558_v51 = vadd.f32 %v3557_v59, %v3556_v61  ;;  %v3572_v61 = vsel %vm244_vm2, %v7805_v23, 0.0 }
 0x7c1   :  { %2992 = vmax.xlane.f32.xlu0 %v2991_v55  ;;  %v3000_v4 = vrot.slane %v2999_v14, 2 }
 0x7c2   :  { %v3560_v20 = vadd.f32 %v3559_v52, %v3558_v51  ;;  %v7820_v51 = vpop.f32.mrb[60].mxu1 }
 0x7c3   :  { %2995 = vmax.xlane.f32.xlu1 %v2994_v29  ;;  %v3001_v24 = vmin.f32 %v2999_v14, %v3000_v4 }
 0x7c4   :  { %v3562_v33 = vadd.f32 %v3561_v1, %v3560_v20  ;;  %v7824_v20 = vpop.f32.mrb[61].mxu1 }
 0x7c5   :  { %v3002_v4 = vrot.slane %v3001_v24, 1 }
 0x7c6   :  { %v3563_v57 = vrot.slane %v3562_v33, 4 }
 0x7c8   :  { %v3564_v41 = vadd.f32 %v3563_v57, %v3562_v33  ;;  %v3576_v57 = vsel %vm244_vm2, %v7824_v20, 0.0 }
 0x7ca   :  { %v3565_v59 = vrot.slane %v3564_v41, 2 }
 0x846   :  { %v2923_v58 = vpop.xlane.xlu0 %2922 }
 0x847   :  { %v2933_v42 = vsel %vm379_vm1, %v2923_v58, inf  ;;  %v3571_v58 = vadd.f32 %v3570_v25, %v3569_v3 }
 0x848   :  { %v2934_v56 = vrot.slane %v2933_v42, 4  ;;  %v2926_v12 = vpop.xlane.xlu1 %2925 }
 0x849   :  { %v2940_v55 = vsel %vm379_vm1, %v2926_v12, inf  ;;  %v3574_v12 = vsel %vm244_vm2, %v7812_v39, 0.0 }
 0x84a   :  { %v2935_v29 = vmin.f32 %v2933_v42, %v2934_v56  ;;  %v2941_v2 = vrot.slane %v2940_v55, 4  ;;  %v2929_v15 = vpop.xlane.xlu0 %2928 }
 0x84b   :  { %v2947_v49 = vsel %vm379_vm1, %v2929_v15, -inf  ;;  %v7826_v15 = vpop.f32.mrb[62].mxu1 }
 0x84c   :  { %v2936_v32 = vrot.slane %v2935_v29, 2  ;;  %v2942_v16 = vmin.f32 %v2940_v55, %v2941_v2  ;;  %v2948_v37 = vrot.slane %v2947_v49, 4  ;;  %v2932_v7 = vpop.xlane.xlu1 %2931  ;;  %v3573_v2 = vadd.f32 %v3572_v61, %v3571_v58 }
 0x84d   :  { %v2954_v35 = vsel %vm379_vm1, %v2932_v7, -inf }
 0x84e   :  { %v2937_v9 = vmin.f32 %v2935_v29, %v2936_v32  ;;  %v2943_v30 = vrot.slane %v2942_v16, 2  ;;  %v2949_v63 = vmax.f32 %v2947_v49, %v2948_v37  ;;  %v2955_v40 = vrot.slane %v2954_v35, 4  ;;  %v2993_v47 = vpop.xlane.xlu0 %2992  ;;  %v7828_v32 = vpop.f32.mrb[63].mxu1 }
 0x84f   :  { %v3566_v29 = vadd.f32 %v3565_v59, %v3564_v41  ;;  %v3575_v7 = vadd.f32 %v3574_v12, %v3573_v2  ;;  %v3578_v41 = vsel %vm244_vm2, %v7828_v32, 0.0  ;;  %v7841_v59 = vpop.f32.mrb[64].mxu1 }
 0x850   :  { %v2944_v36 = vmin.f32 %v2942_v16, %v2943_v30  ;;  %v2950_v53 = vrot.slane %v2949_v63, 2  ;;  %v2956_v11 = vmax.f32 %v2954_v35, %v2955_v40  ;;  %v2996_v31 = vpop.xlane.xlu1 %2995  ;;  %v2938_v42 = vrot.slane %v2937_v9, 1 }
 0x851   :  { %v3004_v52 = vmax.f32 %v2993_v47, %v2996_v31  ;;  %v3567_v37 = vrot.slane %v3566_v29, 1  ;;  %v3577_v47 = vadd.f32 %v3576_v57, %v3575_v7 }
 0x852   :  { %v2951_v1 = vmax.f32 %v2949_v63, %v2950_v53  ;;  %v2957_v56 = vrot.slane %v2956_v11, 2  ;;  %v2945_v33 = vrot.slane %v2944_v36, 1  ;;  %v7832_v35 = vmin.f32 %v2937_v9, %v2938_v42 }
 0x853   :  { %v3005_v55 = vrot.slane %v3004_v52, 4  ;;  %v3568_v40 = vadd.f32 %v3567_v37, %v3566_v29  ;;  %v7843_v9 = vmin.f32 %v3001_v24, %v3002_v4 }
 0x854   :  { %v2952_v14 = vrot.slane %v2951_v1, 1  ;;  %v2958_v49 = vmax.f32 %v2956_v11, %v2957_v56  ;;  %v7836_v25 = vmin.f32 %v2944_v36, %v2945_v33 }
 0x855   :  { %v3006_v16 = vmax.f32 %v3004_v52, %v3005_v55  ;;  %v3606_v61 = vmul.f32 0.0078125, %v3568_v40  ;;  %v7839_v52 = vadd.f32 %v3578_v41, %v3577_v47 }
 0x856   :  { %v2953_v3 = vmax.f32 %v2951_v1, %v2952_v14  ;;  %v2959_v30 = vrot.slane %v2958_v49, 1  ;;  %v7846_v1 = vpop.f32.mrb[65].mxu1 }
 0x857   :  { %v3007_v63 = vrot.slane %v3006_v16, 2  ;;  %v7849_v36 = vsub.f32 %v7740_v0, %v3606_v61  ;;  %v7852_v12 = vsub.f32 %v7746_v43, %v3606_v61  ;;  %v7855_v55 = vsub.f32 %v7738_v38, %v3606_v61  ;;  %v7857_v29 = vpop.f32.mrb[66].mxu1 }
 0x858   :  { %v2961_v53 = vsub.f32 %v2953_v3, %v7832_v35  ;;  %v2960_v11 = vmax.f32 %v2958_v49, %v2959_v30  ;;  %v7860_v2 = vsub.f32 %v7744_v26, %v3606_v61  ;;  %v7863_v33 = vsub.f32 %v7756_v13, %v3606_v61  ;;  %v7865_v14 = vpop.f32.mrb[67].mxu1 }
 0x859   :  { %v3008_v31 = vmax.f32 %v3006_v16, %v3007_v63  ;;  %v7870_v43 = vsub.f32 %v7762_v17, %v3606_v61  ;;  %v7873_v38 = vsub.f32 %v7754_v28, %v3606_v61  ;;  %v7877_v26 = vsub.f32 %v7760_v34, %v3606_v61 }
 0x85a   :  { %v2963_v58 = vmul.f32 0.032258064, %v2961_v53  ;;  %v2962_v42 = vsub.f32 %v2960_v11, %v7836_v25  ;;  %v7880_v13 = vsub.f32 %v7772_v44, %v3606_v61  ;;  %v7886_v7 = vsub.f32 %v7778_v46, %v3606_v61 }
 0x85b   :  { %v3009_v56 = vrot.slane %v3008_v31, 1  ;;  %8769 = vst [vmem:[#allocation63_spill] sm:$0xff] %v7873_v38  ;;  %8770 = vst [vmem:[#allocation64_spill] sm:$0xff] %v7877_v26  ;;  %v7889_v17 = vsub.f32 %v7770_v8, %v3606_v61  ;;  %v7893_v28 = vsub.f32 %v7776_v27, %v3606_v61  ;;  %v7896_v34 = vsub.f32 %v7788_v5, %v3606_v61  ;;  %v7907_v8 = vpop.f32.mrb[68].mxu1 }
 0x85c   :  { %vm2965_vm0 = vcmp.le.f32.partialorder %v2963_v58, 0.0  ;;  %v2964_v24 = vmul.f32 0.032258064, %v2962_v42  ;;  %8771 = vst [vmem:[#allocation65_spill] sm:$0xff] %v7880_v13  ;;  %8772 = vst [vmem:[#allocation46_spill] sm:$0xff] %v7886_v7  ;;  %v7899_v44 = vsub.f32 %v7794_v54, %v3606_v61  ;;  %v7902_v4 = vsub.f32 %v7786_v18, %v3606_v61  ;;  %v7913_v5 = vpop.f32.mrb[69].mxu1 }
 0x85d   :  { %v7867_v0 = vsel %vm2965_vm0, 1.0, %v2963_v58  ;;  %v3010_v49 = vmax.f32 %v3008_v31, %v3009_v56  ;;  %8773 = vst [vmem:[#allocation47_spill] sm:$0xff] %v7889_v17  ;;  %v7905_v46 = vsub.f32 %v7792_v48, %v3606_v61  ;;  %v3640_v3 = vmul.f32 %v7849_v36, %v7849_v36  ;;  %v7917_v30 = vpop.f32.mrb[70].mxu1 }
 0x85e   :  { %5348 = vrcp.f32 %v7867_v0  ;;  %vm2966_vm12 = vcmp.le.f32.partialorder %v2964_v24, 0.0  ;;  %v3641_v27 = vmul.f32 %v7852_v12, %v7852_v12  ;;  %v3642_v54 = vmul.f32 %v7855_v55, %v7855_v55  ;;  %v7923_v63 = vpop.f32.mrb[71].mxu1 }
 0x85f   :  { %v7882_v16 = vsel %vm2966_vm12, 1.0, %v2964_v24  ;;  %v3011_v37 = vsub.f32 %v3010_v49, %v7843_v9  ;;  %v3643_v48 = vmul.f32 %v7860_v2, %v7860_v2  ;;  %v3644_v40 = vmul.f32 %v7863_v33, %v7863_v33 }
 0x860   :  { %5350 = vrcp.f32 %v7882_v16  ;;  %v3672_v47 = vsel %vm244_vm2, %v3640_v3, 0.0  ;;  %v3673_v41 = vsel %vm244_vm2, %v3641_v27, 0.0  ;;  %v2971_v53 = vsub.f32 %v7721_v50, %v7832_v35 }
 0x861   :  { %v3012_v57 = vmul.f32 0.003921569, %v3011_v37  ;;  %v3674_v11 = vadd.f32 %v3673_v41, %v3672_v47  ;;  %v3675_v31 = vsel %vm244_vm2, %v3642_v54, 0.0  ;;  %v3016_v58 = vsub.f32 %v7659_v6, %v7843_v9 }
 0x862   :  { %v3645_v42 = vmul.f32 %v7870_v43, %v7870_v43  ;;  %v3677_v56 = vsel %vm244_vm2, %v3643_v48, 0.0  ;;  %v2972_v24 = vsub.f32 %v7726_v19, %v7836_v25  ;;  %v3580_v50 = vsel %vm244_vm2, %v7820_v51, 0.0 }
 0x863   :  { %vm3013_vm13 = vcmp.le.f32.partialorder %v3012_v57, 0.0  ;;  %v3676_v37 = vadd.f32 %v3675_v31, %v3674_v11  ;;  %v3017_v3 = vsub.f32 %v7654_v22, %v7843_v9  ;;  %v3646_v6 = vmul.f32 %v7873_v38, %v7873_v38 }
 0x864   :  { %v7919_v18 = vsel %vm3013_vm13, 1.0, %v3012_v57  ;;  %v3679_v27 = vsel %vm244_vm2, %v3644_v40, 0.0  ;;  %v3582_v54 = vsel %vm244_vm2, %v7826_v15, 0.0  ;;  %v3588_v41 = vsel %vm244_vm2, %v7841_v59, 0.0 }
 0x865   :  { %5352 = vrcp.f32 %v7919_v18  ;;  %v3678_v19 = vadd.f32 %v3677_v56, %v3676_v37  ;;  %v3648_v22 = vmul.f32 %v7880_v13, %v7880_v13  ;;  %v3681_v11 = vsel %vm244_vm2, %v3645_v42, 0.0 }
 0x866   :  { %v3581_v31 = vadd.f32 %v3580_v50, %v7839_v52  ;;  %v3649_v56 = vmul.f32 %v7886_v7, %v7886_v7  ;;  %v3683_v37 = vsel %vm244_vm2, %v3646_v6, 0.0  ;;  %v3586_v52 = vsel %vm244_vm2, %v7865_v14, 0.0 }
 0x867   :  { %v3680_v60 = vadd.f32 %v3679_v27, %v3678_v19 }
 0x868   :  { %v5349_v61 = vpop.eup %5348 }
 0x869   :  { %v2973_v49 = vmul.f32 %v5349_v61, %v2971_v53  ;;  %v3647_v53 = vmul.f32 %v7877_v26, %v7877_v26  ;;  %v3682_v38 = vadd.f32 %v3681_v11, %v3680_v60 }
 0x86a   :  { %v5351_v57 = vpop.eup %5350 }
 0x86b   :  { %v5254_v48 = vround.rtne.f32 %v2973_v49  ;;  %v2974_v47 = vmul.f32 %v5351_v57, %v2972_v24  ;;  %v3584_v24 = vsel %vm244_vm2, %v7846_v1, 0.0  ;;  %v3650_v49 = vmul.f32 %v7889_v17, %v7889_v17 }
 0x86c   :  { %v3583_v57 = vadd.f32 %v3582_v54, %v3581_v31  ;;  %v3651_v17 = vmul.f32 %v7893_v28, %v7893_v28  ;;  %v3684_v6 = vadd.f32 %v3683_v37, %v3682_v38 }
 0x86d   :  { %v2977_v40 = vmax.f32 %v5254_v48, 0.0  ;;  %v5255_v61 = vround.rtne.f32 %v2974_v47  ;;  %v3685_v48 = vsel %vm244_vm2, %v3647_v53, 0.0  ;;  %v3689_v53 = vsel %vm244_vm2, %v3649_v56, 0.0 }
 0x86e   :  { %v3585_v47 = vadd.f32 %v3584_v24, %v3583_v57  ;;  %v3691_v57 = vsel %vm244_vm2, %v3650_v49, 0.0  ;;  %v3693_v56 = vsel %vm244_vm2, %v3651_v17, 0.0  ;;  %v3598_v17 = vsel %vm244_vm2, %v7917_v30, 0.0 }
 0x86f   :  { %v5353_v13 = vpop.eup %5352  ;;  %v2979_v26 = vmin.f32 %v2977_v40, 31.0  ;;  %v2978_v42 = vmax.f32 %v5255_v61, 0.0  ;;  %v3687_v40 = vsel %vm244_vm2, %v3648_v22, 0.0 }
 0x870   :  { %v3018_v50 = vmul.f32 %v5353_v13, %v3016_v58  ;;  %v3019_v27 = vmul.f32 %v5353_v13, %v3017_v3  ;;  %v3587_v60 = vadd.f32 %v3586_v52, %v3585_v47  ;;  %v3652_v13 = vmul.f32 %v7896_v34, %v7896_v34 }
 0x871   :  { %v2981_v19 = vmul.f32 %v2979_v26, %v7867_v0  ;;  %v2980_v7 = vmin.f32 %v2978_v42, 31.0  ;;  %v3686_v58 = vadd.f32 %v3685_v48, %v3684_v6  ;;  %v3590_v3 = vsel %vm244_vm2, %v7857_v29, 0.0 }
 0x872   :  { %v5256_v54 = vround.rtne.f32 %v3018_v50  ;;  %v5257_v31 = vround.rtne.f32 %v3019_v27  ;;  %v3589_v61 = vadd.f32 %v3588_v41, %v3587_v60  ;;  %v3653_v50 = vmul.f32 %v7899_v44, %v7899_v44 }
 0x873   :  { %v2982_v11 = vmul.f32 %v2980_v7, %v7882_v16  ;;  %v2983_v38 = vadd.f32 %v2981_v19, %v7832_v35  ;;  %v3688_v22 = vadd.f32 %v3687_v40, %v3686_v58  ;;  %v3592_v16 = vsel %vm244_vm2, %v7913_v5, 0.0 }
 0x874   :  { %v3022_v0 = vmax.f32 %v5256_v54, 0.0  ;;  %v3023_v26 = vmax.f32 %v5257_v31, 0.0  ;;  %v3591_v42 = vadd.f32 %v3590_v3, %v3589_v61  ;;  %v3594_v41 = vsel %vm244_vm2, %v7923_v63, 0.0 }
 0x875   :  { %v2984_v24 = vadd.f32 %v2982_v11, %v7836_v25  ;;  %v3690_v27 = vadd.f32 %v3689_v53, %v3688_v22  ;;  %v3654_v47 = vmul.f32 %v7902_v4, %v7902_v4  ;;  %v3596_v19 = vsel %vm244_vm2, %v7907_v8, 0.0 }
 0x876   :  { %v3024_v7 = vmin.f32 %v3022_v0, 255.0  ;;  %v3025_v37 = vmin.f32 %v3023_v26, 255.0  ;;  %v3593_v48 = vadd.f32 %v3592_v16, %v3591_v42  ;;  %v3695_v31 = vsel %vm244_vm2, %v3652_v13, 0.0 }
 0x877   :  { %v3032_v52 = vcombine.low %v2983_v38, %v2984_v24  ;;  %v3692_v49 = vadd.f32 %v3691_v57, %v3690_v27  ;;  %v3655_v58 = vmul.f32 %v7905_v46, %v7905_v46  ;;  %v3697_v3 = vsel %vm244_vm2, %v3653_v50, 0.0 }
 0x878   :  { %v3026_v35 = vmul.f32 %v3024_v7, %v7919_v18  ;;  %v3027_v25 = vmul.f32 %v3025_v37, %v7919_v18  ;;  %v3595_v40 = vadd.f32 %v3594_v41, %v3593_v48 }
 0x879   :  { %v3039_v60 = vrot.slane %v3032_v52, %v6780_v21  ;;  %v3694_v18 = vadd.f32 %v3693_v56, %v3692_v49  ;;  %v3701_v38 = vsel %vm244_vm2, %v3655_v58, 0.0 }
 0x87a   :  { %v3028_v6 = vadd.f32 %v3026_v35, %v7843_v9  ;;  %v3029_v54 = vadd.f32 %v3027_v25, %v7843_v9  ;;  %v3597_v0 = vadd.f32 %v3596_v19, %v3595_v40  ;;  %v3699_v9 = vsel %vm244_vm2, %v3654_v47, 0.0 }
 0x87b   :  { %v3696_v26 = vadd.f32 %v3695_v31, %v3694_v18  ;;  %v3041_v13 = vpack.c.bf16 %v3039_v60, %v3039_v60  ;;  %v188_v60 = vld [vmem:[%s5814_s6] sm:$0x1]  ;;  %s8797_s6 = sld [smem:[#allocation37_spill]] }
 0x87c   :  { %v3042_v11 = vpack.c.bf16 %v3029_v54, %v3028_v6  ;;  %v3599_v53 = vadd.f32 %v3598_v17, %v3597_v0  ;;  %v5458_v17 = vld [vmem:[%s5759_s13] sm:$0x1]  ;;  %s8785_s13 = sld [smem:[#allocation26_spill]] }
 0x87d   :  { %v3698_v61 = vadd.f32 %v3697_v3, %v3696_v26  ;;  %v192_v26 = vld [vmem:[%s8774_s0] sm:$0x1] }
 0x87e   :  { %5124 = vmatpush3.bf16.msra.mxu0 %v3042_v11  ;;  %v3600_v24 = vrot.slane %v3599_v53, 4 }
 0x87f   :  { %5129 = vmatprep.subr.bf16.mxu0 %v8750_v45  ;;  %v3700_v22 = vadd.f32 %v3699_v9, %v3698_v61 }
 0x880   :  { %v3601_v16 = vadd.f32 %v3600_v24, %v3599_v53  ;;  %v5459_v24 = vld [vmem:[%s5764_s17] sm:$0x1]  ;;  %s8786_s17 = sld [smem:[#allocation21_spill]] }
 0x881   :  { %5126 = vmatmul.mubr.msk.bf16.vlgmr.msra.gmra.mrb[40].mxu0 %vm254_vm11, %v3041_v13  ;;  %v3702_v7 = vadd.f32 %v3701_v38, %v3700_v22  ;;  %v193_v38 = vmul.f32 0.99, %v192_v26  ;;  %v194_v22 = vmul.f32 0.01, %v5459_v24 }
 0x882   :  { %5131 = vmatprep.mubr.msk.bf16.mxu0 %vm5728_vm4, %v8750_v45  ;;  %v3602_v37 = vrot.slane %v3601_v16, 2 }
 0x883   :  { %v3703_v57 = vrot.slane %v3702_v7, 4 }
 0x884   :  { %v3603_v42 = vadd.f32 %v3602_v37, %v3601_v16 }
 0x885   :  { %v3704_v52 = vadd.f32 %v3703_v57, %v3702_v7 }
 0x886   :  { %v3604_v50 = vrot.slane %v3603_v42, 1 }
 0x887   :  { %v3705_v27 = vrot.slane %v3704_v52, 2 }
 0x888   :  { %v3605_v41 = vadd.f32 %v3604_v50, %v3603_v42  ;;  %v8077_v42 = vadd.f32 %v194_v22, %v193_v38 }
 0x889   :  { %v3706_v35 = vadd.f32 %v3705_v27, %v3704_v52  ;;  %v8775_v52 = vld [vmem:[#allocation62_spill] sm:$0xff] }
 0x88a   :  { %v3607_v25 = vmul.f32 0.0078125, %v3605_v41 }
 0x88b   :  { %v3707_v56 = vrot.slane %v3706_v35, 1 }
 0x88c   :  { %v8009_v48 = vsub.f32 %v7807_v10, %v3607_v25  ;;  %v8012_v47 = vsub.f32 %v7814_v62, %v3607_v25  ;;  %v8015_v49 = vsub.f32 %v7805_v23, %v3607_v25  ;;  %v8018_v19 = vsub.f32 %v7812_v39, %v3607_v25 }
 0x88d   :  { %v3708_v6 = vadd.f32 %v3707_v56, %v3706_v35  ;;  %v8021_v54 = vsub.f32 %v7824_v20, %v3607_v25  ;;  %v8024_v31 = vsub.f32 %v7828_v32, %v3607_v25  ;;  %v8027_v10 = vsub.f32 %v7820_v51, %v3607_v25 }
 0x88e   :  { %v8030_v62 = vsub.f32 %v7826_v15, %v3607_v25  ;;  %v8033_v23 = vsub.f32 %v7846_v1, %v3607_v25  ;;  %v8036_v40 = vsub.f32 %v7865_v14, %v3607_v25  ;;  %v8039_v39 = vsub.f32 %v7841_v59, %v3607_v25 }
 0x88f   :  { %v3746_v20 = vmul.f32 0.0078125, %v3708_v6  ;;  %v8042_v32 = vsub.f32 %v7857_v29, %v3607_v25  ;;  %v8045_v51 = vsub.f32 %v7913_v5, %v3607_v25  ;;  %v8048_v15 = vsub.f32 %v7923_v63, %v3607_v25 }
 0x890   :  { %v8051_v1 = vsub.f32 %v7907_v8, %v3607_v25  ;;  %v8054_v14 = vsub.f32 %v7917_v30, %v3607_v25  ;;  %v3656_v18 = vmul.f32 %v8009_v48, %v8009_v48  ;;  %v3657_v29 = vmul.f32 %v8012_v47, %v8012_v47 }
 0x891   :  { %v3748_v59 = vadd.f32 1e-05, %v3746_v20  ;;  %v3658_v5 = vmul.f32 %v8015_v49, %v8015_v49  ;;  %v3659_v8 = vmul.f32 %v8018_v19, %v8018_v19  ;;  %v189_v63 = vmul.f32 0.99, %v188_v60  ;;  %v8776_v20 = vld [vmem:[#allocation63_spill] sm:$0xff] }
 0x892   :  { %v190_v30 = vmul.f32 0.01, %v5458_v17  ;;  %v3660_v11 = vmul.f32 %v8021_v54, %v8021_v54  ;;  %v3709_v58 = vsel %vm244_vm2, %v3656_v18, 0.0  ;;  %v3710_v3 = vsel %vm244_vm2, %v3657_v29, 0.0  ;;  %v8779_v29 = vld [vmem:[#allocation46_spill] sm:$0xff] }
 0x893   :  { %5354 = vrsqrt.f32 %v3748_v59  ;;  %v3712_v0 = vsel %vm244_vm2, %v3658_v5, 0.0  ;;  %v3711_v9 = vadd.f32 %v3710_v3, %v3709_v58  ;;  %v3714_v53 = vsel %vm244_vm2, %v3659_v8, 0.0  ;;  %v8780_v5 = vld [vmem:[#allocation47_spill] sm:$0xff] }
 0x894   :  { %v8073_v61 = vadd.f32 %v190_v30, %v189_v63  ;;  %v3716_v16 = vsel %vm244_vm2, %v3660_v11, 0.0  ;;  %v8117_v30 = vrot.slane %v8077_v42, %v8775_v52  ;;  %v3662_v22 = vmul.f32 %v8027_v10, %v8027_v10 }
 0x895   :  { %v3713_v13 = vadd.f32 %v3712_v0, %v3711_v9 }
 0x896   :  { %v8081_v50 = vrot.slane %v8073_v61, %v8775_v52 }
 0x897   :  { %v3715_v7 = vadd.f32 %v3714_v53, %v3713_v13  ;;  %v3661_v53 = vmul.f32 %v8024_v31, %v8024_v31 }
 0x899   :  { %v3717_v37 = vadd.f32 %v3716_v16, %v3715_v7 }
 0x89d   :  { %v5355_v57 = vpop.eup %5354 }
 0x89e   :  { %v8084_v27 = vmul.f32 %v5355_v57, %v7849_v36  ;;  %v8087_v41 = vmul.f32 %v5355_v57, %v7852_v12  ;;  %v8090_v35 = vmul.f32 %v5355_v57, %v7855_v55  ;;  %v8093_v25 = vmul.f32 %v5355_v57, %v7860_v2  ;;  %v8777_v36 = vld [vmem:[#allocation64_spill] sm:$0xff]  ;;  %v8778_v12 = vld [vmem:[#allocation65_spill] sm:$0xff] }
 0x89f   :  { %v8096_v56 = vmul.f32 %v5355_v57, %v7863_v33  ;;  %v8099_v6 = vmul.f32 %v5355_v57, %v7870_v43  ;;  %v8102_v60 = vmul.f32 %v5355_v57, %v8776_v20  ;;  %v8105_v59 = vmul.f32 %v5355_v57, %v8777_v36 }
 0x8a0   :  { %v3760_v18 = vmul.f32 %v5355_v57, %v8778_v12  ;;  %v3761_v55 = vmul.f32 %v5355_v57, %v8779_v29  ;;  %v3762_v8 = vmul.f32 %v5355_v57, %v8780_v5  ;;  %v3763_v2 = vmul.f32 %v5355_v57, %v7893_v28 }
 0x8a1   :  { %v3764_v33 = vmul.f32 %v5355_v57, %v7896_v34  ;;  %v3765_v63 = vmul.f32 %v5355_v57, %v7899_v44  ;;  %v3766_v43 = vmul.f32 %v5355_v57, %v7902_v4  ;;  %v3767_v17 = vmul.f32 %v5355_v57, %v7905_v46 }
 0x8a2   :  { %v3798_v11 = vmul.f32 %v8081_v50, %v3760_v18  ;;  %v3799_v58 = vmul.f32 %v8081_v50, %v3761_v55  ;;  %v3800_v3 = vmul.f32 %v8081_v50, %v3762_v8  ;;  %v3801_v28 = vmul.f32 %v8081_v50, %v3763_v2 }
 0x8a3   :  { %v3802_v34 = vmul.f32 %v8081_v50, %v3764_v33  ;;  %v3803_v44 = vmul.f32 %v8081_v50, %v3765_v63  ;;  %v3804_v9 = vmul.f32 %v8081_v50, %v3766_v43  ;;  %v3805_v38 = vmul.f32 %v8081_v50, %v3767_v17 }
 0x8a4   :  { %v3836_v4 = vadd.f32 %v8117_v30, %v3798_v11  ;;  %v3837_v46 = vadd.f32 %v8117_v30, %v3799_v58  ;;  %v3838_v0 = vadd.f32 %v8117_v30, %v3800_v3  ;;  %v3839_v26 = vadd.f32 %v8117_v30, %v3801_v28 }
 0x8a5   :  { %v3840_v13 = vadd.f32 %v8117_v30, %v3802_v34  ;;  %v3841_v24 = vadd.f32 %v8117_v30, %v3803_v44  ;;  %v3842_v36 = vadd.f32 %v8117_v30, %v3804_v9  ;;  %v3663_v12 = vmul.f32 %v8030_v62, %v8030_v62 }
 0x8a6   :  { %v3868_v16 = vmax.f32 %v3836_v4, 0.0  ;;  %v3869_v7 = vmax.f32 %v3837_v46, 0.0  ;;  %v3870_v57 = vmax.f32 %v3838_v0, 0.0  ;;  %v3871_v20 = vmax.f32 %v3839_v26, 0.0 }
 0x8a7   :  { %v3718_v18 = vsel %vm244_vm2, %v3661_v53, 0.0  ;;  %v3872_v29 = vmax.f32 %v3840_v13, 0.0  ;;  %v3664_v33 = vmul.f32 %v8033_v23, %v8033_v23  ;;  %v3720_v63 = vsel %vm244_vm2, %v3662_v22, 0.0 }
 0x8a8   :  { %v3913_v55 = vsel %vm244_vm2, %v3868_v16, 0.0  ;;  %v3914_v5 = vsel %vm244_vm2, %v3869_v7, 0.0  ;;  %v3916_v8 = vsel %vm244_vm2, %v3870_v57, 0.0  ;;  %v3843_v43 = vadd.f32 %v8117_v30, %v3805_v38 }
 0x8a9   :  { %v3915_v2 = vadd.f32 %v3914_v5, %v3913_v55  ;;  %v3873_v17 = vmax.f32 %v3841_v24, 0.0  ;;  %v3918_v11 = vsel %vm244_vm2, %v3871_v20, 0.0  ;;  %v3719_v58 = vadd.f32 %v3718_v18, %v3717_v37 }
 0x8aa   :  { %v3665_v28 = vmul.f32 %v8036_v40, %v8036_v40  ;;  %v3722_v34 = vsel %vm244_vm2, %v3663_v12, 0.0  ;;  %v3874_v44 = vmax.f32 %v3842_v36, 0.0  ;;  %v3920_v4 = vsel %vm244_vm2, %v3872_v29, 0.0 }
 0x8ab   :  { %v3917_v3 = vadd.f32 %v3916_v8, %v3915_v2  ;;  %v3721_v46 = vadd.f32 %v3720_v63, %v3719_v58  ;;  %v3666_v26 = vmul.f32 %v8039_v39, %v8039_v39  ;;  %v3724_v9 = vsel %vm244_vm2, %v3664_v33, 0.0 }
 0x8ac   :  { %v3875_v53 = vmax.f32 %v3843_v43, 0.0  ;;  %v3922_v13 = vsel %vm244_vm2, %v3873_v17, 0.0  ;;  %v3667_v24 = vmul.f32 %v8042_v32, %v8042_v32  ;;  %v3726_v22 = vsel %vm244_vm2, %v3665_v28, 0.0 }
 0x8ad   :  { %v3919_v0 = vadd.f32 %v3918_v11, %v3917_v3  ;;  %v3723_v37 = vadd.f32 %v3722_v34, %v3721_v46  ;;  %v3924_v16 = vsel %vm244_vm2, %v3874_v44, 0.0  ;;  %v3668_v20 = vmul.f32 %v8045_v51, %v8045_v51 }
 0x8ae   :  { %v3728_v36 = vsel %vm244_vm2, %v3666_v26, 0.0  ;;  %v3926_v12 = vsel %vm244_vm2, %v3875_v53, 0.0  ;;  %v3669_v55 = vmul.f32 %v8048_v15, %v8048_v15  ;;  %v3730_v5 = vsel %vm244_vm2, %v3667_v24, 0.0 }
 0x8af   :  { %v3921_v38 = vadd.f32 %v3920_v4, %v3919_v0  ;;  %v3725_v7 = vadd.f32 %v3724_v9, %v3723_v37  ;;  %v3670_v33 = vmul.f32 %v8051_v1, %v8051_v1  ;;  %v3732_v63 = vsel %vm244_vm2, %v3668_v20, 0.0 }
 0x8b0   :  { %v3671_v17 = vmul.f32 %v8054_v14, %v8054_v14  ;;  %v3734_v11 = vsel %vm244_vm2, %v3669_v55, 0.0 }
 0x8b1   :  { %v3923_v57 = vadd.f32 %v3922_v13, %v3921_v38  ;;  %v3727_v18 = vadd.f32 %v3726_v22, %v3725_v7  ;;  %v3736_v3 = vsel %vm244_vm2, %v3670_v33, 0.0 }
 0x8b2   :  { %v3738_v34 = vsel %vm244_vm2, %v3671_v17, 0.0 }
 0x8b3   :  { %v3925_v29 = vadd.f32 %v3924_v16, %v3923_v57  ;;  %v3729_v8 = vadd.f32 %v3728_v36, %v3727_v18 }
 0x8b5   :  { %v8168_v2 = vadd.f32 %v3926_v12, %v3925_v29  ;;  %v3731_v43 = vadd.f32 %v3730_v5, %v3729_v8 }
 0x8b7   :  { %v3733_v58 = vadd.f32 %v3732_v63, %v3731_v43 }
 0x8b9   :  { %v3735_v28 = vadd.f32 %v3734_v11, %v3733_v58 }
 0x8bb   :  { %v3737_v44 = vadd.f32 %v3736_v3, %v3735_v28 }
 0x8bd   :  { %v3739_v4 = vadd.f32 %v3738_v34, %v3737_v44 }
 0x8bf   :  { %v3740_v46 = vrot.slane %v3739_v4, 4 }
 0x8c1   :  { %v3741_v0 = vadd.f32 %v3740_v46, %v3739_v4 }
 0x8c3   :  { %v3742_v26 = vrot.slane %v3741_v0, 2 }
 0x8c5   :  { %v3743_v9 = vadd.f32 %v3742_v26, %v3741_v0 }
 0x8c7   :  { %v3744_v53 = vrot.slane %v3743_v9, 1 }
 0x8c9   :  { %v3745_v13 = vadd.f32 %v3744_v53, %v3743_v9 }
 0x8cb   :  { %v3747_v37 = vmul.f32 0.0078125, %v3745_v13 }
 0x8cd   :  { %v3749_v38 = vadd.f32 1e-05, %v3747_v37 }
 0x8cf   :  { %5356 = vrsqrt.f32 %v3749_v38 }
 0x8d9   :  { %v5357_v24 = vpop.eup %5356 }
 0x8da   :  { %v8179_v22 = vmul.f32 %v5357_v24, %v8009_v48  ;;  %v8182_v16 = vmul.f32 %v5357_v24, %v8012_v47  ;;  %v8185_v7 = vmul.f32 %v5357_v24, %v8015_v49  ;;  %v8188_v57 = vmul.f32 %v5357_v24, %v8018_v19 }
 0x8db   :  { %v8191_v20 = vmul.f32 %v5357_v24, %v8021_v54  ;;  %v8194_v36 = vmul.f32 %v5357_v24, %v8024_v31  ;;  %v8197_v12 = vmul.f32 %v5357_v24, %v8027_v10  ;;  %v8200_v48 = vmul.f32 %v5357_v24, %v8030_v62 }
 0x8dc   :  { %v3776_v47 = vmul.f32 %v5357_v24, %v8033_v23  ;;  %v3777_v49 = vmul.f32 %v5357_v24, %v8036_v40  ;;  %v3778_v18 = vmul.f32 %v5357_v24, %v8039_v39  ;;  %v3779_v19 = vmul.f32 %v5357_v24, %v8042_v32 }
 0x8dd   :  { %v3780_v54 = vmul.f32 %v5357_v24, %v8045_v51  ;;  %v3781_v29 = vmul.f32 %v5357_v24, %v8048_v15  ;;  %v3782_v31 = vmul.f32 %v5357_v24, %v8051_v1  ;;  %v3783_v10 = vmul.f32 %v5357_v24, %v8054_v14 }
 0x8de   :  { %v3814_v55 = vmul.f32 %v8081_v50, %v3776_v47  ;;  %v3815_v62 = vmul.f32 %v8081_v50, %v3777_v49  ;;  %v3816_v23 = vmul.f32 %v8081_v50, %v3778_v18  ;;  %v3817_v40 = vmul.f32 %v8081_v50, %v3779_v19 }
 0x8df   :  { %v3818_v39 = vmul.f32 %v8081_v50, %v3780_v54  ;;  %v3819_v32 = vmul.f32 %v8081_v50, %v3781_v29  ;;  %v3820_v5 = vmul.f32 %v8081_v50, %v3782_v31  ;;  %v3821_v33 = vmul.f32 %v8081_v50, %v3783_v10  ;;  %v8237_v10 = vld [vmem:[%s5799_s19] sm:$0xff] }
 0x8e0   :  { %v3852_v51 = vadd.f32 %v8117_v30, %v3814_v55  ;;  %v3853_v15 = vadd.f32 %v8117_v30, %v3815_v62  ;;  %v3854_v1 = vadd.f32 %v8117_v30, %v3816_v23  ;;  %v3855_v14 = vadd.f32 %v8117_v30, %v3817_v40  ;;  %v8242_v62 = vld [vmem:[%s5799_s19 + $0x8] sm:$0xff] }
 0x8e1   :  { %v3856_v8 = vadd.f32 %v8117_v30, %v3818_v39  ;;  %v3857_v63 = vadd.f32 %v8117_v30, %v3819_v32  ;;  %v3858_v3 = vadd.f32 %v8117_v30, %v3820_v5  ;;  %v3859_v0 = vadd.f32 %v8117_v30, %v3821_v33 }
 0x8e2   :  { %v3884_v43 = vmax.f32 %v3852_v51, 0.0  ;;  %v3885_v17 = vmax.f32 %v3853_v15, 0.0  ;;  %v3886_v11 = vmax.f32 %v3854_v1, 0.0  ;;  %v3887_v58 = vmax.f32 %v3855_v14, 0.0 }
 0x8e3   :  { %v3888_v28 = vmax.f32 %v3856_v8, 0.0  ;;  %v3889_v26 = vmax.f32 %v3857_v63, 0.0  ;;  %v3890_v13 = vmax.f32 %v3858_v3, 0.0  ;;  %v3891_v24 = vmax.f32 %v3859_v0, 0.0 }
 0x8e4   :  { %v3955_v34 = vsel %vm244_vm2, %v3884_v43, 0.0  ;;  %v3956_v44 = vsel %vm244_vm2, %v3885_v17, 0.0  ;;  %v3958_v4 = vsel %vm244_vm2, %v3886_v11, 0.0  ;;  %v3960_v9 = vsel %vm244_vm2, %v3887_v58, 0.0 }
 0x8e5   :  { %v3957_v46 = vadd.f32 %v3956_v44, %v3955_v34  ;;  %v3962_v37 = vsel %vm244_vm2, %v3888_v28, 0.0  ;;  %v3964_v47 = vsel %vm244_vm2, %v3889_v26, 0.0  ;;  %v3966_v18 = vsel %vm244_vm2, %v3890_v13, 0.0 }
 0x8e6   :  { %v3968_v54 = vsel %vm244_vm2, %v3891_v24, 0.0  ;;  %v3209_v55 = vsel %vm265_vm14, %v8237_v10, inf  ;;  %v3212_v23 = vsel %vm265_vm14, %v8242_v62, inf  ;;  %v3790_v40 = vmul.f32 %v8081_v50, %v8084_v27 }
 0x8e7   :  { %v3959_v53 = vadd.f32 %v3958_v4, %v3957_v46  ;;  %3210 = vmin.xlane.f32.xlu0 %v3209_v55  ;;  %3213 = vmin.xlane.f32.xlu1 %v3212_v23  ;;  %v3791_v39 = vmul.f32 %v8081_v50, %v8087_v41  ;;  %v3806_v32 = vmul.f32 %v8081_v50, %v8179_v22  ;;  %v3928_v4 = vrot.slane %v8168_v2, 4 }
 0x8e8   :  { %v3807_v51 = vmul.f32 %v8081_v50, %v8182_v16  ;;  %v3792_v15 = vmul.f32 %v8081_v50, %v8090_v35  ;;  %v3793_v1 = vmul.f32 %v8081_v50, %v8093_v25  ;;  %v3808_v14 = vmul.f32 %v8081_v50, %v8185_v7 }
 0x8e9   :  { %v3961_v38 = vadd.f32 %v3960_v9, %v3959_v53  ;;  %v3828_v27 = vadd.f32 %v8117_v30, %v3790_v40  ;;  %v3829_v5 = vadd.f32 %v8117_v30, %v3791_v39  ;;  %v3794_v41 = vmul.f32 %v8081_v50, %v8096_v56 }
 0x8ea   :  { %v3809_v22 = vmul.f32 %v8081_v50, %v8188_v57  ;;  %v3844_v16 = vadd.f32 %v8117_v30, %v3806_v32  ;;  %v3845_v35 = vadd.f32 %v8117_v30, %v3807_v51  ;;  %v3795_v25 = vmul.f32 %v8081_v50, %v8099_v6 }
 0x8eb   :  { %v3963_v49 = vadd.f32 %v3962_v37, %v3961_v38  ;;  %v3796_v7 = vmul.f32 %v8081_v50, %v8102_v60  ;;  %v3830_v8 = vadd.f32 %v8117_v30, %v3792_v15  ;;  %v3831_v33 = vadd.f32 %v8117_v30, %v3793_v1 }
 0x8ec   :  { %v3810_v56 = vmul.f32 %v8081_v50, %v8191_v20  ;;  %v3846_v63 = vadd.f32 %v8117_v30, %v3808_v14  ;;  %v3797_v57 = vmul.f32 %v8081_v50, %v8105_v59  ;;  %v3860_v43 = vmax.f32 %v3828_v27, 0.0 }
 0x8ed   :  { %v3965_v19 = vadd.f32 %v3964_v47, %v3963_v49  ;;  %v3861_v17 = vmax.f32 %v3829_v5, 0.0  ;;  %v3811_v6 = vmul.f32 %v8081_v50, %v8194_v36  ;;  %v3832_v11 = vadd.f32 %v8117_v30, %v3794_v41 }
 0x8ee   :  { %v3847_v60 = vadd.f32 %v8117_v30, %v3809_v22  ;;  %v3876_v58 = vmax.f32 %v3844_v16, 0.0  ;;  %v3877_v3 = vmax.f32 %v3845_v35, 0.0  ;;  %v3833_v28 = vadd.f32 %v8117_v30, %v3795_v25 }
 0x8ef   :  { %v3967_v29 = vadd.f32 %v3966_v18, %v3965_v19  ;;  %v3834_v20 = vadd.f32 %v8117_v30, %v3796_v7  ;;  %v3862_v34 = vmax.f32 %v3830_v8, 0.0  ;;  %v3863_v44 = vmax.f32 %v3831_v33, 0.0 }
 0x8f0   :  { %v3812_v59 = vmul.f32 %v8081_v50, %v8197_v12  ;;  %v3848_v46 = vadd.f32 %v8117_v30, %v3810_v56  ;;  %v3878_v36 = vmax.f32 %v3846_v63, 0.0  ;;  %v3813_v0 = vmul.f32 %v8081_v50, %v8200_v48 }
 0x8f1   :  { %v8234_v31 = vadd.f32 %v3968_v54, %v3967_v29  ;;  %v3849_v26 = vadd.f32 %v8117_v30, %v3811_v6  ;;  %v3892_v9 = vsel %vm244_vm2, %v3860_v43, 0.0  ;;  %v3893_v53 = vsel %vm244_vm2, %v3861_v17, 0.0 }
 0x8f2   :  { %v3879_v13 = vmax.f32 %v3847_v60, 0.0  ;;  %v3894_v37 = vadd.f32 %v3893_v53, %v3892_v9  ;;  %v3934_v38 = vsel %vm244_vm2, %v3876_v58, 0.0  ;;  %v3935_v24 = vsel %vm244_vm2, %v3877_v3, 0.0 }
 0x8f3   :  { %v3835_v12 = vadd.f32 %v8117_v30, %v3797_v57  ;;  %v3864_v47 = vmax.f32 %v3832_v11, 0.0  ;;  %v3895_v49 = vsel %vm244_vm2, %v3862_v34, 0.0  ;;  %v3936_v18 = vadd.f32 %v3935_v24, %v3934_v38 }
 0x8f4   :  { %v3850_v50 = vadd.f32 %v8117_v30, %v3812_v59  ;;  %v3880_v48 = vmax.f32 %v3848_v46, 0.0  ;;  %v3896_v19 = vadd.f32 %v3895_v49, %v3894_v37  ;;  %v3937_v54 = vsel %vm244_vm2, %v3878_v36, 0.0 }
 0x8f5   :  { %v3865_v29 = vmax.f32 %v3833_v28, 0.0  ;;  %v3929_v55 = vadd.f32 %v3928_v4, %v8168_v2  ;;  %v3897_v23 = vsel %vm244_vm2, %v3863_v44, 0.0  ;;  %v3938_v40 = vadd.f32 %v3937_v54, %v3936_v18 }
 0x8f6   :  { %v3851_v39 = vadd.f32 %v8117_v30, %v3813_v0  ;;  %v3881_v32 = vmax.f32 %v3849_v26, 0.0  ;;  %v3898_v51 = vadd.f32 %v3897_v23, %v3896_v19  ;;  %v3939_v15 = vsel %vm244_vm2, %v3879_v13, 0.0 }
 0x8f7   :  { %v3866_v1 = vmax.f32 %v3834_v20, 0.0  ;;  %v3899_v14 = vsel %vm244_vm2, %v3864_v47, 0.0  ;;  %v3940_v27 = vadd.f32 %v3939_v15, %v3938_v40  ;;  %v3882_v5 = vmax.f32 %v3850_v50, 0.0 }
 0x8f8   :  { %v3970_v41 = vrot.slane %v8234_v31, 4  ;;  %v3900_v22 = vadd.f32 %v3899_v14, %v3898_v51  ;;  %v3941_v16 = vsel %vm244_vm2, %v3880_v48, 0.0  ;;  %v3867_v2 = vmax.f32 %v3835_v12, 0.0 }
 0x8f9   :  { %v3901_v35 = vsel %vm244_vm2, %v3865_v29, 0.0  ;;  %v3942_v25 = vadd.f32 %v3941_v16, %v3940_v27  ;;  %v3930_v7 = vrot.slane %v3929_v55, 2  ;;  %v3883_v30 = vmax.f32 %v3851_v39, 0.0 }
 0x8fa   :  { %v3902_v8 = vadd.f32 %v3901_v35, %v3900_v22  ;;  %v3943_v33 = vsel %vm244_vm2, %v3881_v32, 0.0  ;;  %v3903_v56 = vsel %vm244_vm2, %v3866_v1, 0.0  ;;  %v3971_v57 = vadd.f32 %v3970_v41, %v8234_v31 }
 0x8fb   :  { %v3944_v63 = vadd.f32 %v3943_v33, %v3942_v25  ;;  %v3945_v17 = vsel %vm244_vm2, %v3882_v5, 0.0  ;;  %v3905_v6 = vsel %vm244_vm2, %v3867_v2, 0.0  ;;  %v3931_v60 = vadd.f32 %v3930_v7, %v3929_v55 }
 0x8fc   :  { %v3904_v43 = vadd.f32 %v3903_v56, %v3902_v8  ;;  %v3947_v3 = vsel %vm244_vm2, %v3883_v30, 0.0  ;;  %v3972_v20 = vrot.slane %v3971_v57, 2 }
 0x8fd   :  { %v3946_v11 = vadd.f32 %v3945_v17, %v3944_v63  ;;  %v3932_v4 = vrot.slane %v3931_v60, 1 }
 0x8fe   :  { %v3906_v58 = vadd.f32 %v3905_v6, %v3904_v43  ;;  %v3973_v36 = vadd.f32 %v3972_v20, %v3971_v57 }
 0x8ff   :  { %v3948_v28 = vadd.f32 %v3947_v3, %v3946_v11  ;;  %v3933_v26 = vadd.f32 %v3932_v4, %v3931_v60 }
 0x900   :  { %v3907_v34 = vrot.slane %v3906_v58, 4  ;;  %v3974_v13 = vrot.slane %v3973_v36, 1 }
 0x901   :  { %v3949_v44 = vrot.slane %v3948_v28, 4  ;;  %v3977_v24 = vmul.f32 0.015625, %v3933_v26 }
 0x902   :  { %v3908_v59 = vadd.f32 %v3907_v34, %v3906_v58  ;;  %v3975_v49 = vadd.f32 %v3974_v13, %v3973_v36 }
 0x903   :  { %v3950_v46 = vadd.f32 %v3949_v44, %v3948_v28  ;;  %v3981_v54 = vpack.c.bf16 %v3977_v24, %v3977_v24 }
 0x904   :  { %v3909_v0 = vrot.slane %v3908_v59, 2  ;;  %v3979_v48 = vmul.f32 0.015625, %v3975_v49 }
 0x905   :  { %v3951_v31 = vrot.slane %v3950_v46, 2  ;;  %v3991_v40 = vunpack.c.l.b16 %v3981_v54 }
 0x906   :  { %v3910_v9 = vadd.f32 %v3909_v0, %v3908_v59  ;;  %v3983_v55 = vpack.c.bf16 %v3979_v48, %v3979_v48 }
 0x907   :  { %v3952_v53 = vadd.f32 %v3951_v31, %v3950_v46 }
 0x908   :  { %v3911_v37 = vrot.slane %v3910_v9, 1  ;;  %v3993_v32 = vunpack.c.l.b16 %v3983_v55 }
 0x909   :  { %v3953_v38 = vrot.slane %v3952_v53, 1 }
 0x90a   :  { %v3912_v12 = vadd.f32 %v3911_v37, %v3910_v9 }
 0x90b   :  { %v3954_v47 = vadd.f32 %v3953_v38, %v3952_v53 }
 0x90c   :  { %v3976_v18 = vmul.f32 0.015625, %v3912_v12 }
 0x90d   :  { %v3978_v50 = vmul.f32 0.015625, %v3954_v47 }
 0x90e   :  { %v3980_v19 = vpack.c.bf16 %v3976_v18, %v3976_v18 }
 0x90f   :  { %v3982_v29 = vpack.c.bf16 %v3978_v50, %v3978_v50 }
 0x910   :  { %v3990_v23 = vunpack.c.l.b16 %v3980_v19 }
 0x911   :  { %v3992_v39 = vunpack.c.l.b16 %v3982_v29  ;;  %v8781_v29 = vld [vmem:[#allocation66_spill] sm:$0xff] }
 0x912   :  { %v3994_v51 = vsel %vm1008_vm6, %v3991_v40, %v3990_v23  ;;  %v8782_v23 = vld [vmem:[#allocation67_spill] sm:$0xff] }
 0x913   :  { %v3995_v15 = vsel %vm1010_vm7, %v3992_v39, %v3994_v51 }
 0x914   :  { %v8317_v1 = vsel %vm1012_vm8, %v3993_v32, %v3995_v15  ;;  %vm258_vm8 = vcmask 122880  }
 0x954   :  { %v3080_v14 = vpop.f32.mrb[40].mxu0 }
 0x955   :  { %v3093_v27 = vrot.slane %v3080_v14, %v6780_v21  ;;  %v5127_v5 = vpop.f32.mrb[41].mxu0 }
 0x956   :  { %v3083_v41 = vpop.f32.mrb[42].mxu0 }
 0x957   :  { %v3094_v22 = vcombine.high %v3093_v27, %v3093_v27  ;;  %v3097_v16 = vsel %vm1073_vm9, %v3093_v27, 0.0  ;;  %v5128_v2 = vpop.f32.mrb[43].mxu0 }
 0x958   :  { %v3098_v35 = vrot.slane %v3097_v16, 4  ;;  %v196_v2 = vld [vmem:[%s8783_s5] sm:$0xff] }
 0x959   :  { %v3104_v25 = vsel %vm1073_vm9, %v3094_v22, 0.0 }
 0x95a   :  { %v3099_v7 = vadd.f32 %v3098_v35, %v3097_v16  ;;  %v3105_v30 = vrot.slane %v3104_v25, 4  ;;  %v3218_v16 = vsel %vm265_vm14, %v8242_v62, -inf  ;;  %v197_v35 = vld [vmem:[%s8783_s5 + $0x8] sm:$0xff] }
 0x95c   :  { %v3100_v8 = vrot.slane %v3099_v7, 2  ;;  %v3106_v33 = vadd.f32 %v3105_v30, %v3104_v25  ;;  %v199_v25 = vmul.f32 0.99, %v196_v2  ;;  %v5462_v30 = vld [vmem:[%s5769_s21] sm:$0xff] }
 0x95e   :  { %v3101_v56 = vadd.f32 %v3100_v8, %v3099_v7  ;;  %v3107_v63 = vrot.slane %v3106_v33, 2  ;;  %v200_v7 = vmul.f32 0.99, %v197_v35  ;;  %v202_v8 = vmul.f32 0.01, %v5462_v30 }
 0x960   :  { %v3102_v57 = vrot.slane %v3101_v56, 1  ;;  %v3108_v43 = vadd.f32 %v3107_v63, %v3106_v33  ;;  %v5463_v33 = vld [vmem:[%s5769_s21 + $0x8] sm:$0xff]  ;;  %v8348_v63 = vadd.f32 %v202_v8, %v199_v25 }
 0x962   :  { %v3103_v17 = vadd.f32 %v3102_v57, %v3101_v56  ;;  %v3109_v6 = vrot.slane %v3108_v43, 1  ;;  %v203_v56 = vmul.f32 0.01, %v5463_v33  ;;  %v198_v57 = vld [vmem:[%s8783_s5 + $0x10] sm:$0xff]  ;;  %255 = vst.msk [vmem:[%s8784_s9] sm:$0xff] %vm254_vm11, %v8348_v63 }
 0x964   :  { %v3110_v11 = vadd.f32 %v3109_v6, %v3108_v43  ;;  %v3111_v60 = vmul.f32 0.5, %v3103_v17  ;;  %v8351_v43 = vadd.f32 %v203_v56, %v200_v7  ;;  %v201_v17 = vmul.f32 0.99, %v198_v57  ;;  %v5464_v6 = vld [vmem:[%s5769_s21 + $0x10] sm:$0xff]  ;;  %s8788_s21 = sld [smem:[#allocation24_spill]] }
 0x966   :  { %v3112_v58 = vmul.f32 0.5, %v3110_v11  ;;  %v3113_v3 = vsub.f32 %v3093_v27, %v3111_v60  ;;  %v204_v11 = vmul.f32 0.01, %v5464_v6  ;;  %256 = vst.msk [vmem:[%s8784_s9 + $0x8] sm:$0xff] %vm254_vm11, %v8351_v43  ;;  %v3984_v60 = vpack.c.bf16 %v8351_v43, %v8348_v63  ;;  %v216_v63 = vld [vmem:[%s8785_s13] sm:$0xff]  ;;  %v217_v43 = vld [vmem:[%s8785_s13 + $0x8] sm:$0xff] }
 0x968   :  { %v3114_v28 = vsub.f32 %v3094_v22, %v3112_v58  ;;  %v3115_v20 = vmul.f32 %v3113_v3, %v3113_v3  ;;  %v3215_v22 = vsel %vm265_vm14, %v8237_v10, -inf  ;;  %v8362_v58 = vadd.f32 %v204_v11, %v201_v17 }
 0x96a   :  { %v3116_v34 = vmul.f32 %v3114_v28, %v3114_v28  ;;  %v3117_v44 = vsel %vm1073_vm9, %v3115_v20, 0.0  ;;  %257 = vst.msk [vmem:[%s8784_s9 + $0x10] sm:$0xff] %vm254_vm11, %v8362_v58 }
 0x96b   :  { %v3118_v4 = vrot.slane %v3117_v44, 4 }
 0x96c   :  { %v3124_v59 = vsel %vm1073_vm9, %v3116_v34, 0.0 }
 0x96d   :  { %v3119_v46 = vadd.f32 %v3118_v4, %v3117_v44  ;;  %v3125_v36 = vrot.slane %v3124_v59, 4 }
 0x96f   :  { %v3120_v0 = vrot.slane %v3119_v46, 2  ;;  %v3126_v31 = vadd.f32 %v3125_v36, %v3124_v59 }
 0x971   :  { %v3121_v26 = vadd.f32 %v3120_v0, %v3119_v46  ;;  %v3127_v9 = vrot.slane %v3126_v31, 2 }
 0x973   :  { %v3122_v53 = vrot.slane %v3121_v26, 1  ;;  %v3128_v13 = vadd.f32 %v3127_v9, %v3126_v31 }
 0x975   :  { %v3123_v37 = vadd.f32 %v3122_v53, %v3121_v26  ;;  %v3129_v38 = vrot.slane %v3128_v13, 1 }
 0x977   :  { %v3130_v24 = vadd.f32 %v3129_v38, %v3128_v13  ;;  %v3131_v12 = vmul.f32 0.5, %v3123_v37 }
 0x979   :  { %v3132_v47 = vmul.f32 0.5, %v3130_v24  ;;  %v3133_v49 = vadd.f32 1e-05, %v3131_v12 }
 0x97b   :  { %v3134_v18 = vadd.f32 1e-05, %v3132_v47  ;;  %5358 = vrsqrt.f32 %v3133_v49 }
 0x97d   :  { %5360 = vrsqrt.f32 %v3134_v18 }
 0x985   :  { %v5359_v50 = vpop.eup %5358 }
 0x986   :  { %v3137_v48 = vmul.f32 %v5359_v50, %v3113_v3  ;;  %v3211_v3 = vpop.xlane.xlu0 %3210 }
 0x987   :  { %v5361_v19 = vpop.eup %5360 }
 0x988   :  { %v3138_v54 = vmul.f32 %v5361_v19, %v3114_v28  ;;  %v3139_v55 = vmul.f32 %v8781_v29, %v3137_v48  ;;  %v3214_v28 = vpop.xlane.xlu1 %3213 }
 0x989   :  { %v3221_v20 = vmin.f32 %v3211_v3, %v3214_v28 }
 0x98a   :  { %v3141_v40 = vadd.f32 %v8782_v23, %v3139_v55  ;;  %v3140_v39 = vmul.f32 %v8781_v29, %v3138_v54 }
 0x98b   :  { %v3222_v46 = vrot.slane %v3221_v20, 4 }
 0x98c   :  { %v8327_v32 = vmax.f32 %v3141_v40, 0.0  ;;  %v3142_v51 = vadd.f32 %v8782_v23, %v3140_v39 }
 0x98d   :  { %v3223_v24 = vmin.f32 %v3221_v20, %v3222_v46 }
 0x98e   :  { %v3145_v15 = vsel %vm1073_vm9, %v8327_v32, inf  ;;  %v8332_v14 = vmax.f32 %v3142_v51, 0.0  ;;  %v3151_v5 = vsel %vm1073_vm9, %v8327_v32, -inf }
 0x98f   :  { %3146 = vmin.xlane.f32.xlu0 %v3145_v15  ;;  %v3224_v23 = vrot.slane %v3223_v24, 2 }
 0x990   :  { %v3148_v27 = vsel %vm1073_vm9, %v8332_v14, inf  ;;  %v3154_v41 = vsel %vm1073_vm9, %v8332_v14, -inf }
 0x991   :  { %3149 = vmin.xlane.f32.xlu1 %v3148_v27 }
 0x993   :  { %3152 = vmax.xlane.f32.xlu0 %v3151_v5 }
 0x995   :  { %3155 = vmax.xlane.f32.xlu1 %v3154_v41 }
 0x997   :  { %3216 = vmax.xlane.f32.xlu0 %v3215_v22 }
 0x999   :  { %3219 = vmax.xlane.f32.xlu1 %v3218_v16  ;;  %v3225_v16 = vmin.f32 %v3223_v24, %v3224_v23 }
 0x99b   :  { %v3226_v57 = vrot.slane %v3225_v16, 1 }
 0x99d   :  { %v3227_v20 = vmin.f32 %v3225_v16, %v3226_v57 }
 0xa1c   :  { %v3147_v34 = vpop.xlane.xlu0 %3146 }
 0xa1d   :  { %v3157_v44 = vsel %vm379_vm1, %v3147_v34, inf }
 0xa1e   :  { %v3158_v4 = vrot.slane %v3157_v44, 4  ;;  %v3150_v59 = vpop.xlane.xlu1 %3149 }
 0xa1f   :  { %v3164_v36 = vsel %vm379_vm1, %v3150_v59, inf }
 0xa20   :  { %v3159_v0 = vmin.f32 %v3157_v44, %v3158_v4  ;;  %v3165_v31 = vrot.slane %v3164_v36, 4  ;;  %v3153_v26 = vpop.xlane.xlu0 %3152 }
 0xa21   :  { %v3171_v9 = vsel %vm379_vm1, %v3153_v26, -inf }
 0xa22   :  { %v3160_v53 = vrot.slane %v3159_v0, 2  ;;  %v3166_v13 = vmin.f32 %v3164_v36, %v3165_v31  ;;  %v3172_v37 = vrot.slane %v3171_v9, 4  ;;  %v3156_v38 = vpop.xlane.xlu1 %3155 }
 0xa23   :  { %v3178_v12 = vsel %vm379_vm1, %v3156_v38, -inf }
 0xa24   :  { %v3161_v47 = vmin.f32 %v3159_v0, %v3160_v53  ;;  %v3167_v49 = vrot.slane %v3166_v13, 2  ;;  %v3173_v18 = vmax.f32 %v3171_v9, %v3172_v37  ;;  %v3179_v50 = vrot.slane %v3178_v12, 4  ;;  %v3217_v48 = vpop.xlane.xlu0 %3216 }
 0xa26   :  { %v3168_v19 = vmin.f32 %v3166_v13, %v3167_v49  ;;  %v3174_v54 = vrot.slane %v3173_v18, 2  ;;  %v3180_v29 = vmax.f32 %v3178_v12, %v3179_v50  ;;  %v3220_v55 = vpop.xlane.xlu1 %3219  ;;  %v3162_v39 = vrot.slane %v3161_v47, 1 }
 0xa27   :  { %v3228_v40 = vmax.f32 %v3217_v48, %v3220_v55  ;;  %v3240_v12 = vsub.f32 %v8237_v10, %v3227_v20 }
 0xa28   :  { %v3175_v51 = vmax.f32 %v3173_v18, %v3174_v54  ;;  %v3181_v15 = vrot.slane %v3180_v29, 2  ;;  %v3169_v5 = vrot.slane %v3168_v19, 1  ;;  %v3163_v35 = vmin.f32 %v3161_v47, %v3162_v39 }
 0xa29   :  { %v3229_v27 = vrot.slane %v3228_v40, 4  ;;  %v3241_v47 = vsub.f32 %v8242_v62, %v3227_v20 }
 0xa2a   :  { %v3176_v41 = vrot.slane %v3175_v51, 1  ;;  %v3182_v22 = vmax.f32 %v3180_v29, %v3181_v15  ;;  %v3170_v8 = vmin.f32 %v3168_v19, %v3169_v5  ;;  %v3195_v0 = vsub.f32 %v8327_v32, %v3163_v35 }
 0xa2b   :  { %v3230_v2 = vmax.f32 %v3228_v40, %v3229_v27 }
 0xa2c   :  { %v3177_v25 = vmax.f32 %v3175_v51, %v3176_v41  ;;  %v3183_v7 = vrot.slane %v3182_v22, 1  ;;  %v3196_v26 = vsub.f32 %v8332_v14, %v3170_v8 }
 0xa2d   :  { %v3231_v30 = vrot.slane %v3230_v2, 2 }
 0xa2e   :  { %v3185_v33 = vsub.f32 %v3177_v25, %v3163_v35  ;;  %v3184_v56 = vmax.f32 %v3182_v22, %v3183_v7 }
 0xa2f   :  { %v3232_v17 = vmax.f32 %v3230_v2, %v3231_v30  ;;  %v3997_v30 = vpack.c.b16 %v8317_v1, %v8317_v1 }
 0xa30   :  { %v3187_v6 = vmul.f32 0.032258064, %v3185_v33  ;;  %v3186_v11 = vsub.f32 %v3184_v56, %v3170_v8  ;;  %v5466_v56 = vld [vmem:[%s5784_s3 + $0x8] sm:$0xff] }
 0xa31   :  { %v3233_v3 = vrot.slane %v3232_v17, 1  ;;  %v221_v57 = vmul.f32 0.01, %v5466_v56 }
 0xa32   :  { %vm3189_vm1 = vcmp.le.f32.partialorder %v3187_v6, 0.0  ;;  %v3188_v28 = vmul.f32 0.032258064, %v3186_v11  ;;  %v8787_v11 = vld [vmem:[#allocation44_spill] sm:$0xff] }
 0xa33   :  { %v3191_v34 = vsel %vm3189_vm1, 1.0, %v3187_v6  ;;  %v3234_v44 = vmax.f32 %v3232_v17, %v3233_v3  ;;  %v1325_v3 = vrot.slane %v8787_v11, %v6780_v21 }
 0xa34   :  { %5362 = vrcp.f32 %v3191_v34  ;;  %vm3190_vm6 = vcmp.le.f32.partialorder %v3188_v28, 0.0 }
 0xa35   :  { %v3192_v4 = vsel %vm3190_vm6, 1.0, %v3188_v28  ;;  %v3235_v59 = vsub.f32 %v3234_v44, %v3227_v20  ;;  %v8403_v28 = vld [vmem:[%s8786_s17] sm:$0x1] }
 0xa36   :  { %5364 = vrcp.f32 %v3192_v4 }
 0xa37   :  { %v3236_v46 = vmul.f32 0.003921569, %v3235_v59 }
 0xa39   :  { %vm3237_vm7 = vcmp.le.f32.partialorder %v3236_v46, 0.0 }
 0xa3a   :  { %v3238_v36 = vsel %vm3237_vm7, 1.0, %v3236_v46 }
 0xa3b   :  { %5366 = vrcp.f32 %v3238_v36 }
 0xa3e   :  { %v5363_v31 = vpop.eup %5362 }
 0xa3f   :  { %v3197_v9 = vmul.f32 %v5363_v31, %v3195_v0 }
 0xa40   :  { %v5365_v53 = vpop.eup %5364 }
 0xa41   :  { %v5258_v13 = vround.rtne.f32 %v3197_v9  ;;  %v3198_v37 = vmul.f32 %v5365_v53, %v3196_v26 }
 0xa43   :  { %v3201_v38 = vmax.f32 %v5258_v13, 0.0  ;;  %v5259_v24 = vround.rtne.f32 %v3198_v37 }
 0xa45   :  { %v5367_v49 = vpop.eup %5366  ;;  %v3203_v18 = vmin.f32 %v3201_v38, 31.0  ;;  %v3202_v50 = vmax.f32 %v5259_v24, 0.0 }
 0xa46   :  { %v3242_v48 = vmul.f32 %v5367_v49, %v3240_v12  ;;  %v3243_v19 = vmul.f32 %v5367_v49, %v3241_v47 }
 0xa47   :  { %v3205_v54 = vmul.f32 %v3203_v18, %v3191_v34  ;;  %v3204_v32 = vmin.f32 %v3202_v50, 31.0  ;;  %v1333_v34 = vrot.slane %v8403_v28, %v8775_v52 }
 0xa48   :  { %v5260_v29 = vround.rtne.f32 %v3242_v48  ;;  %v5261_v55 = vround.rtne.f32 %v3243_v19 }
 0xa49   :  { %v3206_v14 = vmul.f32 %v3204_v32, %v3192_v4  ;;  %v3207_v39 = vadd.f32 %v3205_v54, %v3163_v35  ;;  %v3985_v35 = vpack.c.bf16 %v8362_v58, %v8362_v58  ;;  %v219_v58 = vmul.f32 0.99, %v217_v43 }
 0xa4a   :  { %v3246_v23 = vmax.f32 %v5260_v29, 0.0  ;;  %v3247_v40 = vmax.f32 %v5261_v55, 0.0  ;;  %v1335_v4 = vadd.f32 %v1333_v34, %v1325_v3 }
 0xa4b   :  { %v3208_v51 = vadd.f32 %v3206_v14, %v3170_v8  ;;  %v4002_v7 = vsel %vm1018_vm3, %v3985_v35, 0  ;;  %v5465_v8 = vld [vmem:[%s5784_s3] sm:$0xff]  ;;  %v223_v6 = vadd.f32 %v221_v57, %v219_v58  ;;  %s8789_s3 = sld [smem:[#allocation25_spill]]  ;;  %vm4690_vm3 = vcmask 257024  }
 0xa4c   :  { %v3248_v15 = vmin.f32 %v3246_v23, 255.0  ;;  %v3249_v27 = vmin.f32 %v3247_v40, 255.0  ;;  %v220_v33 = vmul.f32 0.01, %v5465_v8 }
 0xa4d   :  { %v3256_v5 = vcombine.low %v3207_v39, %v3208_v51  ;;  %262 = vst.msk [vmem:[#allocation9 + $0x8] sm:$0xff] %vm254_vm11, %v223_v6 }
 0xa4e   :  { %v3250_v10 = vmul.f32 %v3248_v15, %v3238_v36  ;;  %v3251_v41 = vmul.f32 %v3249_v27, %v3238_v36 }
 0xa4f   :  { %v3263_v16 = vrot.slane %v3256_v5, %v6780_v21 }
 0xa50   :  { %v3252_v62 = vadd.f32 %v3250_v10, %v3227_v20  ;;  %v3253_v22 = vadd.f32 %v3251_v41, %v3227_v20  ;;  %v1326_v20 = vcombine.high %v1325_v3, %v1325_v3 }
 0xa51   :  { %v3265_v25 = vpack.c.bf16 %v3263_v16, %v3263_v16 }
 0xa52   :  { %v3266_v2 = vpack.c.bf16 %v3253_v22, %v3252_v62  ;;  %v1336_v44 = vadd.f32 %v1333_v34, %v1326_v20 }
 0xa54   :  { %5130 = vmatpush3.bf16.msra.mxu0 %v3266_v2 }
 0xa55   :  { %5173 = vmatprep.subr.bf16.mxu0 %v8750_v45 }
 0xa57   :  { %5132 = vmatmul.mubr.msk.bf16.vlgmr.msra.gmra.mrb[44].mxu0 %vm254_vm11, %v3265_v25 }
 0xa58   :  { %5174 = vmatpush3.bf16.msra.mxu0 %v3984_v60  ;;  %5177 = vmatprep.mubr.msk.bf16.mxu0 %vm5728_vm4, %v8750_v45  ;;  %v218_v60 = vmul.f32 0.99, %v216_v63 }
 0xa59   :  { %5175 = vmatprep.subr.bf16.mxu0 %v8750_v45 }
 0xa5a   :  { %v222_v17 = vadd.f32 %v220_v33, %v218_v60 }
 0xa5c   :  { %5176 = vmatpush3.bf16.msra.mxu0 %v4002_v7  ;;  %261 = vst.msk [vmem:[#allocation9] sm:$0xff] %vm254_vm11, %v222_v17  ;;  %v4127_v1 = vpack.c.bf16 %v223_v6, %v222_v17 }
 0xa5d   :  { %5181 = vmatprep.subr.bf16.mxu0 %v8750_v45 }
 0xa5f   :  { %5178 = vmatmul.mubr.msk.bf16.vlgmr.msra.gmra.mrb[48].mxu0 %vm244_vm2, %v3997_v30  ;;  %vm1337_vm2 = vcmask 254976  }
 0xa60   :  { %5183 = vmatprep.mubr.msk.bf16.mxu0 %vm5728_vm4, %v8750_v45  ;;  %5182 = vmatpush3.bf16.msra.mxu0 %v4127_v1  ;;  %v1345_v59 = vsel %vm1337_vm2, %v1336_v44, 0.0  ;;  %v1338_v46 = vsel %vm1337_vm2, %v1335_v4, 0.0 }
 0xa61   :  { %5187 = vmatprep.subr.bf16.mxu0 %v8750_v45  ;;  %v1346_v36 = vrot.slane %v1345_v59, 4  ;;  %v1339_v0 = vrot.slane %v1338_v46, 4 }
 0xa63   :  { %v1347_v31 = vadd.f32 %v1346_v36, %v1345_v59  ;;  %v1340_v26 = vadd.f32 %v1339_v0, %v1338_v46 }
 0xa65   :  { %v1348_v9 = vrot.slane %v1347_v31, 2  ;;  %v1341_v53 = vrot.slane %v1340_v26, 2 }
 0xa67   :  { %v1349_v13 = vadd.f32 %v1348_v9, %v1347_v31  ;;  %v1342_v37 = vadd.f32 %v1341_v53, %v1340_v26 }
 0xa69   :  { %v1350_v38 = vrot.slane %v1349_v13, 1  ;;  %v1343_v24 = vrot.slane %v1342_v37, 1 }
 0xa6b   :  { %v1351_v12 = vadd.f32 %v1350_v38, %v1349_v13  ;;  %v1344_v47 = vadd.f32 %v1343_v24, %v1342_v37 }
 0xa6d   :  { %v1353_v49 = vmul.f32 0.5, %v1351_v12  ;;  %v1352_v18 = vmul.f32 0.5, %v1344_v47 }
 0xa6f   :  { %v8409_v50 = vsub.f32 %v1336_v44, %v1353_v49  ;;  %v8411_v48 = vsub.f32 %v1335_v4, %v1352_v18 }
 0xa71   :  { %v1357_v19 = vmul.f32 %v8409_v50, %v8409_v50  ;;  %v1356_v54 = vmul.f32 %v8411_v48, %v8411_v48 }
 0xa73   :  { %v1365_v32 = vsel %vm1337_vm2, %v1357_v19, 0.0  ;;  %v1358_v23 = vsel %vm1337_vm2, %v1356_v54, 0.0 }
 0xa74   :  { %v1366_v39 = vrot.slane %v1365_v32, 4  ;;  %v1359_v5 = vrot.slane %v1358_v23, 4 }
 0xa76   :  { %v1367_v22 = vadd.f32 %v1366_v39, %v1365_v32  ;;  %v1360_v7 = vadd.f32 %v1359_v5, %v1358_v23 }
 0xa78   :  { %v1368_v8 = vrot.slane %v1367_v22, 2  ;;  %v1361_v11 = vrot.slane %v1360_v7, 2 }
 0xa7a   :  { %v1369_v59 = vadd.f32 %v1368_v8, %v1367_v22  ;;  %v1362_v26 = vadd.f32 %v1361_v11, %v1360_v7 }
 0xa7c   :  { %v1370_v38 = vrot.slane %v1369_v59, 1  ;;  %v1363_v18 = vrot.slane %v1362_v26, 1 }
 0xb2a   :  { %v3304_v29 = vpop.f32.mrb[44].mxu0 }
 0xb2b   :  { %v3317_v55 = vrot.slane %v3304_v29, %v6780_v21  ;;  %v5133_v14 = vpop.f32.mrb[45].mxu0 }
 0xb2c   :  { %v3307_v40 = vpop.f32.mrb[46].mxu0 }
 0xb2d   :  { %v3318_v51 = vcombine.high %v3317_v55, %v3317_v55  ;;  %v3321_v15 = vadd.f32 %v3317_v55, %v1333_v34  ;;  %v5134_v27 = vpop.f32.mrb[47].mxu0  ;;  %v1371_v55 = vadd.f32 %v1370_v38, %v1369_v59 }
 0xb2f   :  { %v3322_v10 = vadd.f32 %v3318_v51, %v1333_v34  ;;  %v3323_v41 = vsel %vm1337_vm2, %v3321_v15, 0.0  ;;  %v1373_v22 = vmul.f32 0.5, %v1371_v55 }
 0xb30   :  { %v3324_v62 = vrot.slane %v3323_v41, 4 }
 0xb31   :  { %v3330_v16 = vsel %vm1337_vm2, %v3322_v10, 0.0  ;;  %v1375_v8 = vadd.f32 1e-05, %v1373_v22 }
 0xb32   :  { %v3325_v2 = vadd.f32 %v3324_v62, %v3323_v41  ;;  %v3331_v25 = vrot.slane %v3330_v16, 4  ;;  %v4038_v35 = vpop.f32.mrb[48].mxu0 }
 0xb33   :  { %v4051_v30 = vrot.slane %v4038_v35, %v6780_v21  ;;  %v5179_v63 = vpop.f32.mrb[49].mxu0  ;;  %5368 = vrsqrt.f32 %v1375_v8 }
 0xb34   :  { %v3326_v43 = vrot.slane %v3325_v2, 2  ;;  %v3332_v60 = vadd.f32 %v3331_v25, %v3330_v16  ;;  %v4041_v58 = vpop.f32.mrb[50].mxu0 }
 0xb35   :  { %v4052_v33 = vcombine.high %v4051_v30, %v4051_v30  ;;  %v4055_v56 = vsel %vm1073_vm9, %v4051_v30, 0.0  ;;  %v5180_v57 = vpop.f32.mrb[51].mxu0 }
 0xb36   :  { %v3327_v17 = vadd.f32 %v3326_v43, %v3325_v2  ;;  %v3333_v6 = vrot.slane %v3332_v60, 2  ;;  %v4056_v1 = vrot.slane %v4055_v56, 4 }
 0xb37   :  { %v4062_v3 = vsel %vm1073_vm9, %v4052_v33, 0.0 }
 0xb38   :  { %v3328_v20 = vrot.slane %v3327_v17, 1  ;;  %v3334_v34 = vadd.f32 %v3333_v6, %v3332_v60  ;;  %v4057_v44 = vadd.f32 %v4056_v1, %v4055_v56  ;;  %v4063_v4 = vrot.slane %v4062_v3, 4 }
 0xb3a   :  { %v3329_v46 = vadd.f32 %v3328_v20, %v3327_v17  ;;  %v3335_v36 = vrot.slane %v3334_v34, 1  ;;  %v4058_v0 = vrot.slane %v4057_v44, 2  ;;  %v4064_v31 = vadd.f32 %v4063_v4, %v4062_v3 }
 0xb3c   :  { %v3336_v9 = vadd.f32 %v3335_v36, %v3334_v34  ;;  %v3337_v53 = vmul.f32 0.5, %v3329_v46  ;;  %v4059_v13 = vadd.f32 %v4058_v0, %v4057_v44  ;;  %v4065_v37 = vrot.slane %v4064_v31, 2 }
 0xb3e   :  { %v3338_v24 = vmul.f32 0.5, %v3336_v9  ;;  %v8425_v12 = vsub.f32 %v3321_v15, %v3337_v53  ;;  %v4060_v47 = vrot.slane %v4059_v13, 1  ;;  %v4066_v49 = vadd.f32 %v4065_v37, %v4064_v31 }
 0xb3f   :  { %v1364_v15 = vadd.f32 %v1363_v18, %v1362_v26  ;;  %v5369_v18 = vpop.eup %5368 }
 0xb40   :  { %v8427_v19 = vsub.f32 %v3322_v10, %v3338_v24  ;;  %v3341_v54 = vmul.f32 %v8425_v12, %v8425_v12  ;;  %v4061_v32 = vadd.f32 %v4060_v47, %v4059_v13  ;;  %v4067_v29 = vrot.slane %v4066_v49, 1  ;;  %v208_v24 = vld [vmem:[%s8788_s21] sm:$0x1] }
 0xb41   :  { %v1372_v7 = vmul.f32 0.5, %v1364_v15  ;;  %v209_v55 = vmul.f32 0.99, %v208_v24 }
 0xb42   :  { %v3342_v14 = vmul.f32 %v8427_v19, %v8427_v19  ;;  %v3343_v23 = vsel %vm1337_vm2, %v3341_v54, 0.0  ;;  %v4068_v40 = vadd.f32 %v4067_v29, %v4066_v49  ;;  %v4069_v39 = vmul.f32 0.5, %v4061_v32  ;;  %v212_v54 = vld [vmem:[%s8789_s3] sm:$0x1] }
 0xb43   :  { %v3344_v51 = vrot.slane %v3343_v23, 4  ;;  %v1374_v1 = vadd.f32 1e-05, %v1372_v7 }
 0xb44   :  { %v3350_v27 = vsel %vm1337_vm2, %v3342_v14, 0.0  ;;  %v4070_v5 = vmul.f32 0.5, %v4068_v40  ;;  %v8435_v10 = vsub.f32 %v4051_v30, %v4069_v39  ;;  %v5467_v14 = vld [vmem:[%s5774_s25] sm:$0x1]  ;;  %v1379_v40 = vmul.f32 %v5369_v18, %v8409_v50  ;;  %s8790_s25 = sld [smem:[#allocation29_spill]] }
 0xb45   :  { %v3345_v41 = vadd.f32 %v3344_v51, %v3343_v23  ;;  %v3351_v62 = vrot.slane %v3350_v27, 4  ;;  %5370 = vrsqrt.f32 %v1374_v1  ;;  %v210_v23 = vmul.f32 0.01, %v5467_v14  ;;  %v5468_v51 = vld [vmem:[%s5779_s29] sm:$0x1]  ;;  %s8791_s29 = sld [smem:[#allocation27_spill]] }
 0xb46   :  { %v8437_v16 = vsub.f32 %v4052_v33, %v4070_v5  ;;  %v4073_v2 = vmul.f32 %v8435_v10, %v8435_v10  ;;  %v213_v39 = vmul.f32 0.99, %v212_v54  ;;  %v214_v15 = vmul.f32 0.01, %v5468_v51 }
 0xb47   :  { %v3346_v25 = vrot.slane %v3345_v41, 2  ;;  %v3352_v35 = vadd.f32 %v3351_v62, %v3350_v27 }
 0xb48   :  { %v4074_v63 = vmul.f32 %v8437_v16, %v8437_v16  ;;  %v4075_v43 = vsel %vm1073_vm9, %v4073_v2, 0.0 }
 0xb49   :  { %v3347_v60 = vadd.f32 %v3346_v25, %v3345_v41  ;;  %v3353_v58 = vrot.slane %v3352_v35, 2  ;;  %v4076_v30 = vrot.slane %v4075_v43, 4  ;;  %v8451_v41 = vadd.f32 %v210_v23, %v209_v55 }
 0xb4a   :  { %v4082_v56 = vsel %vm1073_vm9, %v4074_v63, 0.0 }
 0xb4b   :  { %v3348_v57 = vrot.slane %v3347_v60, 1  ;;  %v3354_v33 = vadd.f32 %v3353_v58, %v3352_v35  ;;  %v4077_v17 = vadd.f32 %v4076_v30, %v4075_v43  ;;  %v4083_v6 = vrot.slane %v4082_v56, 4  ;;  %259 = vst.msk [vmem:[#allocation6] sm:$0x1] %vm258_vm8, %v8451_v41 }
 0xb4c   :  { %v8455_v35 = vadd.f32 %v214_v15, %v213_v39  ;;  %v4101_v50 = vrot.slane %v8451_v41, %v8775_v52 }
 0xb4d   :  { %v3349_v11 = vadd.f32 %v3348_v57, %v3347_v60  ;;  %v3355_v3 = vrot.slane %v3354_v33, 1  ;;  %v4078_v20 = vrot.slane %v4077_v17, 2  ;;  %v4084_v34 = vadd.f32 %v4083_v6, %v4082_v56 }
 0xb4e   :  { %v4109_v58 = vrot.slane %v8455_v35, %v8775_v52  ;;  %260 = vst.msk [vmem:[#allocation7] sm:$0x1] %vm258_vm8, %v8455_v35 }
 0xb4f   :  { %v3356_v44 = vadd.f32 %v3355_v3, %v3354_v33  ;;  %v3357_v4 = vmul.f32 0.5, %v3349_v11  ;;  %v4079_v59 = vadd.f32 %v4078_v20, %v4077_v17  ;;  %v4085_v46 = vrot.slane %v4084_v34, 2  ;;  %v5371_v29 = vpop.eup %5370  ;;  %v233_v3 = vld [vmem:[%s8790_s25 + $0x8] sm:$0xff] }
 0xb50   :  { %v1378_v5 = vmul.f32 %v5371_v29, %v8411_v48 }
 0xb51   :  { %v3358_v36 = vmul.f32 0.5, %v3356_v44  ;;  %v3359_v0 = vadd.f32 1e-05, %v3357_v4  ;;  %v4080_v31 = vrot.slane %v4079_v59, 1  ;;  %v4086_v26 = vadd.f32 %v4085_v46, %v4084_v34  ;;  %v5469_v44 = vld [vmem:[%s5799_s19] sm:$0xff] }
 0xb52   :  { %v4363_v22 = vcombine.low %v1378_v5, %v1379_v40  ;;  %v235_v34 = vmul.f32 0.99, %v233_v3  ;;  %v236_v4 = vmul.f32 0.01, %v5469_v44 }
 0xb53   :  { %v3360_v9 = vadd.f32 1e-05, %v3358_v36  ;;  %5372 = vrsqrt.f32 %v3359_v0  ;;  %v4081_v53 = vadd.f32 %v4080_v31, %v4079_v59  ;;  %v4087_v13 = vrot.slane %v4086_v26, 1  ;;  %v5470_v59 = vld [vmem:[%s5799_s19 + $0x8] sm:$0xff]  ;;  %s8792_s19 = sld [smem:[#allocation28_spill]] }
 0xb54   :  { %v4371_v43 = vrot.slane %v4363_v22, %v6780_v21  ;;  %v237_v46 = vmul.f32 0.01, %v5470_v59  ;;  %v5472_v59 = vld [vmem:[%s5794_s14] sm:$0x1]  ;;  %s8795_s14 = sld [smem:[#allocation30_spill]] }
 0xb55   :  { %5374 = vrsqrt.f32 %v3360_v9  ;;  %v4088_v37 = vadd.f32 %v4087_v13, %v4086_v26  ;;  %v4089_v38 = vmul.f32 0.5, %v4081_v53 }
 0xb56   :  { %v239_v0 = vadd.f32 %v237_v46, %v235_v34  ;;  %v5471_v34 = vld [vmem:[%s5789_s8] sm:$0x1]  ;;  %v230_v46 = vmul.f32 0.01, %v5472_v59  ;;  %s8794_s8 = sld [smem:[#allocation34_spill]] }
 0xb57   :  { %v4090_v47 = vmul.f32 0.5, %v4088_v37  ;;  %v4091_v49 = vadd.f32 1e-05, %v4089_v38  ;;  %v226_v44 = vmul.f32 0.01, %v5471_v34 }
 0xb58   :  { %267 = vst.msk [vmem:[#allocation13 + $0x8] sm:$0xff] %vm265_vm14, %v239_v0 }
 0xb59   :  { %v4092_v32 = vadd.f32 1e-05, %v4090_v47  ;;  %5376 = vrsqrt.f32 %v4091_v49 }
 0xb5b   :  { %5378 = vrsqrt.f32 %v4092_v32 }
 0xb5d   :  { %v5373_v27 = vpop.eup %5372 }
 0xb5e   :  { %v3363_v2 = vmul.f32 %v5373_v27, %v8425_v12 }
 0xb5f   :  { %v5375_v62 = vpop.eup %5374 }
 0xb60   :  { %v3364_v25 = vmul.f32 %v5375_v62, %v8427_v19 }
 0xb62   :  { %v4364_v7 = vcombine.low %v3363_v2, %v3364_v25 }
 0xb63   :  { %v5377_v63 = vpop.eup %5376 }
 0xb64   :  { %v4378_v60 = vrot.slane %v4364_v7, %v6780_v21  ;;  %v4095_v48 = vmul.f32 %v5377_v63, %v8435_v10 }
 0xb65   :  { %v5379_v12 = vpop.eup %5378 }
 0xb66   :  { %v4096_v19 = vmul.f32 %v5379_v12, %v8437_v16  ;;  %v4103_v30 = vmul.f32 %v4101_v50, %v4095_v48  ;;  %v8465_v8 = vcombine.low %v4371_v43, %v4378_v60  ;;  %v232_v16 = vld [vmem:[%s8790_s25] sm:$0xff] }
 0xb67   :  { %v234_v20 = vmul.f32 0.99, %v232_v16  ;;  %v228_v16 = vld [vmem:[%s8792_s19] sm:$0x1] }
 0xb68   :  { %v4104_v56 = vmul.f32 %v4101_v50, %v4096_v19  ;;  %v4111_v57 = vadd.f32 %v4109_v58, %v4103_v30 }
 0xb69   :  { %v238_v36 = vadd.f32 %v236_v4, %v234_v20  ;;  %v229_v4 = vmul.f32 0.99, %v228_v16 }
 0xb6a   :  { %v4112_v33 = vadd.f32 %v4109_v58, %v4104_v56  ;;  %v4113_v17 = vmax.f32 %v4111_v57, 0.0 }
 0xb6b   :  { %266 = vst.msk [vmem:[#allocation13] sm:$0xff] %vm265_vm14, %v238_v36  ;;  %v4254_v31 = vpack.c.bf16 %v239_v0, %v238_v36  ;;  %v8489_v0 = vadd.f32 %v230_v46, %v229_v4 }
 0xb6c   :  { %v4114_v6 = vmax.f32 %v4112_v33, 0.0 }
 0xb6d   :  { %264 = vst.msk [vmem:[#allocation12] sm:$0x1] %vm258_vm8, %v8489_v0 }
 0xb6e   :  { %v4117_v1 = vcombine.low %v4113_v17, %v4114_v6 }
 0xb70   :  { %v4124_v10 = vrot.slane %v4117_v1, %v6780_v21  ;;  %v224_v1 = vld [vmem:[%s8791_s29] sm:$0x1] }
 0xb71   :  { %v225_v20 = vmul.f32 0.99, %v224_v1 }
 0xb72   :  { %v4126_v11 = vpack.c.bf16 %v4124_v10, %v4124_v10 }
 0xb73   :  { %v8487_v36 = vadd.f32 %v226_v44, %v225_v20 }
 0xb74   :  { %5184 = vmatmul.mubr.msk.bf16.vlgmr.msra.gmra.mrb[52].mxu0 %vm254_vm11, %v4126_v11 }
 0xb75   :  { %5189 = vmatprep.mubr.msk.bf16.mxu0 %vm5728_vm4, %v8750_v45  ;;  %5188 = vmatpush3.bf16.msra.mxu0 %v4254_v31  ;;  %v4228_v31 = vrot.slane %v8487_v36, %v8775_v52  ;;  %263 = vst.msk [vmem:[#allocation10] sm:$0x1] %vm258_vm8, %v8487_v36 }
 0xb76   :  { %5193 = vmatprep.subr.bf16.mxu0 %v8750_v45 }
 0xc47   :  { %v4165_v26 = vpop.f32.mrb[52].mxu0 }
 0xc48   :  { %v4178_v9 = vrot.slane %v4165_v26, %v6780_v21  ;;  %v5185_v53 = vpop.f32.mrb[53].mxu0 }
 0xc49   :  { %v4168_v13 = vpop.f32.mrb[54].mxu0  ;;  %v4236_v53 = vrot.slane %v8489_v0, %v8775_v52 }
 0xc4a   :  { %v4179_v37 = vcombine.high %v4178_v9, %v4178_v9  ;;  %v4182_v38 = vsel %vm1073_vm9, %v4178_v9, 0.0  ;;  %v5186_v24 = vpop.f32.mrb[55].mxu0 }
 0xc4b   :  { %v4183_v47 = vrot.slane %v4182_v38, 4 }
 0xc4c   :  { %v4189_v49 = vsel %vm1073_vm9, %v4179_v37, 0.0 }
 0xc4d   :  { %v4184_v18 = vadd.f32 %v4183_v47, %v4182_v38  ;;  %v4190_v54 = vrot.slane %v4189_v49, 4 }
 0xc4f   :  { %v4185_v32 = vrot.slane %v4184_v18, 2  ;;  %v4191_v29 = vadd.f32 %v4190_v54, %v4189_v49 }
 0xc51   :  { %v4186_v55 = vadd.f32 %v4185_v32, %v4184_v18  ;;  %v4192_v14 = vrot.slane %v4191_v29, 2 }
 0xc53   :  { %v4187_v23 = vrot.slane %v4186_v55, 1  ;;  %v4193_v40 = vadd.f32 %v4192_v14, %v4191_v29  ;;  %v270_v29 = vld [vmem:[%s8793_s24] sm:$0xff] }
 0xc55   :  { %v4188_v39 = vadd.f32 %v4187_v23, %v4186_v55  ;;  %v4194_v51 = vrot.slane %v4193_v40, 1  ;;  %v271_v55 = vld [vmem:[%s8793_s24 + $0x8] sm:$0xff] }
 0xc56   :  { %v4382_v23 = vpack.c.bf16 %v271_v55, %v270_v29 }
 0xc57   :  { %v4195_v15 = vadd.f32 %v4194_v51, %v4193_v40  ;;  %v4196_v27 = vmul.f32 0.5, %v4188_v39  ;;  %v272_v39 = vld [vmem:[%s8793_s24 + $0x10] sm:$0xff]  ;;  %v273_v51 = vld [vmem:[%s8793_s24 + $0x18] sm:$0xff] }
 0xc59   :  { %v4197_v5 = vmul.f32 0.5, %v4195_v15  ;;  %v4198_v62 = vsub.f32 %v4178_v9, %v4196_v27  ;;  %v4383_v15 = vpack.c.bf16 %v273_v51, %v272_v39  ;;  %v4381_v27 = vpack.c.bf16 %v8465_v8, %v8465_v8 }
 0xc5b   :  { %v4199_v22 = vsub.f32 %v4179_v37, %v4197_v5  ;;  %v4200_v2 = vmul.f32 %v4198_v62, %v4198_v62  ;;  %v276_v5 = vld [vmem:[%s8794_s8] sm:$0xff] }
 0xc5d   :  { %v4201_v25 = vmul.f32 %v4199_v22, %v4199_v22  ;;  %v4202_v7 = vsel %vm1073_vm9, %v4200_v2, 0.0  ;;  %v240_v2 = vld [vmem:[%s8795_s14] sm:$0x1] }
 0xc5e   :  { %v4203_v50 = vrot.slane %v4202_v7, 4 }
 0xc5f   :  { %v4209_v63 = vsel %vm1073_vm9, %v4201_v25, 0.0  ;;  %v241_v25 = vmul.f32 0.99, %v240_v2 }
 0xc60   :  { %v4204_v43 = vadd.f32 %v4203_v50, %v4202_v7  ;;  %v4210_v60 = vrot.slane %v4209_v63, 4  ;;  %v242_v7 = vmul.f32 0.01, %v8403_v28 }
 0xc62   :  { %v4205_v48 = vrot.slane %v4204_v43, 2  ;;  %v4211_v58 = vadd.f32 %v4210_v60, %v4209_v63  ;;  %v8514_v50 = vadd.f32 %v242_v7, %v241_v25 }
 0xc64   :  { %v4206_v12 = vadd.f32 %v4205_v48, %v4204_v43  ;;  %v4212_v19 = vrot.slane %v4211_v58, 2  ;;  %v4313_v8 = vrot.slane %v8514_v50, %v8775_v52 }
 0xc66   :  { %v4207_v30 = vrot.slane %v4206_v12, 1  ;;  %v4213_v56 = vadd.f32 %v4212_v19, %v4211_v58 }
 0xc68   :  { %v4208_v57 = vadd.f32 %v4207_v30, %v4206_v12  ;;  %v4214_v33 = vrot.slane %v4213_v56, 1 }
 0xc6a   :  { %v4215_v17 = vadd.f32 %v4214_v33, %v4213_v56  ;;  %v4216_v6 = vmul.f32 0.5, %v4208_v57 }
 0xc6c   :  { %v4217_v10 = vmul.f32 0.5, %v4215_v17  ;;  %v4218_v11 = vadd.f32 1e-05, %v4216_v6 }
 0xc6e   :  { %v4219_v3 = vadd.f32 1e-05, %v4217_v10  ;;  %5380 = vrsqrt.f32 %v4218_v11 }
 0xc70   :  { %5382 = vrsqrt.f32 %v4219_v3 }
 0xc78   :  { %v5381_v26 = vpop.eup %5380 }
 0xc79   :  { %v4222_v9 = vmul.f32 %v5381_v26, %v4198_v62  ;;  %v277_v62 = vld [vmem:[%s8794_s8 + $0x8] sm:$0xff] }
 0xc7a   :  { %v5383_v13 = vpop.eup %5382 }
 0xc7b   :  { %v4223_v37 = vmul.f32 %v5383_v13, %v4199_v22  ;;  %v4230_v38 = vmul.f32 %v4228_v31, %v4222_v9  ;;  %v4580_v22 = vpack.c.bf16 %v277_v62, %v276_v5 }
 0xc7d   :  { %v4231_v24 = vmul.f32 %v4228_v31, %v4223_v37  ;;  %v4238_v47 = vadd.f32 %v4236_v53, %v4230_v38 }
 0xc7f   :  { %v4239_v49 = vadd.f32 %v4236_v53, %v4231_v24  ;;  %v4240_v18 = vmax.f32 %v4238_v47, 0.0 }
 0xc81   :  { %v4241_v54 = vmax.f32 %v4239_v49, 0.0 }
 0xc83   :  { %v4244_v32 = vcombine.low %v4240_v18, %v4241_v54 }
 0xc85   :  { %v4251_v14 = vrot.slane %v4244_v32, %v6780_v21 }
 0xc87   :  { %v4253_v40 = vpack.c.bf16 %v4251_v14, %v4251_v14 }
 0xc89   :  { %5190 = vmatmul.mubr.msk.bf16.vlgmr.msra.gmra.mrb[56].mxu0 %vm254_vm11, %v4253_v40 }
 0xc8a   :  { %5194 = vmatpush3.bf16.msra.mxu0 %v4382_v23  ;;  %5197 = vmatprep.mubr.msk.bf16.mxu0 %vm5728_vm4, %v8750_v45 }
 0xc8b   :  { %5195 = vmatprep.subr.bf16.mxu0 %v8750_v45 }
 0xc8e   :  { %5196 = vmatpush3.bf16.msra.mxu0 %v4383_v15 }
 0xc8f   :  { %5201 = vmatprep.subr.bf16.mxu0 %v8750_v45 }
 0xc91   :  { %5198 = vmatmul.mubr.msk.bf16.vlgmr.msra.gmra.mrb[60].mxu0 %vm265_vm14, %v4381_v27 }
 0xc92   :  { %5203 = vmatprep.mubr.msk.bf16.mxu0 %vm5728_vm4, %v8750_v45  ;;  %5202 = vmatpush3.bf16.msra.mxu0 %v4580_v22  ;;  %vm251_vm4 = vcmask 188416  }
 0xc93   :  { %253 = vst.msk [vmem:[#allocation4] sm:$0x1] %vm251_vm4, %v8077_v42  ;;  %252 = vst.msk [vmem:[#allocation2] sm:$0x1] %vm251_vm4, %v8073_v61 }
 0xd5c   :  { %v4292_v63 = vpop.f32.mrb[56].mxu0 }
 0xd5d   :  { %v4305_v43 = vrot.slane %v4292_v63, %v6780_v21  ;;  %v5191_v60 = vpop.f32.mrb[57].mxu0 }
 0xd5e   :  { %v4295_v48 = vpop.f32.mrb[58].mxu0 }
 0xd5f   :  { %v4306_v58 = vcombine.high %v4305_v43, %v4305_v43  ;;  %v4315_v45 = vadd.f32 %v4313_v8, %v4305_v43  ;;  %v5192_v12 = vpop.f32.mrb[59].mxu0 }
 0xd61   :  { %v4316_v19 = vadd.f32 %v4313_v8, %v4306_v58  ;;  %v4317_v30 = vsel %vm1337_vm2, %v4315_v45, 0.0 }
 0xd62   :  { %v4318_v56 = vrot.slane %v4317_v30, 4 }
 0xd63   :  { %v4324_v57 = vsel %vm1337_vm2, %v4316_v19, 0.0 }
 0xd64   :  { %v4319_v28 = vadd.f32 %v4318_v56, %v4317_v30  ;;  %v4325_v33 = vrot.slane %v4324_v57, 4  ;;  %v4421_v17 = vpop.f32.mrb[60].mxu0 }
 0xd65   :  { %v4428_v6 = vcombine.high %v4421_v17, %v4421_v17  ;;  %v4435_v52 = vrot.slane %v4421_v17, %v6780_v21  ;;  %v5199_v1 = vpop.f32.mrb[61].mxu0 }
 0xd66   :  { %v4320_v10 = vrot.slane %v4319_v28, 2  ;;  %v4326_v11 = vadd.f32 %v4325_v33, %v4324_v57  ;;  %v4424_v16 = vpop.f32.mrb[62].mxu0 }
 0xd67   :  { %v4442_v3 = vrot.slane %v4428_v6, %v6780_v21  ;;  %v4443_v20 = vcombine.high %v4435_v52, %v4435_v52  ;;  %v4449_v34 = vsel %vm1073_vm9, %v4435_v52, 0.0  ;;  %v5200_v44 = vpop.f32.mrb[63].mxu0 }
 0xd68   :  { %v4321_v4 = vadd.f32 %v4320_v10, %v4319_v28  ;;  %v4327_v59 = vrot.slane %v4326_v11, 2  ;;  %v4450_v46 = vrot.slane %v4449_v34, 4 }
 0xd69   :  { %v4444_v31 = vcombine.high %v4442_v3, %v4442_v3  ;;  %v4456_v26 = vsel %vm1073_vm9, %v4443_v20, 0.0  ;;  %v4463_v9 = vsel %vm1073_vm9, %v4442_v3, 0.0 }
 0xd6a   :  { %v4322_v53 = vrot.slane %v4321_v4, 1  ;;  %v4328_v13 = vadd.f32 %v4327_v59, %v4326_v11  ;;  %v4451_v37 = vadd.f32 %v4450_v46, %v4449_v34  ;;  %v4457_v38 = vrot.slane %v4456_v26, 4 }
 0xd6b   :  { %v4464_v24 = vrot.slane %v4463_v9, 4  ;;  %v4470_v47 = vsel %vm1073_vm9, %v4444_v31, 0.0 }
 0xd6c   :  { %v4323_v49 = vadd.f32 %v4322_v53, %v4321_v4  ;;  %v4329_v18 = vrot.slane %v4328_v13, 1  ;;  %v4452_v54 = vrot.slane %v4451_v37, 2  ;;  %v4458_v32 = vadd.f32 %v4457_v38, %v4456_v26 }
 0xd6d   :  { %v4465_v29 = vadd.f32 %v4464_v24, %v4463_v9  ;;  %v4471_v55 = vrot.slane %v4470_v47, 4 }
 0xd6e   :  { %v4330_v14 = vadd.f32 %v4329_v18, %v4328_v13  ;;  %v4331_v23 = vmul.f32 0.5, %v4323_v49  ;;  %v4453_v40 = vadd.f32 %v4452_v54, %v4451_v37  ;;  %v4459_v39 = vrot.slane %v4458_v32, 2 }
 0xd6f   :  { %v4466_v51 = vrot.slane %v4465_v29, 2  ;;  %v4472_v15 = vadd.f32 %v4471_v55, %v4470_v47 }
 0xd70   :  { %v4332_v27 = vmul.f32 0.5, %v4330_v14  ;;  %v8527_v5 = vsub.f32 %v4315_v45, %v4331_v23  ;;  %v4454_v62 = vrot.slane %v4453_v40, 1  ;;  %v4460_v22 = vadd.f32 %v4459_v39, %v4458_v32 }
 0xd71   :  { %v4467_v2 = vadd.f32 %v4466_v51, %v4465_v29  ;;  %v4473_v25 = vrot.slane %v4472_v15, 2 }
 0xd72   :  { %v8529_v7 = vsub.f32 %v4316_v19, %v4332_v27  ;;  %v4335_v8 = vmul.f32 %v8527_v5, %v8527_v5  ;;  %v4455_v63 = vadd.f32 %v4454_v62, %v4453_v40  ;;  %v4461_v43 = vrot.slane %v4460_v22, 1 }
 0xd73   :  { %v4468_v60 = vrot.slane %v4467_v2, 1  ;;  %v4474_v48 = vadd.f32 %v4473_v25, %v4472_v15 }
 0xd74   :  { %v4336_v58 = vmul.f32 %v8529_v7, %v8529_v7  ;;  %v4337_v12 = vsel %vm1337_vm2, %v4335_v8, 0.0  ;;  %v4462_v45 = vadd.f32 %v4461_v43, %v4460_v22  ;;  %v4477_v30 = vmul.f32 0.5, %v4455_v63 }
 0xd75   :  { %v4338_v56 = vrot.slane %v4337_v12, 4  ;;  %v4469_v57 = vadd.f32 %v4468_v60, %v4467_v2  ;;  %v4475_v28 = vrot.slane %v4474_v48, 1 }
 0xd76   :  { %v4344_v19 = vsel %vm1337_vm2, %v4336_v58, 0.0  ;;  %v4478_v33 = vmul.f32 0.5, %v4462_v45  ;;  %v8537_v17 = vsub.f32 %v4435_v52, %v4477_v30 }
 0xd77   :  { %v4339_v6 = vadd.f32 %v4338_v56, %v4337_v12  ;;  %v4345_v1 = vrot.slane %v4344_v19, 4  ;;  %v4476_v10 = vadd.f32 %v4475_v28, %v4474_v48  ;;  %v4479_v11 = vmul.f32 0.5, %v4469_v57 }
 0xd78   :  { %v8539_v16 = vsub.f32 %v4443_v20, %v4478_v33  ;;  %v4485_v34 = vmul.f32 %v8537_v17, %v8537_v17 }
 0xd79   :  { %v4340_v44 = vrot.slane %v4339_v6, 2  ;;  %v4346_v4 = vadd.f32 %v4345_v1, %v4344_v19  ;;  %v4480_v59 = vmul.f32 0.5, %v4476_v10  ;;  %v8543_v46 = vsub.f32 %v4442_v3, %v4479_v11 }
 0xd7a   :  { %v4486_v26 = vmul.f32 %v8539_v16, %v8539_v16  ;;  %v4489_v52 = vsel %vm1073_vm9, %v4485_v34, 0.0 }
 0xd7b   :  { %v4341_v9 = vadd.f32 %v4340_v44, %v4339_v6  ;;  %v4347_v53 = vrot.slane %v4346_v4, 2  ;;  %v8548_v13 = vsub.f32 %v4444_v31, %v4480_v59  ;;  %v4487_v20 = vmul.f32 %v8543_v46, %v8543_v46 }
 0xd7c   :  { %v4490_v37 = vrot.slane %v4489_v52, 4  ;;  %v4496_v38 = vsel %vm1073_vm9, %v4486_v26, 0.0 }
 0xd7d   :  { %v4342_v24 = vrot.slane %v4341_v9, 1  ;;  %v4348_v47 = vadd.f32 %v4347_v53, %v4346_v4  ;;  %v4488_v3 = vmul.f32 %v8548_v13, %v8548_v13  ;;  %v4497_v49 = vrot.slane %v4496_v38, 4 }
 0xd7e   :  { %v4491_v18 = vadd.f32 %v4490_v37, %v4489_v52  ;;  %v4503_v54 = vsel %vm1073_vm9, %v4487_v20, 0.0 }
 0xd7f   :  { %v4343_v32 = vadd.f32 %v4342_v24, %v4341_v9  ;;  %v4349_v29 = vrot.slane %v4348_v47, 1  ;;  %v4498_v55 = vadd.f32 %v4497_v49, %v4496_v38  ;;  %v4504_v31 = vrot.slane %v4503_v54, 4  ;;  %v4932_v24 = vld [vmem:[%s8796_s30] ss:$0 sm:$0xff] }
 0xd80   :  { %v4492_v14 = vrot.slane %v4491_v18, 2  ;;  %v4510_v23 = vsel %vm1073_vm9, %v4488_v3, 0.0  ;;  %vm268_vm9 = vcmask 253952  }
 0xd81   :  { %v4350_v40 = vadd.f32 %v4349_v29, %v4348_v47  ;;  %v4351_v39 = vmul.f32 0.5, %v4343_v32  ;;  %v4499_v51 = vrot.slane %v4498_v55, 2  ;;  %v4505_v15 = vadd.f32 %v4504_v31, %v4503_v54  ;;  %v4933_v32 = vld [vmem:[%s8798_s28] ss:$0 sm:$0xff] }
 0xd82   :  { %v4493_v27 = vadd.f32 %v4492_v14, %v4491_v18  ;;  %v4511_v62 = vrot.slane %v4510_v23, 4 }
 0xd83   :  { %v4352_v22 = vmul.f32 0.5, %v4350_v40  ;;  %v4353_v2 = vadd.f32 1e-05, %v4351_v39  ;;  %v4500_v25 = vadd.f32 %v4499_v51, %v4498_v55  ;;  %v4506_v8 = vrot.slane %v4505_v15, 2 }
 0xd84   :  { %v4494_v63 = vrot.slane %v4493_v27, 1  ;;  %v4512_v43 = vadd.f32 %v4511_v62, %v4510_v23 }
 0xd85   :  { %v4354_v60 = vadd.f32 1e-05, %v4352_v22  ;;  %5384 = vrsqrt.f32 %v4353_v2  ;;  %v4501_v48 = vrot.slane %v4500_v25, 1  ;;  %v4507_v58 = vadd.f32 %v4506_v8, %v4505_v15 }
 0xd86   :  { %v4495_v12 = vadd.f32 %v4494_v63, %v4493_v27  ;;  %v4513_v45 = vrot.slane %v4512_v43, 2 }
 0xd87   :  { %5386 = vrsqrt.f32 %v4354_v60  ;;  %v4502_v30 = vadd.f32 %v4501_v48, %v4500_v25  ;;  %v4508_v56 = vrot.slane %v4507_v58, 1 }
 0xd88   :  { %v4514_v57 = vadd.f32 %v4513_v45, %v4512_v43  ;;  %v4517_v28 = vmul.f32 0.5, %v4495_v12 }
 0xd89   :  { %v4509_v19 = vadd.f32 %v4508_v56, %v4507_v58  ;;  %v4518_v33 = vmul.f32 0.5, %v4502_v30 }
 0xd8a   :  { %v4515_v6 = vrot.slane %v4514_v57, 1  ;;  %v4521_v1 = vadd.f32 1e-05, %v4517_v28 }
 0xd8b   :  { %v4519_v10 = vmul.f32 0.5, %v4509_v19  ;;  %v4522_v11 = vadd.f32 1e-05, %v4518_v33 }
 0xd8c   :  { %v4516_v34 = vadd.f32 %v4515_v6, %v4514_v57  ;;  %5388 = vrsqrt.f32 %v4521_v1 }
 0xd8d   :  { %v4523_v44 = vadd.f32 1e-05, %v4519_v10  ;;  %5390 = vrsqrt.f32 %v4522_v11 }
 0xd8e   :  { %v4520_v4 = vmul.f32 0.5, %v4516_v34 }
 0xd8f   :  { %v5385_v59 = vpop.eup %5384  ;;  %5392 = vrsqrt.f32 %v4523_v44 }
 0xd90   :  { %v4524_v26 = vadd.f32 1e-05, %v4520_v4  ;;  %v4357_v9 = vmul.f32 %v5385_v59, %v8527_v5 }
 0xd91   :  { %v5387_v52 = vpop.eup %5386 }
 0xd92   :  { %v4358_v53 = vmul.f32 %v5387_v52, %v8529_v7  ;;  %5394 = vrsqrt.f32 %v4524_v26 }
 0xd94   :  { %v4681_v20 = vcombine.low %v4357_v9, %v4358_v53 }
 0xd96   :  { %v5389_v37 = vpop.eup %5388  ;;  %v4688_v38 = vrot.slane %v4681_v20, %v6780_v21 }
 0xd97   :  { %v5391_v47 = vpop.eup %5390  ;;  %v4529_v3 = vmul.f32 %v5389_v37, %v8537_v17 }
 0xd98   :  { %4691 = vst.msk [vmem:[%s8797_s6] sm:$0xf] %vm4690_vm3, %v4688_v38  ;;  %v4530_v49 = vmul.f32 %v5391_v47, %v8539_v16 }
 0xd99   :  { %v5393_v18 = vpop.eup %5392  ;;  %v4539_v54 = vmul.f32 %v4932_v24, %v4529_v3 }
 0xd9a   :  { %v4531_v5 = vmul.f32 %v5393_v18, %v8543_v46  ;;  %v4540_v29 = vmul.f32 %v4932_v24, %v4530_v49 }
 0xd9b   :  { %v4549_v23 = vadd.f32 %v4933_v32, %v4539_v54 }
 0xd9c   :  { %v5395_v7 = vpop.eup %5394  ;;  %v4541_v55 = vmul.f32 %v4932_v24, %v4531_v5  ;;  %v4550_v31 = vadd.f32 %v4933_v32, %v4540_v29 }
 0xd9d   :  { %v4532_v14 = vmul.f32 %v5395_v7, %v8548_v13  ;;  %v4553_v17 = vmax.f32 %v4549_v23, 0.0 }
 0xd9e   :  { %v4551_v39 = vadd.f32 %v4933_v32, %v4541_v55  ;;  %v4554_v51 = vmax.f32 %v4550_v31, 0.0 }
 0xd9f   :  { %v4542_v40 = vmul.f32 %v4932_v24, %v4532_v14 }
 0xda0   :  { %v4555_v27 = vmax.f32 %v4551_v39, 0.0  ;;  %v4561_v16 = vcombine.low %v4553_v17, %v4554_v51 }
 0xda1   :  { %v4552_v15 = vadd.f32 %v4933_v32, %v4542_v40 }
 0xda2   :  { %v4569_v2 = vrot.slane %v4561_v16, %v6780_v21 }
 0xda3   :  { %v4556_v62 = vmax.f32 %v4552_v15, 0.0 }
 0xda5   :  { %v4562_v22 = vcombine.low %v4555_v27, %v4556_v62 }
 0xda7   :  { %v4576_v46 = vrot.slane %v4562_v22, %v6780_v21 }
 0xda9   :  { %v4577_v25 = vcombine.low %v4569_v2, %v4576_v46 }
 0xdab   :  { %v4579_v8 = vpack.c.bf16 %v4577_v25, %v4577_v25 }
 0xdad   :  { %5204 = vmatmul.mubr.msk.bf16.vlgmr.msra.gmra.mrb[64].mxu0 %vm254_vm11, %v4579_v8 }
 0xdae   :  { %5490 = shalt.err (!%p5487_p4)
}
 0xdaf   :  { %s8799_s16 = sld [smem:[#allocation39_spill]] }
 0xdb5   :  { %s5491_s18 = scalar_lea.hbm %s8799_s16, 16 }
 0xdb6   :  { %p5492_p5 = scmp.ne.s32.totalorder %s8799_s16, %s5491_s18  ;;  %p5495_p6 = scmp.lt.u32.totalorder %s5491_s18, %s8799_s16 }
 0xdb8   :  { %p5497_p7 = pnand %p5495_p6, %p5492_p5 }
 0xdba   :  { %5500 = shalt.err (!%p5497_p7)
}
 0xdbb   :  { %4717 = dma.vmem_to_hbm [thread:$0]  %s4715_s2, 16, %s8799_s16, [#allocation5]   ;;  %269 = vst.msk [vmem:[#allocation15] sm:$0x1] %vm268_vm9, %v8514_v50 }
 0xdbc   :  { %s5501_s22 = scalar_lea.vmem %s8573_s10, 16  ;;  %s5505_s23 = scalar_lea.vmem %s8573_s10, 32 }
 0xdbd   :  { %p5502_p8 = scmp.ne.s32.totalorder %s8573_s10, %s5501_s22  ;;  %p5506_p9 = scmp.lt.s32.totalorder %s8573_s10, %s8573_s10 }
 0xdbe   :  { %p5507_p10 = scmp.lt.s32.totalorder %s5505_s23, %s5501_s22 }
 0xdc0   :  { %p5508_p11 = por %p5507_p10, %p5506_p9 }
 0xdc2   :  { %p5509_p12 = pnand %p5508_p11, %p5502_p8 }
 0xdc4   :  { %5512 = shalt.err (!%p5509_p12)
}
 0xdc5   :  { %s8800_s26 = sld [smem:[#allocation42_spill]] }
 0xdcb   :  { %s5513_s0 = scalar_lea.hbm %s8800_s26, 16 }
 0xdcc   :  { %p5514_p13 = scmp.ne.s32.totalorder %s8800_s26, %s5513_s0  ;;  %p5517_p0 = scmp.lt.u32.totalorder %s5513_s0, %s8800_s26 }
 0xdce   :  { %p5519_p1 = pnand %p5517_p0, %p5514_p13 }
 0xdd0   :  { %5522 = shalt.err (!%p5519_p1)
}
 0xdd1   :  { %4739 = dma.vmem_to_hbm [thread:$0]  %s8573_s10, 16, %s8800_s26, [#allocation8]  }
 0xdd2   :  { %s5732_s5 = smov [#allocation10]  }
 0xdd3   :  { %s4758_s9 = sshll.u32 %s5732_s5, 4  ;;  %s4759_s9 = int_to_ptr.vmem [resolvable:$true] %s4758_s9 }
 0xdd4   :  { %s5523_s13 = scalar_lea.vmem %s4759_s9, 16  ;;  %s5527_s17 = scalar_lea.vmem %s4759_s9, 32 }
 0xdd5   :  { %p5524_p2 = scmp.ne.s32.totalorder %s4759_s9, %s5523_s13  ;;  %p5528_p3 = scmp.lt.s32.totalorder %s4759_s9, %s4759_s9 }
 0xdd6   :  { %p5529_p4 = scmp.lt.s32.totalorder %s5527_s17, %s5523_s13 }
 0xdd8   :  { %p5530_p5 = por %p5529_p4, %p5528_p3 }
 0xdda   :  { %p5531_p6 = pnand %p5530_p5, %p5524_p2 }
 0xddc   :  { %5534 = shalt.err (!%p5531_p6)
}
 0xddd   :  { %s5535_s21 = scalar_lea.hbm %s5934_s4, 16 }
 0xdde   :  { %p5536_p7 = scmp.ne.s32.totalorder %s5934_s4, %s5535_s21  ;;  %p5539_p8 = scmp.lt.u32.totalorder %s5535_s21, %s5934_s4 }
 0xde0   :  { %p5541_p9 = pnand %p5539_p8, %p5536_p7 }
 0xde2   :  { %5544 = shalt.err (!%p5541_p9)
}
 0xde3   :  { %4761 = dma.vmem_to_hbm [thread:$0]  %s4759_s9, 16, %s5934_s4, [#allocation11]  }
 0xde4   :  { %s5733_s3 = smov [#allocation13]   ;;  %s5734_s29 = smov [#allocation2]  }
 0xde5   :  { %s4777_s25 = sshll.u32 %s5733_s3, 4  ;;  %s4704_s19 = sshll.u32 %s5734_s29, 4  ;;  %s4778_s25 = int_to_ptr.vmem [resolvable:$true] %s4777_s25  ;;  %s4705_s19 = int_to_ptr.vmem [resolvable:$true] %s4704_s19 }
 0xde6   :  { %s5545_s24 = scalar_lea.vmem %s4778_s25, 256  ;;  %p5550_p11 = scmp.lt.s32.totalorder %s4778_s25, %s4778_s25 }
 0xde7   :  { %p5546_p10 = scmp.ne.s32.totalorder %s4778_s25, %s5545_s24  ;;  %p5551_p12 = scmp.lt.s32.totalorder %s5545_s24, %s5545_s24 }
 0xde9   :  { %p5552_p13 = por %p5551_p12, %p5550_p11 }
 0xdeb   :  { %p5553_p0 = pnand %p5552_p13, %p5546_p10 }
 0xded   :  { %5556 = shalt.err (!%p5553_p0)
}
 0xdee   :  { %s5557_s8 = scalar_lea.hbm %s5944_s20, 256 }
 0xdef   :  { %p5558_p1 = scmp.ne.s32.totalorder %s5944_s20, %s5557_s8  ;;  %p5561_p2 = scmp.lt.u32.totalorder %s5557_s8, %s5944_s20 }
 0xdf1   :  { %p5563_p3 = pnand %p5561_p2, %p5558_p1 }
 0xdf3   :  { %5566 = shalt.err (!%p5563_p3)
}
 0xdf4   :  { %s5735_s4 = smov 128   ;;  %s5736_s14 = smov 8  }
 0xdf5   :  { %4783 = dma.vmem_to_hbm [thread:$0]  %s4778_s25, 256, %s5944_s20, [#allocation14], %s5735_s4, %s5735_s4, %s5736_s14  }
 0xdf6   :  { %s5567_s30 = scalar_lea.vmem %s4705_s19, 16  ;;  %s5571_s6 = scalar_lea.vmem %s4705_s19, 32 }
 0xdf7   :  { %p5568_p4 = scmp.ne.s32.totalorder %s4705_s19, %s5567_s30  ;;  %p5572_p5 = scmp.lt.s32.totalorder %s4705_s19, %s4705_s19 }
 0xdf8   :  { %p5573_p6 = scmp.lt.s32.totalorder %s5571_s6, %s5567_s30 }
 0xdfa   :  { %p5574_p7 = por %p5573_p6, %p5572_p5 }
 0xdfc   :  { %p5575_p8 = pnand %p5574_p7, %p5568_p4 }
 0xdfe   :  { %5578 = shalt.err (!%p5575_p8)
}
 0xdff   :  { %s8801_s28 = sld [smem:[#allocation38_spill]] }
 0xe05   :  { %s5579_s1 = scalar_lea.hbm %s8801_s28, 16 }
 0xe06   :  { %p5580_p9 = scmp.ne.s32.totalorder %s8801_s28, %s5579_s1  ;;  %p5583_p10 = scmp.lt.u32.totalorder %s5579_s1, %s8801_s28 }
 0xe08   :  { %p5585_p11 = pnand %p5583_p10, %p5580_p9 }
 0xe0a   :  { %5588 = shalt.err (!%p5585_p11)
}
 0xe0b   :  { %4707 = dma.vmem_to_hbm [thread:$0]  %s4705_s19, 16, %s8801_s28, [#allocation3]  }
 0xe0c   :  { %s5737_s20 = smov [#allocation6]   ;;  %s5738_s7 = smov [#allocation9]  }
 0xe0d   :  { %s4726_s2 = sshll.u32 %s5737_s20, 4  ;;  %s4745_s10 = sshll.u32 %s5738_s7, 4  ;;  %s4727_s2 = int_to_ptr.vmem [resolvable:$true] %s4726_s2  ;;  %s4746_s10 = int_to_ptr.vmem [resolvable:$true] %s4745_s10 }
 0xe0e   :  { %s5589_s11 = scalar_lea.vmem %s4727_s2, 16  ;;  %s5593_s15 = scalar_lea.vmem %s4727_s2, 32 }
 0xe0f   :  { %p5590_p12 = scmp.ne.s32.totalorder %s4727_s2, %s5589_s11  ;;  %p5594_p13 = scmp.lt.s32.totalorder %s4727_s2, %s4727_s2 }
 0xe10   :  { %p5595_p0 = scmp.lt.s32.totalorder %s5593_s15, %s5589_s11 }
 0xe12   :  { %p5596_p1 = por %p5595_p0, %p5594_p13 }
 0xe14   :  { %p5597_p2 = pnand %p5596_p1, %p5590_p12 }
 0xe16   :  { %5600 = shalt.err (!%p5597_p2)
}
 0xe17   :  { %s8802_s16 = sld [smem:[#allocation41_spill]] }
 0xe1d   :  { %s5601_s18 = scalar_lea.hbm %s8802_s16, 16 }
 0xe1e   :  { %p5602_p3 = scmp.ne.s32.totalorder %s8802_s16, %s5601_s18  ;;  %p5605_p4 = scmp.lt.u32.totalorder %s5601_s18, %s8802_s16 }
 0xe20   :  { %p5607_p5 = pnand %p5605_p4, %p5602_p3 }
 0xe22   :  { %5610 = shalt.err (!%p5607_p5)
}
 0xe23   :  { %4729 = dma.vmem_to_hbm [thread:$0]  %s4727_s2, 16, %s8802_s16, [#allocation5]  }
 0xe24   :  { %s5611_s22 = scalar_lea.vmem %s4746_s10, 256  ;;  %p5616_p7 = scmp.lt.s32.totalorder %s4746_s10, %s4746_s10 }
 0xe25   :  { %p5612_p6 = scmp.ne.s32.totalorder %s4746_s10, %s5611_s22  ;;  %p5617_p8 = scmp.lt.s32.totalorder %s5611_s22, %s5611_s22 }
 0xe27   :  { %p5618_p9 = por %p5617_p8, %p5616_p7 }
 0xe29   :  { %p5619_p10 = pnand %p5618_p9, %p5612_p6 }
 0xe2b   :  { %5622 = shalt.err (!%p5619_p10)
}
 0xe2c   :  { %s8803_s23 = sld [smem:[#allocation43_spill]] }
 0xe32   :  { %s5623_s26 = scalar_lea.hbm %s8803_s23, 256 }
 0xe33   :  { %p5624_p11 = scmp.ne.s32.totalorder %s8803_s23, %s5623_s26  ;;  %p5627_p12 = scmp.lt.u32.totalorder %s5623_s26, %s8803_s23 }
 0xe35   :  { %p5629_p13 = pnand %p5627_p12, %p5624_p11 }
 0xe37   :  { %5632 = shalt.err (!%p5629_p13)
}
 0xe38   :  { %4751 = dma.vmem_to_hbm [thread:$0]  %s4746_s10, 256, %s8803_s23, [#allocation8], %s5735_s4, %s5735_s4, %s5736_s14  }
 0xe39   :  { %s5739_s0 = smov [#allocation12]   ;;  %s5740_s9 = smov [#allocation15]  }
 0xe3a   :  { %s4768_s5 = sshll.u32 %s5739_s0, 4  ;;  %s4790_s13 = sshll.u32 %s5740_s9, 4  ;;  %s4769_s5 = int_to_ptr.vmem [resolvable:$true] %s4768_s5  ;;  %s4791_s13 = int_to_ptr.vmem [resolvable:$true] %s4790_s13 }
 0xe3b   :  { %s5633_s17 = scalar_lea.vmem %s4769_s5, 16  ;;  %s5637_s21 = scalar_lea.vmem %s4769_s5, 32 }
 0xe3c   :  { %p5634_p0 = scmp.ne.s32.totalorder %s4769_s5, %s5633_s17  ;;  %p5638_p1 = scmp.lt.s32.totalorder %s4769_s5, %s4769_s5 }
 0xe3d   :  { %p5639_p2 = scmp.lt.s32.totalorder %s5637_s21, %s5633_s17 }
 0xe3f   :  { %p5640_p3 = por %p5639_p2, %p5638_p1 }
 0xe41   :  { %p5641_p4 = pnand %p5640_p3, %p5634_p0 }
 0xe43   :  { %5644 = shalt.err (!%p5641_p4)
}
 0xe44   :  { %s5645_s3 = scalar_lea.hbm %s5939_s12, 16 }
 0xe45   :  { %p5646_p5 = scmp.ne.s32.totalorder %s5939_s12, %s5645_s3  ;;  %p5649_p6 = scmp.lt.u32.totalorder %s5645_s3, %s5939_s12 }
 0xe47   :  { %p5651_p7 = pnand %p5649_p6, %p5646_p5 }
 0xe49   :  { %5654 = shalt.err (!%p5651_p7)
}
 0xe4a   :  { %4771 = dma.vmem_to_hbm [thread:$0]  %s4769_s5, 16, %s5939_s12, [#allocation11]  }
 0xe4b   :  { %s5655_s25 = scalar_lea.vmem %s4791_s13, 16  ;;  %s5659_s29 = scalar_lea.vmem %s4791_s13, 32 }
 0xe4c   :  { %p5656_p8 = scmp.ne.s32.totalorder %s4791_s13, %s5655_s25  ;;  %p5660_p9 = scmp.lt.s32.totalorder %s4791_s13, %s4791_s13 }
 0xe4d   :  { %p5661_p10 = scmp.lt.s32.totalorder %s5659_s29, %s5655_s25 }
 0xe4f   :  { %p5662_p11 = por %p5661_p10, %p5660_p9 }
 0xe51   :  { %p5663_p12 = pnand %p5662_p11, %p5656_p8 }
 0xe53   :  { %5666 = shalt.err (!%p5663_p12)
}
 0xe54   :  { %s5667_s19 = scalar_lea.hbm %s5949_s27, 16 }
 0xe55   :  { %p5668_p13 = scmp.ne.s32.totalorder %s5949_s27, %s5667_s19  ;;  %p5671_p0 = scmp.lt.u32.totalorder %s5667_s19, %s5949_s27 }
 0xe57   :  { %p5673_p1 = pnand %p5671_p0, %p5668_p13 }
 0xe59   :  { %5676 = shalt.err (!%p5673_p1)
}
 0xe5a   :  { %s8804_s24 = sld [smem:[#allocation35_spill]]  ;;  %s8805_s12 = sld [smem:[#allocation36_spill]] }
 0xe5b   :  { %4793 = dma.vmem_to_hbm [thread:$0]  %s4791_s13, 16, %s5949_s27, [#allocation14]  }
 0xe60   :  { %v4935_v36 = vld [vmem:[%s8804_s24] ss:$0 sm:$0xff] }
 0xe80   :  { %v4618_v61 = vpop.f32.mrb[64].mxu0 }
 0xe81   :  { %v4625_v42 = vcombine.high %v4618_v61, %v4618_v61  ;;  %v4632_v41 = vrot.slane %v4618_v61, %v6780_v21  ;;  %v5205_v35 = vpop.f32.mrb[65].mxu0 }
 0xe82   :  { %v4621_v0 = vpop.f32.mrb[66].mxu0 }
 0xe83   :  { %v4639_v50 = vrot.slane %v4625_v42, %v6780_v21  ;;  %v4640_v13 = vcombine.high %v4632_v41, %v4632_v41  ;;  %v5206_v63 = vpop.f32.mrb[67].mxu0  ;;  %v4652_v60 = vadd.f32 %v4935_v36, %v4632_v41 }
 0xe85   :  { %v4641_v43 = vcombine.high %v4639_v50, %v4639_v50  ;;  %v4653_v48 = vadd.f32 %v4935_v36, %v4640_v13  ;;  %v4654_v58 = vadd.f32 %v4935_v36, %v4639_v50 }
 0xe87   :  { %v4655_v12 = vadd.f32 %v4935_v36, %v4641_v43  ;;  %v4660_v45 = vcombine.low %v4652_v60, %v4653_v48 }
 0xe89   :  { %v4661_v30 = vcombine.low %v4654_v58, %v4655_v12  ;;  %v4668_v56 = vrot.slane %v4660_v45, %v6780_v21 }
 0xe8b   :  { %v4675_v57 = vrot.slane %v4661_v30, %v6780_v21 }
 0xe8d   :  { %v4676_v28 = vcombine.low %v4668_v56, %v4675_v57 }
 0xe8f   :  { %4678 = vst [vmem:[%s8805_s12] sm:$0xff] %v4676_v28 }
 0xe90   :  { %5677 = dma.done.wait [#allocation3], 16  }
 0xe91   :  { %5678 = vsyncadd [#allocation3], 4294967280 }
 0xe92   :  { %5679 = dma.done.wait [#allocation5], 32  }
 0xe93   :  { %5680 = vsyncadd [#allocation5], 4294967264 }
 0xe94   :  { %5681 = dma.done.wait [#allocation8], 272  }
 0xe95   :  { %5682 = vsyncadd [#allocation8], 4294967024 }
 0xe96   :  { %5683 = dma.done.wait [#allocation11], 32  }
 0xe97   :  { %5684 = vsyncadd [#allocation11], 4294967264 }
 0xe98   :  { %5685 = dma.done.wait [#allocation14], 272  }
 0xe99   :  { %5686 = vsyncadd [#allocation14], 4294967024 }
 0xe9a   :  { %4829 = vsyncpa [#allocation3], 1 }
 0xe9b   :  { %4830 = vsyncpa [#allocation5], 1 }
 0xe9c   :  { %4831 = vsyncpa [#allocation8], 1 }
 0xe9d   :  { %4832 = vsyncpa [#allocation11], 1 }
 0xe9e   :  { %4833 = vsyncpa [#allocation14], 1 }

</bundles_post_ra>
